<compile_context>
chip_gen: v7x
topology: tpu7x:2x2x1
jax: 0.10.0
libtpu: 0.0.40
codegen_flags: <defaults>
</compile_context>

<pallas_src>
import functools

import numpy as np
import jax
import jax.numpy as jnp
from jax import lax
from jax.experimental import pallas as pl
from jax.experimental.pallas import tpu as pltpu


_INV_SQRT2 = 0.7071067811865476


def _erf_f32(x):
    # f32 rational erf approximation (same form/coefficients as XLA ErfImpl32);
    # used for the exact (erf-based) torch nn.GELU().
    alpha = (0.00022905065861350646, 0.0034082910107109506,
             0.050955695062380861, 0.18520832239976145, 1.128379143519084)
    beta = (-1.1791602954361697e-07, 2.3547966471313185e-05,
            0.0010179625278914885, 0.014070470171167667,
            0.11098505178285362, 0.49746925110067538, 1.0)
    x = jnp.clip(x, -3.832506856900711, 3.832506856900711)
    x2 = x * x
    p = jnp.full_like(x2, alpha[0])
    for c in alpha[1:]:
        p = p * x2 + c
    q = jnp.full_like(x2, beta[0])
    for c in beta[1:]:
        q = q * x2 + c
    return (x * p) * pl.reciprocal(q)     # exact reciprocal


def _gelu_exact(x):
    return 0.5 * x * (1.0 + _erf_f32(x * _INV_SQRT2))


def _layernorm(x, gamma, beta, eps=1e-5):
    mu = jnp.mean(x, axis=-1, keepdims=True)
    xc = x - mu
    var = jnp.mean(xc * xc, axis=-1, keepdims=True)
    return xc * lax.rsqrt(var + eps) * gamma + beta


def _cpe_apply(x, taps, bias, masks, shifts):
    """Decomposed depthwise 3D conv (k=3, pad 1) + residual on flat tokens.

    x:     (M, C) tokens, M = batches * H*W*T, flattened in (b, h, w, t) order.
    taps:  (7, C)  row 0 = summed center tap; rows 1-6 = [h-1, h+1, w-1, w+1, t-1, t+1].
    bias:  (1, C)  sum of the three per-conv biases.
    masks: (M, 6)  f32 {0,1} boundary masks, same column order as taps rows 1-6.
                   (h-masks also stop roll leakage across the fused-batch boundary.)
    shifts: (s_h, s_w, s_t) flat row strides.
    """
    M = x.shape[0]
    s_h, s_w, s_t = shifts
    # pltpu.roll follows jnp.roll semantics: roll(x, s)[n] = x[n - s].  Rows
    # that would wrap are zeroed by the masks, reproducing the conv's zero
    # padding.  Rolls land on the XLU slot; no (M, C) concat copies needed.
    feat = taps[0:1] * x
    feat = feat + masks[:, 0:1] * (taps[1:2] * pltpu.roll(x, s_h, 0))
    feat = feat + masks[:, 1:2] * (taps[2:3] * pltpu.roll(x, M - s_h, 0))
    feat = feat + masks[:, 2:3] * (taps[3:4] * pltpu.roll(x, s_w, 0))
    feat = feat + masks[:, 3:4] * (taps[4:5] * pltpu.roll(x, M - s_w, 0))
    feat = feat + masks[:, 4:5] * (taps[5:6] * pltpu.roll(x, s_t, 0))
    feat = feat + masks[:, 5:6] * (taps[6:7] * pltpu.roll(x, M - s_t, 0))
    return x + feat + bias


def _transformer_block_kernel(
        x_ref, masks_ref,
        cpe1_taps_ref, cpe1_b_ref, ln1_g_ref, ln1_b_ref,
        wqkv_ref, wproj_ref,
        cpe2_taps_ref, cpe2_b_ref, ln2_g_ref, ln2_b_ref,
        w1_ref, b1_ref, w2_ref, b2_ref,
        o_ref, *, W, T, heads, batches, mm_dtype):
    M, C = x_ref.shape                      # M = batches * N (batches fused per step)
    N = M // batches
    d = C // heads
    f32 = jnp.float32
    exact = jnp.dtype(mm_dtype) == jnp.dtype(jnp.float32)   # f32 parity mode

    def mm(a, w):
        # bf16 operands by default (MXU-native on v5e/v6e/v7x), f32 accumulate.
        return jnp.dot(a.astype(mm_dtype), w.astype(mm_dtype),
                       preferred_element_type=f32)

    x = x_ref[...].astype(f32)
    masks = masks_ref[...]                  # precomputed in the wrapper
    shifts = (W * T, T, 1)

    # ---- ConvPosEnc #1 ----
    x = _cpe_apply(x, cpe1_taps_ref[...], cpe1_b_ref[...], masks, shifts)

    # ---- LayerNorm1 + multi-head self-attention + residual ----
    xn = _layernorm(x, ln1_g_ref[...], ln1_b_ref[...])
    # scale = sqrt(dim_head) is folded into the Q columns of wqkv (prepare_params).
    qkv = mm(xn, wqkv_ref[...])                                   # (M, 3C)

    q3 = qkv[:, :C].reshape(batches, N, C)
    k3 = qkv[:, C:2 * C].reshape(batches, N, C)
    v3 = qkv[:, 2 * C:].reshape(batches, N, C)

    # All (batch, head) pairs on a single einsum batch axis: p = h*batches + b.
    # O(heads) big slices/concats instead of O(batches*heads) tiny ones.
    q_all = jnp.concatenate([q3[:, :, h * d:(h + 1) * d] for h in range(heads)], 0)
    k_all = jnp.concatenate([k3[:, :, h * d:(h + 1) * d] for h in range(heads)], 0)
    v_all = jnp.concatenate([v3[:, :, h * d:(h + 1) * d] for h in range(heads)], 0)

    att = jnp.einsum('pnd,pmd->pnm', q_all.astype(mm_dtype), k_all.astype(mm_dtype),
                     preferred_element_type=f32)                  # (P, N, N)
    att = jnp.exp(att - jnp.max(att, axis=-1, keepdims=True))
    denom = jnp.sum(att, axis=-1, keepdims=True)                  # (P, N, 1)
    ctx = jnp.einsum('pnm,pmd->pnd', att.astype(mm_dtype), v_all.astype(mm_dtype),
                     preferred_element_type=f32)                  # (P, N, d)
    # Deferred softmax normalization; exact reciprocal on the f32 parity path.
    ctx = ctx * pl.reciprocal(denom, approx=not exact)
    # TODO(synk): flash-style KV-block tiling (online softmax) once
    # batches*heads*N*N*4 bytes outgrows the VMEM budget (v7x has 64 MiB/TC).

    # ctx[h*batches + b, n] -> columns [h*d:(h+1)*d] of token row b*N + n.
    attn_out = jnp.concatenate(
        [ctx[h * batches:(h + 1) * batches].reshape(M, d) for h in range(heads)],
        axis=-1)                                                  # (M, C)

    x = x + mm(attn_out, wproj_ref[...])

    # ---- ConvPosEnc #2 ----
    x = _cpe_apply(x, cpe2_taps_ref[...], cpe2_b_ref[...], masks, shifts)

    # ---- LayerNorm2 + MLP (Linear -> GELU -> Linear) + residual ----
    xn = _layernorm(x, ln2_g_ref[...], ln2_b_ref[...])
    h1 = mm(xn, w1_ref[...]) + b1_ref[...]
    h1 = _gelu_exact(h1)
    x = x + mm(h1, w2_ref[...]) + b2_ref[...]

    o_ref[...] = x.astype(o_ref.dtype)


def _device_kind():
    try:
        return jax.devices()[0].device_kind.lower()
    except Exception:
        return ""


def _choose_batches_per_step(B, N, C, heads, device_kind):
    """VMEM-budgeted number of batches fused per grid step."""

    def working_set(bb):
        # f32 intermediates resident in VMEM per step: in/out activations
        # (double-buffered), qkv, MLP hidden, attention scores, ctx/attn_out.
        m = bb * N
        return 4 * (4 * m * C + 3 * m * C + 4 * m * C
                    + bb * heads * N * N + 2 * m * C)

    budget = 24 << 20            # ~half of the 48 MiB scoped-VMEM limit below
    if "v7" in device_kind and B > 1:
        # one batch per grid step -> "parallel" axis shards across both TCs
        return 1
    divisors = [d_ for d_ in range(1, B + 1) if B % d_ == 0]
    fitting = [d_ for d_ in divisors if working_set(d_) <= budget] or [1]
    # Smallest bb that fills the MXU M dimension (>=256 rows) while keeping
    # >=2 grid steps so activation DMA pipelines behind compute; otherwise the
    # largest bb that fits the budget (small-problem, overhead-bound regime).
    # TODO(synk): if even bb=1 exceeds the budget (very large H*W*T), the
    # attention needs flash-style KV tiling (see kernel TODO) before it fits.
    for d_ in fitting:
        if d_ * N >= 256 and B // d_ >= 2:
            return d_
    return fitting[-1]


def _cpe_boundary_masks(H, W, T, bb):
    """(bb*N, 6) f32 {0,1} masks: [h>0, h<H-1, w>0, w<W-1, t>0, t<T-1].

    Host-side, shape-only constant; the h-masks also stop roll leakage across
    the fused-batch boundary (batch boundaries coincide with h boundaries).
    """
    idx = np.arange(H * W * T)
    t = idx % T
    w = (idx // T) % W
    h = idx // (W * T)
    m = np.stack([h > 0, h < H - 1, w > 0, w < W - 1, t > 0, t < T - 1],
                 axis=-1).astype(np.float32)
    return jnp.asarray(np.tile(m, (bb, 1)))


def prepare_params(params, C, heads):
    """One-time parameter transform (call once, outside the forward path):
    fold scale = sqrt(dim_head) into the Q columns of wqkv_t (ScaleDotProduct
    does q = q * sqrt(dim_head)) and collapse the three CPE center taps."""
    d = C // heads
    scale = float(d ** 0.5)
    p = dict(params)
    wqkv = p["wqkv_t"]
    p["wqkv_t"] = jnp.concatenate([wqkv[:, :C] * scale, wqkv[:, C:]], axis=-1)
    for name in ("cpe1", "cpe2"):
        w = p.pop(name + "_w")       # (9, C): rows 0-2 along H, 3-5 along W, 6-8 along T
        center = w[1:2] + w[4:5] + w[7:8]
        p[name + "_taps"] = jnp.concatenate(
            [center, w[0:1], w[2:3], w[3:4], w[5:6], w[6:7], w[8:9]], axis=0)
    return p


def transformer_block_forward(x_ncdhw, params, heads, *,
                              mm_dtype=jnp.bfloat16, batches_per_step=None):
    """TransformerBlock (downsample=False) forward.  `params` must come from
    prepare_params().  mm_dtype=jnp.float32 is the exact-parity mode."""
    B, C, H, W, T = x_ncdhw.shape
    N = H * W * T
    assert C % heads == 0

    bb = (batches_per_step if batches_per_step is not None
          else _choose_batches_per_step(B, N, C, heads, _device_kind()))
    if B % bb != 0 or (bb != B and (bb * N) % 8 != 0):
        bb = B                       # block == full array -> no (8,128) constraint
    M = bb * N

    # token-major layout, channels on lanes; batches stacked along rows so the
    # kernel runs QKV/proj/MLP matmuls on a single (bb*N, C) slab.
    x_tok = jnp.transpose(x_ncdhw, (0, 2, 3, 4, 1)).reshape(B * N, C)
    masks = _cpe_boundary_masks(H, W, T, bb)

    p_list = [
        params["cpe1_taps"], params["cpe1_b"], params["ln1_g"], params["ln1_b"],
        params["wqkv_t"], params["wproj_t"],
        params["cpe2_taps"], params["cpe2_b"], params["ln2_g"], params["ln2_b"],
        params["w1_t"], params["b1"], params["w2_t"], params["b2"],
    ]

    kernel = functools.partial(
        _transformer_block_kernel, W=W, T=T, heads=heads, batches=bb,
        mm_dtype=mm_dtype)

    out_tok = pl.pallas_call(
        kernel,
        out_shape=jax.ShapeDtypeStruct((B * N, C), x_tok.dtype),
        grid=(B // bb,),
        in_specs=[pl.BlockSpec((M, C), lambda i: (i, 0)),
                  pl.BlockSpec(masks.shape, lambda i: (0, 0))]
                 + [pl.BlockSpec(a.shape, lambda i: (0, 0)) for a in p_list],
        out_specs=pl.BlockSpec((M, C), lambda i: (i, 0)),
        compiler_params=pltpu.CompilerParams(
            dimension_semantics=("parallel",),
            vmem_limit_bytes=48 * 1024 * 1024),
    )(x_tok, masks, *p_list)
    # TODO(synk): at C < 128 every non-MXU stage runs at C/128 lane occupancy and
    # the output store is masked; pack several tokens per vreg row (lane-dense
    # in/out slabs) if production C stays this small.
    # TODO(synk): on v7x with B == 1 add a second "parallel" grid axis (heads or
    # query-row blocks) so both TensorCores get work.

    return jnp.transpose(out_tok.reshape(B, H, W, T, C), (0, 4, 1, 2, 3))


def init_params(key, C):
    hidden = 4 * C
    ks = jax.random.split(key, 14)

    def nrm(k, shape, s):
        return s * jax.random.normal(k, shape, jnp.float32)

    return {
        # decomposed depthwise conv taps: rows 0-2 along H, 3-5 along W, 6-8 along T
        "cpe1_w": nrm(ks[0], (9, C), 0.2),
        "cpe1_b": nrm(ks[1], (1, C), 0.05),     # sum of the three conv biases
        "cpe2_w": nrm(ks[2], (9, C), 0.2),
        "cpe2_b": nrm(ks[3], (1, C), 0.05),
        "ln1_g": 1.0 + nrm(ks[4], (1, C), 0.05),
        "ln1_b": nrm(ks[5], (1, C), 0.05),
        "ln2_g": 1.0 + nrm(ks[6], (1, C), 0.05),
        "ln2_b": nrm(ks[7], (1, C), 0.05),
        # Linear weights stored pre-transposed: y = x @ W_t  (== x @ W.T in torch)
        "wqkv_t": nrm(ks[8], (C, 3 * C), 0.05),
        "wproj_t": nrm(ks[9], (C, C), 0.05),
        "w1_t": nrm(ks[10], (C, hidden), 0.05),
        "b1": nrm(ks[11], (1, hidden), 0.05),
        "w2_t": nrm(ks[12], (hidden, C), 0.05),
        "b2": nrm(ks[13], (1, C), 0.05),
    }


if __name__ == "__main__":
    key = jax.random.PRNGKey(0)
    kx, kp = jax.random.split(key)

    # TransformerBlock(inp=32, oup=32, image_size=(4,4,4), kernel_size=3,
    #                  heads=4, downsample=False); x is (B, C, H, W, T).
    B, C, H, W, T = 2, 32, 4, 4, 4
    heads = 4

    x = jax.random.normal(kx, (B, C, H, W, T), jnp.float32)
    params = prepare_params(init_params(kp, C), C, heads)   # one-time transform

    # default: bf16 MXU operands, f32 accumulate.  mm_dtype=jnp.float32 gives
    # exact parity with the PyTorch module's numerics.
    out = transformer_block_forward(x, params, heads)
    out = jax.block_until_ready(out)
    assert out.shape == (B, C, H, W, T) and out.dtype == jnp.float32
    assert bool(jnp.isfinite(out).all())

    print("KERNEL_OK")
</pallas_src>

<mosaic_0001>
module attributes {stable_mosaic.version = 11 : i64} {
  func.func @_transformer_block_kernel(%arg0: i32, %arg1: memref<128x32xf32, #tpu.memory_space<vmem>>, %arg2: memref<128x6xf32, #tpu.memory_space<vmem>>, %arg3: memref<7x32xf32, #tpu.memory_space<vmem>>, %arg4: memref<1x32xf32, #tpu.memory_space<vmem>>, %arg5: memref<1x32xf32, #tpu.memory_space<vmem>>, %arg6: memref<1x32xf32, #tpu.memory_space<vmem>>, %arg7: memref<32x96xf32, #tpu.memory_space<vmem>>, %arg8: memref<32x32xf32, #tpu.memory_space<vmem>>, %arg9: memref<7x32xf32, #tpu.memory_space<vmem>>, %arg10: memref<1x32xf32, #tpu.memory_space<vmem>>, %arg11: memref<1x32xf32, #tpu.memory_space<vmem>>, %arg12: memref<1x32xf32, #tpu.memory_space<vmem>>, %arg13: memref<32x128xf32, #tpu.memory_space<vmem>>, %arg14: memref<1x128xf32, #tpu.memory_space<vmem>>, %arg15: memref<128x32xf32, #tpu.memory_space<vmem>>, %arg16: memref<1x32xf32, #tpu.memory_space<vmem>>, %arg17: memref<128x32xf32, #tpu.memory_space<vmem>>) attributes {dimension_semantics = [#tpu.dimension_semantics<parallel>], iteration_bounds = array<i64: 1>, scalar_prefetch = 0 : i64, scratch_operands = 0 : i64, tpu.core_type = #tpu.core_type<tc>, window_params = [{transform_indices = @transform_0, window_bounds = array<i64: 128, 32>}, {pipeline_mode = #tpu.pipeline_mode<synchronous>, transform_indices = @transform_1, window_bounds = array<i64: 128, 6>}, {pipeline_mode = #tpu.pipeline_mode<synchronous>, transform_indices = @transform_2, window_bounds = array<i64: 7, 32>}, {pipeline_mode = #tpu.pipeline_mode<synchronous>, transform_indices = @transform_3, window_bounds = array<i64: 1, 32>}, {pipeline_mode = #tpu.pipeline_mode<synchronous>, transform_indices = @transform_4, window_bounds = array<i64: 1, 32>}, {pipeline_mode = #tpu.pipeline_mode<synchronous>, transform_indices = @transform_5, window_bounds = array<i64: 1, 32>}, {pipeline_mode = #tpu.pipeline_mode<synchronous>, transform_indices = @transform_6, window_bounds = array<i64: 32, 96>}, {pipeline_mode = #tpu.pipeline_mode<synchronous>, transform_indices = @transform_7, window_bounds = array<i64: 32, 32>}, {pipeline_mode = #tpu.pipeline_mode<synchronous>, transform_indices = @transform_8, window_bounds = array<i64: 7, 32>}, {pipeline_mode = #tpu.pipeline_mode<synchronous>, transform_indices = @transform_9, window_bounds = array<i64: 1, 32>}, {pipeline_mode = #tpu.pipeline_mode<synchronous>, transform_indices = @transform_10, window_bounds = array<i64: 1, 32>}, {pipeline_mode = #tpu.pipeline_mode<synchronous>, transform_indices = @transform_11, window_bounds = array<i64: 1, 32>}, {pipeline_mode = #tpu.pipeline_mode<synchronous>, transform_indices = @transform_12, window_bounds = array<i64: 32, 128>}, {pipeline_mode = #tpu.pipeline_mode<synchronous>, transform_indices = @transform_13, window_bounds = array<i64: 1, 128>}, {pipeline_mode = #tpu.pipeline_mode<synchronous>, transform_indices = @transform_14, window_bounds = array<i64: 128, 32>}, {pipeline_mode = #tpu.pipeline_mode<synchronous>, transform_indices = @transform_15, window_bounds = array<i64: 1, 32>}, {transform_indices = @transform_16, window_bounds = array<i64: 128, 32>}]} {
    %c0 = arith.constant 0 : index
    %c0_0 = arith.constant 0 : index
    %0 = vector.load %arg1[%c0, %c0_0] : memref<128x32xf32, #tpu.memory_space<vmem>>, vector<128x32xf32>
    %c0_1 = arith.constant 0 : index
    %c0_2 = arith.constant 0 : index
    %1 = vector.load %arg2[%c0_1, %c0_2] : memref<128x6xf32, #tpu.memory_space<vmem>>, vector<128x6xf32>
    %c0_3 = arith.constant 0 : index
    %c0_4 = arith.constant 0 : index
    %2 = vector.load %arg3[%c0_3, %c0_4] : memref<7x32xf32, #tpu.memory_space<vmem>>, vector<7x32xf32>
    %c0_5 = arith.constant 0 : index
    %c0_6 = arith.constant 0 : index
    %3 = vector.load %arg4[%c0_5, %c0_6] : memref<1x32xf32, #tpu.memory_space<vmem>>, vector<1x32xf32>
    %4 = vector.extract_strided_slice %2 {offsets = [0, 0], sizes = [1, 32], strides = [1, 1]} : vector<7x32xf32> to vector<1x32xf32>
    %5 = vector.broadcast %4 : vector<1x32xf32> to vector<128x32xf32>
    %6 = arith.mulf %5, %0 : vector<128x32xf32>
    %7 = vector.extract_strided_slice %1 {offsets = [0, 0], sizes = [128, 1], strides = [1, 1]} : vector<128x6xf32> to vector<128x1xf32>
    %8 = vector.extract_strided_slice %2 {offsets = [1, 0], sizes = [1, 32], strides = [1, 1]} : vector<7x32xf32> to vector<1x32xf32>
    %c16_i32 = arith.constant 16 : i32
    %9 = tpu.dynamic_rotate %0 by %c16_i32 dim 0 : vector<128x32xf32>, i32 -> vector<128x32xf32>
    %10 = vector.broadcast %8 : vector<1x32xf32> to vector<128x32xf32>
    %11 = arith.mulf %10, %9 : vector<128x32xf32>
    %12 = vector.broadcast %7 : vector<128x1xf32> to vector<128x32xf32>
    %13 = arith.mulf %12, %11 : vector<128x32xf32>
    %14 = arith.addf %6, %13 : vector<128x32xf32>
    %15 = vector.extract_strided_slice %1 {offsets = [0, 1], sizes = [128, 1], strides = [1, 1]} : vector<128x6xf32> to vector<128x1xf32>
    %16 = vector.extract_strided_slice %2 {offsets = [2, 0], sizes = [1, 32], strides = [1, 1]} : vector<7x32xf32> to vector<1x32xf32>
    %c112_i32 = arith.constant 112 : i32
    %17 = tpu.dynamic_rotate %0 by %c112_i32 dim 0 : vector<128x32xf32>, i32 -> vector<128x32xf32>
    %18 = vector.broadcast %16 : vector<1x32xf32> to vector<128x32xf32>
    %19 = arith.mulf %18, %17 : vector<128x32xf32>
    %20 = vector.broadcast %15 : vector<128x1xf32> to vector<128x32xf32>
    %21 = arith.mulf %20, %19 : vector<128x32xf32>
    %22 = arith.addf %14, %21 : vector<128x32xf32>
    %23 = vector.extract_strided_slice %1 {offsets = [0, 2], sizes = [128, 1], strides = [1, 1]} : vector<128x6xf32> to vector<128x1xf32>
    %24 = vector.extract_strided_slice %2 {offsets = [3, 0], sizes = [1, 32], strides = [1, 1]} : vector<7x32xf32> to vector<1x32xf32>
    %c4_i32 = arith.constant 4 : i32
    %25 = tpu.dynamic_rotate %0 by %c4_i32 dim 0 : vector<128x32xf32>, i32 -> vector<128x32xf32>
    %26 = vector.broadcast %24 : vector<1x32xf32> to vector<128x32xf32>
    %27 = arith.mulf %26, %25 : vector<128x32xf32>
    %28 = vector.broadcast %23 : vector<128x1xf32> to vector<128x32xf32>
    %29 = arith.mulf %28, %27 : vector<128x32xf32>
    %30 = arith.addf %22, %29 : vector<128x32xf32>
    %31 = vector.extract_strided_slice %1 {offsets = [0, 3], sizes = [128, 1], strides = [1, 1]} : vector<128x6xf32> to vector<128x1xf32>
    %32 = vector.extract_strided_slice %2 {offsets = [4, 0], sizes = [1, 32], strides = [1, 1]} : vector<7x32xf32> to vector<1x32xf32>
    %c124_i32 = arith.constant 124 : i32
    %33 = tpu.dynamic_rotate %0 by %c124_i32 dim 0 : vector<128x32xf32>, i32 -> vector<128x32xf32>
    %34 = vector.broadcast %32 : vector<1x32xf32> to vector<128x32xf32>
    %35 = arith.mulf %34, %33 : vector<128x32xf32>
    %36 = vector.broadcast %31 : vector<128x1xf32> to vector<128x32xf32>
    %37 = arith.mulf %36, %35 : vector<128x32xf32>
    %38 = arith.addf %30, %37 : vector<128x32xf32>
    %39 = vector.extract_strided_slice %1 {offsets = [0, 4], sizes = [128, 1], strides = [1, 1]} : vector<128x6xf32> to vector<128x1xf32>
    %40 = vector.extract_strided_slice %2 {offsets = [5, 0], sizes = [1, 32], strides = [1, 1]} : vector<7x32xf32> to vector<1x32xf32>
    %c1_i32 = arith.constant 1 : i32
    %41 = tpu.dynamic_rotate %0 by %c1_i32 dim 0 : vector<128x32xf32>, i32 -> vector<128x32xf32>
    %42 = vector.broadcast %40 : vector<1x32xf32> to vector<128x32xf32>
    %43 = arith.mulf %42, %41 : vector<128x32xf32>
    %44 = vector.broadcast %39 : vector<128x1xf32> to vector<128x32xf32>
    %45 = arith.mulf %44, %43 : vector<128x32xf32>
    %46 = arith.addf %38, %45 : vector<128x32xf32>
    %47 = vector.extract_strided_slice %1 {offsets = [0, 5], sizes = [128, 1], strides = [1, 1]} : vector<128x6xf32> to vector<128x1xf32>
    %48 = vector.extract_strided_slice %2 {offsets = [6, 0], sizes = [1, 32], strides = [1, 1]} : vector<7x32xf32> to vector<1x32xf32>
    %c127_i32 = arith.constant 127 : i32
    %49 = tpu.dynamic_rotate %0 by %c127_i32 dim 0 : vector<128x32xf32>, i32 -> vector<128x32xf32>
    %50 = vector.broadcast %48 : vector<1x32xf32> to vector<128x32xf32>
    %51 = arith.mulf %50, %49 : vector<128x32xf32>
    %52 = vector.broadcast %47 : vector<128x1xf32> to vector<128x32xf32>
    %53 = arith.mulf %52, %51 : vector<128x32xf32>
    %54 = arith.addf %46, %53 : vector<128x32xf32>
    %55 = arith.addf %0, %54 : vector<128x32xf32>
    %56 = vector.broadcast %3 : vector<1x32xf32> to vector<128x32xf32>
    %57 = arith.addf %55, %56 : vector<128x32xf32>
    %c0_7 = arith.constant 0 : index
    %c0_8 = arith.constant 0 : index
    %58 = vector.load %arg5[%c0_7, %c0_8] : memref<1x32xf32, #tpu.memory_space<vmem>>, vector<1x32xf32>
    %c0_9 = arith.constant 0 : index
    %c0_10 = arith.constant 0 : index
    %59 = vector.load %arg6[%c0_9, %c0_10] : memref<1x32xf32, #tpu.memory_space<vmem>>, vector<1x32xf32>
    %cst = arith.constant dense<0.000000e+00> : vector<128xf32>
    %60 = vector.multi_reduction <add>, %57, %cst [1] : vector<128x32xf32> to vector<128xf32>
    %61 = vector.shape_cast %60 : vector<128xf32> to vector<128x1xf32>
    %cst_11 = arith.constant 3.200000e+01 : f32
    %62 = vector.broadcast %cst_11 : f32 to vector<128x1xf32>
    %63 = arith.divf %61, %62 : vector<128x1xf32>
    %64 = vector.broadcast %63 : vector<128x1xf32> to vector<128x32xf32>
    %65 = arith.subf %57, %64 : vector<128x32xf32>
    %66 = arith.mulf %65, %65 : vector<128x32xf32>
    %cst_12 = arith.constant dense<0.000000e+00> : vector<128xf32>
    %67 = vector.multi_reduction <add>, %66, %cst_12 [1] : vector<128x32xf32> to vector<128xf32>
    %68 = vector.shape_cast %67 : vector<128xf32> to vector<128x1xf32>
    %cst_13 = arith.constant 3.200000e+01 : f32
    %69 = vector.broadcast %cst_13 : f32 to vector<128x1xf32>
    %70 = arith.divf %68, %69 : vector<128x1xf32>
    %cst_14 = arith.constant 9.99999974E-6 : f32
    %71 = vector.broadcast %cst_14 : f32 to vector<128x1xf32>
    %72 = arith.addf %70, %71 : vector<128x1xf32>
    %73 = math.rsqrt %72 : vector<128x1xf32>
    %74 = vector.broadcast %73 : vector<128x1xf32> to vector<128x32xf32>
    %75 = arith.mulf %65, %74 : vector<128x32xf32>
    %76 = vector.broadcast %58 : vector<1x32xf32> to vector<128x32xf32>
    %77 = arith.mulf %75, %76 : vector<128x32xf32>
    %78 = vector.broadcast %59 : vector<1x32xf32> to vector<128x32xf32>
    %79 = arith.addf %77, %78 : vector<128x32xf32>
    %c0_15 = arith.constant 0 : index
    %c0_16 = arith.constant 0 : index
    %80 = vector.load %arg7[%c0_15, %c0_16] : memref<32x96xf32, #tpu.memory_space<vmem>>, vector<32x96xf32>
    %81 = arith.truncf %79 : vector<128x32xf32> to vector<128x32xbf16>
    %82 = arith.truncf %80 : vector<32x96xf32> to vector<32x96xbf16>
    %cst_17 = arith.constant dense<0.000000e+00> : vector<128x96xf32>
    %83 = tpu.matmul %81, %82, %cst_17 {dimension_numbers = #tpu.dot_dimension_numbers<[1], [0], [0], [1], [0, 0, 1, 1], [], []>} : vector<128x32xbf16>, vector<32x96xbf16>, vector<128x96xf32> -> vector<128x96xf32>
    %84 = vector.extract_strided_slice %83 {offsets = [0, 0], sizes = [128, 32], strides = [1, 1]} : vector<128x96xf32> to vector<128x32xf32>
    %85 = vector.shape_cast %84 : vector<128x32xf32> to vector<2x64x32xf32>
    %86 = vector.extract_strided_slice %83 {offsets = [0, 32], sizes = [128, 32], strides = [1, 1]} : vector<128x96xf32> to vector<128x32xf32>
    %87 = vector.shape_cast %86 : vector<128x32xf32> to vector<2x64x32xf32>
    %88 = vector.extract_strided_slice %83 {offsets = [0, 64], sizes = [128, 32], strides = [1, 1]} : vector<128x96xf32> to vector<128x32xf32>
    %89 = vector.shape_cast %88 : vector<128x32xf32> to vector<2x64x32xf32>
    %90 = vector.extract_strided_slice %85 {offsets = [0, 0, 0], sizes = [2, 64, 8], strides = [1, 1, 1]} : vector<2x64x32xf32> to vector<2x64x8xf32>
    %91 = vector.extract_strided_slice %85 {offsets = [0, 0, 8], sizes = [2, 64, 8], strides = [1, 1, 1]} : vector<2x64x32xf32> to vector<2x64x8xf32>
    %92 = vector.extract_strided_slice %85 {offsets = [0, 0, 16], sizes = [2, 64, 8], strides = [1, 1, 1]} : vector<2x64x32xf32> to vector<2x64x8xf32>
    %93 = vector.extract_strided_slice %85 {offsets = [0, 0, 24], sizes = [2, 64, 8], strides = [1, 1, 1]} : vector<2x64x32xf32> to vector<2x64x8xf32>
    %94 = tpu.concatenate %90, %91, %92, %93 in 0 : vector<2x64x8xf32>, vector<2x64x8xf32>, vector<2x64x8xf32>, vector<2x64x8xf32> -> vector<8x64x8xf32>
    %95 = vector.extract_strided_slice %87 {offsets = [0, 0, 0], sizes = [2, 64, 8], strides = [1, 1, 1]} : vector<2x64x32xf32> to vector<2x64x8xf32>
    %96 = vector.extract_strided_slice %87 {offsets = [0, 0, 8], sizes = [2, 64, 8], strides = [1, 1, 1]} : vector<2x64x32xf32> to vector<2x64x8xf32>
    %97 = vector.extract_strided_slice %87 {offsets = [0, 0, 16], sizes = [2, 64, 8], strides = [1, 1, 1]} : vector<2x64x32xf32> to vector<2x64x8xf32>
    %98 = vector.extract_strided_slice %87 {offsets = [0, 0, 24], sizes = [2, 64, 8], strides = [1, 1, 1]} : vector<2x64x32xf32> to vector<2x64x8xf32>
    %99 = tpu.concatenate %95, %96, %97, %98 in 0 : vector<2x64x8xf32>, vector<2x64x8xf32>, vector<2x64x8xf32>, vector<2x64x8xf32> -> vector<8x64x8xf32>
    %100 = vector.extract_strided_slice %89 {offsets = [0, 0, 0], sizes = [2, 64, 8], strides = [1, 1, 1]} : vector<2x64x32xf32> to vector<2x64x8xf32>
    %101 = vector.extract_strided_slice %89 {offsets = [0, 0, 8], sizes = [2, 64, 8], strides = [1, 1, 1]} : vector<2x64x32xf32> to vector<2x64x8xf32>
    %102 = vector.extract_strided_slice %89 {offsets = [0, 0, 16], sizes = [2, 64, 8], strides = [1, 1, 1]} : vector<2x64x32xf32> to vector<2x64x8xf32>
    %103 = vector.extract_strided_slice %89 {offsets = [0, 0, 24], sizes = [2, 64, 8], strides = [1, 1, 1]} : vector<2x64x32xf32> to vector<2x64x8xf32>
    %104 = tpu.concatenate %100, %101, %102, %103 in 0 : vector<2x64x8xf32>, vector<2x64x8xf32>, vector<2x64x8xf32>, vector<2x64x8xf32> -> vector<8x64x8xf32>
    %105 = arith.truncf %94 : vector<8x64x8xf32> to vector<8x64x8xbf16>
    %106 = arith.truncf %99 : vector<8x64x8xf32> to vector<8x64x8xbf16>
    "tpu.trace_start"() <{level = 10 : i32, message = "pnd,pmd->pnm"}> : () -> ()
    %cst_18 = arith.constant dense<0.000000e+00> : vector<8x64x64xf32>
    %107 = tpu.matmul %105, %106, %cst_18 {dimension_numbers = #tpu.dot_dimension_numbers<[2], [2], [1], [1], [0, 0, 0, 1, 1, 1], [0], [0]>} : vector<8x64x8xbf16>, vector<8x64x8xbf16>, vector<8x64x64xf32> -> vector<8x64x64xf32>
    "tpu.trace_stop"() : () -> ()
    %cst_19 = arith.constant dense<0xFF800000> : vector<8x64xf32>
    %108 = vector.multi_reduction <maximumf>, %107, %cst_19 [2] : vector<8x64x64xf32> to vector<8x64xf32>
    %109 = vector.shape_cast %108 : vector<8x64xf32> to vector<8x64x1xf32>
    %110 = vector.broadcast %109 : vector<8x64x1xf32> to vector<8x64x64xf32>
    %111 = arith.subf %107, %110 : vector<8x64x64xf32>
    %112 = math.exp %111 : vector<8x64x64xf32>
    %cst_20 = arith.constant dense<0.000000e+00> : vector<8x64xf32>
    %113 = vector.multi_reduction <add>, %112, %cst_20 [2] : vector<8x64x64xf32> to vector<8x64xf32>
    %114 = vector.shape_cast %113 : vector<8x64xf32> to vector<8x64x1xf32>
    %115 = arith.truncf %112 : vector<8x64x64xf32> to vector<8x64x64xbf16>
    %116 = arith.truncf %104 : vector<8x64x8xf32> to vector<8x64x8xbf16>
    "tpu.trace_start"() <{level = 10 : i32, message = "pnm,pmd->pnd"}> : () -> ()
    %cst_21 = arith.constant dense<0.000000e+00> : vector<8x64x8xf32>
    %117 = tpu.matmul %115, %116, %cst_21 {dimension_numbers = #tpu.dot_dimension_numbers<[2], [1], [1], [2], [0, 0, 0, 1, 1, 2], [0], [0]>} : vector<8x64x64xbf16>, vector<8x64x8xbf16>, vector<8x64x8xf32> -> vector<8x64x8xf32>
    "tpu.trace_stop"() : () -> ()
    %118 = tpu.reciprocal %114 {approx = true} : vector<8x64x1xf32> -> vector<8x64x1xf32>
    %119 = vector.broadcast %118 : vector<8x64x1xf32> to vector<8x64x8xf32>
    %120 = arith.mulf %117, %119 : vector<8x64x8xf32>
    %121 = vector.extract_strided_slice %120 {offsets = [0, 0, 0], sizes = [2, 64, 8], strides = [1, 1, 1]} : vector<8x64x8xf32> to vector<2x64x8xf32>
    %122 = vector.shape_cast %121 : vector<2x64x8xf32> to vector<128x8xf32>
    %123 = vector.extract_strided_slice %120 {offsets = [2, 0, 0], sizes = [2, 64, 8], strides = [1, 1, 1]} : vector<8x64x8xf32> to vector<2x64x8xf32>
    %124 = vector.shape_cast %123 : vector<2x64x8xf32> to vector<128x8xf32>
    %125 = vector.extract_strided_slice %120 {offsets = [4, 0, 0], sizes = [2, 64, 8], strides = [1, 1, 1]} : vector<8x64x8xf32> to vector<2x64x8xf32>
    %126 = vector.shape_cast %125 : vector<2x64x8xf32> to vector<128x8xf32>
    %127 = vector.extract_strided_slice %120 {offsets = [6, 0, 0], sizes = [2, 64, 8], strides = [1, 1, 1]} : vector<8x64x8xf32> to vector<2x64x8xf32>
    %128 = vector.shape_cast %127 : vector<2x64x8xf32> to vector<128x8xf32>
    %129 = tpu.concatenate %122, %124, %126, %128 in 1 : vector<128x8xf32>, vector<128x8xf32>, vector<128x8xf32>, vector<128x8xf32> -> vector<128x32xf32>
    %c0_22 = arith.constant 0 : index
    %c0_23 = arith.constant 0 : index
    %130 = vector.load %arg8[%c0_22, %c0_23] : memref<32x32xf32, #tpu.memory_space<vmem>>, vector<32x32xf32>
    %131 = arith.truncf %129 : vector<128x32xf32> to vector<128x32xbf16>
    %132 = arith.truncf %130 : vector<32x32xf32> to vector<32x32xbf16>
    %cst_24 = arith.constant dense<0.000000e+00> : vector<128x32xf32>
    %133 = tpu.matmul %131, %132, %cst_24 {dimension_numbers = #tpu.dot_dimension_numbers<[1], [0], [0], [1], [0, 0, 1, 1], [], []>} : vector<128x32xbf16>, vector<32x32xbf16>, vector<128x32xf32> -> vector<128x32xf32>
    %134 = arith.addf %57, %133 : vector<128x32xf32>
    %c0_25 = arith.constant 0 : index
    %c0_26 = arith.constant 0 : index
    %135 = vector.load %arg9[%c0_25, %c0_26] : memref<7x32xf32, #tpu.memory_space<vmem>>, vector<7x32xf32>
    %c0_27 = arith.constant 0 : index
    %c0_28 = arith.constant 0 : index
    %136 = vector.load %arg10[%c0_27, %c0_28] : memref<1x32xf32, #tpu.memory_space<vmem>>, vector<1x32xf32>
    %137 = vector.extract_strided_slice %135 {offsets = [0, 0], sizes = [1, 32], strides = [1, 1]} : vector<7x32xf32> to vector<1x32xf32>
    %138 = vector.broadcast %137 : vector<1x32xf32> to vector<128x32xf32>
    %139 = arith.mulf %138, %134 : vector<128x32xf32>
    %140 = vector.extract_strided_slice %1 {offsets = [0, 0], sizes = [128, 1], strides = [1, 1]} : vector<128x6xf32> to vector<128x1xf32>
    %141 = vector.extract_strided_slice %135 {offsets = [1, 0], sizes = [1, 32], strides = [1, 1]} : vector<7x32xf32> to vector<1x32xf32>
    %c16_i32_29 = arith.constant 16 : i32
    %142 = tpu.dynamic_rotate %134 by %c16_i32_29 dim 0 : vector<128x32xf32>, i32 -> vector<128x32xf32>
    %143 = vector.broadcast %141 : vector<1x32xf32> to vector<128x32xf32>
    %144 = arith.mulf %143, %142 : vector<128x32xf32>
    %145 = vector.broadcast %140 : vector<128x1xf32> to vector<128x32xf32>
    %146 = arith.mulf %145, %144 : vector<128x32xf32>
    %147 = arith.addf %139, %146 : vector<128x32xf32>
    %148 = vector.extract_strided_slice %1 {offsets = [0, 1], sizes = [128, 1], strides = [1, 1]} : vector<128x6xf32> to vector<128x1xf32>
    %149 = vector.extract_strided_slice %135 {offsets = [2, 0], sizes = [1, 32], strides = [1, 1]} : vector<7x32xf32> to vector<1x32xf32>
    %c112_i32_30 = arith.constant 112 : i32
    %150 = tpu.dynamic_rotate %134 by %c112_i32_30 dim 0 : vector<128x32xf32>, i32 -> vector<128x32xf32>
    %151 = vector.broadcast %149 : vector<1x32xf32> to vector<128x32xf32>
    %152 = arith.mulf %151, %150 : vector<128x32xf32>
    %153 = vector.broadcast %148 : vector<128x1xf32> to vector<128x32xf32>
    %154 = arith.mulf %153, %152 : vector<128x32xf32>
    %155 = arith.addf %147, %154 : vector<128x32xf32>
    %156 = vector.extract_strided_slice %1 {offsets = [0, 2], sizes = [128, 1], strides = [1, 1]} : vector<128x6xf32> to vector<128x1xf32>
    %157 = vector.extract_strided_slice %135 {offsets = [3, 0], sizes = [1, 32], strides = [1, 1]} : vector<7x32xf32> to vector<1x32xf32>
    %c4_i32_31 = arith.constant 4 : i32
    %158 = tpu.dynamic_rotate %134 by %c4_i32_31 dim 0 : vector<128x32xf32>, i32 -> vector<128x32xf32>
    %159 = vector.broadcast %157 : vector<1x32xf32> to vector<128x32xf32>
    %160 = arith.mulf %159, %158 : vector<128x32xf32>
    %161 = vector.broadcast %156 : vector<128x1xf32> to vector<128x32xf32>
    %162 = arith.mulf %161, %160 : vector<128x32xf32>
    %163 = arith.addf %155, %162 : vector<128x32xf32>
    %164 = vector.extract_strided_slice %1 {offsets = [0, 3], sizes = [128, 1], strides = [1, 1]} : vector<128x6xf32> to vector<128x1xf32>
    %165 = vector.extract_strided_slice %135 {offsets = [4, 0], sizes = [1, 32], strides = [1, 1]} : vector<7x32xf32> to vector<1x32xf32>
    %c124_i32_32 = arith.constant 124 : i32
    %166 = tpu.dynamic_rotate %134 by %c124_i32_32 dim 0 : vector<128x32xf32>, i32 -> vector<128x32xf32>
    %167 = vector.broadcast %165 : vector<1x32xf32> to vector<128x32xf32>
    %168 = arith.mulf %167, %166 : vector<128x32xf32>
    %169 = vector.broadcast %164 : vector<128x1xf32> to vector<128x32xf32>
    %170 = arith.mulf %169, %168 : vector<128x32xf32>
    %171 = arith.addf %163, %170 : vector<128x32xf32>
    %172 = vector.extract_strided_slice %1 {offsets = [0, 4], sizes = [128, 1], strides = [1, 1]} : vector<128x6xf32> to vector<128x1xf32>
    %173 = vector.extract_strided_slice %135 {offsets = [5, 0], sizes = [1, 32], strides = [1, 1]} : vector<7x32xf32> to vector<1x32xf32>
    %c1_i32_33 = arith.constant 1 : i32
    %174 = tpu.dynamic_rotate %134 by %c1_i32_33 dim 0 : vector<128x32xf32>, i32 -> vector<128x32xf32>
    %175 = vector.broadcast %173 : vector<1x32xf32> to vector<128x32xf32>
    %176 = arith.mulf %175, %174 : vector<128x32xf32>
    %177 = vector.broadcast %172 : vector<128x1xf32> to vector<128x32xf32>
    %178 = arith.mulf %177, %176 : vector<128x32xf32>
    %179 = arith.addf %171, %178 : vector<128x32xf32>
    %180 = vector.extract_strided_slice %1 {offsets = [0, 5], sizes = [128, 1], strides = [1, 1]} : vector<128x6xf32> to vector<128x1xf32>
    %181 = vector.extract_strided_slice %135 {offsets = [6, 0], sizes = [1, 32], strides = [1, 1]} : vector<7x32xf32> to vector<1x32xf32>
    %c127_i32_34 = arith.constant 127 : i32
    %182 = tpu.dynamic_rotate %134 by %c127_i32_34 dim 0 : vector<128x32xf32>, i32 -> vector<128x32xf32>
    %183 = vector.broadcast %181 : vector<1x32xf32> to vector<128x32xf32>
    %184 = arith.mulf %183, %182 : vector<128x32xf32>
    %185 = vector.broadcast %180 : vector<128x1xf32> to vector<128x32xf32>
    %186 = arith.mulf %185, %184 : vector<128x32xf32>
    %187 = arith.addf %179, %186 : vector<128x32xf32>
    %188 = arith.addf %134, %187 : vector<128x32xf32>
    %189 = vector.broadcast %136 : vector<1x32xf32> to vector<128x32xf32>
    %190 = arith.addf %188, %189 : vector<128x32xf32>
    %c0_35 = arith.constant 0 : index
    %c0_36 = arith.constant 0 : index
    %191 = vector.load %arg11[%c0_35, %c0_36] : memref<1x32xf32, #tpu.memory_space<vmem>>, vector<1x32xf32>
    %c0_37 = arith.constant 0 : index
    %c0_38 = arith.constant 0 : index
    %192 = vector.load %arg12[%c0_37, %c0_38] : memref<1x32xf32, #tpu.memory_space<vmem>>, vector<1x32xf32>
    %cst_39 = arith.constant dense<0.000000e+00> : vector<128xf32>
    %193 = vector.multi_reduction <add>, %190, %cst_39 [1] : vector<128x32xf32> to vector<128xf32>
    %194 = vector.shape_cast %193 : vector<128xf32> to vector<128x1xf32>
    %cst_40 = arith.constant 3.200000e+01 : f32
    %195 = vector.broadcast %cst_40 : f32 to vector<128x1xf32>
    %196 = arith.divf %194, %195 : vector<128x1xf32>
    %197 = vector.broadcast %196 : vector<128x1xf32> to vector<128x32xf32>
    %198 = arith.subf %190, %197 : vector<128x32xf32>
    %199 = arith.mulf %198, %198 : vector<128x32xf32>
    %cst_41 = arith.constant dense<0.000000e+00> : vector<128xf32>
    %200 = vector.multi_reduction <add>, %199, %cst_41 [1] : vector<128x32xf32> to vector<128xf32>
    %201 = vector.shape_cast %200 : vector<128xf32> to vector<128x1xf32>
    %cst_42 = arith.constant 3.200000e+01 : f32
    %202 = vector.broadcast %cst_42 : f32 to vector<128x1xf32>
    %203 = arith.divf %201, %202 : vector<128x1xf32>
    %cst_43 = arith.constant 9.99999974E-6 : f32
    %204 = vector.broadcast %cst_43 : f32 to vector<128x1xf32>
    %205 = arith.addf %203, %204 : vector<128x1xf32>
    %206 = math.rsqrt %205 : vector<128x1xf32>
    %207 = vector.broadcast %206 : vector<128x1xf32> to vector<128x32xf32>
    %208 = arith.mulf %198, %207 : vector<128x32xf32>
    %209 = vector.broadcast %191 : vector<1x32xf32> to vector<128x32xf32>
    %210 = arith.mulf %208, %209 : vector<128x32xf32>
    %211 = vector.broadcast %192 : vector<1x32xf32> to vector<128x32xf32>
    %212 = arith.addf %210, %211 : vector<128x32xf32>
    %c0_44 = arith.constant 0 : index
    %c0_45 = arith.constant 0 : index
    %213 = vector.load %arg13[%c0_44, %c0_45] : memref<32x128xf32, #tpu.memory_space<vmem>>, vector<32x128xf32>
    %214 = arith.truncf %212 : vector<128x32xf32> to vector<128x32xbf16>
    %215 = arith.truncf %213 : vector<32x128xf32> to vector<32x128xbf16>
    %cst_46 = arith.constant dense<0.000000e+00> : vector<128x128xf32>
    %216 = tpu.matmul %214, %215, %cst_46 {dimension_numbers = #tpu.dot_dimension_numbers<[1], [0], [0], [1], [0, 0, 1, 1], [], []>} : vector<128x32xbf16>, vector<32x128xbf16>, vector<128x128xf32> -> vector<128x128xf32>
    %c0_47 = arith.constant 0 : index
    %c0_48 = arith.constant 0 : index
    %217 = vector.load %arg14[%c0_47, %c0_48] : memref<1x128xf32, #tpu.memory_space<vmem>>, vector<1x128xf32>
    %218 = vector.broadcast %217 : vector<1x128xf32> to vector<128x128xf32>
    %219 = arith.addf %216, %218 : vector<128x128xf32>
    %cst_49 = arith.constant 5.000000e-01 : f32
    %220 = vector.broadcast %cst_49 : f32 to vector<128x128xf32>
    %221 = arith.mulf %220, %219 : vector<128x128xf32>
    %cst_50 = arith.constant 0.707106769 : f32
    %222 = vector.broadcast %cst_50 : f32 to vector<128x128xf32>
    %223 = arith.mulf %219, %222 : vector<128x128xf32>
    %cst_51 = arith.constant -3.8325069 : f32
    %cst_52 = arith.constant 3.8325069 : f32
    %224 = vector.broadcast %cst_51 : f32 to vector<128x128xf32>
    %225 = arith.maximumf %224, %223 : vector<128x128xf32>
    %226 = vector.broadcast %cst_52 : f32 to vector<128x128xf32>
    %227 = arith.minimumf %226, %225 : vector<128x128xf32>
    %228 = arith.mulf %227, %227 : vector<128x128xf32>
    %cst_53 = arith.constant 2.29050653E-4 : f32
    %229 = vector.broadcast %cst_53 : f32 to vector<128x128xf32>
    %230 = arith.mulf %229, %228 : vector<128x128xf32>
    %cst_54 = arith.constant 0.00340829091 : f32
    %231 = vector.broadcast %cst_54 : f32 to vector<128x128xf32>
    %232 = arith.addf %230, %231 : vector<128x128xf32>
    %233 = arith.mulf %232, %228 : vector<128x128xf32>
    %cst_55 = arith.constant 0.0509556942 : f32
    %234 = vector.broadcast %cst_55 : f32 to vector<128x128xf32>
    %235 = arith.addf %233, %234 : vector<128x128xf32>
    %236 = arith.mulf %235, %228 : vector<128x128xf32>
    %cst_56 = arith.constant 0.185208321 : f32
    %237 = vector.broadcast %cst_56 : f32 to vector<128x128xf32>
    %238 = arith.addf %236, %237 : vector<128x128xf32>
    %239 = arith.mulf %238, %228 : vector<128x128xf32>
    %cst_57 = arith.constant 1.12837911 : f32
    %240 = vector.broadcast %cst_57 : f32 to vector<128x128xf32>
    %241 = arith.addf %239, %240 : vector<128x128xf32>
    %cst_58 = arith.constant -1.17916031E-7 : f32
    %242 = vector.broadcast %cst_58 : f32 to vector<128x128xf32>
    %243 = arith.mulf %242, %228 : vector<128x128xf32>
    %cst_59 = arith.constant 2.35479656E-5 : f32
    %244 = vector.broadcast %cst_59 : f32 to vector<128x128xf32>
    %245 = arith.addf %243, %244 : vector<128x128xf32>
    %246 = arith.mulf %245, %228 : vector<128x128xf32>
    %cst_60 = arith.constant 0.00101796258 : f32
    %247 = vector.broadcast %cst_60 : f32 to vector<128x128xf32>
    %248 = arith.addf %246, %247 : vector<128x128xf32>
    %249 = arith.mulf %248, %228 : vector<128x128xf32>
    %cst_61 = arith.constant 0.0140704699 : f32
    %250 = vector.broadcast %cst_61 : f32 to vector<128x128xf32>
    %251 = arith.addf %249, %250 : vector<128x128xf32>
    %252 = arith.mulf %251, %228 : vector<128x128xf32>
    %cst_62 = arith.constant 0.110985048 : f32
    %253 = vector.broadcast %cst_62 : f32 to vector<128x128xf32>
    %254 = arith.addf %252, %253 : vector<128x128xf32>
    %255 = arith.mulf %254, %228 : vector<128x128xf32>
    %cst_63 = arith.constant 0.497469246 : f32
    %256 = vector.broadcast %cst_63 : f32 to vector<128x128xf32>
    %257 = arith.addf %255, %256 : vector<128x128xf32>
    %258 = arith.mulf %257, %228 : vector<128x128xf32>
    %cst_64 = arith.constant 1.000000e+00 : f32
    %259 = vector.broadcast %cst_64 : f32 to vector<128x128xf32>
    %260 = arith.addf %258, %259 : vector<128x128xf32>
    %261 = arith.mulf %227, %241 : vector<128x128xf32>
    %262 = tpu.reciprocal %260 : vector<128x128xf32> -> vector<128x128xf32>
    %263 = arith.mulf %261, %262 : vector<128x128xf32>
    %cst_65 = arith.constant 1.000000e+00 : f32
    %264 = vector.broadcast %cst_65 : f32 to vector<128x128xf32>
    %265 = arith.addf %264, %263 : vector<128x128xf32>
    %266 = arith.mulf %221, %265 : vector<128x128xf32>
    %c0_66 = arith.constant 0 : index
    %c0_67 = arith.constant 0 : index
    %267 = vector.load %arg15[%c0_66, %c0_67] : memref<128x32xf32, #tpu.memory_space<vmem>>, vector<128x32xf32>
    %268 = arith.truncf %266 : vector<128x128xf32> to vector<128x128xbf16>
    %269 = arith.truncf %267 : vector<128x32xf32> to vector<128x32xbf16>
    %cst_68 = arith.constant dense<0.000000e+00> : vector<128x32xf32>
    %270 = tpu.matmul %268, %269, %cst_68 {dimension_numbers = #tpu.dot_dimension_numbers<[1], [0], [0], [1], [0, 0, 1, 1], [], []>} : vector<128x128xbf16>, vector<128x32xbf16>, vector<128x32xf32> -> vector<128x32xf32>
    %271 = arith.addf %190, %270 : vector<128x32xf32>
    %c0_69 = arith.constant 0 : index
    %c0_70 = arith.constant 0 : index
    %272 = vector.load %arg16[%c0_69, %c0_70] : memref<1x32xf32, #tpu.memory_space<vmem>>, vector<1x32xf32>
    %273 = vector.broadcast %272 : vector<1x32xf32> to vector<128x32xf32>
    %274 = arith.addf %271, %273 : vector<128x32xf32>
    %c0_71 = arith.constant 0 : index
    %c0_72 = arith.constant 0 : index
    %275 = vector.load %arg17[%c0_71, %c0_72] : memref<128x32xf32, #tpu.memory_space<vmem>>, vector<128x32xf32>
    tpu.vector_store %arg17[%c0_71, %c0_72], %274 {strides = array<i32>} : memref<128x32xf32, #tpu.memory_space<vmem>>, vector<128x32xf32>,
    return
  }
  func.func @transform_0(%arg0: i32) -> (i32, i32) {
    %c0_i32 = arith.constant 0 : i32
    %c0_i32_0 = arith.constant 0 : i32
    return %arg0, %c0_i32 : i32, i32
  }
  func.func @transform_1(%arg0: i32) -> (i32, i32) {
    %c0_i32 = arith.constant 0 : i32
    %c0_i32_0 = arith.constant 0 : i32
    %c0_i32_1 = arith.constant 0 : i32
    return %c0_i32, %c0_i32_0 : i32, i32
  }
  func.func @transform_2(%arg0: i32) -> (i32, i32) {
    %c0_i32 = arith.constant 0 : i32
    %c0_i32_0 = arith.constant 0 : i32
    %c0_i32_1 = arith.constant 0 : i32
    return %c0_i32, %c0_i32_0 : i32, i32
  }
  func.func @transform_3(%arg0: i32) -> (i32, i32) {
    %c0_i32 = arith.constant 0 : i32
    %c0_i32_0 = arith.constant 0 : i32
    %c0_i32_1 = arith.constant 0 : i32
    return %c0_i32, %c0_i32_0 : i32, i32
  }
  func.func @transform_4(%arg0: i32) -> (i32, i32) {
    %c0_i32 = arith.constant 0 : i32
    %c0_i32_0 = arith.constant 0 : i32
    %c0_i32_1 = arith.constant 0 : i32
    return %c0_i32, %c0_i32_0 : i32, i32
  }
  func.func @transform_5(%arg0: i32) -> (i32, i32) {
    %c0_i32 = arith.constant 0 : i32
    %c0_i32_0 = arith.constant 0 : i32
    %c0_i32_1 = arith.constant 0 : i32
    return %c0_i32, %c0_i32_0 : i32, i32
  }
  func.func @transform_6(%arg0: i32) -> (i32, i32) {
    %c0_i32 = arith.constant 0 : i32
    %c0_i32_0 = arith.constant 0 : i32
    %c0_i32_1 = arith.constant 0 : i32
    return %c0_i32, %c0_i32_0 : i32, i32
  }
  func.func @transform_7(%arg0: i32) -> (i32, i32) {
    %c0_i32 = arith.constant 0 : i32
    %c0_i32_0 = arith.constant 0 : i32
    %c0_i32_1 = arith.constant 0 : i32
    return %c0_i32, %c0_i32_0 : i32, i32
  }
  func.func @transform_8(%arg0: i32) -> (i32, i32) {
    %c0_i32 = arith.constant 0 : i32
    %c0_i32_0 = arith.constant 0 : i32
    %c0_i32_1 = arith.constant 0 : i32
    return %c0_i32, %c0_i32_0 : i32, i32
  }
  func.func @transform_9(%arg0: i32) -> (i32, i32) {
    %c0_i32 = arith.constant 0 : i32
    %c0_i32_0 = arith.constant 0 : i32
    %c0_i32_1 = arith.constant 0 : i32
    return %c0_i32, %c0_i32_0 : i32, i32
  }
  func.func @transform_10(%arg0: i32) -> (i32, i32) {
    %c0_i32 = arith.constant 0 : i32
    %c0_i32_0 = arith.constant 0 : i32
    %c0_i32_1 = arith.constant 0 : i32
    return %c0_i32, %c0_i32_0 : i32, i32
  }
  func.func @transform_11(%arg0: i32) -> (i32, i32) {
    %c0_i32 = arith.constant 0 : i32
    %c0_i32_0 = arith.constant 0 : i32
    %c0_i32_1 = arith.constant 0 : i32
    return %c0_i32, %c0_i32_0 : i32, i32
  }
  func.func @transform_12(%arg0: i32) -> (i32, i32) {
    %c0_i32 = arith.constant 0 : i32
    %c0_i32_0 = arith.constant 0 : i32
    %c0_i32_1 = arith.constant 0 : i32
    return %c0_i32, %c0_i32_0 : i32, i32
  }
  func.func @transform_13(%arg0: i32) -> (i32, i32) {
    %c0_i32 = arith.constant 0 : i32
    %c0_i32_0 = arith.constant 0 : i32
    %c0_i32_1 = arith.constant 0 : i32
    return %c0_i32, %c0_i32_0 : i32, i32
  }
  func.func @transform_14(%arg0: i32) -> (i32, i32) {
    %c0_i32 = arith.constant 0 : i32
    %c0_i32_0 = arith.constant 0 : i32
    %c0_i32_1 = arith.constant 0 : i32
    return %c0_i32, %c0_i32_0 : i32, i32
  }
  func.func @transform_15(%arg0: i32) -> (i32, i32) {
    %c0_i32 = arith.constant 0 : i32
    %c0_i32_0 = arith.constant 0 : i32
    %c0_i32_1 = arith.constant 0 : i32
    return %c0_i32, %c0_i32_0 : i32, i32
  }
  func.func @transform_16(%arg0: i32) -> (i32, i32) {
    %c0_i32 = arith.constant 0 : i32
    %c0_i32_0 = arith.constant 0 : i32
    return %arg0, %c0_i32 : i32, i32
  }
}

</mosaic_0001>

<bundles_post_ra>
// kernel: tpu_custom_call.1
= control target key start
LH: loop header
LB: loop body
LE: loop exit
PB: predicated region body
PF: predicated region fallthrough
CT: control target
= control target key end

     0   :  { %v11540_v0 = vmov 4   ;;  %v11544_v1 = vmov 0   ;;  %v11539_v4 = vmov 5   ;;  %v11543_v7 = vmov 1   ;;  %s7047_s26 = smov 112   ;;  %s7048_s27 = smov 104   ;;  %s11518_s1 = inlined_call_operand.vmem [shape: f32[128,6], index: 1, kind: input, shape index: {}]   ;;  %s11519_s2 = inlined_call_operand.vmem [shape: f32[7,32], index: 2, kind: input, shape index: {}]   ;;  %s11520_s0 = inlined_call_operand.vmem [shape: f32[128,32], index: 0, kind: input, shape index: {}]   ;;  %s11521_s3 = inlined_call_operand.vmem [shape: f32[1,32], index: 3, kind: input, shape index: {}]   ;;  %s11522_s6 = inlined_call_operand.vmem [shape: f32[32,96], index: 6, kind: input, shape index: {}]   ;;  %s11523_s4 = inlined_call_operand.vmem [shape: f32[1,32], index: 4, kind: input, shape index: {}]   ;;  %s11524_s5 = inlined_call_operand.vmem [shape: f32[1,32], index: 5, kind: input, shape index: {}]   ;;  %s11525_s7 = inlined_call_operand.vmem [shape: f32[32,32], index: 7, kind: input, shape index: {}]   ;;  %s11526_s8 = inlined_call_operand.vmem [shape: f32[7,32], index: 8, kind: input, shape index: {}]   ;;  %s11527_s9 = inlined_call_operand.vmem [shape: f32[1,32], index: 9, kind: input, shape index: {}]   ;;  %s11528_s12 = inlined_call_operand.vmem [shape: f32[32,128], index: 12, kind: input, shape index: {}]   ;;  %s11529_s10 = inlined_call_operand.vmem [shape: f32[1,32], index: 10, kind: input, shape index: {}]   ;;  %s11530_s11 = inlined_call_operand.vmem [shape: f32[1,32], index: 11, kind: input, shape index: {}]   ;;  %s11531_s14 = inlined_call_operand.vmem [shape: f32[128,32], index: 14, kind: input, shape index: {}]   ;;  %s11532_s13 = inlined_call_operand.vmem [shape: f32[1,128], index: 13, kind: input, shape index: {}]   ;;  %s11533_s15 = inlined_call_operand.vmem [shape: f32[1,32], index: 15, kind: input, shape index: {}]   ;;  %s11534_s16 = inlined_call_operand.vmem [shape: f32[128,32], index: 16, kind: output, shape index: {}]  }
   0x1   :  { %11728 = sst [smem:[#allocation141_spill]] %s11518_s1  ;;  %6412 = vset.pattern.permute.xlu0 %v11540_v0  ;;  %6405 = vset.pattern.permute.xlu1 %v11544_v1  ;;  %v11542_v11 = vmov 2   ;;  %v11541_v13 = vmov 3   ;;  %v88_v46 = vlaneseq  ;;  %v86_v53 = vld [vmem:[%s11519_s2] sm:$0x7f]  ;;  %v7393_v58 = vld [vmem:[%s11520_s0 + $0x10] sm:$0xff] }
   0x2   :  { %s11729_s23 = sld [smem:[#allocation141_spill]]  ;;  %v7398_v59 = vld [vmem:[%s11520_s0 + $0x8] sm:$0xff]  ;;  %v7405_v61 = vld [vmem:[%s11520_s0] sm:$0xff]  ;;  %v358_v63 = vrot.slane %v7393_v58, 4  ;;  %vm961_vm3 = vcmask 261120   ;;  %vm1554_vm4 = vcmask 64512  }
   0x3   :  { %v7369_v49 = vshrl.u32 %v88_v46, 7  ;;  %11762 = vst [vmem:[#allocation34_spill] sm:$0xff] %v7398_v59  ;;  %v357_v62 = vrot.slane %v7398_v59, 4  ;;  %s7049_s28 = smov 64   ;;  %vm2351_vm5 = vcmask 523264   ;;  %s7050_s29 = smov 8  }
   0x4   :  { %vm4008_vm6 = vcmask 130048   ;;  %vm4025_vm7 = vcmask 195584  }
   0x5   :  { %11757 = vst [vmem:[#allocation29_spill] sm:$0xff] %v7369_v49  ;;  %v11537_v52 = vsub.s32 1, %v7369_v49  ;;  %v11536_v55 = vsub.s32 0, %v7369_v49  ;;  %v11538_v60 = vsub.s32 2, %v7369_v49  ;;  %vm374_vm0 = vcmp.lt.s32.totalorder %v7369_v49, 4 }
   0x6   :  { %vm639_vm1 = vcmp.lt.s32.totalorder %v7369_v49, 1  ;;  %vm788_vm2 = vcmp.lt.s32.totalorder %v7369_v49, 7 }
   0x7   :  { %v7388_v57 = vrot.slane %v86_v53, %v11537_v52 }
   0x8   :  { %v72_v2 = vld [vmem:[%s11729_s23 + $0x10] sm:$0xff]  ;;  %v7146_v3 = vld [vmem:[%s11729_s23 + $0x18] sm:$0xff]  ;;  %v7158_v6 = vld [vmem:[%s11729_s23 + $0x8] sm:$0xff] }
   0x9   :  { %685 = vperm.xlu0 %6412, %v72_v2   ;;  %140 = vperm.xlu1 %6405, %v72_v2   ;;  %v7153_v5 = vld [vmem:[%s11729_s23 + $0x30] sm:$0xff]  ;;  %v7166_v8 = vld [vmem:[%s11729_s23 + $0x40] sm:$0xff]  ;;  %v7172_v9 = vld [vmem:[%s11729_s23 + $0x58] sm:$0xff] }
   0xa   :  { %v7177_v10 = vld [vmem:[%s11729_s23] sm:$0xff]  ;;  %v7189_v12 = vld [vmem:[%s11729_s23 + $0x28] sm:$0xff]  ;;  %v7210_v16 = vld [vmem:[%s11729_s23 + $0x50] sm:$0xff] }
   0xb   :  { %v7198_v14 = vld [vmem:[%s11729_s23 + $0x48] sm:$0xff]  ;;  %v7203_v15 = vld [vmem:[%s11729_s23 + $0x20] sm:$0xff]  ;;  %v7228_v18 = vld [vmem:[%s11729_s23 + $0x38] sm:$0xff] }
   0xc   :  { %v7217_v17 = vld [vmem:[%s11729_s23 + $0x68] sm:$0xff]  ;;  %v7246_v19 = vld [vmem:[%s11729_s23 + $0x60] sm:$0xff]  ;;  %v7253_v20 = vld [vmem:[%s11729_s23 + $0x78] sm:$0xff] }
   0xd   :  { %6417 = vset.pattern.permute.xlu0 %v11539_v4  ;;  %145 = vperm.xlu1 %6405, %v7146_v3  }
   0xe   :  { %834 = vperm.xlu0 %6417, %v72_v2  }
  0x11   :  { %6406 = vset.pattern.permute.xlu1 %v11543_v7 }
  0x12   :  { %850 = vperm.xlu0 %6417, %v7153_v5   ;;  %265 = vperm.xlu1 %6406, %v7158_v6  }
  0x16   :  { %858 = vperm.xlu0 %6417, %v7166_v8   ;;  %269 = vperm.xlu1 %6406, %v72_v2  }
  0x1a   :  { %870 = vperm.xlu0 %6417, %v7172_v9   ;;  %6407 = vset.pattern.permute.xlu1 %v11542_v11 }
  0x1b   :  { %412 = vperm.xlu1 %6407, %v7177_v10  }
  0x1e   :  { %6433 = vset.pattern.permute.xlu0 %v11544_v1 }
  0x1f   :  { %130 = vperm.xlu0 %6433, %v7177_v10   ;;  %420 = vperm.xlu1 %6407, %v72_v2  }
  0x23   :  { %135 = vperm.xlu0 %6433, %v7158_v6   ;;  %424 = vperm.xlu1 %6407, %v7146_v3  }
  0x27   :  { %155 = vperm.xlu0 %6433, %v7189_v12   ;;  %6408 = vset.pattern.permute.xlu1 %v11541_v13 }
  0x28   :  { %532 = vperm.xlu1 %6408, %v7158_v6  }
  0x2b   :  { %160 = vperm.xlu0 %6433, %v7153_v5  }
  0x2c   :  { %536 = vperm.xlu1 %6408, %v72_v2   ;;  %v11545_v2 = vsub.s32 3, %v7369_v49 }
  0x2f   :  { %175 = vperm.xlu0 %6433, %v7198_v14  }
  0x30   :  { %6409 = vset.pattern.permute.xlu1 %v11544_v1 }
  0x31   :  { %150 = vperm.xlu1 %6409, %v7203_v15  }
  0x33   :  { %180 = vperm.xlu0 %6433, %v7210_v16  }
  0x35   :  { %6410 = vset.pattern.permute.xlu1 %v11540_v0 }
  0x36   :  { %677 = vperm.xlu1 %6410, %v7177_v10  }
  0x37   :  { %195 = vperm.xlu0 %6433, %v7217_v17  }
  0x3a   :  { %681 = vperm.xlu1 %6410, %v7158_v6  }
  0x3b   :  { %6435 = vset.pattern.permute.xlu0 %v11543_v7 }
  0x3c   :  { %261 = vperm.xlu0 %6435, %v7177_v10  }
  0x3e   :  { %6411 = vset.pattern.permute.xlu1 %v11544_v1 }
  0x3f   :  { %165 = vperm.xlu1 %6411, %v7228_v18  }
  0x40   :  { %273 = vperm.xlu0 %6435, %v7146_v3  }
  0x43   :  { %6413 = vset.pattern.permute.xlu1 %v11540_v0 }
  0x44   :  { %281 = vperm.xlu0 %6435, %v7189_v12   ;;  %689 = vperm.xlu1 %6413, %v7146_v3  }
  0x48   :  { %285 = vperm.xlu0 %6435, %v7153_v5   ;;  %6414 = vset.pattern.permute.xlu1 %v11543_v7 }
  0x49   :  { %277 = vperm.xlu1 %6414, %v7203_v15  }
  0x4c   :  { %297 = vperm.xlu0 %6435, %v7198_v14  }
  0x4d   :  { %6415 = vset.pattern.permute.xlu1 %v11539_v4 }
  0x4e   :  { %826 = vperm.xlu1 %6415, %v7177_v10  }
  0x50   :  { %301 = vperm.xlu0 %6435, %v7210_v16  }
  0x52   :  { %830 = vperm.xlu1 %6415, %v7158_v6  }
  0x54   :  { %309 = vperm.xlu0 %6435, %v7246_v19  }
  0x56   :  { %6416 = vset.pattern.permute.xlu1 %v11543_v7 }
  0x57   :  { %289 = vperm.xlu1 %6416, %v7228_v18  }
  0x58   :  { %321 = vperm.xlu0 %6435, %v7253_v20  }
  0x5b   :  { %6418 = vset.pattern.permute.xlu1 %v11539_v4 }
  0x5c   :  { %6437 = vset.pattern.permute.xlu0 %v11542_v11  ;;  %838 = vperm.xlu1 %6418, %v7146_v3  }
  0x5d   :  { %416 = vperm.xlu0 %6437, %v7158_v6   ;;  %v11552_v6 = vsub.s32 5, %v7369_v49 }
  0x5f   :  { %v7472_v46 = vrot.slane %v86_v53, %v11552_v6 }
  0x60   :  { %6419 = vset.pattern.permute.xlu1 %v11542_v11 }
  0x61   :  { %432 = vperm.xlu0 %6437, %v7189_v12   ;;  %428 = vperm.xlu1 %6419, %v7203_v15  }
  0x65   :  { %448 = vperm.xlu0 %6437, %v7198_v14   ;;  %436 = vperm.xlu1 %6419, %v7153_v5  }
  0x69   :  { %464 = vperm.xlu0 %6437, %v7217_v17   ;;  %440 = vperm.xlu1 %6419, %v7228_v18  }
  0x6d   :  { %6439 = vset.pattern.permute.xlu0 %v11541_v13  ;;  %6420 = vset.pattern.permute.xlu1 %v11541_v13 }
  0x6e   :  { %528 = vperm.xlu0 %6439, %v7177_v10   ;;  %548 = vperm.xlu1 %6420, %v7189_v12   ;;  %v7428_v10 = vld [vmem:[%s11520_s0 + $0x18] sm:$0xff] }
  0x72   :  { %540 = vperm.xlu0 %6439, %v7146_v3   ;;  %552 = vperm.xlu1 %6420, %v7153_v5  }
  0x76   :  { %544 = vperm.xlu0 %6439, %v7203_v15   ;;  %6421 = vset.pattern.permute.xlu1 %v11544_v1 }
  0x77   :  { %170 = vperm.xlu1 %6421, %v7166_v8  }
  0x7a   :  { %556 = vperm.xlu0 %6439, %v7228_v18  }
  0x7b   :  { %6422 = vset.pattern.permute.xlu1 %v11540_v0 }
  0x7c   :  { %693 = vperm.xlu1 %6422, %v7203_v15  }
  0x7e   :  { %560 = vperm.xlu0 %6439, %v7166_v8  }
  0x80   :  { %697 = vperm.xlu1 %6422, %v7189_v12  }
  0x82   :  { %572 = vperm.xlu0 %6439, %v7172_v9  }
  0x84   :  { %6423 = vset.pattern.permute.xlu1 %v11544_v1 }
  0x85   :  { %185 = vperm.xlu1 %6423, %v7172_v9  }
  0x86   :  { %576 = vperm.xlu0 %6439, %v7246_v19  }
  0x88   :  { %v7287_v21 = vpop.permute.xlu1 %140  ;;  %v7289_v22 = vpop.permute.xlu0 %685 }
  0x89   :  { %11730 = vst [vmem:[#allocation2_spill] sm:$0xff] %v7287_v21  ;;  %11731 = vst [vmem:[#allocation3_spill] sm:$0xff] %v7289_v22  ;;  %6424 = vset.pattern.permute.xlu1 %v11540_v0 }
  0x8a   :  { %588 = vperm.xlu0 %6439, %v7253_v20   ;;  %705 = vperm.xlu1 %6424, %v7228_v18  }
  0x8c   :  { %v7294_v23 = vpop.permute.xlu1 %145 }
  0x8d   :  { %11732 = vst [vmem:[#allocation4_spill] sm:$0xff] %v7294_v23  ;;  %v7296_v24 = vpop.permute.xlu0 %834 }
  0x8e   :  { %11733 = vst [vmem:[#allocation5_spill] sm:$0xff] %v7296_v24  ;;  %6441 = vset.pattern.permute.xlu0 %v11540_v0  ;;  %6425 = vset.pattern.permute.xlu1 %v11543_v7 }
  0x8f   :  { %701 = vperm.xlu0 %6441, %v7153_v5   ;;  %293 = vperm.xlu1 %6425, %v7166_v8   ;;  %v7415_v5 = vrot.slane %v86_v53, %v11536_v55  ;;  %v388_v55 = vsel %vm374_vm0, %v357_v62, %v358_v63 }
  0x91   :  { %v7302_v25 = vpop.permute.xlu1 %265  ;;  %v7304_v26 = vpop.permute.xlu0 %850 }
  0x92   :  { %11734 = vst [vmem:[#allocation6_spill] sm:$0xff] %v7302_v25  ;;  %11735 = vst [vmem:[#allocation7_spill] sm:$0xff] %v7304_v26 }
  0x93   :  { %6426 = vset.pattern.permute.xlu1 %v11539_v4  ;;  %713 = vperm.xlu0 %6441, %v7198_v14  }
  0x94   :  { %842 = vperm.xlu1 %6426, %v7203_v15  }
  0x95   :  { %v7309_v27 = vpop.permute.xlu1 %269  ;;  %v7311_v28 = vpop.permute.xlu0 %858 }
  0x96   :  { %11736 = vst [vmem:[#allocation8_spill] sm:$0xff] %v7309_v27  ;;  %11737 = vst [vmem:[#allocation9_spill] sm:$0xff] %v7311_v28 }
  0x97   :  { %729 = vperm.xlu0 %6441, %v7217_v17  }
  0x98   :  { %846 = vperm.xlu1 %6426, %v7189_v12   ;;  %v7432_v12 = vrot.slane %v86_v53, %v11538_v60 }
  0x99   :  { %v7315_v29 = vpop.permute.xlu0 %870 }
  0x9a   :  { %11738 = vst [vmem:[#allocation10_spill] sm:$0xff] %v7315_v29  ;;  %v7317_v30 = vpop.permute.xlu1 %412  ;;  %v11768_v29 = vrot.slane %v7428_v10, 4 }
  0x9b   :  { %11739 = vst [vmem:[#allocation11_spill] sm:$0xff] %v7317_v30  ;;  %6443 = vset.pattern.permute.xlu0 %v11539_v4 }
  0x9c   :  { %6427 = vset.pattern.permute.xlu1 %v11543_v7  ;;  %874 = vperm.xlu0 %6443, %v7246_v19  }
  0x9d   :  { %305 = vperm.xlu1 %6427, %v7172_v9  }
  0x9e   :  { %v7323_v31 = vpop.permute.xlu0 %130  ;;  %v7325_v32 = vpop.permute.xlu1 %420 }
  0x9f   :  { %11740 = vst [vmem:[#allocation12_spill] sm:$0xff] %v7323_v31  ;;  %11741 = vst [vmem:[#allocation13_spill] sm:$0xff] %v7325_v32 }
  0xa0   :  { %886 = vperm.xlu0 %6443, %v7253_v20  }
  0xa1   :  { %6428 = vset.pattern.permute.xlu1 %v11539_v4 }
  0xa2   :  { %v7329_v33 = vpop.permute.xlu0 %135  ;;  %854 = vperm.xlu1 %6428, %v7228_v18   ;;  %v7332_v34 = vpop.permute.xlu1 %424  ;;  %v624_v18 = vrot.slane %v7398_v59, 7 }
  0xa3   :  { %11742 = vst [vmem:[#allocation14_spill] sm:$0xff] %v7329_v33  ;;  %11743 = vst [vmem:[#allocation15_spill] sm:$0xff] %v7332_v34 }
  0xa6   :  { %6429 = vset.pattern.permute.xlu1 %v11542_v11  ;;  %v7335_v35 = vpop.permute.xlu0 %155  ;;  %v7458_v11 = vld [vmem:[%s11520_s0 + $0x78] sm:$0xff] }
  0xa7   :  { %11744 = vst [vmem:[#allocation16_spill] sm:$0xff] %v7335_v35  ;;  %444 = vperm.xlu1 %6429, %v7166_v8   ;;  %v7338_v36 = vpop.permute.xlu1 %532  ;;  %v113_v1 = vmul.f32 %v7388_v57, %v7458_v11 }
  0xa8   :  { %11745 = vst [vmem:[#allocation17_spill] sm:$0xff] %v7338_v36 }
  0xaa   :  { %v7340_v37 = vpop.permute.xlu0 %160 }
  0xab   :  { %11746 = vst [vmem:[#allocation18_spill] sm:$0xff] %v7340_v37  ;;  %452 = vperm.xlu1 %6429, %v7210_v16   ;;  %v7343_v38 = vpop.permute.xlu1 %536 }
  0xac   :  { %11747 = vst [vmem:[#allocation19_spill] sm:$0xff] %v7343_v38 }
  0xae   :  { %v7345_v39 = vpop.permute.xlu0 %175 }
  0xaf   :  { %11748 = vst [vmem:[#allocation20_spill] sm:$0xff] %v7345_v39  ;;  %456 = vperm.xlu1 %6429, %v7172_v9  }
  0xb0   :  { %v7348_v40 = vpop.permute.xlu1 %150 }
  0xb1   :  { %11749 = vst [vmem:[#allocation21_spill] sm:$0xff] %v7348_v40 }
  0xb2   :  { %v7350_v41 = vpop.permute.xlu0 %180 }
  0xb3   :  { %11750 = vst [vmem:[#allocation22_spill] sm:$0xff] %v7350_v41  ;;  %6430 = vset.pattern.permute.xlu1 %v11541_v13  ;;  %v94_v13 = vmul.f32 %v7415_v5, %v7393_v58  ;;  %v774_v41 = vrot.slane %v7393_v58, 1 }
  0xb4   :  { %564 = vperm.xlu1 %6430, %v7198_v14  }
  0xb5   :  { %v7354_v42 = vpop.permute.xlu1 %677 }
  0xb6   :  { %11751 = vst [vmem:[#allocation23_spill] sm:$0xff] %v7354_v42  ;;  %v7356_v43 = vpop.permute.xlu0 %195 }
  0xb7   :  { %11752 = vst [vmem:[#allocation24_spill] sm:$0xff] %v7356_v43  ;;  %v11767_v43 = vrot.slane %v7393_v58, 7 }
  0xb8   :  { %568 = vperm.xlu1 %6430, %v7210_v16  }
  0xb9   :  { %v7359_v44 = vpop.permute.xlu1 %681 }
  0xba   :  { %11753 = vst [vmem:[#allocation25_spill] sm:$0xff] %v7359_v44 }
  0xbb   :  { %v7361_v45 = vpop.permute.xlu0 %261 }
  0xbc   :  { %11754 = vst [vmem:[#allocation26_spill] sm:$0xff] %v7361_v45  ;;  %6431 = vset.pattern.permute.xlu1 %v11540_v0 }
  0xbd   :  { %709 = vperm.xlu1 %6431, %v7166_v8   ;;  %v7421_v8 = vld [vmem:[%s11520_s0 + $0x20] sm:$0xff] }
  0xbe   :  { %v7365_v47 = vpop.permute.xlu1 %165  ;;  %v246_v60 = vmul.f32 %v7432_v12, %v7421_v8 }
  0xbf   :  { %11755 = vst [vmem:[#allocation27_spill] sm:$0xff] %v7365_v47  ;;  %v7367_v48 = vpop.permute.xlu0 %273 }
  0xc0   :  { %11756 = vst [vmem:[#allocation28_spill] sm:$0xff] %v7367_v48 }
  0xc1   :  { %717 = vperm.xlu1 %6431, %v7210_v16  }
  0xc3   :  { %v7372_v50 = vpop.permute.xlu1 %689  ;;  %v7374_v51 = vpop.permute.xlu0 %281 }
  0xc4   :  { %11758 = vst [vmem:[#allocation30_spill] sm:$0xff] %v7372_v50  ;;  %11759 = vst [vmem:[#allocation31_spill] sm:$0xff] %v7374_v51 }
  0xc5   :  { %721 = vperm.xlu1 %6431, %v7172_v9   ;;  %v114_v9 = vmul.f32 %v7388_v57, %v7405_v61 }
  0xc7   :  { %v7381_v54 = vpop.permute.xlu0 %285 }
  0xc8   :  { %11760 = vst [vmem:[#allocation32_spill] sm:$0xff] %v7381_v54  ;;  %v7384_v56 = vpop.permute.xlu1 %277 }
  0xc9   :  { %11761 = vst [vmem:[#allocation33_spill] sm:$0xff] %v7384_v56  ;;  %6432 = vset.pattern.permute.xlu1 %v11539_v4  ;;  %v7449_v4 = vrot.slane %v86_v53, %v11545_v2 }
  0xca   :  { %862 = vperm.xlu1 %6432, %v7198_v14   ;;  %v11550_v14 = vsub.s32 4, %v7369_v49 }
  0xcb   :  { %v7411_v3 = vpop.permute.xlu0 %297  ;;  %v397_v7 = vmul.f32 %v7449_v4, %v388_v55 }
  0xcc   :  { %11763 = vst [vmem:[#allocation35_spill] sm:$0xff] %v7411_v3  ;;  %v7466_v2 = vrot.slane %v86_v53, %v11550_v14  ;;  %v11769_v14 = vmov 0   ;;  %v326_v3 = vmul.f32 %v7309_v27, %v246_v60  ;;  %v93_v60 = vmul.f32 %v7415_v5, %v7398_v59 }
  0xcd   :  { %v7436_v15 = vpop.permute.xlu1 %826  ;;  %v477_v6 = vmul.f32 %v7325_v32, %v397_v7  ;;  %v11564_v32 = vrot.slane %v7398_v59, 1 }
  0xce   :  { %11764 = vst [vmem:[#allocation36_spill] sm:$0xff] %v7436_v15  ;;  %866 = vperm.xlu1 %6432, %v7210_v16   ;;  %v210_v16 = vmul.f32 %v7287_v21, %v114_v9  ;;  %v653_v9 = vsel %vm639_vm1, %v624_v18, %v11767_v43  ;;  %v209_v21 = vmul.f32 %v7329_v33, %v113_v1 }
  0xcf   :  { %v7451_v0 = vpop.permute.xlu0 %301  ;;  %v662_v27 = vmul.f32 %v7472_v46, %v653_v9  ;;  %v245_v1 = vmul.f32 %v7432_v12, %v7428_v10  ;;  %v512_v35 = vmul.f32 %v7466_v2, %v388_v55 }
  0xd0   :  { %11765 = vst [vmem:[#allocation37_spill] sm:$0xff] %v7451_v0  ;;  %v7483_v0 = vsel %vm374_vm0, %v358_v63, %v11768_v29  ;;  %v356_v29 = vrot.slane %v7405_v61, 4  ;;  %v7499_v63 = vld [vmem:[%s11729_s23 + $0x70] sm:$0xff] }
  0xd1   :  { %v7468_v52 = vpop.permute.xlu1 %830  ;;  %v513_v28 = vmul.f32 %v7466_v2, %v7483_v0 }
  0xd2   :  { %11766 = vst [vmem:[#allocation38_spill] sm:$0xff] %v7468_v52  ;;  %6434 = vset.pattern.permute.xlu1 %v11769_v14  ;;  %v226_v14 = vadd.f32 %v210_v16, %v94_v13  ;;  %v7514_v51 = vsel %vm374_vm0, %v356_v29, %v357_v62  ;;  %v11773_v13 = vrot.slane %v7428_v10, 1  ;;  %v225_v62 = vadd.f32 %v209_v21, %v93_v60  ;;  %v7539_v21 = vld [vmem:[%s11520_s0 + $0x70] sm:$0xff] }
  0xd3   :  { %190 = vperm.xlu1 %6434, %v7246_v19   ;;  %v7492_v43 = vpop.permute.xlu0 %309  ;;  %v593_v9 = vmul.f32 %v7343_v38, %v513_v28  ;;  %v802_v60 = vsel %vm788_vm2, %v11564_v32, %v774_v41 }
  0xd4   :  { %11770 = vst [vmem:[#allocation39_spill] sm:$0xff] %v7492_v43  ;;  %v11771_v43 = vsub.s32 6, %v7369_v49  ;;  %v801_v7 = vsel %vm788_vm2, %v774_v41, %v11773_v13  ;;  %v342_v16 = vadd.f32 %v326_v3, %v226_v14  ;;  %v742_v3 = vmul.f32 %v7289_v22, %v662_v27 }
  0xd5   :  { %v325_v14 = vmul.f32 %v7302_v25, %v245_v1  ;;  %v592_v41 = vmul.f32 %v7338_v36, %v512_v35  ;;  %v11777_v22 = vmov 1  }
  0xd6   :  { %v7508_v39 = vrot.slane %v86_v53, %v11771_v43  ;;  %v7510_v47 = vpop.permute.xlu1 %289  ;;  %v623_v43 = vrot.slane %v7405_v61, 7  ;;  %v493_v33 = vadd.f32 %v477_v6, %v342_v16  ;;  %v112_v16 = vmul.f32 %v7388_v57, %v7539_v21 }
  0xd7   :  { %11772 = vst [vmem:[#allocation40_spill] sm:$0xff] %v7510_v47  ;;  %200 = vperm.xlu1 %6434, %v7499_v63   ;;  %v7524_v53 = vpop.permute.xlu0 %321  ;;  %v396_v47 = vmul.f32 %v7449_v4, %v7514_v51 }
  0xd8   :  { %11774 = vst [vmem:[#allocation41_spill] sm:$0xff] %v7524_v53  ;;  %v811_v13 = vmul.f32 %v7508_v39, %v801_v7  ;;  %v654_v28 = vsel %vm639_vm1, %v623_v43, %v624_v18  ;;  %v609_v6 = vadd.f32 %v593_v9, %v493_v33  ;;  %v341_v7 = vadd.f32 %v325_v14, %v225_v62 }
  0xd9   :  { %v661_v27 = vmul.f32 %v7472_v46, %v654_v28  ;;  %v810_v33 = vmul.f32 %v7508_v39, %v802_v60  ;;  %v208_v35 = vmul.f32 %v7323_v31, %v112_v16 }
  0xda   :  { %v891_v9 = vmul.f32 %v7296_v24, %v811_v13  ;;  %v758_v32 = vadd.f32 %v742_v3, %v609_v6  ;;  %v92_v13 = vmul.f32 %v7415_v5, %v7405_v61  ;;  %v244_v3 = vmul.f32 %v7432_v12, %v7393_v58 }
  0xdb   :  { %205 = vperm.xlu1 %6434, %v7253_v20   ;;  %v7546_v55 = vpop.permute.xlu1 %838  ;;  %v741_v28 = vmul.f32 %v7359_v44, %v661_v27  ;;  %v890_v6 = vmul.f32 %v7468_v52, %v810_v33  ;;  %v95_v52 = vmul.f32 %v7415_v5, %v7428_v10 }
  0xdc   :  { %11775 = vst [vmem:[#allocation42_spill] sm:$0xff] %v7546_v55  ;;  %v7548_v18 = vpop.permute.xlu0 %416 }
  0xdd   :  { %11776 = vst [vmem:[#allocation43_spill] sm:$0xff] %v7548_v18  ;;  %v476_v1 = vmul.f32 %v7548_v18, %v396_v47  ;;  %v11571_v47 = vrot.slane %v7458_v11, 4 }
  0xdf   :  { %v492_v25 = vadd.f32 %v476_v1, %v341_v7  ;;  %6436 = vset.pattern.permute.xlu1 %v11777_v22  ;;  %v7573_v22 = vld [vmem:[%s11520_s0 + $0x28] sm:$0xff]  ;;  %v907_v7 = vadd.f32 %v891_v9, %v758_v32  ;;  %v324_v32 = vmul.f32 %v7361_v45, %v244_v3  ;;  %v11784_v3 = vmov 2  }
  0xe0   :  { %313 = vperm.xlu1 %6436, %v7217_v17   ;;  %v7559_v38 = vpop.permute.xlu1 %428  ;;  %v7561_v62 = vpop.permute.xlu0 %432  ;;  %v247_v9 = vmul.f32 %v7432_v12, %v7573_v22 }
  0xe1   :  { %11778 = vst [vmem:[#allocation44_spill] sm:$0xff] %v7559_v38  ;;  %11779 = vst [vmem:[#allocation45_spill] sm:$0xff] %v7561_v62  ;;  %v608_v14 = vadd.f32 %v592_v41, %v492_v25  ;;  %v115_v25 = vmul.f32 %v7388_v57, %v7398_v59  ;;  %v7588_v41 = vsel %vm374_vm0, %v11571_v47, %v356_v29 }
  0xe2   :  { %11782 = vst [vmem:[#allocation48_spill] sm:$0xff] %v7588_v41  ;;  %v923_v31 = vadd.f32 %v907_v7, %v7393_v58  ;;  %v395_v29 = vmul.f32 %v7449_v4, %v7588_v41  ;;  %v7613_v7 = vld [vmem:[%s11521_s3] ss:$0 sm:$0xff]  ;;  %s7051_s3 = smov 16  }
  0xe3   :  { %v757_v60 = vadd.f32 %v741_v28, %v608_v14  ;;  %v224_v28 = vadd.f32 %v208_v35, %v92_v13  ;;  %v11574_v14 = vrot.slane %v7405_v61, 1  ;;  %v211_v44 = vmul.f32 %v7294_v23, %v115_v25 }
  0xe4   :  { %317 = vperm.xlu1 %6436, %v7499_v63   ;;  %v7580_v1 = vpop.permute.xlu1 %436  ;;  %v7582_v16 = vpop.permute.xlu0 %448  ;;  %v11783_v13 = vrot.slane %v7458_v11, 7  ;;  %v511_v25 = vmul.f32 %v7466_v2, %v7514_v51 }
  0xe5   :  { %11780 = vst [vmem:[#allocation46_spill] sm:$0xff] %v7580_v1  ;;  %11781 = vst [vmem:[#allocation47_spill] sm:$0xff] %v7582_v16  ;;  %v906_v33 = vadd.f32 %v890_v6, %v757_v60  ;;  %v227_v18 = vadd.f32 %v211_v44, %v95_v52  ;;  %v11793_v44 = vrot.slane %v7428_v10, 4 }
  0xe6   :  { %v655_v35 = vsel %vm639_vm1, %v11783_v13, %v623_v43  ;;  %v340_v43 = vadd.f32 %v324_v32, %v224_v28  ;;  %v327_v13 = vmul.f32 %v7367_v48, %v247_v9  ;;  %v475_v28 = vmul.f32 %v7317_v30, %v395_v29 }
  0xe7   :  { %v922_v27 = vadd.f32 %v906_v33, %v7398_v59  ;;  %v398_v32 = vmul.f32 %v7449_v4, %v7483_v0  ;;  %v660_v9 = vmul.f32 %v7472_v46, %v655_v35 }
  0xe8   :  { %6438 = vset.pattern.permute.xlu1 %v11784_v3  ;;  %v7606_v6 = vpop.permute.xlu1 %440  ;;  %v7608_v60 = vpop.permute.xlu0 %464  ;;  %v11788_v3 = vrot.slane %v7398_v59, 1  ;;  %v343_v35 = vadd.f32 %v327_v13, %v227_v18  ;;  %v11818_v59 = vrot.slane %v7573_v22, 1 }
  0xe9   :  { %11785 = vst [vmem:[#allocation49_spill] sm:$0xff] %v7606_v6  ;;  %11786 = vst [vmem:[#allocation50_spill] sm:$0xff] %v7608_v60  ;;  %460 = vperm.xlu1 %6438, %v7246_v19   ;;  %v7619_v47 = vadd.f32 %v7613_v7, %v922_v27  ;;  %v7633_v27 = vadd.f32 %v7613_v7, %v923_v31  ;;  %v11792_v31 = vrot.slane %v7421_v8, 4 }
  0xea   :  { %v803_v36 = vsel %vm788_vm2, %v11574_v14, %v11788_v3  ;;  %v11790_v3 = vrot.slane %v7428_v10, 7  ;;  %v11791_v14 = vrot.slane %v7393_v58, 7  ;;  %v478_v30 = vmul.f32 %v7332_v34, %v398_v32 }
  0xeb   :  { %11787 = vst [vmem:[#allocation51_spill] sm:$0xff] %v7619_v47  ;;  %v965_v33 = vsel %vm961_vm3, %v7619_v47, 0.0  ;;  %11789 = vst [vmem:[#allocation52_spill] sm:$0xff] %v7633_v27  ;;  %v809_v45 = vmul.f32 %v7508_v39, %v803_v36  ;;  %v7652_v52 = vsel %vm374_vm0, %v11793_v44, %v11792_v31  ;;  %v740_v31 = vmul.f32 %v7354_v42, %v660_v9 }
  0xec   :  { %966 = vadd.xlane.f32.xlu0 %v965_v33  ;;  %v652_v51 = vsel %vm639_vm1, %v11791_v14, %v11790_v3  ;;  %v491_v33 = vadd.f32 %v475_v28, %v340_v43  ;;  %v514_v36 = vmul.f32 %v7466_v2, %v7652_v52  ;;  %v968_v3 = vsel %vm961_vm3, %v7633_v27, 0.0 }
  0xed   :  { %v7654_v0 = vpop.permute.xlu0 %528  ;;  %468 = vperm.xlu1 %6438, %v7499_v63   ;;  %v7657_v29 = vpop.permute.xlu1 %548  ;;  %v663_v44 = vmul.f32 %v7472_v46, %v652_v51  ;;  %v494_v13 = vadd.f32 %v478_v30, %v343_v35  ;;  %v7693_v30 = vld [vmem:[%s11520_s0 + $0x30] sm:$0xff]  ;;  %v118_v35 = vmul.f32 %v7388_v57, %v7421_v8  ;;  %v96_v34 = vmul.f32 %v7415_v5, %v7421_v8 }
  0xee   :  { %11794 = vst [vmem:[#allocation53_spill] sm:$0xff] %v7654_v0  ;;  %11795 = vst [vmem:[#allocation54_spill] sm:$0xff] %v7657_v29  ;;  %v591_v14 = vmul.f32 %v7654_v0, %v511_v25  ;;  %v889_v25 = vmul.f32 %v7436_v15, %v809_v45  ;;  %v116_v15 = vmul.f32 %v7388_v57, %v7393_v58 }
  0xef   :  { %v743_v32 = vmul.f32 %v7372_v50, %v663_v44  ;;  %v361_v44 = vrot.slane %v7573_v22, 4 }
  0xf0   :  { %v607_v24 = vadd.f32 %v591_v14, %v491_v33  ;;  %969 = vadd.xlane.f32.xlu0 %v968_v3  ;;  %v11799_v33 = vmov 3   ;;  %v212_v60 = vmul.f32 %v7348_v40, %v116_v15  ;;  %v11811_v15 = vrot.slane %v7421_v8, 7 }
  0xf1   :  { %v7667_v48 = vpop.permute.xlu0 %540  ;;  %472 = vperm.xlu1 %6438, %v7253_v20   ;;  %v7670_v18 = vpop.permute.xlu1 %552  ;;  %v11812_v40 = vrot.slane %v7428_v10, 7 }
  0xf2   :  { %11796 = vst [vmem:[#allocation55_spill] sm:$0xff] %v7667_v48  ;;  %11797 = vst [vmem:[#allocation56_spill] sm:$0xff] %v7670_v18  ;;  %v756_v43 = vadd.f32 %v740_v31, %v607_v24  ;;  %v594_v28 = vmul.f32 %v7667_v48, %v514_v36  ;;  %v7702_v31 = vld [vmem:[%s11520_s0 + $0x40] sm:$0xff] }
  0xf4   :  { %v7675_v0 = vadd.f32 %v889_v25, %v756_v43  ;;  %v610_v9 = vadd.f32 %v594_v28, %v494_v13  ;;  %v362_v25 = vrot.slane %v7693_v30, 4  ;;  %v11804_v43 = vmov 4   ;;  %v7713_v28 = vld [vmem:[%s11520_s0 + $0x38] sm:$0xff] }
  0xf5   :  { %v7677_v51 = vpop.permute.xlu0 %544  ;;  %6440 = vset.pattern.permute.xlu1 %v11799_v33  ;;  %v250_v33 = vmul.f32 %v7432_v12, %v7702_v31  ;;  %v11809_v27 = vrot.slane %v7713_v28, 4 }
  0xf6   :  { %11798 = vst [vmem:[#allocation57_spill] sm:$0xff] %v7677_v51  ;;  %v7680_v14 = vadd.f32 %v743_v32, %v610_v9  ;;  %580 = vperm.xlu1 %6440, %v7217_v17   ;;  %v7683_v3 = vpop.permute.xlu1 %170  ;;  %v98_v32 = vmul.f32 %v7415_v5, %v7693_v30  ;;  %v214_v9 = vmul.f32 %v7340_v37, %v118_v35 }
  0xf7   :  { %11800 = vst [vmem:[#allocation58_spill] sm:$0xff] %v7683_v3  ;;  %v330_v35 = vmul.f32 %v7381_v54, %v250_v33  ;;  %v7744_v58 = vsel %vm374_vm0, %v362_v25, %v11809_v27  ;;  %v399_v27 = vmul.f32 %v7449_v4, %v7652_v52  ;;  %v651_v52 = vsel %vm639_vm1, %v11812_v40, %v11811_v15 }
  0xf8   :  { %v230_v48 = vadd.f32 %v214_v9, %v98_v32  ;;  %v11598_v32 = vrot.slane %v7573_v22, 7  ;;  %v11597_v9 = vrot.slane %v7693_v30, 7  ;;  %v517_v47 = vmul.f32 %v7466_v2, %v7744_v58 }
  0xf9   :  { %v7685_v45 = vpop.permute.xlu0 %556  ;;  %v11817_v15 = vmov 5  }
  0xfa   :  { %11801 = vst [vmem:[#allocation59_spill] sm:$0xff] %v7685_v45  ;;  %584 = vperm.xlu1 %6440, %v7499_v63   ;;  %v649_v54 = vsel %vm639_vm1, %v11598_v32, %v11597_v9  ;;  %v346_v53 = vadd.f32 %v330_v35, %v230_v48  ;;  %v11815_v48 = vrot.slane %v7713_v28, 1  ;;  %v776_v32 = vrot.slane %v7421_v8, 1 }
  0xfb   :  { %v7688_v24 = vpop.permute.xlu1 %693  ;;  %v597_v40 = vmul.f32 %v7670_v18, %v517_v47 }
  0xfc   :  { %11802 = vst [vmem:[#allocation60_spill] sm:$0xff] %v7688_v24 }
  0xfd   :  { %v7697_v36 = vpop.permute.xlu0 %560 }
  0xfe   :  { %11803 = vst [vmem:[#allocation61_spill] sm:$0xff] %v7697_v36  ;;  %6442 = vset.pattern.permute.xlu1 %v11804_v43  ;;  %v248_v43 = vmul.f32 %v7432_v12, %v7693_v30 }
  0xff   :  { %725 = vperm.xlu1 %6442, %v7246_v19   ;;  %v7708_v13 = vpop.permute.xlu1 %697  ;;  %v7724_v19 = vsel %vm374_vm0, %v361_v44, %v362_v25  ;;  %v11810_v25 = vrot.slane %v7421_v8, 4 }
 0x100   :  { %11805 = vst [vmem:[#allocation62_spill] sm:$0xff] %v7708_v13  ;;  %v401_v37 = vmul.f32 %v7449_v4, %v7724_v19  ;;  %v328_v41 = vmul.f32 %v7384_v56, %v248_v43  ;;  %v479_v43 = vmul.f32 %v7559_v38, %v399_v27  ;;  %v664_v56 = vmul.f32 %v7472_v46, %v651_v52  ;;  %v7904_v38 = vld [vmem:[%s11520_s0 + $0x58] sm:$0xff] }
 0x101   :  { %v7720_v42 = vpop.permute.xlu0 %572  ;;  %v385_v33 = vsel %vm374_vm0, %v11810_v25, %v361_v44  ;;  %v228_v25 = vadd.f32 %v212_v60, %v96_v34 }
 0x102   :  { %11806 = vst [vmem:[#allocation63_spill] sm:$0xff] %v7720_v42  ;;  %v515_v9 = vmul.f32 %v7466_v2, %v385_v33 }
 0x103   :  { %733 = vperm.xlu1 %6442, %v7499_v63   ;;  %v344_v47 = vadd.f32 %v328_v41, %v228_v25 }
 0x104   :  { %v7730_v50 = vpop.permute.xlu1 %185 }
 0x105   :  { %11807 = vst [vmem:[#allocation64_spill] sm:$0xff] %v7730_v50  ;;  %v7736_v23 = vpop.permute.xlu0 %576  ;;  %v495_v27 = vadd.f32 %v479_v43, %v344_v47 }
 0x106   :  { %11808 = vst [vmem:[#allocation65_spill] sm:$0xff] %v7736_v23 }
 0x107   :  { %737 = vperm.xlu1 %6442, %v7253_v20   ;;  %v481_v20 = vmul.f32 %v7580_v1, %v401_v37  ;;  %v11816_v37 = vrot.slane %v7693_v30, 1  ;;  %v666_v1 = vmul.f32 %v7472_v46, %v649_v54 }
 0x109   :  { %v7775_v23 = vpop.permute.xlu1 %705  ;;  %v7777_v44 = vpop.permute.xlu0 %588  ;;  %v797_v35 = vsel %vm788_vm2, %v11816_v37, %v11815_v48  ;;  %v799_v48 = vsel %vm788_vm2, %v776_v32, %v11818_v59 }
 0x10a   :  { %11813 = vst [vmem:[#allocation66_spill] sm:$0xff] %v7775_v23  ;;  %11814 = vst [vmem:[#allocation67_spill] sm:$0xff] %v7777_v44  ;;  %v497_v44 = vadd.f32 %v481_v20, %v346_v53  ;;  %v815_v37 = vmul.f32 %v7508_v39, %v797_v35  ;;  %v813_v53 = vmul.f32 %v7508_v39, %v799_v48 }
 0x10b   :  { %6444 = vset.pattern.permute.xlu1 %v11817_v15  ;;  %v595_v15 = vmul.f32 %v7677_v51, %v515_v9  ;;  %v97_v48 = vmul.f32 %v7415_v5, %v7573_v22  ;;  %v11839_v51 = vrot.slane %v7693_v30, 7 }
 0x10c   :  { %878 = vperm.xlu1 %6444, %v7217_v17   ;;  %v613_v54 = vadd.f32 %v597_v40, %v497_v44  ;;  %v744_v17 = vmul.f32 %v7688_v24, %v664_v56  ;;  %v895_v20 = vmul.f32 %v7304_v26, %v815_v37  ;;  %v11824_v37 = vld [vmem:[#allocation16_spill] sm:$0xff]  ;;  %v11832_v26 = vrot.slane %v7702_v31, 4 }
 0x10d   :  { %v611_v41 = vadd.f32 %v595_v15, %v495_v27  ;;  %v249_v15 = vmul.f32 %v7432_v12, %v7713_v28 }
 0x10e   :  { %v7801_v18 = vpop.permute.xlu0 %701  ;;  %v7803_v34 = vpop.permute.xlu1 %293 }
 0x10f   :  { %11819 = vst [vmem:[#allocation68_spill] sm:$0xff] %v7801_v18  ;;  %11820 = vst [vmem:[#allocation69_spill] sm:$0xff] %v7803_v34  ;;  %v746_v60 = vmul.f32 %v7801_v18, %v666_v1  ;;  %v760_v9 = vadd.f32 %v744_v17, %v611_v41  ;;  %v117_v1 = vmul.f32 %v7388_v57, %v7428_v10  ;;  %v7837_v17 = vld [vmem:[%s11520_s0 + $0x48] sm:$0xff]  ;;  %v11833_v18 = vrot.slane %v7713_v28, 4 }
 0x110   :  { %882 = vperm.xlu1 %6444, %v7499_v63   ;;  %v400_v41 = vmul.f32 %v7449_v4, %v385_v33  ;;  %v11830_v33 = vrot.slane %v7573_v22, 7 }
 0x111   :  { %v762_v59 = vadd.f32 %v746_v60, %v613_v54  ;;  %v213_v47 = vmul.f32 %v11824_v37, %v117_v1  ;;  %v251_v1 = vmul.f32 %v7432_v12, %v7837_v17 }
 0x113   :  { %v7810_v52 = vpop.permute.xlu1 %842  ;;  %v911_v25 = vadd.f32 %v895_v20, %v762_v59  ;;  %v11827_v59 = vld [vmem:[#allocation31_spill] sm:$0xff] }
 0x114   :  { %11821 = vst [vmem:[#allocation70_spill] sm:$0xff] %v7810_v52  ;;  %v893_v35 = vmul.f32 %v7810_v52, %v813_v53  ;;  %v229_v53 = vadd.f32 %v213_v47, %v97_v48  ;;  %v329_v20 = vmul.f32 %v11827_v59, %v249_v15  ;;  %v11831_v48 = vrot.slane %v7421_v8, 7  ;;  %v11837_v52 = vld [vmem:[#allocation40_spill] sm:$0xff] }
 0x115   :  { %v927_v63 = vadd.f32 %v911_v25, %v7693_v30  ;;  %v119_v25 = vmul.f32 %v7388_v57, %v7573_v22  ;;  %v402_v15 = vmul.f32 %v7449_v4, %v7744_v58  ;;  %v103_v59 = vmul.f32 %v7415_v5, %v7904_v38 }
 0x116   :  { %v909_v44 = vadd.f32 %v893_v35, %v760_v9  ;;  %v650_v47 = vsel %vm639_vm1, %v11831_v48, %v11830_v33  ;;  %v516_v9 = vmul.f32 %v7466_v2, %v7724_v19  ;;  %v11835_v48 = vrot.slane %v7693_v30, 1 }
 0x117   :  { %v7815_v40 = vpop.permute.xlu1 %846  ;;  %v7832_v27 = vadd.f32 %v7613_v7, %v927_v63  ;;  %v780_v19 = vrot.slane %v7702_v31, 1 }
 0x118   :  { %11822 = vst [vmem:[#allocation71_spill] sm:$0xff] %v7815_v40  ;;  %v925_v56 = vadd.f32 %v909_v44, %v7421_v8  ;;  %v99_v8 = vmul.f32 %v7415_v5, %v7713_v28  ;;  %v596_v58 = vmul.f32 %v7657_v29, %v516_v9 }
 0x119   :  { %11826 = vst [vmem:[#allocation74_spill] sm:$0xff] %v7832_v27  ;;  %v980_v35 = vsel %vm961_vm3, %v7832_v27, 0.0 }
 0x11a   :  { %v7820_v43 = vadd.f32 %v7613_v7, %v925_v56  ;;  %v11829_v56 = vrot.slane %v7428_v10, 1 }
 0x11c   :  { %11823 = vst [vmem:[#allocation72_spill] sm:$0xff] %v7820_v43  ;;  %v7827_v54 = vpop.permute.xlu1 %305  ;;  %v974_v60 = vsel %vm961_vm3, %v7820_v43, 0.0  ;;  %v800_v63 = vsel %vm788_vm2, %v11829_v56, %v776_v32  ;;  %v382_v32 = vsel %vm374_vm0, %v11833_v18, %v11832_v26  ;;  %v11834_v56 = vld [vmem:[#allocation27_spill] sm:$0xff]  ;;  %v665_v26 = vmul.f32 %v7472_v46, %v650_v47 }
 0x11d   :  { %11825 = vst [vmem:[#allocation73_spill] sm:$0xff] %v7827_v54  ;;  %975 = vadd.xlane.f32.xlu0 %v974_v60  ;;  %v345_v60 = vadd.f32 %v329_v20, %v229_v53  ;;  %v215_v33 = vmul.f32 %v11834_v56, %v119_v25  ;;  %v11836_v53 = vrot.slane %v7573_v22, 1  ;;  %v331_v25 = vmul.f32 %v11837_v52, %v251_v1 }
 0x11e   :  { %v518_v24 = vmul.f32 %v7466_v2, %v382_v32  ;;  %v11838_v56 = vrot.slane %v7713_v28, 7  ;;  %v11841_v18 = vrot.slane %v7713_v28, 1 }
 0x11f   :  { %v798_v20 = vsel %vm788_vm2, %v11836_v53, %v11835_v48  ;;  %v231_v52 = vadd.f32 %v215_v33, %v99_v8  ;;  %v11842_v8 = vrot.slane %v7837_v17, 1 }
 0x120   :  { %v648_v48 = vsel %vm639_vm1, %v11839_v51, %v11838_v56  ;;  %v814_v47 = vmul.f32 %v7508_v39, %v798_v20  ;;  %v796_v1 = vsel %vm788_vm2, %v11841_v18, %v780_v19  ;;  %v7909_v51 = vld [vmem:[%s11520_s0 + $0x60] sm:$0xff] }
 0x121   :  { %v7846_v44 = vpop.permute.xlu1 %854  ;;  %981 = vadd.xlane.f32.xlu0 %v980_v35  ;;  %v480_v35 = vmul.f32 %v7561_v62, %v400_v41  ;;  %v812_v41 = vmul.f32 %v7508_v39, %v800_v63  ;;  %v667_v56 = vmul.f32 %v7472_v46, %v648_v48  ;;  %v795_v33 = vsel %vm788_vm2, %v780_v19, %v11842_v8 }
 0x122   :  { %11828 = vst [vmem:[#allocation75_spill] sm:$0xff] %v7846_v44  ;;  %v347_v20 = vadd.f32 %v331_v25, %v231_v52  ;;  %v816_v18 = vmul.f32 %v7508_v39, %v796_v1  ;;  %v921_v62 = vadd.f32 %v7675_v0, %v7405_v61  ;;  %v894_v48 = vmul.f32 %v7815_v40, %v814_v47  ;;  %v7932_v52 = vld [vmem:[%s11520_s0 + $0x50] sm:$0xff] }
 0x123   :  { %v496_v63 = vadd.f32 %v480_v35, %v345_v60  ;;  %v892_v9 = vmul.f32 %v7546_v55, %v812_v41  ;;  %v482_v60 = vmul.f32 %v7606_v6, %v402_v15  ;;  %v745_v35 = vmul.f32 %v7708_v13, %v665_v26  ;;  %v11853_v55 = vld [vmem:[#allocation9_spill] sm:$0xff] }
 0x124   :  { %v598_v26 = vmul.f32 %v7685_v45, %v518_v24  ;;  %v11615_v6 = vrot.slane %v7904_v38, 1  ;;  %v11614_v13 = vrot.slane %v7909_v51, 1  ;;  %v120_v0 = vmul.f32 %v7388_v57, %v7693_v30 }
 0x125   :  { %v612_v41 = vadd.f32 %v596_v58, %v496_v63  ;;  %v908_v15 = vadd.f32 %v892_v9, %v7680_v14  ;;  %v498_v19 = vadd.f32 %v482_v60, %v347_v20  ;;  %v747_v14 = vmul.f32 %v7775_v23, %v667_v56 }
 0x126   :  { %v7893_v53 = vpop.permute.xlu1 %444  ;;  %v817_v24 = vmul.f32 %v7508_v39, %v795_v33  ;;  %v11616_v63 = vrot.slane %v7837_v17, 4  ;;  %v252_v58 = vmul.f32 %v7432_v12, %v7932_v52  ;;  %v7944_v1 = vadd.f32 %v7613_v7, %v921_v62 }
 0x127   :  { %11840 = vst [vmem:[#allocation76_spill] sm:$0xff] %v7893_v53  ;;  %v761_v25 = vadd.f32 %v745_v35, %v612_v41  ;;  %v614_v9 = vadd.f32 %v598_v26, %v498_v19  ;;  %v896_v8 = vmul.f32 %v7846_v44, %v816_v18  ;;  %v924_v30 = vadd.f32 %v908_v15, %v7428_v10 }
 0x128   :  { %11845 = vst [vmem:[#allocation79_spill] sm:$0xff] %v7944_v1  ;;  %v7954_v35 = vsel %vm788_vm2, %v11615_v6, %v11614_v13  ;;  %v101_v56 = vmul.f32 %v7415_v5, %v7837_v17  ;;  %v121_v62 = vmul.f32 %v7388_v57, %v7713_v28  ;;  %v100_v33 = vmul.f32 %v7415_v5, %v7702_v31 }
 0x129   :  { %v910_v60 = vadd.f32 %v894_v48, %v761_v25  ;;  %v216_v20 = vmul.f32 %v7683_v3, %v120_v0  ;;  %v367_v10 = vrot.slane %v7904_v38, 4  ;;  %v763_v18 = vadd.f32 %v747_v14, %v614_v9 }
 0x12a   :  { %v7920_v29 = vpop.permute.xlu1 %452  ;;  %v403_v41 = vmul.f32 %v7449_v4, %v382_v32  ;;  %v11846_v15 = vrot.slane %v7702_v31, 4  ;;  %v11623_v48 = vrot.slane %v7909_v51, 4  ;;  %v366_v19 = vrot.slane %v7932_v52, 4 }
 0x12b   :  { %11843 = vst [vmem:[#allocation77_spill] sm:$0xff] %v7920_v29  ;;  %v962_v25 = vsel %vm961_vm3, %v7944_v1, 0.0  ;;  %v332_v0 = vmul.f32 %v7803_v34, %v252_v58  ;;  %v926_v14 = vadd.f32 %v910_v60, %v7573_v22  ;;  %v912_v9 = vadd.f32 %v896_v8, %v763_v18  ;;  %v7993_v22 = vld [vmem:[%s11520_s0 + $0x68] sm:$0xff] }
 0x12c   :  { %v381_v26 = vsel %vm374_vm0, %v11846_v15, %v11616_v63  ;;  %v7980_v13 = vadd.f32 %v7613_v7, %v924_v30  ;;  %v7984_v15 = vmul.f32 %v7415_v5, %v7932_v52  ;;  %v122_v6 = vmul.f32 %v7388_v57, %v7702_v31 }
 0x12d   :  { %v519_v63 = vmul.f32 %v7466_v2, %v381_v26  ;;  %v631_v58 = vrot.slane %v7702_v31, 7  ;;  %v232_v60 = vadd.f32 %v216_v20, %v100_v33  ;;  %v123_v8 = vmul.f32 %v7388_v57, %v7837_v17 }
 0x12e   :  { %v7941_v47 = vpop.permute.xlu1 %456  ;;  %11848 = vst [vmem:[#allocation81_spill] sm:$0xff] %v7980_v13  ;;  %v483_v30 = vmul.f32 %v7893_v53, %v403_v41  ;;  %v8000_v18 = vsel %vm374_vm0, %v366_v19, %v367_v10  ;;  %v8008_v34 = vsel %vm374_vm0, %v367_v10, %v11623_v48  ;;  %v255_v33 = vmul.f32 %v7432_v12, %v7993_v22  ;;  %v11852_v10 = vld [vmem:[#allocation20_spill] sm:$0xff] }
 0x12f   :  { %11844 = vst [vmem:[#allocation78_spill] sm:$0xff] %v7941_v47  ;;  %v11849_v20 = vrot.slane %v7713_v28, 7  ;;  %v348_v53 = vadd.f32 %v332_v0, %v232_v60  ;;  %v928_v44 = vadd.f32 %v912_v9, %v7713_v28  ;;  %v971_v3 = vsel %vm961_vm3, %v7980_v13, 0.0 }
 0x130   :  { %v8022_v23 = vadd.f32 %v7613_v7, %v926_v14  ;;  %v217_v48 = vmul.f32 %v11852_v10, %v121_v62  ;;  %v254_v40 = vmul.f32 %v7432_v12, %v7909_v51  ;;  %v406_v0 = vmul.f32 %v7449_v4, %v8000_v18 }
 0x131   :  { %v647_v41 = vsel %vm639_vm1, %v11849_v20, %v631_v58  ;;  %v599_v28 = vmul.f32 %v7697_v36, %v519_v63  ;;  %v219_v9 = vmul.f32 %v7730_v50, %v123_v8  ;;  %v499_v60 = vadd.f32 %v483_v30, %v348_v53  ;;  %v11855_v30 = vld [vmem:[#allocation35_spill] sm:$0xff] }
 0x132   :  { %11851 = vst [vmem:[#allocation83_spill] sm:$0xff] %v8022_v23  ;;  %v668_v14 = vmul.f32 %v7472_v46, %v647_v41  ;;  %v404_v20 = vmul.f32 %v7449_v4, %v381_v26  ;;  %v522_v62 = vmul.f32 %v7466_v2, %v8008_v34  ;;  %v632_v10 = vrot.slane %v7837_v17, 7 }
 0x133   :  { %v7977_v32 = vpop.permute.xlu1 %564  ;;  %v897_v27 = vmul.f32 %v11853_v55, %v817_v24  ;;  %v977_v63 = vsel %vm961_vm3, %v8022_v23, 0.0  ;;  %v8044_v53 = vadd.f32 %v7613_v7, %v928_v44  ;;  %v233_v8 = vadd.f32 %v217_v48, %v101_v56  ;;  %v11858_v55 = vld [vmem:[#allocation22_spill] sm:$0xff] }
 0x134   :  { %11847 = vst [vmem:[#allocation80_spill] sm:$0xff] %v7977_v32  ;;  %963 = vadd.xlane.f32.xlu1 %v962_v25  ;;  %v253_v25 = vmul.f32 %v7432_v12, %v7904_v38  ;;  %v11856_v41 = vrot.slane %v7837_v17, 4  ;;  %v633_v24 = vrot.slane %v7932_v52, 7  ;;  %v486_v37 = vmul.f32 %v7941_v47, %v406_v0 }
 0x135   :  { %11854 = vst [vmem:[#allocation84_spill] sm:$0xff] %v8044_v53  ;;  %v218_v56 = vmul.f32 %v11858_v55, %v122_v6  ;;  %v782_v0 = vrot.slane %v7932_v52, 1  ;;  %v484_v6 = vmul.f32 %v7582_v16, %v404_v20  ;;  %v787_v47 = vrot.slane %v7458_v11, 1 }
 0x136   :  { %v333_v26 = vmul.f32 %v11855_v30, %v253_v25  ;;  %v380_v50 = vsel %vm374_vm0, %v11856_v41, %v366_v19  ;;  %v646_v25 = vsel %vm639_vm1, %v631_v58, %v632_v10  ;;  %v11859_v19 = vrot.slane %v7904_v38, 7 }
 0x137   :  { %v8017_v45 = vpop.permute.xlu1 %568  ;;  %v520_v48 = vmul.f32 %v7466_v2, %v380_v50  ;;  %v645_v58 = vsel %vm639_vm1, %v632_v10, %v633_v24  ;;  %v234_v20 = vadd.f32 %v218_v56, %v7984_v15  ;;  %v11863_v10 = vrot.slane %v7837_v17, 1 }
 0x138   :  { %11850 = vst [vmem:[#allocation82_spill] sm:$0xff] %v8017_v45  ;;  %972 = vadd.xlane.f32.xlu1 %v971_v3  ;;  %v335_v3 = vmul.f32 %v7827_v54, %v255_v33  ;;  %v235_v33 = vadd.f32 %v219_v9, %v103_v59  ;;  %v615_v54 = vadd.f32 %v599_v28, %v499_v60  ;;  %v983_v59 = vsel %vm961_vm3, %v8044_v53, 0.0 }
 0x139   :  { %v349_v28 = vadd.f32 %v333_v26, %v233_v8  ;;  %v405_v9 = vmul.f32 %v7449_v4, %v380_v50  ;;  %v669_v8 = vmul.f32 %v7472_v46, %v646_v25  ;;  %v11861_v26 = vld [vmem:[#allocation37_spill] sm:$0xff]  ;;  %v670_v15 = vmul.f32 %v7472_v46, %v645_v58 }
 0x13a   :  { %v351_v41 = vadd.f32 %v335_v3, %v235_v33  ;;  %v334_v50 = vmul.f32 %v11861_v26, %v254_v40  ;;  %v11892_v26 = vld [vmem:[#allocation65_spill] sm:$0xff] }
 0x13b   :  { %v485_v40 = vmul.f32 %v7920_v29, %v405_v9  ;;  %v11867_v9 = vld [vmem:[#allocation10_spill] sm:$0xff] }
 0x13c   :  { %v8051_v36 = vpop.permute.xlu1 %709  ;;  %978 = vadd.xlane.f32.xlu1 %v977_v63  ;;  %v644_v63 = vsel %vm639_vm1, %v633_v24, %v11859_v19  ;;  %v502_v3 = vadd.f32 %v486_v37, %v351_v41  ;;  %v8079_v19 = vpop.permute.xlu0 %713  ;;  %v794_v37 = vsel %vm788_vm2, %v11863_v10, %v782_v0  ;;  %v11866_v41 = vrot.slane %v7904_v38, 1 }
 0x13d   :  { %11857 = vst [vmem:[#allocation85_spill] sm:$0xff] %v8051_v36  ;;  %v748_v44 = vmul.f32 %v8051_v36, %v668_v14  ;;  %v602_v14 = vmul.f32 %v7720_v42, %v522_v62  ;;  %v671_v33 = vmul.f32 %v7472_v46, %v644_v63  ;;  %11862 = vst [vmem:[#allocation87_spill] sm:$0xff] %v8079_v19  ;;  %v11893_v36 = vld [vmem:[#allocation41_spill] sm:$0xff] }
 0x13e   :  { %v500_v62 = vadd.f32 %v484_v6, %v349_v28  ;;  %v749_v63 = vmul.f32 %v8079_v19, %v669_v8 }
 0x13f   :  { %v764_v30 = vadd.f32 %v748_v44, %v615_v54  ;;  %v600_v44 = vmul.f32 %v7977_v32, %v520_v48  ;;  %v618_v56 = vadd.f32 %v602_v14, %v502_v3 }
 0x140   :  { %v8069_v60 = vpop.permute.xlu1 %717  ;;  %984 = vadd.xlane.f32.xlu1 %v983_v59  ;;  %v350_v59 = vadd.f32 %v334_v50, %v234_v20 }
 0x141   :  { %11860 = vst [vmem:[#allocation86_spill] sm:$0xff] %v8069_v60  ;;  %v913_v54 = vadd.f32 %v897_v27, %v764_v30  ;;  %v820_v27 = vmul.f32 %v7508_v39, %v7954_v35  ;;  %v521_v30 = vmul.f32 %v7466_v2, %v8000_v18  ;;  %v616_v25 = vadd.f32 %v600_v44, %v500_v62 }
 0x142   :  { %v818_v35 = vmul.f32 %v7508_v39, %v794_v37  ;;  %v793_v18 = vsel %vm788_vm2, %v782_v0, %v11866_v41  ;;  %v501_v14 = vadd.f32 %v485_v40, %v350_v59  ;;  %v750_v44 = vmul.f32 %v8069_v60, %v670_v15 }
 0x143   :  { %v929_v55 = vadd.f32 %v913_v54, %v7702_v31  ;;  %v900_v58 = vmul.f32 %v11867_v9, %v820_v27  ;;  %v819_v54 = vmul.f32 %v7508_v39, %v793_v18  ;;  %v11891_v9 = vld [vmem:[#allocation48_spill] sm:$0xff] }
 0x144   :  { %v8091_v24 = vpop.permute.xlu1 %721 }
 0x145   :  { %11864 = vst [vmem:[#allocation88_spill] sm:$0xff] %v8091_v24  ;;  %v751_v31 = vmul.f32 %v8091_v24, %v671_v33  ;;  %v8096_v48 = vadd.f32 %v7613_v7, %v929_v55  ;;  %v601_v55 = vmul.f32 %v8017_v45, %v521_v30  ;;  %v765_v33 = vadd.f32 %v749_v63, %v616_v25 }
 0x147   :  { %11865 = vst [vmem:[#allocation89_spill] sm:$0xff] %v8096_v48  ;;  %v767_v28 = vadd.f32 %v751_v31, %v618_v56  ;;  %v986_v6 = vsel %vm961_vm3, %v8096_v48, 0.0  ;;  %v617_v20 = vadd.f32 %v601_v55, %v501_v14  ;;  %v256_v14 = vmul.f32 %v7432_v12, %v7539_v21 }
 0x148   :  { %987 = vadd.xlane.f32.xlu0 %v986_v6 }
 0x149   :  { %v8108_v3 = vpop.permute.xlu1 %862  ;;  %v916_v8 = vadd.f32 %v900_v58, %v767_v28  ;;  %v766_v37 = vadd.f32 %v750_v44, %v617_v20  ;;  %v124_v28 = vmul.f32 %v7388_v57, %v7932_v52  ;;  %v104_v58 = vmul.f32 %v7415_v5, %v7909_v51 }
 0x14a   :  { %11868 = vst [vmem:[#allocation90_spill] sm:$0xff] %v8108_v3  ;;  %v898_v0 = vmul.f32 %v8108_v3, %v818_v35  ;;  %v407_v44 = vmul.f32 %v7449_v4, %v8008_v34  ;;  %v127_v34 = vmul.f32 %v7388_v57, %v7993_v22 }
 0x14b   :  { %v932_v30 = vadd.f32 %v916_v8, %v7904_v38  ;;  %v11878_v8 = vld [vmem:[#allocation39_spill] sm:$0xff] }
 0x14c   :  { %v914_v50 = vadd.f32 %v898_v0, %v765_v33  ;;  %v336_v0 = vmul.f32 %v11878_v8, %v256_v14  ;;  %v11884_v14 = vld [vmem:[#allocation24_spill] sm:$0xff]  ;;  %v11888_v8 = vrot.slane %v7904_v38, 7 }
 0x14d   :  { %v8113_v10 = vpop.permute.xlu1 %866  ;;  %v8127_v63 = vadd.f32 %v7613_v7, %v932_v30  ;;  %v369_v30 = vrot.slane %v7993_v22, 4 }
 0x14e   :  { %11869 = vst [vmem:[#allocation91_spill] sm:$0xff] %v8113_v10  ;;  %v930_v27 = vadd.f32 %v914_v50, %v7837_v17  ;;  %v899_v62 = vmul.f32 %v8113_v10, %v819_v54 }
 0x14f   :  { %11872 = vst [vmem:[#allocation94_spill] sm:$0xff] %v8127_v63  ;;  %v995_v18 = vsel %vm961_vm3, %v8127_v63, 0.0 }
 0x150   :  { %v915_v40 = vadd.f32 %v899_v62, %v766_v37  ;;  %v8119_v56 = vadd.f32 %v7613_v7, %v930_v27 }
 0x152   :  { %11870 = vst [vmem:[#allocation92_spill] sm:$0xff] %v8119_v56  ;;  %v8121_v31 = vpop.permute.xlu1 %190  ;;  %v989_v15 = vsel %vm961_vm3, %v8119_v56, 0.0  ;;  %v931_v25 = vadd.f32 %v915_v40, %v7932_v52  ;;  %v125_v40 = vmul.f32 %v7388_v57, %v7904_v38 }
 0x153   :  { %11871 = vst [vmem:[#allocation93_spill] sm:$0xff] %v8121_v31  ;;  %990 = vadd.xlane.f32.xlu1 %v989_v15  ;;  %v220_v55 = vmul.f32 %v8121_v31, %v124_v28  ;;  %v11635_v15 = vrot.slane %v7993_v22, 1  ;;  %v105_v28 = vmul.f32 %v7415_v5, %v7993_v22  ;;  %v107_v31 = vmul.f32 %v7415_v5, %v7458_v11 }
 0x154   :  { %v8130_v17 = vadd.f32 %v7613_v7, %v931_v25 }
 0x155   :  { %v236_v33 = vadd.f32 %v220_v55, %v104_v58  ;;  %v11883_v58 = vrot.slane %v7909_v51, 4 }
 0x156   :  { %11873 = vst [vmem:[#allocation95_spill] sm:$0xff] %v8130_v17  ;;  %v8132_v35 = vpop.permute.xlu1 %200  ;;  %v992_v41 = vsel %vm961_vm3, %v8130_v17, 0.0 }
 0x157   :  { %11874 = vst [vmem:[#allocation96_spill] sm:$0xff] %v8132_v35  ;;  %993 = vadd.xlane.f32.xlu0 %v992_v41  ;;  %996 = vadd.xlane.f32.xlu1 %v995_v18  ;;  %v352_v52 = vadd.f32 %v336_v0, %v236_v33  ;;  %v370_v41 = vrot.slane %v7539_v21, 4  ;;  %v635_v18 = vrot.slane %v7909_v51, 7  ;;  %v377_v55 = vsel %vm374_vm0, %v11883_v58, %v369_v30 }
 0x158   :  { %v221_v33 = vmul.f32 %v11884_v14, %v125_v40  ;;  %v11886_v0 = vrot.slane %v7458_v11, 4  ;;  %v523_v40 = vmul.f32 %v7466_v2, %v377_v55  ;;  %v11890_v14 = vld [vmem:[#allocation34_spill] sm:$0xff]  ;;  %v408_v29 = vmul.f32 %v7449_v4, %v377_v55 }
 0x159   :  { %v643_v58 = vsel %vm639_vm1, %v11888_v8, %v635_v18  ;;  %v259_v60 = vmul.f32 %v7432_v12, %v11890_v14  ;;  %v126_v14 = vmul.f32 %v7388_v57, %v7909_v51 }
 0x15a   :  { %v8138_v59 = vpop.permute.xlu1 %205  ;;  %v672_v8 = vmul.f32 %v7472_v46, %v643_v58  ;;  %v237_v45 = vadd.f32 %v221_v33, %v105_v28  ;;  %v603_v24 = vmul.f32 %v11892_v26, %v523_v40  ;;  %v376_v28 = vsel %vm374_vm0, %v369_v30, %v370_v41 }
 0x15b   :  { %11875 = vst [vmem:[#allocation97_spill] sm:$0xff] %v8138_v59  ;;  %v223_v10 = vmul.f32 %v8138_v59, %v127_v34  ;;  %v526_v34 = vmul.f32 %v7466_v2, %v11891_v9  ;;  %v636_v59 = vrot.slane %v7993_v22, 7  ;;  %v637_v33 = vrot.slane %v7539_v21, 7 }
 0x15d   :  { %v239_v42 = vadd.f32 %v223_v10, %v107_v31  ;;  %v642_v30 = vsel %vm639_vm1, %v635_v18, %v636_v59  ;;  %v222_v18 = vmul.f32 %v8132_v35, %v126_v14 }
 0x15f   :  { %v8142_v6 = vpop.permute.xlu1 %313 }
 0x160   :  { %11876 = vst [vmem:[#allocation98_spill] sm:$0xff] %v8142_v6 }
 0x163   :  { %v8149_v54 = vpop.permute.xlu1 %317 }
 0x164   :  { %11877 = vst [vmem:[#allocation99_spill] sm:$0xff] %v8149_v54 }
 0x168   :  { %v8154_v20 = vpop.permute.xlu1 %460 }
 0x169   :  { %11879 = vst [vmem:[#allocation100_spill] sm:$0xff] %v8154_v20  ;;  %v487_v50 = vmul.f32 %v8154_v20, %v407_v44  ;;  %v8178_v44 = vpop.permute.xlu0 %729 }
 0x16a   :  { %11885 = vst [vmem:[#allocation104_spill] sm:$0xff] %v8178_v44 }
 0x16b   :  { %v503_v37 = vadd.f32 %v487_v50, %v352_v52  ;;  %v375_v52 = vsel %vm374_vm0, %v370_v41, %v11886_v0  ;;  %v11887_v50 = vrot.slane %v7909_v51, 1  ;;  %v524_v41 = vmul.f32 %v7466_v2, %v376_v28 }
 0x16c   :  { %v8157_v27 = vpop.permute.xlu1 %468  ;;  %v410_v38 = vmul.f32 %v7449_v4, %v375_v52 }
 0x16d   :  { %11880 = vst [vmem:[#allocation101_spill] sm:$0xff] %v8157_v27  ;;  %v791_v20 = vsel %vm788_vm2, %v11887_v50, %v11635_v15  ;;  %v257_v50 = vmul.f32 %v7432_v12, %v7458_v11  ;;  %v8219_v55 = vpop.permute.xlu0 %874  ;;  %v619_v10 = vadd.f32 %v603_v24, %v503_v37  ;;  %v11897_v24 = vrot.slane %v7405_v61, 1 }
 0x16e   :  { %v821_v15 = vmul.f32 %v7508_v39, %v791_v20  ;;  %v339_v20 = vmul.f32 %v11893_v36, %v259_v60  ;;  %11894 = vst [vmem:[#allocation34_spill] sm:$0xff] %v8219_v55  ;;  %v7037_v60 = vld [vmem:[%s11520_s0] sm:$0xff]  ;;  %v11896_v36 = vrot.slane %v7458_v11, 7  ;;  %v409_v11 = vmul.f32 %v7449_v4, %v376_v28 }
 0x16f   :  { %v337_v58 = vmul.f32 %v8142_v6, %v257_v50  ;;  %v258_v50 = vmul.f32 %v7037_v60, %v7432_v12  ;;  %v804_v37 = vsel %vm788_vm2, %v787_v47, %v11897_v24  ;;  %v106_v12 = vmul.f32 %v7415_v5, %v7539_v21 }
 0x170   :  { %v8159_v62 = vpop.permute.xlu1 %472  ;;  %v901_v57 = vmul.f32 %v8219_v55, %v821_v15  ;;  %v355_v15 = vadd.f32 %v339_v20, %v239_v42  ;;  %v641_v61 = vsel %vm639_vm1, %v636_v59, %v637_v33  ;;  %v673_v24 = vmul.f32 %v7472_v46, %v642_v30 }
 0x171   :  { %11881 = vst [vmem:[#allocation102_spill] sm:$0xff] %v8159_v62  ;;  %v490_v40 = vmul.f32 %v8159_v62, %v410_v38  ;;  %v640_v38 = vsel %vm639_vm1, %v637_v33, %v11896_v36  ;;  %v786_v62 = vrot.slane %v7539_v21, 1  ;;  %v353_v60 = vadd.f32 %v337_v58, %v237_v45  ;;  %v11900_v45 = vld [vmem:[#allocation67_spill] sm:$0xff] }
 0x172   :  { %v675_v20 = vmul.f32 %v7472_v46, %v640_v38  ;;  %v824_v5 = vmul.f32 %v7508_v39, %v804_v37  ;;  %v606_v58 = vmul.f32 %v11900_v45, %v526_v34  ;;  %v338_v4 = vmul.f32 %v8149_v54, %v258_v50 }
 0x173   :  { %v506_v36 = vadd.f32 %v490_v40, %v355_v15  ;;  %v11901_v40 = vrot.slane %v7993_v22, 1  ;;  %v238_v33 = vadd.f32 %v222_v18, %v106_v12  ;;  %v525_v30 = vmul.f32 %v7466_v2, %v375_v52 }
 0x174   :  { %v674_v38 = vmul.f32 %v7472_v46, %v641_v61  ;;  %v489_v34 = vmul.f32 %v8157_v27, %v409_v11  ;;  %v789_v2 = vsel %vm788_vm2, %v786_v62, %v787_v47 }
 0x175   :  { %v8167_v25 = vpop.permute.xlu1 %580  ;;  %v790_v59 = vsel %vm788_vm2, %v11901_v40, %v786_v62  ;;  %v622_v50 = vadd.f32 %v606_v58, %v506_v36  ;;  %v354_v52 = vadd.f32 %v338_v4, %v238_v33  ;;  %v823_v61 = vmul.f32 %v7508_v39, %v789_v2 }
 0x176   :  { %11882 = vst [vmem:[#allocation103_spill] sm:$0xff] %v8167_v25  ;;  %v604_v14 = vmul.f32 %v8167_v25, %v524_v41  ;;  %v822_v12 = vmul.f32 %v7508_v39, %v790_v59  ;;  %v7038_v39 = vld [vmem:[%s11520_s0 + $0x78] sm:$0xff] }
 0x177   :  { %v505_v36 = vadd.f32 %v489_v34, %v354_v52 }
 0x179   :  { %v8198_v0 = vpop.permute.xlu1 %584 }
 0x17a   :  { %11889 = vst [vmem:[#allocation105_spill] sm:$0xff] %v8198_v0  ;;  %v605_v11 = vmul.f32 %v8198_v0, %v525_v30 }
 0x17e   :  { %v8221_v9 = vpop.permute.xlu1 %725 }
 0x17f   :  { %11895 = vst [vmem:[#allocation48_spill] sm:$0xff] %v8221_v9  ;;  %v752_v31 = vmul.f32 %v8221_v9, %v672_v8 }
 0x181   :  { %v768_v8 = vadd.f32 %v752_v31, %v619_v10  ;;  %v11899_v10 = vld [vmem:[#allocation50_spill] sm:$0xff] }
 0x182   :  { %v8247_v55 = vpop.permute.xlu1 %733  ;;  %v488_v31 = vmul.f32 %v11899_v10, %v408_v29 }
 0x183   :  { %11898 = vst [vmem:[#allocation106_spill] sm:$0xff] %v8247_v55  ;;  %v917_v42 = vadd.f32 %v901_v57, %v768_v8  ;;  %v8263_v57 = vpop.permute.xlu0 %886 }
 0x184   :  { %11902 = vst [vmem:[#allocation107_spill] sm:$0xff] %v8263_v57  ;;  %v504_v29 = vadd.f32 %v488_v31, %v353_v60  ;;  %v904_v37 = vmul.f32 %v8263_v57, %v824_v5  ;;  %v753_v60 = vmul.f32 %v8178_v44, %v673_v24  ;;  %v754_v31 = vmul.f32 %v8247_v55, %v674_v38  ;;  %v11908_v38 = vld [vmem:[#allocation51_spill] sm:$0xff] }
 0x185   :  { %v933_v28 = vadd.f32 %v917_v42, %v7909_v51 }
 0x186   :  { %v8267_v41 = vpop.permute.xlu1 %737  ;;  %v620_v8 = vadd.f32 %v604_v14, %v504_v29  ;;  %v621_v14 = vadd.f32 %v605_v11, %v505_v36  ;;  %v11911_v11 = vld [vmem:[#allocation52_spill] sm:$0xff] }
 0x187   :  { %11903 = vst [vmem:[#allocation108_spill] sm:$0xff] %v8267_v41  ;;  %v755_v51 = vmul.f32 %v8267_v41, %v675_v20  ;;  %v8272_v15 = vadd.f32 %v7613_v7, %v933_v28  ;;  %v967_v20 = vpop.xlane.xlu0 %966 }
 0x188   :  { %v769_v47 = vadd.f32 %v753_v60, %v620_v8  ;;  %v1012_v4 = vmul.f32 0.03125, %v967_v20  ;;  %v770_v24 = vadd.f32 %v754_v31, %v621_v14 }
 0x189   :  { %11904 = vst [vmem:[#allocation109_spill] sm:$0xff] %v8272_v15  ;;  %v771_v46 = vadd.f32 %v755_v51, %v622_v50  ;;  %v998_v18 = vsel %vm961_vm3, %v8272_v15, 0.0 }
 0x18a   :  { %999 = vadd.xlane.f32.xlu0 %v998_v18  ;;  %v8298_v34 = vsub.f32 %v11908_v38, %v1012_v4 }
 0x18b   :  { %v8282_v42 = vpop.permute.xlu1 %878  ;;  %v920_v5 = vadd.f32 %v904_v37, %v771_v46  ;;  %v970_v52 = vpop.xlane.xlu0 %969 }
 0x18c   :  { %11905 = vst [vmem:[#allocation110_spill] sm:$0xff] %v8282_v42  ;;  %v902_v62 = vmul.f32 %v8282_v42, %v822_v12  ;;  %v1044_v2 = vmul.f32 %v8298_v34, %v8298_v34  ;;  %v1013_v46 = vmul.f32 0.03125, %v970_v52 }
 0x18d   :  { %v936_v33 = vadd.f32 %v7038_v39, %v920_v5 }
 0x18e   :  { %v918_v58 = vadd.f32 %v902_v62, %v769_v47  ;;  %v8317_v36 = vsub.f32 %v11911_v11, %v1013_v46 }
 0x18f   :  { %v8287_v28 = vpop.permute.xlu1 %882 }
 0x190   :  { %11906 = vst [vmem:[#allocation111_spill] sm:$0xff] %v8287_v28  ;;  %v934_v40 = vadd.f32 %v918_v58, %v7993_v22  ;;  %v903_v59 = vmul.f32 %v8287_v28, %v823_v61  ;;  %v8304_v22 = vadd.f32 %v7613_v7, %v936_v33  ;;  %v1045_v14 = vmul.f32 %v8317_v36, %v8317_v36 }
 0x192   :  { %v919_v29 = vadd.f32 %v903_v59, %v770_v24  ;;  %v8295_v30 = vadd.f32 %v7613_v7, %v934_v40  ;;  %11909 = vst [vmem:[#allocation113_spill] sm:$0xff] %v8304_v22  ;;  %v1007_v12 = vsel %vm961_vm3, %v8304_v22, 0.0 }
 0x194   :  { %11907 = vst [vmem:[#allocation112_spill] sm:$0xff] %v8295_v30  ;;  %v1001_v50 = vsel %vm961_vm3, %v8295_v30, 0.0  ;;  %v935_v51 = vadd.f32 %v919_v29, %v7539_v21  ;;  %v1062_v21 = vsel %vm961_vm3, %v1044_v2, 0.0  ;;  %v1065_v29 = vsel %vm961_vm3, %v1045_v14, 0.0 }
 0x195   :  { %1002 = vadd.xlane.f32.xlu1 %v1001_v50  ;;  %v11912_v50 = vld [vmem:[#allocation74_spill] sm:$0xff] }
 0x196   :  { %v8307_v37 = vadd.f32 %v7613_v7, %v935_v51 }
 0x198   :  { %11910 = vst [vmem:[#allocation114_spill] sm:$0xff] %v8307_v37  ;;  %v1004_v8 = vsel %vm961_vm3, %v8307_v37, 0.0 }
 0x199   :  { %1005 = vadd.xlane.f32.xlu0 %v1004_v8  ;;  %1008 = vadd.xlane.f32.xlu1 %v1007_v12 }
 0x19d   :  { %1063 = vadd.xlane.f32.xlu1 %v1062_v21 }
 0x1aa   :  { %v976_v18 = vpop.xlane.xlu0 %975 }
 0x1ab   :  { %v1015_v61 = vmul.f32 0.03125, %v976_v18 }
 0x1ad   :  { %v8327_v58 = vsub.f32 %v7820_v43, %v1015_v61 }
 0x1ae   :  { %v982_v31 = vpop.xlane.xlu0 %981 }
 0x1af   :  { %v1017_v4 = vmul.f32 0.03125, %v982_v31  ;;  %v1047_v2 = vmul.f32 %v8327_v58, %v8327_v58 }
 0x1b1   :  { %v8337_v51 = vsub.f32 %v11912_v50, %v1017_v4 }
 0x1b3   :  { %v1049_v61 = vmul.f32 %v8337_v51, %v8337_v51 }
 0x1c1   :  { %v964_v60 = vpop.xlane.xlu1 %963 }
 0x1c2   :  { %v1011_v7 = vmul.f32 0.03125, %v964_v60  ;;  %v1071_v60 = vsel %vm961_vm3, %v1047_v2, 0.0 }
 0x1c4   :  { %v8320_v20 = vsub.f32 %v7944_v1, %v1011_v7 }
 0x1c5   :  { %v973_v5 = vpop.xlane.xlu1 %972 }
 0x1c6   :  { %v1014_v47 = vmul.f32 0.03125, %v973_v5  ;;  %v1043_v62 = vmul.f32 %v8320_v20, %v8320_v20  ;;  %v1077_v5 = vsel %vm961_vm3, %v1049_v61, 0.0 }
 0x1c8   :  { %v8330_v24 = vsub.f32 %v7980_v13, %v1014_v47  ;;  %v1059_v40 = vsel %vm961_vm3, %v1043_v62, 0.0 }
 0x1c9   :  { %1060 = vadd.xlane.f32.xlu0 %v1059_v40  ;;  %v979_v59 = vpop.xlane.xlu1 %978 }
 0x1ca   :  { %v1016_v39 = vmul.f32 0.03125, %v979_v59  ;;  %v1046_v33 = vmul.f32 %v8330_v24, %v8330_v24 }
 0x1cc   :  { %v8340_v8 = vsub.f32 %v8022_v23, %v1016_v39  ;;  %v1068_v12 = vsel %vm961_vm3, %v1046_v33, 0.0 }
 0x1cd   :  { %1066 = vadd.xlane.f32.xlu0 %v1065_v29  ;;  %1069 = vadd.xlane.f32.xlu1 %v1068_v12  ;;  %v985_v21 = vpop.xlane.xlu1 %984 }
 0x1ce   :  { %v1018_v52 = vmul.f32 0.03125, %v985_v21  ;;  %v1048_v46 = vmul.f32 %v8340_v8, %v8340_v8 }
 0x1d0   :  { %v8348_v18 = vsub.f32 %v8044_v53, %v1018_v52  ;;  %v1074_v7 = vsel %vm961_vm3, %v1048_v46, 0.0 }
 0x1d1   :  { %1072 = vadd.xlane.f32.xlu0 %v1071_v60  ;;  %1075 = vadd.xlane.f32.xlu1 %v1074_v7 }
 0x1d2   :  { %v1050_v31 = vmul.f32 %v8348_v18, %v8348_v18 }
 0x1d4   :  { %v1080_v47 = vsel %vm961_vm3, %v1050_v31, 0.0  ;;  %v1215_v31 = vld [vmem:[%s11522_s6] sm:$0xff] }
 0x1d5   :  { %v988_v62 = vpop.xlane.xlu0 %987  ;;  %1078 = vadd.xlane.f32.xlu0 %v1077_v5  ;;  %1081 = vadd.xlane.f32.xlu1 %v1080_v47  ;;  %v1216_v5 = vld [vmem:[%s11522_s6 + $0x8] sm:$0xff] }
 0x1d6   :  { %v1019_v14 = vmul.f32 0.03125, %v988_v62 }
 0x1d8   :  { %v8359_v4 = vsub.f32 %v8096_v48, %v1019_v14  ;;  %v1227_v14 = vpack.c.bf16 %v1216_v5, %v1215_v31 }
 0x1da   :  { %v1051_v40 = vmul.f32 %v8359_v4, %v8359_v4  ;;  %6011 = vmatprep.subr.bf16.mxu0 %v1227_v14 }
 0x1db   :  { %6012 = vmatpush3.bf16.msra.mxu0 %v1227_v14 }
 0x1dc   :  { %v1083_v59 = vsel %vm961_vm3, %v1051_v40, 0.0 }
 0x1dd   :  { %1084 = vadd.xlane.f32.xlu0 %v1083_v59 }
 0x1e0   :  { %v991_v39 = vpop.xlane.xlu1 %990 }
 0x1e1   :  { %v1020_v33 = vmul.f32 0.03125, %v991_v39  ;;  %v1217_v39 = vld [vmem:[%s11522_s6 + $0x10] sm:$0xff] }
 0x1e3   :  { %v8365_v29 = vsub.f32 %v8119_v56, %v1020_v33  ;;  %v1218_v33 = vld [vmem:[%s11522_s6 + $0x18] sm:$0xff] }
 0x1e4   :  { %v994_v12 = vpop.xlane.xlu0 %993  ;;  %v997_v2 = vpop.xlane.xlu1 %996 }
 0x1e5   :  { %v1021_v21 = vmul.f32 0.03125, %v994_v12  ;;  %v1022_v52 = vmul.f32 0.03125, %v997_v2  ;;  %v1052_v46 = vmul.f32 %v8365_v29, %v8365_v29  ;;  %v1228_v12 = vpack.c.bf16 %v1218_v33, %v1217_v39 }
 0x1e7   :  { %v8370_v60 = vsub.f32 %v8130_v17, %v1021_v21  ;;  %v8373_v7 = vsub.f32 %v8127_v63, %v1022_v52  ;;  %v1086_v61 = vsel %vm961_vm3, %v1052_v46, 0.0  ;;  %6013 = vmatprep.subr.bf16.mxu0 %v1228_v12 }
 0x1e8   :  { %1087 = vadd.xlane.f32.xlu1 %v1086_v61  ;;  %6014 = vmatpush3.bf16.msra.mxu0 %v1228_v12 }
 0x1e9   :  { %v1053_v47 = vmul.f32 %v8370_v60, %v8370_v60  ;;  %v1054_v62 = vmul.f32 %v8373_v7, %v8373_v7 }
 0x1eb   :  { %v1089_v40 = vsel %vm961_vm3, %v1053_v47, 0.0  ;;  %v1092_v59 = vsel %vm961_vm3, %v1054_v62, 0.0 }
 0x1ec   :  { %1090 = vadd.xlane.f32.xlu0 %v1089_v40  ;;  %1093 = vadd.xlane.f32.xlu1 %v1092_v59 }
 0x217   :  { %v1000_v2 = vpop.xlane.xlu0 %999 }
 0x218   :  { %v1023_v21 = vmul.f32 0.03125, %v1000_v2 }
 0x21a   :  { %v8395_v52 = vsub.f32 %v8272_v15, %v1023_v21 }
 0x21c   :  { %v1055_v46 = vmul.f32 %v8395_v52, %v8395_v52 }
 0x21e   :  { %v1095_v61 = vsel %vm961_vm3, %v1055_v46, 0.0 }
 0x21f   :  { %1096 = vadd.xlane.f32.xlu0 %v1095_v61 }
 0x222   :  { %v1003_v31 = vpop.xlane.xlu1 %1002 }
 0x223   :  { %v1024_v5 = vmul.f32 0.03125, %v1003_v31 }
 0x225   :  { %v8401_v47 = vsub.f32 %v8295_v30, %v1024_v5 }
 0x226   :  { %v1006_v62 = vpop.xlane.xlu0 %1005  ;;  %v1009_v14 = vpop.xlane.xlu1 %1008 }
 0x227   :  { %v1025_v40 = vmul.f32 0.03125, %v1006_v62  ;;  %v1026_v59 = vmul.f32 0.03125, %v1009_v14  ;;  %v1056_v39 = vmul.f32 %v8401_v47, %v8401_v47 }
 0x229   :  { %v8406_v33 = vsub.f32 %v8307_v37, %v1025_v40  ;;  %v8409_v12 = vsub.f32 %v8304_v22, %v1026_v59  ;;  %v1098_v2 = vsel %vm961_vm3, %v1056_v39, 0.0 }
 0x22a   :  { %1099 = vadd.xlane.f32.xlu1 %v1098_v2  ;;  %v1064_v5 = vpop.xlane.xlu1 %1063 }
 0x22b   :  { %v1057_v21 = vmul.f32 %v8406_v33, %v8406_v33  ;;  %v1058_v46 = vmul.f32 %v8409_v12, %v8409_v12  ;;  %v1108_v62 = vmul.f32 0.03125, %v1064_v5 }
 0x22d   :  { %v1101_v61 = vsel %vm961_vm3, %v1057_v21, 0.0  ;;  %v1104_v31 = vsel %vm961_vm3, %v1058_v46, 0.0  ;;  %v1124_v14 = vadd.f32 1e-05, %v1108_v62 }
 0x22e   :  { %1102 = vadd.xlane.f32.xlu0 %v1101_v61  ;;  %1105 = vadd.xlane.f32.xlu1 %v1104_v31 }
 0x22f   :  { %6685 = vrsqrt.f32 %v1124_v14 }
 0x239   :  { %v6686_v35 = vpop.eup %6685 }
 0x256   :  { %v1061_v40 = vpop.xlane.xlu0 %1060 }
 0x257   :  { %v1107_v59 = vmul.f32 0.03125, %v1061_v40  ;;  %v1156_v40 = vmul.f32 %v6686_v35, %v8298_v34  ;;  %v8429_v35 = vld [vmem:[%s11524_s5] ss:$0 sm:$0xff]  ;;  %s7046_s5 = smov 96  }
 0x259   :  { %v1123_v39 = vadd.f32 1e-05, %v1107_v59 }
 0x25a   :  { %v1067_v2 = vpop.xlane.xlu0 %1066  ;;  %v1070_v28 = vpop.xlane.xlu1 %1069 }
 0x25b   :  { %6687 = vrsqrt.f32 %v1123_v39  ;;  %v1109_v55 = vmul.f32 0.03125, %v1067_v2  ;;  %v1110_v0 = vmul.f32 0.03125, %v1070_v28 }
 0x25d   :  { %v1125_v57 = vadd.f32 1e-05, %v1109_v55  ;;  %v1126_v27 = vadd.f32 1e-05, %v1110_v0  ;;  %v8422_v0 = vld [vmem:[%s11523_s4] ss:$0 sm:$0xff] }
 0x25e   :  { %v1073_v54 = vpop.xlane.xlu0 %1072  ;;  %v1076_v21 = vpop.xlane.xlu1 %1075  ;;  %v1178_v28 = vmul.f32 %v8422_v0, %v1156_v40  ;;  %s7045_s4 = smov 120  }
 0x25f   :  { %6689 = vrsqrt.f32 %v1125_v57  ;;  %v1111_v46 = vmul.f32 0.03125, %v1073_v54  ;;  %v1112_v61 = vmul.f32 0.03125, %v1076_v21 }
 0x260   :  { %6691 = vrsqrt.f32 %v1126_v27 }
 0x261   :  { %v1127_v31 = vadd.f32 1e-05, %v1111_v46  ;;  %v1128_v5 = vadd.f32 1e-05, %v1112_v61 }
 0x262   :  { %v1079_v62 = vpop.xlane.xlu0 %1078  ;;  %v1082_v14 = vpop.xlane.xlu1 %1081 }
 0x263   :  { %6693 = vrsqrt.f32 %v1127_v31  ;;  %v1113_v59 = vmul.f32 0.03125, %v1079_v62  ;;  %v1114_v39 = vmul.f32 0.03125, %v1082_v14  ;;  %v1200_v31 = vadd.f32 %v8429_v35, %v1178_v28 }
 0x264   :  { %6695 = vrsqrt.f32 %v1128_v5 }
 0x265   :  { %v6688_v55 = vpop.eup %6687  ;;  %v1129_v57 = vadd.f32 1e-05, %v1113_v59  ;;  %v1130_v54 = vadd.f32 1e-05, %v1114_v39 }
 0x266   :  { %v1155_v27 = vmul.f32 %v6688_v55, %v8320_v20 }
 0x267   :  { %6697 = vrsqrt.f32 %v1129_v57 }
 0x268   :  { %6699 = vrsqrt.f32 %v1130_v54  ;;  %v1177_v34 = vmul.f32 %v8422_v0, %v1155_v27 }
 0x269   :  { %v6690_v2 = vpop.eup %6689 }
 0x26a   :  { %v6692_v21 = vpop.eup %6691  ;;  %v1085_v46 = vpop.xlane.xlu0 %1084  ;;  %v1199_v61 = vadd.f32 %v8429_v35, %v1177_v34  ;;  %v1157_v20 = vmul.f32 %v6690_v2, %v8317_v36 }
 0x26b   :  { %v1158_v5 = vmul.f32 %v6692_v21, %v8330_v24  ;;  %v1115_v62 = vmul.f32 0.03125, %v1085_v46 }
 0x26c   :  { %v1219_v14 = vpack.c.bf16 %v1200_v31, %v1199_v61  ;;  %v1179_v40 = vmul.f32 %v8422_v0, %v1157_v20 }
 0x26d   :  { %v6694_v59 = vpop.eup %6693  ;;  %v1180_v39 = vmul.f32 %v8422_v0, %v1158_v5  ;;  %v1131_v28 = vadd.f32 1e-05, %v1115_v62 }
 0x26e   :  { %v6696_v55 = vpop.eup %6695  ;;  %6015 = vmatprep.mubr.msk.bf16.mxu0 %vm961_vm3, %v1219_v14  ;;  %v1201_v57 = vadd.f32 %v8429_v35, %v1179_v40  ;;  %v1159_v54 = vmul.f32 %v6694_v59, %v8327_v58 }
 0x26f   :  { %v1202_v27 = vadd.f32 %v8429_v35, %v1180_v39  ;;  %v1160_v36 = vmul.f32 %v6696_v55, %v8340_v8  ;;  %6701 = vrsqrt.f32 %v1131_v28 }
 0x270   :  { %v1181_v24 = vmul.f32 %v8422_v0, %v1159_v54 }
 0x271   :  { %v6698_v34 = vpop.eup %6697  ;;  %v1220_v2 = vpack.c.bf16 %v1202_v27, %v1201_v57  ;;  %v1182_v21 = vmul.f32 %v8422_v0, %v1160_v36 }
 0x272   :  { %v6700_v46 = vpop.eup %6699  ;;  %v1203_v61 = vadd.f32 %v8429_v35, %v1181_v24  ;;  %v1161_v31 = vmul.f32 %v6698_v34, %v8337_v51 }
 0x273   :  { %6016 = vmatmul.mubr.msk.bf16.vlgmr.msra.gmra.mrb[0].mxu0 %vm961_vm3, %v1220_v2  ;;  %v1204_v58 = vadd.f32 %v8429_v35, %v1182_v21  ;;  %v1162_v20 = vmul.f32 %v6700_v46, %v8348_v18 }
 0x274   :  { %v1183_v8 = vmul.f32 %v8422_v0, %v1161_v31 }
 0x275   :  { %v1088_v5 = vpop.xlane.xlu1 %1087  ;;  %v1221_v62 = vpack.c.bf16 %v1204_v58, %v1203_v61  ;;  %v1184_v14 = vmul.f32 %v8422_v0, %v1162_v20 }
 0x276   :  { %v1116_v40 = vmul.f32 0.03125, %v1088_v5  ;;  %v1205_v59 = vadd.f32 %v8429_v35, %v1183_v8 }
 0x277   :  { %6019 = vmatprep.mubr.msk.bf16.mxu0 %vm961_vm3, %v1221_v62  ;;  %v1206_v51 = vadd.f32 %v8429_v35, %v1184_v14 }
 0x278   :  { %v1132_v39 = vadd.f32 1e-05, %v1116_v40 }
 0x279   :  { %v1091_v55 = vpop.xlane.xlu0 %1090  ;;  %v1094_v57 = vpop.xlane.xlu1 %1093  ;;  %v1222_v54 = vpack.c.bf16 %v1206_v51, %v1205_v59 }
 0x27a   :  { %6703 = vrsqrt.f32 %v1132_v39  ;;  %v1117_v18 = vmul.f32 0.03125, %v1091_v55  ;;  %v1118_v27 = vmul.f32 0.03125, %v1094_v57  ;;  %v6702_v24 = vpop.eup %6701 }
 0x27b   :  { %6020 = vmatmul.mubr.msk.bf16.gmra.mrb[4].mxu0 %vm961_vm3, %v1222_v54  ;;  %v1163_v34 = vmul.f32 %v6702_v24, %v8359_v4 }
 0x27c   :  { %v1133_v36 = vadd.f32 1e-05, %v1117_v18  ;;  %v1134_v28 = vadd.f32 1e-05, %v1118_v27 }
 0x27d   :  { %v1185_v46 = vmul.f32 %v8422_v0, %v1163_v34 }
 0x27e   :  { %6705 = vrsqrt.f32 %v1133_v36 }
 0x27f   :  { %6707 = vrsqrt.f32 %v1134_v28  ;;  %v1207_v20 = vadd.f32 %v8429_v35, %v1185_v46 }
 0x284   :  { %v6704_v2 = vpop.eup %6703 }
 0x285   :  { %v1164_v21 = vmul.f32 %v6704_v2, %v8365_v29 }
 0x287   :  { %v1186_v61 = vmul.f32 %v8422_v0, %v1164_v21 }
 0x288   :  { %v6706_v31 = vpop.eup %6705 }
 0x289   :  { %v6708_v58 = vpop.eup %6707  ;;  %v1208_v8 = vadd.f32 %v8429_v35, %v1186_v61  ;;  %v1165_v5 = vmul.f32 %v6706_v31, %v8370_v60 }
 0x28a   :  { %v1166_v62 = vmul.f32 %v6708_v58, %v8373_v7 }
 0x28b   :  { %v1223_v14 = vpack.c.bf16 %v1208_v8, %v1207_v20  ;;  %v1187_v4 = vmul.f32 %v8422_v0, %v1165_v5 }
 0x28c   :  { %v1188_v40 = vmul.f32 %v8422_v0, %v1166_v62 }
 0x28d   :  { %6023 = vmatprep.mubr.msk.bf16.mxu0 %vm961_vm3, %v1223_v14  ;;  %v1209_v29 = vadd.f32 %v8429_v35, %v1187_v4 }
 0x28e   :  { %v1210_v59 = vadd.f32 %v8429_v35, %v1188_v40 }
 0x290   :  { %v1224_v51 = vpack.c.bf16 %v1210_v59, %v1209_v29 }
 0x292   :  { %6024 = vmatmul.mubr.msk.bf16.gmra.mrb[8].mxu0 %vm961_vm3, %v1224_v51 }
 0x2ac   :  { %v1097_v39 = vpop.xlane.xlu0 %1096 }
 0x2ad   :  { %v1119_v55 = vmul.f32 0.03125, %v1097_v39 }
 0x2af   :  { %v1135_v57 = vadd.f32 1e-05, %v1119_v55 }
 0x2b1   :  { %6709 = vrsqrt.f32 %v1135_v57 }
 0x2b7   :  { %v1100_v60 = vpop.xlane.xlu1 %1099 }
 0x2b8   :  { %v1120_v7 = vmul.f32 0.03125, %v1100_v60 }
 0x2ba   :  { %v1136_v54 = vadd.f32 1e-05, %v1120_v7 }
 0x2bb   :  { %v1103_v18 = vpop.xlane.xlu0 %1102  ;;  %v1106_v27 = vpop.xlane.xlu1 %1105 }
 0x2bc   :  { %6711 = vrsqrt.f32 %v1136_v54  ;;  %v1121_v36 = vmul.f32 0.03125, %v1103_v18  ;;  %v1122_v28 = vmul.f32 0.03125, %v1106_v27  ;;  %v6710_v2 = vpop.eup %6709 }
 0x2bd   :  { %v1167_v21 = vmul.f32 %v6710_v2, %v8395_v52 }
 0x2be   :  { %v1137_v24 = vadd.f32 1e-05, %v1121_v36  ;;  %v1138_v34 = vadd.f32 1e-05, %v1122_v28 }
 0x2bf   :  { %v1189_v31 = vmul.f32 %v8422_v0, %v1167_v21 }
 0x2c0   :  { %6713 = vrsqrt.f32 %v1137_v24 }
 0x2c1   :  { %6715 = vrsqrt.f32 %v1138_v34  ;;  %v1211_v5 = vadd.f32 %v8429_v35, %v1189_v31 }
 0x2c6   :  { %v6712_v46 = vpop.eup %6711 }
 0x2c7   :  { %v1168_v61 = vmul.f32 %v6712_v46, %v8401_v47 }
 0x2c9   :  { %v1190_v58 = vmul.f32 %v8422_v0, %v1168_v61 }
 0x2ca   :  { %v6714_v20 = vpop.eup %6713 }
 0x2cb   :  { %v6716_v8 = vpop.eup %6715  ;;  %v1212_v62 = vadd.f32 %v8429_v35, %v1190_v58  ;;  %v1169_v14 = vmul.f32 %v6714_v20, %v8406_v33 }
 0x2cc   :  { %v1170_v4 = vmul.f32 %v6716_v8, %v8409_v12 }
 0x2cd   :  { %v1225_v40 = vpack.c.bf16 %v1212_v62, %v1211_v5  ;;  %v1191_v52 = vmul.f32 %v8422_v0, %v1169_v14 }
 0x2ce   :  { %v1192_v29 = vmul.f32 %v8422_v0, %v1170_v4 }
 0x2cf   :  { %6027 = vmatprep.mubr.msk.bf16.mxu0 %vm961_vm3, %v1225_v40  ;;  %v1213_v47 = vadd.f32 %v8429_v35, %v1191_v52 }
 0x2d0   :  { %v1214_v59 = vadd.f32 %v8429_v35, %v1192_v29 }
 0x2d2   :  { %v1226_v51 = vpack.c.bf16 %v1214_v59, %v1213_v47 }
 0x2d4   :  { %6028 = vmatmul.mubr.msk.bf16.gmra.mrb[12].mxu0 %vm961_vm3, %v1226_v51 }
 0x346   :  { %v6017_v39 = vpop.f32.mrb[0].mxu0 }
 0x347   :  { %v1287_v55 = vpop.f32.mrb[1].mxu0 }
 0x348   :  { %v6018_v57 = vpop.f32.mrb[2].mxu0 }
 0x349   :  { %v8484_v33 = vpack.i.bf16 %v6018_v57, %v6017_v39  ;;  %v8486_v12 = vpack.c.bf16 %v6018_v57, %v6017_v39  ;;  %v1290_v60 = vpop.f32.mrb[3].mxu0 }
 0x34a   :  { %v8488_v7 = vpack.i.bf16 %v1290_v60, %v1287_v55  ;;  %v8490_v0 = vpack.c.bf16 %v1290_v60, %v1287_v55 }
 0x34b   :  { %6451 = vrot.lane.b32.xlu1 %v8484_v33, %s7045_s4 }
 0x34c   :  { %6446 = vrot.lane.b32.xlu0 %v8488_v7, %s7045_s4  ;;  %6039 = vmatprep.mubr.msk.bf16.mxu1 %vm1554_vm4, %v8490_v0 }
 0x34e   :  { %v6021_v35 = vpop.f32.mrb[4].mxu0 }
 0x34f   :  { %v1303_v54 = vpop.f32.mrb[5].mxu0 }
 0x350   :  { %v6022_v18 = vpop.f32.mrb[6].mxu0 }
 0x351   :  { %v8498_v27 = vpack.i.bf16 %v6022_v18, %v6021_v35  ;;  %v8500_v36 = vpack.c.bf16 %v6022_v18, %v6021_v35  ;;  %v1306_v28 = vpop.f32.mrb[7].mxu0 }
 0x352   :  { %v8502_v24 = vpack.i.bf16 %v1306_v28, %v1303_v54  ;;  %v8504_v34 = vpack.c.bf16 %v1306_v28, %v1303_v54 }
 0x354   :  { %6456 = vrot.lane.b32.xlu1 %v8502_v24, %s7045_s4 }
 0x358   :  { %6466 = vrot.lane.b32.xlu1 %v8498_v27, %s7045_s4 }
 0x35c   :  { %1546 = vrot.lane.b32.xlu1 %v8490_v0, %s7046_s5 }
 0x360   :  { %6476 = vrot.lane.b32.xlu1 %v8488_v7, %s7047_s26 }
 0x365   :  { %v6025_v2 = vpop.f32.mrb[8].mxu0 }
 0x366   :  { %v1319_v21 = vpop.f32.mrb[9].mxu0 }
 0x367   :  { %v6026_v46 = vpop.f32.mrb[10].mxu0 }
 0x368   :  { %v8514_v61 = vpack.i.bf16 %v6026_v46, %v6025_v2  ;;  %v8516_v31 = vpack.c.bf16 %v6026_v46, %v6025_v2  ;;  %v1322_v58 = vpop.f32.mrb[11].mxu0 }
 0x369   :  { %v8518_v20 = vpack.i.bf16 %v1322_v58, %v1319_v21  ;;  %v8520_v8 = vpack.c.bf16 %v1322_v58, %v1319_v21 }
 0x36b   :  { %6461 = vrot.lane.b32.xlu0 %v8518_v20, %s7045_s4  ;;  %6055 = vmatprep.mubr.msk.bf16.mxu0 %vm1554_vm4, %v8520_v8 }
 0x36f   :  { %6471 = vrot.lane.b32.xlu0 %v8514_v61, %s7045_s4 }
 0x3a7   :  { %v6029_v5 = vpop.f32.mrb[12].mxu0 }
 0x3a8   :  { %v1335_v62 = vpop.f32.mrb[13].mxu0 }
 0x3a9   :  { %v6030_v14 = vpop.f32.mrb[14].mxu0 }
 0x3aa   :  { %v8528_v4 = vpack.i.bf16 %v6030_v14, %v6029_v5  ;;  %v8530_v40 = vpack.c.bf16 %v6030_v14, %v6029_v5  ;;  %v1338_v52 = vpop.f32.mrb[15].mxu0 }
 0x3ab   :  { %v8532_v29 = vpack.i.bf16 %v1338_v52, %v1335_v62  ;;  %v8534_v47 = vpack.c.bf16 %v1338_v52, %v1335_v62 }
 0x3ac   :  { %6486 = vrot.lane.b32.xlu1 %v8528_v4, %s7045_s4 }
 0x3ad   :  { %6481 = vrot.lane.b32.xlu0 %v8532_v29, %s7045_s4 }
 0x3b0   :  { %1550 = vrot.lane.b32.xlu1 %v8504_v34, %s7046_s5 }
 0x3b1   :  { %1548 = vrot.lane.b32.xlu0 %v8486_v12, %s7046_s5 }
 0x3b4   :  { %6496 = vrot.lane.b32.xlu1 %v8502_v24, %s7047_s26 }
 0x3b5   :  { %6491 = vrot.lane.b32.xlu0 %v8484_v33, %s7047_s26 }
 0x3b8   :  { %1552 = vrot.lane.b32.xlu1 %v8500_v36, %s7046_s5 }
 0x3b9   :  { %1648 = vrot.lane.b32.xlu0 %v8520_v8, %s7046_s5 }
 0x3bc   :  { %6506 = vrot.lane.b32.xlu1 %v8498_v27, %s7047_s26 }
 0x3bd   :  { %6501 = vrot.lane.b32.xlu0 %v8518_v20, %s7047_s26  ;;  %v6452_v51 = vpop.permute.xlu1 %6451 }
 0x3be   :  { %v6447_v59 = vpop.permute.xlu0 %6446  ;;  %v6454_v28 = vunpack.i.h.bf16 %v6452_v51  ;;  %v6453_v2 = vunpack.i.l.bf16 %v6452_v51 }
 0x3bf   :  { %v6449_v39 = vunpack.i.h.bf16 %v6447_v59  ;;  %v6448_v55 = vunpack.i.l.bf16 %v6447_v59 }
 0x3c0   :  { %1652 = vrot.lane.b32.xlu1 %v8534_v47, %s7046_s5  ;;  %v8576_v58 = vpack.c.bf16 %v6454_v28, %v6453_v2 }
 0x3c1   :  { %1650 = vrot.lane.b32.xlu0 %v8516_v31, %s7046_s5  ;;  %v8564_v60 = vpack.c.bf16 %v6449_v39, %v6448_v55 }
 0x3c4   :  { %6516 = vrot.lane.b32.xlu1 %v8532_v29, %s7047_s26 }
 0x3c5   :  { %6511 = vrot.lane.b32.xlu0 %v8514_v61, %s7047_s26 }
 0x3c6   :  { %v6457_v57 = vpop.permute.xlu1 %6456 }
 0x3c7   :  { %v6459_v35 = vunpack.i.h.bf16 %v6457_v57  ;;  %v6458_v54 = vunpack.i.l.bf16 %v6457_v57 }
 0x3c8   :  { %1654 = vrot.lane.b32.xlu1 %v8530_v40, %s7046_s5 }
 0x3c9   :  { %1749 = vrot.lane.b32.xlu0 %v8564_v60, %s7046_s5  ;;  %v8574_v21 = vpack.c.bf16 %v6459_v35, %v6458_v54 }
 0x3ca   :  { %v6467_v18 = vpop.permute.xlu1 %6466 }
 0x3cb   :  { %v6469_v62 = vunpack.i.h.bf16 %v6467_v18  ;;  %v6468_v14 = vunpack.i.l.bf16 %v6467_v18 }
 0x3cc   :  { %6526 = vrot.lane.b32.xlu1 %v8528_v4, %s7047_s26 }
 0x3cd   :  { %6521 = vrot.lane.b32.xlu0 %v8488_v7, %s7048_s27  ;;  %v8588_v7 = vpack.c.bf16 %v6469_v62, %v6468_v14 }
 0x3ce   :  { %v1547_v46 = vpop.permute.xlu1 %1546 }
 0x3cf   :  { %6359 = vmatprep.subr.msk.bf16.mxu1 %vm1554_vm4, %v1547_v46  ;;  %v1568_v5 = vsel %vm1554_vm4, %v1547_v46, 0 }
 0x3d0   :  { %6032 = vmatpush3.bf16.xpose.msra.mxu1 %v1568_v5  ;;  %1753 = vrot.lane.b32.xlu1 %v8574_v21, %s7046_s5 }
 0x3d1   :  { %1751 = vrot.lane.b32.xlu0 %v8576_v58, %s7046_s5 }
 0x3d2   :  { %v6477_v35 = vpop.permute.xlu1 %6476 }
 0x3d3   :  { %v6478_v54 = vunpack.i.l.bf16 %v6477_v35 }
 0x3d4   :  { %6536 = vrot.lane.b32.xlu1 %v8502_v24, %s7048_s27 }
 0x3d5   :  { %6531 = vrot.lane.b32.xlu0 %v8484_v33, %s7048_s27 }
 0x3d8   :  { %1755 = vrot.lane.b32.xlu1 %v8588_v7, %s7046_s5 }
 0x3dc   :  { %6546 = vrot.lane.b32.xlu1 %v8498_v27, %s7048_s27  ;;  %v6479_v27 = vunpack.i.h.bf16 %v6477_v35 }
 0x3dd   :  { %v6462_v52 = vpop.permute.xlu0 %6461 }
 0x3de   :  { %v6464_v59 = vunpack.i.h.bf16 %v6462_v52  ;;  %v6463_v51 = vunpack.i.l.bf16 %v6462_v52  ;;  %v8606_v18 = vpack.c.bf16 %v6479_v27, %v6478_v54 }
 0x3e0   :  { %v8594_v39 = vpack.c.bf16 %v6464_v59, %v6463_v51 }
 0x3e1   :  { %v6472_v55 = vpop.permute.xlu0 %6471 }
 0x3e2   :  { %1850 = vrot.lane.b32.xlu0 %v8594_v39, %s7046_s5  ;;  %v6474_v24 = vunpack.i.h.bf16 %v6472_v55  ;;  %v6473_v57 = vunpack.i.l.bf16 %v6472_v55 }
 0x3e4   :  { %v8600_v33 = vpack.c.bf16 %v6474_v24, %v6473_v57 }
 0x3e6   :  { %6541 = vrot.lane.b32.xlu0 %v8518_v20, %s7048_s27 }
 0x3ea   :  { %1852 = vrot.lane.b32.xlu0 %v8600_v33, %s7046_s5 }
 0x3ee   :  { %6551 = vrot.lane.b32.xlu0 %v8514_v61, %s7048_s27 }
 0x3f2   :  { %1951 = vrot.lane.b32.xlu0 %v8606_v18, %s7046_s5 }
 0x41e   :  { %v6487_v28 = vpop.permute.xlu1 %6486 }
 0x41f   :  { %v6489_v2 = vunpack.i.h.bf16 %v6487_v28  ;;  %v6488_v46 = vunpack.i.l.bf16 %v6487_v28  ;;  %v6482_v20 = vpop.permute.xlu0 %6481 }
 0x420   :  { %v6484_v5 = vunpack.i.h.bf16 %v6482_v20  ;;  %v6483_v62 = vunpack.i.l.bf16 %v6482_v20 }
 0x421   :  { %v8610_v14 = vpack.c.bf16 %v6489_v2, %v6488_v46 }
 0x422   :  { %v8612_v52 = vpack.c.bf16 %v6484_v5, %v6483_v62  ;;  %v1551_v59 = vpop.permute.xlu1 %1550 }
 0x423   :  { %v1549_v51 = vpop.permute.xlu0 %1548  ;;  %1856 = vrot.lane.b32.xlu0 %v8610_v14, %s7046_s5  ;;  %v1574_v20 = vsel %vm1554_vm4, %v1551_v59, 0 }
 0x424   :  { %6360 = vmatprep.subr.msk.bf16.mxu1 %vm1554_vm4, %v1549_v51  ;;  %1854 = vrot.lane.b32.xlu1 %v8612_v52, %s7046_s5  ;;  %v1571_v61 = vsel %vm1554_vm4, %v1549_v51, 0 }
 0x425   :  { %6034 = vmatpush3.bf16.xpose.msra.mxu1 %v1571_v61 }
 0x426   :  { %6361 = vmatprep.subr.msk.bf16.mxu1 %vm1554_vm4, %v1551_v59  ;;  %v6497_v55 = vpop.permute.xlu1 %6496 }
 0x427   :  { %v6492_v24 = vpop.permute.xlu0 %6491  ;;  %6561 = vrot.lane.b32.xlu0 %v8528_v4, %s7048_s27  ;;  %v6499_v27 = vunpack.i.h.bf16 %v6497_v55  ;;  %v6498_v54 = vunpack.i.l.bf16 %v6497_v55 }
 0x428   :  { %v6494_v57 = vunpack.i.h.bf16 %v6492_v24  ;;  %v6493_v35 = vunpack.i.l.bf16 %v6492_v24  ;;  %6556 = vrot.lane.b32.xlu1 %v8532_v29, %s7048_s27 }
 0x429   :  { %v8632_v5 = vpack.c.bf16 %v6499_v27, %v6498_v54 }
 0x42a   :  { %v8625_v28 = vpack.c.bf16 %v6494_v57, %v6493_v35  ;;  %v1553_v2 = vpop.permute.xlu1 %1552 }
 0x42b   :  { %v1649_v46 = vpop.permute.xlu0 %1648  ;;  %v1577_v27 = vsel %vm1554_vm4, %v1553_v2, 0 }
 0x42c   :  { %6363 = vmatprep.subr.msk.bf16.mxu0 %vm1554_vm4, %v1649_v46  ;;  %1953 = vrot.lane.b32.xlu1 %v8625_v28, %s7046_s5  ;;  %v1669_v4 = vsel %vm1554_vm4, %v1649_v46, 0 }
 0x42d   :  { %6036 = vmatpush3.bf16.xpose.msra.mxu1 %v1574_v20  ;;  %6048 = vmatpush3.bf16.xpose.msra.mxu0 %v1669_v4 }
 0x42e   :  { %6362 = vmatprep.subr.msk.bf16.mxu1 %vm1554_vm4, %v1553_v2  ;;  %v6507_v29 = vpop.permute.xlu1 %6506 }
 0x42f   :  { %v6509_v62 = vunpack.i.h.bf16 %v6507_v29  ;;  %v6508_v51 = vunpack.i.l.bf16 %v6507_v29  ;;  %v6502_v61 = vpop.permute.xlu0 %6501 }
 0x430   :  { %v6504_v55 = vunpack.i.h.bf16 %v6502_v61  ;;  %v6503_v24 = vunpack.i.l.bf16 %v6502_v61  ;;  %1955 = vrot.lane.b32.xlu1 %v8632_v5, %s7046_s5 }
 0x431   :  { %v8637_v57 = vpack.c.bf16 %v6509_v62, %v6508_v51 }
 0x432   :  { %v8639_v59 = vpack.c.bf16 %v6504_v55, %v6503_v24  ;;  %v1653_v35 = vpop.permute.xlu1 %1652 }
 0x433   :  { %v1651_v46 = vpop.permute.xlu0 %1650 }
 0x434   :  { %6364 = vmatprep.subr.msk.bf16.mxu0 %vm1554_vm4, %v1651_v46  ;;  %1957 = vrot.lane.b32.xlu1 %v8637_v57, %s7046_s5  ;;  %v1672_v54 = vsel %vm1554_vm4, %v1651_v46, 0 }
 0x435   :  { %2052 = vrot.lane.b32.xlu0 %v8639_v59, %s7046_s5  ;;  %6038 = vmatpush3.bf16.xpose.msra.mxu1 %v1577_v27  ;;  %v1675_v27 = vsel %vm1554_vm4, %v1653_v35, 0 }
 0x436   :  { %6050 = vmatpush3.bf16.xpose.msra.mxu0 %v1672_v54  ;;  %v6517_v20 = vpop.permute.xlu1 %6516 }
 0x437   :  { %6365 = vmatprep.subr.msk.bf16.mxu0 %vm1554_vm4, %v1653_v35  ;;  %v6519_v4 = vunpack.i.h.bf16 %v6517_v20  ;;  %v6518_v29 = vunpack.i.l.bf16 %v6517_v20  ;;  %v6512_v62 = vpop.permute.xlu0 %6511 }
 0x438   :  { %v6514_v51 = vunpack.i.h.bf16 %v6512_v62  ;;  %v6513_v61 = vunpack.i.l.bf16 %v6512_v62 }
 0x439   :  { %v8649_v55 = vpack.c.bf16 %v6519_v4, %v6518_v29 }
 0x43a   :  { %v8651_v24 = vpack.c.bf16 %v6514_v51, %v6513_v61  ;;  %v1655_v2 = vpop.permute.xlu1 %1654 }
 0x43b   :  { %v1750_v41 = vpop.permute.xlu0 %1749  ;;  %2056 = vrot.lane.b32.xlu1 %v8649_v55, %s7046_s5 }
 0x43c   :  { %6040 = vmatmul.mubr.msk.bf16.vlgmr.msra.gmra.mrb[0].mxu1 %vm1554_vm4, %v8486_v12  ;;  %6367 = vmatprep.subr.msk.bf16.mxu1 %vm1554_vm4, %v1750_v41  ;;  %v1770_v46 = vsel %vm1554_vm4, %v1750_v41, 0 }
 0x43d   :  { %2054 = vrot.lane.b32.xlu0 %v8651_v24, %s7046_s5  ;;  %6043 = vmatprep.mubr.msk.bf16.mxu1 %vm1554_vm4, %v8504_v34 }
 0x43e   :  { %6052 = vmatpush3.bf16.xpose.msra.mxu0 %v1675_v27  ;;  %6064 = vmatpush3.bf16.xpose.msra.mxu1 %v1770_v46  ;;  %v6527_v54 = vpop.permute.xlu1 %6526  ;;  %v1678_v46 = vsel %vm1554_vm4, %v1655_v2, 0 }
 0x43f   :  { %6366 = vmatprep.subr.msk.bf16.mxu0 %vm1554_vm4, %v1655_v2  ;;  %v6529_v20 = vunpack.i.h.bf16 %v6527_v54  ;;  %v6528_v4 = vunpack.i.l.bf16 %v6527_v54  ;;  %v6522_v29 = vpop.permute.xlu0 %6521 }
 0x440   :  { %v6524_v62 = vunpack.i.h.bf16 %v6522_v29  ;;  %v6523_v51 = vunpack.i.l.bf16 %v6522_v29 }
 0x441   :  { %v8665_v61 = vpack.c.bf16 %v6529_v20, %v6528_v4 }
 0x442   :  { %v8667_v41 = vpack.c.bf16 %v6524_v62, %v6523_v51  ;;  %v1754_v45 = vpop.permute.xlu1 %1753 }
 0x443   :  { %2058 = vrot.lane.b32.xlu1 %v8665_v61, %s7046_s5  ;;  %v1752_v9 = vpop.permute.xlu0 %1751  ;;  %v1776_v2 = vsel %vm1554_vm4, %v1754_v45, 0 }
 0x444   :  { %6044 = vmatmul.mubr.msk.bf16.gmra.mrb[4].mxu1 %vm1554_vm4, %v8500_v36  ;;  %2153 = vrot.lane.b32.xlu0 %v8667_v41, %s7046_s5  ;;  %v1773_v35 = vsel %vm1554_vm4, %v1752_v9, 0 }
 0x445   :  { %6368 = vmatprep.subr.msk.bf16.mxu1 %vm1554_vm4, %v1752_v9  ;;  %6071 = vmatprep.mubr.msk.bf16.mxu1 %vm1554_vm4, %v8564_v60 }
 0x446   :  { %6054 = vmatpush3.bf16.xpose.msra.mxu0 %v1678_v46  ;;  %6066 = vmatpush3.bf16.xpose.msra.mxu1 %v1773_v35  ;;  %v6537_v27 = vpop.permute.xlu1 %6536 }
 0x447   :  { %v6539_v54 = vunpack.i.h.bf16 %v6537_v27  ;;  %v6538_v20 = vunpack.i.l.bf16 %v6537_v27  ;;  %6369 = vmatprep.subr.msk.bf16.mxu1 %vm1554_vm4, %v1754_v45  ;;  %v6532_v4 = vpop.permute.xlu0 %6531 }
 0x448   :  { %v6534_v29 = vunpack.i.h.bf16 %v6532_v4  ;;  %v6533_v62 = vunpack.i.l.bf16 %v6532_v4 }
 0x449   :  { %v8681_v51 = vpack.c.bf16 %v6539_v54, %v6538_v20 }
 0x44a   :  { %v8683_v26 = vpack.c.bf16 %v6534_v29, %v6533_v62  ;;  %v1756_v9 = vpop.permute.xlu1 %1755 }
 0x44b   :  { %2157 = vrot.lane.b32.xlu1 %v8681_v51, %s7046_s5  ;;  %v1779_v45 = vsel %vm1554_vm4, %v1756_v9, 0 }
 0x44c   :  { %2155 = vrot.lane.b32.xlu0 %v8683_v26, %s7046_s5 }
 0x44d   :  { %6056 = vmatmul.mubr.msk.bf16.vlgmr.msra.gmra.mrb[16].mxu0 %vm1554_vm4, %v8516_v31 }
 0x44e   :  { %6059 = vmatprep.mubr.msk.bf16.mxu0 %vm1554_vm4, %v8534_v47  ;;  %6068 = vmatpush3.bf16.xpose.msra.mxu1 %v1776_v2  ;;  %v6547_v35 = vpop.permute.xlu1 %6546 }
 0x44f   :  { %v6549_v46 = vunpack.i.h.bf16 %v6547_v35  ;;  %v6548_v27 = vunpack.i.l.bf16 %v6547_v35  ;;  %6370 = vmatprep.subr.msk.bf16.mxu1 %vm1554_vm4, %v1756_v9 }
 0x451   :  { %v8695_v54 = vpack.c.bf16 %v6549_v46, %v6548_v27 }
 0x453   :  { %2159 = vrot.lane.b32.xlu1 %v8695_v54, %s7046_s5 }
 0x454   :  { %v1851_v20 = vpop.permute.xlu0 %1850 }
 0x455   :  { %6060 = vmatmul.mubr.msk.bf16.gmra.mrb[20].mxu0 %vm1554_vm4, %v8530_v40  ;;  %6371 = vmatprep.subr.msk.bf16.mxu0 %vm1554_vm4, %v1851_v20  ;;  %v1871_v4 = vsel %vm1554_vm4, %v1851_v20, 0 }
 0x456   :  { %6070 = vmatpush3.bf16.xpose.msra.mxu1 %v1779_v45  ;;  %6087 = vmatprep.mubr.msk.bf16.mxu0 %vm1554_vm4, %v8594_v39 }
 0x457   :  { %6080 = vmatpush3.bf16.xpose.msra.mxu0 %v1871_v4 }
 0x458   :  { %v6542_v29 = vpop.permute.xlu0 %6541 }
 0x459   :  { %v6544_v62 = vunpack.i.h.bf16 %v6542_v29  ;;  %v6543_v2 = vunpack.i.l.bf16 %v6542_v29 }
 0x45b   :  { %v8706_v35 = vpack.c.bf16 %v6544_v62, %v6543_v2 }
 0x45c   :  { %v1853_v46 = vpop.permute.xlu0 %1852 }
 0x45d   :  { %6072 = vmatmul.mubr.msk.bf16.vlgmr.msra.gmra.mrb[8].mxu1 %vm1554_vm4, %v8576_v58  ;;  %6372 = vmatprep.subr.msk.bf16.mxu0 %vm1554_vm4, %v1853_v46  ;;  %v1874_v9 = vsel %vm1554_vm4, %v1853_v46, 0 }
 0x45e   :  { %6075 = vmatprep.mubr.msk.bf16.mxu1 %vm1554_vm4, %v8574_v21  ;;  %2254 = vrot.lane.b32.xlu0 %v8706_v35, %s7046_s5 }
 0x45f   :  { %6082 = vmatpush3.bf16.xpose.msra.mxu0 %v1874_v9 }
 0x460   :  { %v6552_v27 = vpop.permute.xlu0 %6551 }
 0x461   :  { %v6554_v20 = vunpack.i.h.bf16 %v6552_v27  ;;  %v6553_v45 = vunpack.i.l.bf16 %v6552_v27 }
 0x463   :  { %v8716_v4 = vpack.c.bf16 %v6554_v20, %v6553_v45 }
 0x464   :  { %v1952_v29 = vpop.permute.xlu0 %1951 }
 0x465   :  { %6076 = vmatmul.mubr.msk.bf16.gmra.mrb[12].mxu1 %vm1554_vm4, %v8588_v7  ;;  %6375 = vmatprep.subr.msk.bf16.mxu1 %vm1554_vm4, %v1952_v29  ;;  %v1972_v62 = vsel %vm1554_vm4, %v1952_v29, 0 }
 0x466   :  { %6103 = vmatprep.mubr.msk.bf16.mxu1 %vm1554_vm4, %v8606_v18  ;;  %2256 = vrot.lane.b32.xlu0 %v8716_v4, %s7046_s5 }
 0x467   :  { %6096 = vmatpush3.bf16.xpose.msra.mxu1 %v1972_v62 }
 0x495   :  { %v1857_v2 = vpop.permute.xlu0 %1856 }
 0x496   :  { %v1855_v46 = vpop.permute.xlu1 %1854 }
 0x497   :  { %6373 = vmatprep.subr.msk.bf16.mxu0 %vm1554_vm4, %v1855_v46  ;;  %v1877_v9 = vsel %vm1554_vm4, %v1855_v46, 0  ;;  %v1880_v46 = vsel %vm1554_vm4, %v1857_v2, 0 }
 0x498   :  { %6084 = vmatpush3.bf16.xpose.msra.mxu0 %v1877_v9 }
 0x499   :  { %6374 = vmatprep.subr.msk.bf16.mxu0 %vm1554_vm4, %v1857_v2  ;;  %v6562_v27 = vpop.permute.xlu0 %6561 }
 0x49a   :  { %v6564_v20 = vunpack.i.h.bf16 %v6562_v27  ;;  %v6563_v45 = vunpack.i.l.bf16 %v6562_v27  ;;  %v6557_v29 = vpop.permute.xlu1 %6556 }
 0x49b   :  { %v6559_v42 = vunpack.i.h.bf16 %v6557_v29  ;;  %v6558_v44 = vunpack.i.l.bf16 %v6557_v29 }
 0x49c   :  { %v8729_v25 = vpack.c.bf16 %v6564_v20, %v6563_v45 }
 0x49d   :  { %v8731_v10 = vpack.c.bf16 %v6559_v42, %v6558_v44 }
 0x49e   :  { %11913 = vst [vmem:[#allocation115_spill] sm:$0xff] %v8729_v25  ;;  %v1954_v62 = vpop.permute.xlu1 %1953  ;;  %2260 = vrot.lane.b32.xlu0 %v8729_v25, %s7046_s5 }
 0x49f   :  { %2258 = vrot.lane.b32.xlu1 %v8731_v10, %s7046_s5  ;;  %6376 = vmatprep.subr.msk.bf16.mxu1 %vm1554_vm4, %v1954_v62  ;;  %v1975_v9 = vsel %vm1554_vm4, %v1954_v62, 0 }
 0x4a0   :  { %6086 = vmatpush3.bf16.xpose.msra.mxu0 %v1880_v46  ;;  %6098 = vmatpush3.bf16.xpose.msra.mxu1 %v1975_v9 }
 0x4a2   :  { %v1956_v27 = vpop.permute.xlu1 %1955  ;;  %2960 = vrot.lane.b32.xlu0 %v8490_v0, %s7049_s28 }
 0x4a3   :  { %2962 = vrot.lane.b32.xlu1 %v8486_v12, %s7049_s28  ;;  %6377 = vmatprep.subr.msk.bf16.mxu1 %vm1554_vm4, %v1956_v27  ;;  %v1978_v42 = vsel %vm1554_vm4, %v1956_v27, 0 }
 0x4a6   :  { %2964 = vrot.lane.b32.xlu0 %v8504_v34, %s7049_s28  ;;  %v1958_v0 = vpop.permute.xlu1 %1957 }
 0x4a7   :  { %v2053_v44 = vpop.permute.xlu0 %2052  ;;  %3049 = vrot.lane.b32.xlu1 %v8520_v8, %s7049_s28  ;;  %6088 = vmatmul.mubr.msk.bf16.vlgmr.msra.gmra.mrb[24].mxu0 %vm1554_vm4, %v8600_v33  ;;  %v1981_v8 = vsel %vm1554_vm4, %v1958_v0, 0 }
 0x4a8   :  { %6379 = vmatprep.subr.msk.bf16.mxu0 %vm1554_vm4, %v2053_v44  ;;  %6091 = vmatprep.mubr.msk.bf16.mxu0 %vm1554_vm4, %v8612_v52  ;;  %v2073_v12 = vsel %vm1554_vm4, %v2053_v44, 0 }
 0x4a9   :  { %6100 = vmatpush3.bf16.xpose.msra.mxu1 %v1978_v42  ;;  %6112 = vmatpush3.bf16.xpose.msra.mxu0 %v2073_v12 }
 0x4aa   :  { %6378 = vmatprep.subr.msk.bf16.mxu1 %vm1554_vm4, %v1958_v0  ;;  %2966 = vrot.lane.b32.xlu0 %v8500_v36, %s7049_s28 }
 0x4ab   :  { %3138 = vrot.lane.b32.xlu1 %v8564_v60, %s7049_s28 }
 0x4ad   :  { %v2057_v36 = vpop.permute.xlu1 %2056 }
 0x4ae   :  { %3051 = vrot.lane.b32.xlu0 %v8516_v31, %s7049_s28  ;;  %v2079_v60 = vsel %vm1554_vm4, %v2057_v36, 0 }
 0x4af   :  { %v2055_v34 = vpop.permute.xlu0 %2054  ;;  %3053 = vrot.lane.b32.xlu1 %v8534_v47, %s7049_s28  ;;  %6092 = vmatmul.mubr.msk.bf16.gmra.mrb[28].mxu0 %vm1554_vm4, %v8610_v14 }
 0x4b0   :  { %6380 = vmatprep.subr.msk.bf16.mxu0 %vm1554_vm4, %v2055_v34  ;;  %v2076_v2 = vsel %vm1554_vm4, %v2055_v34, 0  ;;  %6119 = vmatprep.mubr.msk.bf16.mxu0 %vm1554_vm4, %v8639_v59 }
 0x4b1   :  { %6102 = vmatpush3.bf16.xpose.msra.mxu1 %v1981_v8  ;;  %6114 = vmatpush3.bf16.xpose.msra.mxu0 %v2076_v2 }
 0x4b2   :  { %6381 = vmatprep.subr.msk.bf16.mxu0 %vm1554_vm4, %v2057_v36  ;;  %3140 = vrot.lane.b32.xlu0 %v8576_v58, %s7049_s28 }
 0x4b3   :  { %3142 = vrot.lane.b32.xlu1 %v8574_v21, %s7049_s28 }
 0x4b5   :  { %v2059_v58 = vpop.permute.xlu1 %2058 }
 0x4b6   :  { %v2154_v31 = vpop.permute.xlu0 %2153  ;;  %3055 = vrot.lane.b32.xlu0 %v8530_v40, %s7049_s28 }
 0x4b7   :  { %3227 = vrot.lane.b32.xlu1 %v8594_v39, %s7049_s28  ;;  %6383 = vmatprep.subr.msk.bf16.mxu1 %vm1554_vm4, %v2154_v31  ;;  %v2174_v47 = vsel %vm1554_vm4, %v2154_v31, 0  ;;  %v2082_v39 = vsel %vm1554_vm4, %v2059_v58, 0 }
 0x4b8   :  { %6104 = vmatmul.mubr.msk.bf16.vlgmr.msra.gmra.mrb[16].mxu1 %vm1554_vm4, %v8625_v28 }
 0x4b9   :  { %6107 = vmatprep.mubr.msk.bf16.mxu1 %vm1554_vm4, %v8632_v5  ;;  %6116 = vmatpush3.bf16.xpose.msra.mxu0 %v2079_v60 }
 0x4ba   :  { %6128 = vmatpush3.bf16.xpose.msra.mxu1 %v2174_v47  ;;  %6382 = vmatprep.subr.msk.bf16.mxu0 %vm1554_vm4, %v2059_v58 }
 0x4bb   :  { %3144 = vrot.lane.b32.xlu0 %v8588_v7, %s7049_s28  ;;  %3316 = vrot.lane.b32.xlu1 %v8606_v18, %s7049_s28 }
 0x4bd   :  { %v2158_v7 = vpop.permute.xlu1 %2157 }
 0x4be   :  { %v2156_v40 = vpop.permute.xlu0 %2155 }
 0x4bf   :  { %3229 = vrot.lane.b32.xlu0 %v8600_v33, %s7049_s28  ;;  %3320 = vrot.lane.b32.xlu1 %v8632_v5, %s7049_s28  ;;  %v2177_v21 = vsel %vm1554_vm4, %v2156_v40, 0  ;;  %v2180_v33 = vsel %vm1554_vm4, %v2158_v7, 0 }
 0x4c0   :  { %6108 = vmatmul.mubr.msk.bf16.gmra.mrb[20].mxu1 %vm1554_vm4, %v8637_v57  ;;  %6384 = vmatprep.subr.msk.bf16.mxu1 %vm1554_vm4, %v2156_v40 }
 0x4c1   :  { %6118 = vmatpush3.bf16.xpose.msra.mxu0 %v2082_v39  ;;  %6135 = vmatprep.mubr.msk.bf16.mxu1 %vm1554_vm4, %v8667_v41 }
 0x4c2   :  { %6130 = vmatpush3.bf16.xpose.msra.mxu1 %v2177_v21 }
 0x4c3   :  { %6385 = vmatprep.subr.msk.bf16.mxu1 %vm1554_vm4, %v2158_v7  ;;  %3318 = vrot.lane.b32.xlu0 %v8625_v28, %s7049_s28 }
 0x4c4   :  { %3405 = vrot.lane.b32.xlu1 %v8639_v59, %s7049_s28 }
 0x4c5   :  { %v2160_v18 = vpop.permute.xlu1 %2159 }
 0x4c6   :  { %v2183_v28 = vsel %vm1554_vm4, %v2160_v18, 0 }
 0x4c7   :  { %3233 = vrot.lane.b32.xlu0 %v8610_v14, %s7049_s28 }
 0x4c8   :  { %3494 = vrot.lane.b32.xlu1 %v8667_v41, %s7049_s28  ;;  %6120 = vmatmul.mubr.msk.bf16.vlgmr.msra.gmra.mrb[32].mxu0 %vm1554_vm4, %v8651_v24 }
 0x4c9   :  { %6123 = vmatprep.mubr.msk.bf16.mxu0 %vm1554_vm4, %v8649_v55 }
 0x4ca   :  { %6132 = vmatpush3.bf16.xpose.msra.mxu1 %v2180_v33 }
 0x4cb   :  { %6386 = vmatprep.subr.msk.bf16.mxu1 %vm1554_vm4, %v2160_v18  ;;  %3322 = vrot.lane.b32.xlu0 %v8637_v57, %s7049_s28 }
 0x4cc   :  { %3498 = vrot.lane.b32.xlu1 %v8681_v51, %s7049_s28 }
 0x4cf   :  { %3407 = vrot.lane.b32.xlu0 %v8651_v24, %s7049_s28 }
 0x4d0   :  { %3231 = vrot.lane.b32.xlu1 %v8612_v52, %s7049_s28  ;;  %6124 = vmatmul.mubr.msk.bf16.gmra.mrb[36].mxu0 %vm1554_vm4, %v8665_v61  ;;  %v2255_v14 = vpop.permute.xlu0 %2254 }
 0x4d1   :  { %6387 = vmatprep.subr.msk.bf16.mxu0 %vm1554_vm4, %v2255_v14  ;;  %6151 = vmatprep.mubr.msk.bf16.mxu0 %vm1554_vm4, %v8706_v35  ;;  %v2275_v5 = vsel %vm1554_vm4, %v2255_v14, 0 }
 0x4d2   :  { %6134 = vmatpush3.bf16.xpose.msra.mxu1 %v2183_v28  ;;  %6144 = vmatpush3.bf16.xpose.msra.mxu0 %v2275_v5 }
 0x4d3   :  { %3496 = vrot.lane.b32.xlu0 %v8683_v26, %s7049_s28 }
 0x4d4   :  { %3409 = vrot.lane.b32.xlu1 %v8649_v55, %s7049_s28 }
 0x4d7   :  { %3411 = vrot.lane.b32.xlu0 %v8665_v61, %s7049_s28 }
 0x4d8   :  { %v2257_v52 = vpop.permute.xlu0 %2256 }
 0x4d9   :  { %6136 = vmatmul.mubr.msk.bf16.vlgmr.msra.gmra.mrb[24].mxu1 %vm1554_vm4, %v8683_v26  ;;  %6388 = vmatprep.subr.msk.bf16.mxu0 %vm1554_vm4, %v2257_v52  ;;  %v2278_v57 = vsel %vm1554_vm4, %v2257_v52, 0 }
 0x4da   :  { %6139 = vmatprep.mubr.msk.bf16.mxu1 %vm1554_vm4, %v8681_v51  ;;  %6146 = vmatpush3.bf16.xpose.msra.mxu0 %v2278_v57 }
 0x4db   :  { %3500 = vrot.lane.b32.xlu0 %v8695_v54, %s7049_s28 }
 0x4e1   :  { %6140 = vmatmul.mubr.msk.bf16.gmra.mrb[28].mxu1 %vm1554_vm4, %v8695_v54 }
 0x50f   :  { %v8850_v59 = vpop.f32.mrb[0].mxu1 }
 0x510   :  { %v8852_v55 = vpop.f32.mrb[1].mxu1  ;;  %v2261_v26 = vpop.permute.xlu0 %2260  ;;  %v2358_v24 = vsel %vm2351_vm5, %v8850_v59, -inf }
 0x511   :  { %v8856_v61 = vpop.f32.mrb[2].mxu1  ;;  %v2259_v41 = vpop.permute.xlu1 %2258  ;;  %2359 = vmax.xlane.f32.xlu0 %v2358_v24  ;;  %v2352_v51 = vsel %vm2351_vm5, %v8852_v55, -inf  ;;  %v2284_v2 = vsel %vm1554_vm4, %v2261_v26, 0 }
 0x512   :  { %v8860_v20 = vpop.f32.mrb[3].mxu1  ;;  %2353 = vmax.xlane.f32.xlu1 %v2352_v51  ;;  %6389 = vmatprep.subr.msk.bf16.mxu0 %vm1554_vm4, %v2259_v41  ;;  %v2281_v54 = vsel %vm1554_vm4, %v2259_v41, 0  ;;  %v2361_v46 = vsel %vm2351_vm5, %v8856_v61, -inf }
 0x513   :  { %6148 = vmatpush3.bf16.xpose.msra.mxu0 %v2281_v54  ;;  %v2355_v45 = vsel %vm2351_vm5, %v8860_v20, -inf }
 0x514   :  { %6390 = vmatprep.subr.msk.bf16.mxu0 %vm1554_vm4, %v2261_v26  ;;  %v2961_v29 = vpop.permute.xlu0 %2960 }
 0x515   :  { %v2963_v62 = vpop.permute.xlu1 %2962  ;;  %2356 = vmax.xlane.f32.xlu0 %v2355_v45 }
 0x516   :  { %2362 = vmax.xlane.f32.xlu1 %v2361_v46 }
 0x517   :  { %v8869_v9 = vpop.f32.mrb[4].mxu1 }
 0x518   :  { %v8871_v27 = vpop.f32.mrb[5].mxu1  ;;  %v2965_v44 = vpop.permute.xlu0 %2964  ;;  %v2370_v42 = vsel %vm2351_vm5, %v8869_v9, -inf }
 0x519   :  { %v8875_v12 = vpop.f32.mrb[6].mxu1  ;;  %v8877_v0 = vpop.permute.xlu1 %3049  ;;  %2371 = vmax.xlane.f32.xlu0 %v2370_v42  ;;  %v2364_v31 = vsel %vm2351_vm5, %v8871_v27, -inf }
 0x51a   :  { %v8879_v34 = vpop.f32.mrb[7].mxu1  ;;  %v2373_v8 = vsel %vm2351_vm5, %v8875_v12, -inf }
 0x51b   :  { %2374 = vmax.xlane.f32.xlu1 %v2373_v8  ;;  %6150 = vmatpush3.bf16.xpose.msra.mxu0 %v2284_v2  ;;  %v2367_v60 = vsel %vm2351_vm5, %v8879_v34, -inf }
 0x51c   :  { %6159 = vmatprep.subr.bf16.mxu0 %v2961_v29  ;;  %v2967_v36 = vpop.permute.xlu0 %2966 }
 0x51d   :  { %v3139_v47 = vpop.permute.xlu1 %3138  ;;  %2365 = vmax.xlane.f32.xlu0 %v2364_v31 }
 0x51e   :  { %6191 = vmatprep.subr.bf16.mxu1 %v3139_v47 }
 0x51f   :  { %2368 = vmax.xlane.f32.xlu1 %v2367_v60  ;;  %6192 = vmatpush3.bf16.msra.mxu1 %v3139_v47 }
 0x520   :  { %v8888_v58 = vpop.f32.mrb[16].mxu0  ;;  %v8890_v40 = vpop.permute.xlu0 %3051 }
 0x521   :  { %v8892_v21 = vpop.f32.mrb[17].mxu0  ;;  %v8894_v39 = vpop.permute.xlu1 %3053  ;;  %v2382_v18 = vsel %vm2351_vm5, %v8888_v58, -inf }
 0x522   :  { %v8896_v7 = vpop.f32.mrb[18].mxu0  ;;  %v2376_v33 = vsel %vm2351_vm5, %v8892_v21, -inf  ;;  %6152 = vmatmul.mubr.msk.bf16.vlgmr.msra.gmra.mrb[40].mxu0 %vm1554_vm4, %v8716_v4 }
 0x523   :  { %v8904_v14 = vpop.f32.mrb[19].mxu0  ;;  %2377 = vmax.xlane.f32.xlu0 %v2376_v33  ;;  %2383 = vmax.xlane.f32.xlu1 %v2382_v18  ;;  %v2385_v52 = vsel %vm2351_vm5, %v8896_v7, -inf }
 0x524   :  { %6155 = vmatprep.mubr.msk.bf16.mxu0 %vm1554_vm4, %v8731_v10  ;;  %6160 = vmatpush3.bf16.msra.mxu0 %v2961_v29  ;;  %v3141_v28 = vpop.permute.xlu0 %3140  ;;  %v2379_v45 = vsel %vm2351_vm5, %v8904_v14, -inf }
 0x525   :  { %6161 = vmatprep.subr.bf16.mxu0 %v2963_v62  ;;  %v3143_v5 = vpop.permute.xlu1 %3142  ;;  %6193 = vmatprep.subr.bf16.mxu1 %v3141_v28 }
 0x526   :  { %6194 = vmatpush3.bf16.msra.mxu1 %v3141_v28 }
 0x527   :  { %2386 = vmax.xlane.f32.xlu1 %v2385_v52  ;;  %6195 = vmatprep.subr.bf16.mxu1 %v3143_v5 }
 0x528   :  { %v8910_v57 = vpop.f32.mrb[20].mxu0  ;;  %6162 = vmatpush3.bf16.msra.mxu0 %v2963_v62  ;;  %v8912_v26 = vpop.permute.xlu0 %3055 }
 0x529   :  { %v8914_v24 = vpop.f32.mrb[21].mxu0  ;;  %6163 = vmatprep.subr.bf16.mxu0 %v2965_v44  ;;  %v8916_v41 = vpop.permute.xlu1 %3227  ;;  %v2394_v42 = vsel %vm2351_vm5, %v8910_v57, -inf }
 0x52a   :  { %v8918_v51 = vpop.f32.mrb[22].mxu0  ;;  %v2388_v54 = vsel %vm2351_vm5, %v8914_v24, -inf  ;;  %6156 = vmatmul.mubr.msk.bf16.gmra.mrb[44].mxu0 %vm1554_vm4, %v8729_v25  ;;  %6196 = vmatpush3.bf16.msra.mxu1 %v3143_v5 }
 0x52b   :  { %v8926_v29 = vpop.f32.mrb[23].mxu0  ;;  %2389 = vmax.xlane.f32.xlu0 %v2388_v54  ;;  %2380 = vmax.xlane.f32.xlu1 %v2379_v45  ;;  %v2397_v47 = vsel %vm2351_vm5, %v8918_v51, -inf }
 0x52c   :  { %6164 = vmatpush3.bf16.msra.mxu0 %v2965_v44 }
 0x52d   :  { %6165 = vmatprep.subr.bf16.mxu0 %v2967_v36  ;;  %v3145_v62 = vpop.permute.xlu0 %3144  ;;  %v8928_v46 = vpop.permute.xlu1 %3316 }
 0x52e   :  { %6197 = vmatprep.subr.bf16.mxu1 %v3145_v62 }
 0x52f   :  { %6198 = vmatpush3.bf16.msra.mxu1 %v3145_v62  ;;  %2395 = vmax.xlane.f32.xlu1 %v2394_v42 }
 0x530   :  { %v8932_v8 = vpop.f32.mrb[8].mxu1  ;;  %6166 = vmatpush3.bf16.msra.mxu0 %v2967_v36  ;;  %6223 = vmatprep.subr.bf16.mxu1 %v8928_v46  ;;  %v2391_v36 = vsel %vm2351_vm5, %v8926_v29, -inf }
 0x531   :  { %v8935_v2 = vpop.f32.mrb[9].mxu1  ;;  %6175 = vmatprep.subr.bf16.mxu0 %v8877_v0  ;;  %v2406_v52 = vsel %vm2351_vm5, %v8932_v8, -inf }
 0x532   :  { %v8938_v44 = vpop.f32.mrb[10].mxu1  ;;  %v2400_v31 = vsel %vm2351_vm5, %v8935_v2, -inf }
 0x533   :  { %v8944_v60 = vpop.f32.mrb[11].mxu1  ;;  %2401 = vmax.xlane.f32.xlu0 %v2400_v31  ;;  %2398 = vmax.xlane.f32.xlu1 %v2397_v47  ;;  %v2409_v62 = vsel %vm2351_vm5, %v8938_v44, -inf }
 0x534   :  { %v2403_v42 = vsel %vm2351_vm5, %v8944_v60, -inf }
 0x537   :  { %2392 = vmax.xlane.f32.xlu1 %v2391_v36  ;;  %v8970_v36 = vpop.permute.xlu0 %3229 }
 0x538   :  { %v8948_v33 = vpop.f32.mrb[12].mxu1 }
 0x539   :  { %v8950_v18 = vpop.f32.mrb[13].mxu1  ;;  %v2418_v31 = vsel %vm2351_vm5, %v8948_v33, -inf }
 0x53a   :  { %v8952_v28 = vpop.f32.mrb[14].mxu1  ;;  %v2412_v5 = vsel %vm2351_vm5, %v8950_v18, -inf }
 0x53b   :  { %v8958_v54 = vpop.f32.mrb[15].mxu1  ;;  %2413 = vmax.xlane.f32.xlu0 %v2412_v5  ;;  %2407 = vmax.xlane.f32.xlu1 %v2406_v52  ;;  %v2421_v47 = vsel %vm2351_vm5, %v8952_v28, -inf  ;;  %v8972_v5 = vpop.permute.xlu0 %3318 }
 0x53c   :  { %v2415_v45 = vsel %vm2351_vm5, %v8958_v54, -inf }
 0x53f   :  { %2416 = vmax.xlane.f32.xlu0 %v2415_v45  ;;  %2410 = vmax.xlane.f32.xlu1 %v2409_v62 }
 0x543   :  { %2404 = vmax.xlane.f32.xlu1 %v2403_v42  ;;  %v8980_v42 = vpop.permute.xlu0 %3233 }
 0x547   :  { %2419 = vmax.xlane.f32.xlu1 %v2418_v31  ;;  %v8994_v32 = vpop.permute.xlu0 %3322 }
 0x54b   :  { %2422 = vmax.xlane.f32.xlu1 %v2421_v47  ;;  %v8986_v47 = vpop.permute.xlu1 %3320  ;;  %v9012_v56 = vpop.permute.xlu0 %3407 }
 0x54c   :  { %11914 = vst [vmem:[#allocation116_spill] sm:$0xff] %v9012_v56 }
 0x57a   :  { %v8974_v52 = vpop.f32.mrb[24].mxu0 }
 0x57b   :  { %v8976_v45 = vpop.f32.mrb[25].mxu0  ;;  %v2430_v62 = vsel %vm2351_vm5, %v8974_v52, -inf }
 0x57c   :  { %v8982_v6 = vpop.f32.mrb[26].mxu0  ;;  %2431 = vmax.xlane.f32.xlu0 %v2430_v62  ;;  %v2424_v31 = vsel %vm2351_vm5, %v8976_v45, -inf  ;;  %v8998_v62 = vpop.permute.xlu1 %3405 }
 0x57d   :  { %2425 = vmax.xlane.f32.xlu1 %v2424_v31  ;;  %v8988_v3 = vpop.f32.mrb[27].mxu0  ;;  %v2433_v19 = vsel %vm2351_vm5, %v8982_v6, -inf }
 0x57e   :  { %v2427_v30 = vsel %vm2351_vm5, %v8988_v3, -inf }
 0x580   :  { %2428 = vmax.xlane.f32.xlu0 %v2427_v30  ;;  %v9016_v48 = vpop.permute.xlu1 %3494 }
 0x581   :  { %2434 = vmax.xlane.f32.xlu1 %v2433_v19 }
 0x582   :  { %v8996_v16 = vpop.f32.mrb[28].mxu0 }
 0x583   :  { %v9000_v22 = vpop.f32.mrb[29].mxu0  ;;  %v2442_v31 = vsel %vm2351_vm5, %v8996_v16, -inf }
 0x584   :  { %v9004_v15 = vpop.f32.mrb[30].mxu0  ;;  %2443 = vmax.xlane.f32.xlu0 %v2442_v31  ;;  %v2436_v30 = vsel %vm2351_vm5, %v9000_v22, -inf  ;;  %v9032_v43 = vpop.permute.xlu1 %3498 }
 0x585   :  { %2437 = vmax.xlane.f32.xlu1 %v2436_v30  ;;  %v9008_v37 = vpop.f32.mrb[31].mxu0  ;;  %v2445_v63 = vsel %vm2351_vm5, %v9004_v15, -inf  ;;  %11919 = vst [vmem:[#allocation121_spill] sm:$0xff] %v9032_v43 }
 0x586   :  { %v2439_v19 = vsel %vm2351_vm5, %v9008_v37, -inf }
 0x588   :  { %2440 = vmax.xlane.f32.xlu0 %v2439_v19  ;;  %v9028_v19 = vpop.permute.xlu0 %3496 }
 0x589   :  { %2446 = vmax.xlane.f32.xlu1 %v2445_v63  ;;  %11917 = vst [vmem:[#allocation119_spill] sm:$0xff] %v9028_v19 }
 0x58b   :  { %v9018_v17 = vpop.f32.mrb[16].mxu1 }
 0x58c   :  { %v9020_v31 = vpop.f32.mrb[17].mxu1  ;;  %v2454_v30 = vsel %vm2351_vm5, %v9018_v17, -inf }
 0x58d   :  { %11915 = vst [vmem:[#allocation117_spill] sm:$0xff] %v9020_v31  ;;  %v9024_v53 = vpop.f32.mrb[18].mxu1  ;;  %2455 = vmax.xlane.f32.xlu0 %v2454_v30  ;;  %v2448_v50 = vsel %vm2351_vm5, %v9020_v31, -inf  ;;  %v9040_v30 = vpop.permute.xlu0 %3411 }
 0x58e   :  { %11916 = vst [vmem:[#allocation118_spill] sm:$0xff] %v9024_v53  ;;  %v9030_v23 = vpop.f32.mrb[19].mxu1  ;;  %2449 = vmax.xlane.f32.xlu1 %v2448_v50  ;;  %v2457_v63 = vsel %vm2351_vm5, %v9024_v53, -inf  ;;  %11921 = vst [vmem:[#allocation123_spill] sm:$0xff] %v9040_v30  ;;  %v9046_v50 = vpop.permute.xlu1 %3231 }
 0x58f   :  { %11918 = vst [vmem:[#allocation120_spill] sm:$0xff] %v9030_v23  ;;  %v2451_v38 = vsel %vm2351_vm5, %v9030_v23, -inf }
 0x591   :  { %2458 = vmax.xlane.f32.xlu0 %v2457_v63  ;;  %v9058_v19 = vpop.permute.xlu0 %3500 }
 0x592   :  { %2452 = vmax.xlane.f32.xlu1 %v2451_v38  ;;  %11925 = vst [vmem:[#allocation127_spill] sm:$0xff] %v9058_v19  ;;  %v9060_v30 = vpop.permute.xlu1 %3409 }
 0x593   :  { %v9038_v13 = vpop.f32.mrb[20].mxu1  ;;  %11926 = vst [vmem:[#allocation128_spill] sm:$0xff] %v9060_v30 }
 0x594   :  { %11920 = vst [vmem:[#allocation122_spill] sm:$0xff] %v9038_v13  ;;  %v9042_v1 = vpop.f32.mrb[21].mxu1  ;;  %v2466_v11 = vsel %vm2351_vm5, %v9038_v13, -inf }
 0x595   :  { %11922 = vst [vmem:[#allocation124_spill] sm:$0xff] %v9042_v1  ;;  %v9048_v49 = vpop.f32.mrb[22].mxu1  ;;  %2467 = vmax.xlane.f32.xlu0 %v2466_v11  ;;  %v2460_v63 = vsel %vm2351_vm5, %v9042_v1, -inf }
 0x596   :  { %11923 = vst [vmem:[#allocation125_spill] sm:$0xff] %v9048_v49  ;;  %v9052_v25 = vpop.f32.mrb[23].mxu1  ;;  %2461 = vmax.xlane.f32.xlu1 %v2460_v63  ;;  %v2469_v38 = vsel %vm2351_vm5, %v9048_v49, -inf }
 0x597   :  { %11924 = vst [vmem:[#allocation126_spill] sm:$0xff] %v9052_v25  ;;  %v2463_v43 = vsel %vm2351_vm5, %v9052_v25, -inf }
 0x599   :  { %2470 = vmax.xlane.f32.xlu0 %v2469_v38 }
 0x59a   :  { %2464 = vmax.xlane.f32.xlu1 %v2463_v43 }
 0x59b   :  { %v9062_v13 = vpop.f32.mrb[32].mxu0 }
 0x59c   :  { %11927 = vst [vmem:[#allocation129_spill] sm:$0xff] %v9062_v13  ;;  %v9064_v11 = vpop.f32.mrb[33].mxu0  ;;  %v2478_v1 = vsel %vm2351_vm5, %v9062_v13, -inf }
 0x59d   :  { %11928 = vst [vmem:[#allocation130_spill] sm:$0xff] %v9064_v11  ;;  %v9068_v63 = vpop.f32.mrb[34].mxu0  ;;  %2479 = vmax.xlane.f32.xlu0 %v2478_v1  ;;  %v2472_v38 = vsel %vm2351_vm5, %v9064_v11, -inf }
 0x59e   :  { %2473 = vmax.xlane.f32.xlu1 %v2472_v38  ;;  %v9072_v25 = vpop.f32.mrb[35].mxu0  ;;  %v2360_v19 = vpop.xlane.xlu0 %2359  ;;  %v2481_v1 = vsel %vm2351_vm5, %v9068_v63, -inf }
 0x59f   :  { %v2546_v43 = vsub.f32 %v8850_v59, %v2360_v19  ;;  %v2354_v49 = vpop.xlane.xlu1 %2353  ;;  %v2475_v30 = vsel %vm2351_vm5, %v9072_v25, -inf }
 0x5a0   :  { %v2544_v56 = vsub.f32 %v8852_v55, %v2354_v49 }
 0x5a1   :  { %v2612_v23 = vmul.f32 1.442695, %v2546_v43  ;;  %2476 = vmax.xlane.f32.xlu0 %v2475_v30 }
 0x5a2   :  { %v2608_v13 = vmul.f32 1.442695, %v2544_v56  ;;  %2482 = vmax.xlane.f32.xlu1 %v2481_v1  ;;  %v2357_v11 = vpop.xlane.xlu0 %2356 }
 0x5a3   :  { %v9080_v38 = vpop.f32.mrb[36].mxu0  ;;  %v2545_v53 = vsub.f32 %v8860_v20, %v2357_v11  ;;  %v2363_v31 = vpop.xlane.xlu1 %2362  ;;  %6717 = vpow2.f32 %v2612_v23 }
 0x5a4   :  { %v2547_v59 = vsub.f32 %v8856_v61, %v2363_v31  ;;  %v9084_v19 = vpop.f32.mrb[37].mxu0  ;;  %v2490_v49 = vsel %vm2351_vm5, %v9080_v38, -inf  ;;  %6719 = vpow2.f32 %v2608_v13 }
 0x5a5   :  { %v2610_v55 = vmul.f32 1.442695, %v2545_v53  ;;  %v9088_v30 = vpop.f32.mrb[38].mxu0  ;;  %2491 = vmax.xlane.f32.xlu0 %v2490_v49  ;;  %v2484_v56 = vsel %vm2351_vm5, %v9084_v19, -inf }
 0x5a6   :  { %v2614_v43 = vmul.f32 1.442695, %v2547_v59  ;;  %2485 = vmax.xlane.f32.xlu1 %v2484_v56  ;;  %v9092_v20 = vpop.f32.mrb[39].mxu0  ;;  %v2372_v11 = vpop.xlane.xlu0 %2371  ;;  %v2493_v13 = vsel %vm2351_vm5, %v9088_v30, -inf }
 0x5a7   :  { %6721 = vpow2.f32 %v2610_v55  ;;  %v2550_v61 = vsub.f32 %v8869_v9, %v2372_v11  ;;  %v2487_v31 = vsel %vm2351_vm5, %v9092_v20, -inf }
 0x5a8   :  { %6723 = vpow2.f32 %v2614_v43  ;;  %v2375_v23 = vpop.xlane.xlu1 %2374 }
 0x5a9   :  { %v2620_v53 = vmul.f32 1.442695, %v2550_v61  ;;  %v2551_v1 = vsub.f32 %v8875_v12, %v2375_v23  ;;  %2488 = vmax.xlane.f32.xlu0 %v2487_v31 }
 0x5aa   :  { %2494 = vmax.xlane.f32.xlu1 %v2493_v13  ;;  %v2366_v59 = vpop.xlane.xlu0 %2365 }
 0x5ab   :  { %v2622_v49 = vmul.f32 1.442695, %v2551_v1  ;;  %v2548_v56 = vsub.f32 %v8871_v27, %v2366_v59  ;;  %6725 = vpow2.f32 %v2620_v53 }
 0x5ac   :  { %v9101_v55 = vpop.f32.mrb[24].mxu1  ;;  %v2369_v9 = vpop.xlane.xlu1 %2368 }
 0x5ad   :  { %6727 = vpow2.f32 %v2622_v49  ;;  %v2616_v11 = vmul.f32 1.442695, %v2548_v56  ;;  %v9103_v43 = vpop.f32.mrb[25].mxu1  ;;  %v2549_v61 = vsub.f32 %v8879_v34, %v2369_v9  ;;  %v2502_v12 = vsel %vm2351_vm5, %v9101_v55, -inf  ;;  %v9112_v27 = vpop.eup %6717 }
 0x5ae   :  { %11929 = vst [vmem:[#allocation131_spill] sm:$0xff] %v9103_v43  ;;  %2503 = vmax.xlane.f32.xlu0 %v2502_v12  ;;  %v9108_v31 = vpop.f32.mrb[26].mxu1  ;;  %v2496_v23 = vsel %vm2351_vm5, %v9103_v43, -inf  ;;  %11931 = vst [vmem:[#allocation133_spill] sm:$0xff] %v9112_v27  ;;  %v9116_v13 = vpop.eup %6719 }
 0x5af   :  { %11930 = vst [vmem:[#allocation132_spill] sm:$0xff] %v9108_v31  ;;  %v2618_v53 = vmul.f32 1.442695, %v2549_v61  ;;  %2497 = vmax.xlane.f32.xlu1 %v2496_v23  ;;  %v9114_v1 = vpop.f32.mrb[27].mxu1  ;;  %11933 = vst [vmem:[#allocation135_spill] sm:$0xff] %v9116_v13  ;;  %6729 = vpow2.f32 %v2616_v11  ;;  %v2505_v56 = vsel %vm2351_vm5, %v9108_v31, -inf }
 0x5b0   :  { %11932 = vst [vmem:[#allocation134_spill] sm:$0xff] %v9114_v1  ;;  %v2384_v59 = vpop.xlane.xlu1 %2383  ;;  %v2378_v12 = vpop.xlane.xlu0 %2377  ;;  %v2499_v61 = vsel %vm2351_vm5, %v9114_v1, -inf }
 0x5b1   :  { %v9118_v34 = vpop.eup %6721  ;;  %6731 = vpow2.f32 %v2618_v53  ;;  %v2554_v49 = vsub.f32 %v8888_v58, %v2384_v59  ;;  %v2552_v59 = vsub.f32 %v8892_v21, %v2378_v12 }
 0x5b2   :  { %v9123_v9 = vpop.eup %6723  ;;  %2506 = vmax.xlane.f32.xlu0 %v2505_v56  ;;  %v2928_v23 = vpack.c.bf16 %v9118_v34, %v9116_v13 }
 0x5b3   :  { %v2929_v11 = vpack.c.bf16 %v9123_v9, %v9112_v27  ;;  %2500 = vmax.xlane.f32.xlu1 %v2499_v61  ;;  %v2628_v53 = vmul.f32 1.442695, %v2554_v49 }
 0x5b4   :  { %v9131_v43 = vpop.f32.mrb[28].mxu1  ;;  %v2387_v58 = vpop.xlane.xlu1 %2386  ;;  %6167 = vmatprep.mubr.msk.bf16.mxu0 %vm2351_vm5, %v2928_v23 }
 0x5b5   :  { %v9135_v31 = vpop.f32.mrb[29].mxu1  ;;  %v2555_v56 = vsub.f32 %v8896_v7, %v2387_v58  ;;  %v2514_v1 = vsel %vm2351_vm5, %v9131_v43, -inf  ;;  %6168 = vmatmul.mubr.msk.bf16.vlgmr.msra.gmra.mrb[48].mxu0 %vm2351_vm5, %v2929_v11  ;;  %v9141_v13 = vpop.eup %6725  ;;  %6733 = vpow2.f32 %v2628_v53  ;;  %v2624_v11 = vmul.f32 1.442695, %v2552_v59 }
 0x5b6   :  { %11934 = vst [vmem:[#allocation136_spill] sm:$0xff] %v9141_v13  ;;  %2515 = vmax.xlane.f32.xlu0 %v2514_v1  ;;  %v9143_v49 = vpop.f32.mrb[30].mxu1  ;;  %v2508_v61 = vsel %vm2351_vm5, %v9135_v31, -inf  ;;  %6176 = vmatpush3.bf16.msra.mxu0 %v8877_v0 }
 0x5b7   :  { %v9148_v21 = vpop.eup %6727  ;;  %v2630_v12 = vmul.f32 1.442695, %v2555_v56  ;;  %2509 = vmax.xlane.f32.xlu1 %v2508_v61  ;;  %v9150_v7 = vpop.f32.mrb[31].mxu1  ;;  %6177 = vmatprep.subr.bf16.mxu0 %v8890_v40  ;;  %v2517_v0 = vsel %vm2351_vm5, %v9143_v49, -inf }
 0x5b8   :  { %v2381_v23 = vpop.xlane.xlu1 %2380  ;;  %v2931_v1 = vpack.c.bf16 %v9148_v21, %v9141_v13  ;;  %v2511_v56 = vsel %vm2351_vm5, %v9150_v7, -inf }
 0x5b9   :  { %6735 = vpow2.f32 %v2630_v12  ;;  %v2553_v58 = vsub.f32 %v8904_v14, %v2381_v23  ;;  %v9158_v27 = vpop.eup %6729  ;;  %v2390_v12 = vpop.xlane.xlu0 %2389 }
 0x5ba   :  { %2518 = vmax.xlane.f32.xlu0 %v2517_v0  ;;  %6178 = vmatpush3.bf16.msra.mxu0 %v8890_v40  ;;  %6737 = vpow2.f32 %v2624_v11  ;;  %v2556_v40 = vsub.f32 %v8914_v24, %v2390_v12 }
 0x5bb   :  { %v9163_v53 = vpop.eup %6731  ;;  %v2626_v61 = vmul.f32 1.442695, %v2553_v58  ;;  %2512 = vmax.xlane.f32.xlu1 %v2511_v56  ;;  %6179 = vmatprep.subr.bf16.mxu0 %v8894_v39 }
 0x5bc   :  { %v2396_v59 = vpop.xlane.xlu1 %2395  ;;  %v2930_v14 = vpack.c.bf16 %v9163_v53, %v9158_v27 }
 0x5bd   :  { %v2558_v23 = vsub.f32 %v8910_v57, %v2396_v59  ;;  %6739 = vpow2.f32 %v2626_v61  ;;  %v2632_v61 = vmul.f32 1.442695, %v2556_v40 }
 0x5be   :  { %6180 = vmatpush3.bf16.msra.mxu0 %v8894_v39  ;;  %6171 = vmatprep.mubr.msk.bf16.mxu0 %vm2351_vm5, %v2930_v14 }
 0x5bf   :  { %6181 = vmatprep.subr.bf16.mxu0 %v8912_v26  ;;  %6172 = vmatmul.mubr.msk.bf16.gmra.mrb[52].mxu0 %vm2351_vm5, %v2931_v1  ;;  %v2636_v0 = vmul.f32 1.442695, %v2558_v23  ;;  %v9175_v13 = vpop.eup %6733 }
 0x5c0   :  { %v2399_v58 = vpop.xlane.xlu1 %2398  ;;  %11935 = vst [vmem:[#allocation137_spill] sm:$0xff] %v9175_v13  ;;  %v2402_v1 = vpop.xlane.xlu0 %2401 }
 0x5c1   :  { %v2559_v56 = vsub.f32 %v8918_v51, %v2399_v58  ;;  %6741 = vpow2.f32 %v2636_v0 }
 0x5c2   :  { %6182 = vmatpush3.bf16.msra.mxu0 %v8912_v26 }
 0x5c3   :  { %v9178_v57 = vpop.eup %6735  ;;  %v2638_v11 = vmul.f32 1.442695, %v2559_v56  ;;  %6207 = vmatprep.subr.bf16.mxu0 %v8916_v41 }
 0x5c4   :  { %v2933_v39 = vpack.c.bf16 %v9178_v57, %v9175_v13  ;;  %v2393_v59 = vpop.xlane.xlu1 %2392  ;;  %v9184_v51 = vpop.eup %6737 }
 0x5c5   :  { %v2557_v24 = vsub.f32 %v8926_v29, %v2393_v59  ;;  %6743 = vpow2.f32 %v2638_v11  ;;  %v2560_v29 = vsub.f32 %v8935_v2, %v2402_v1 }
 0x5c6   :  { %6745 = vpow2.f32 %v2632_v61 }
 0x5c7   :  { %v2634_v14 = vmul.f32 1.442695, %v2557_v24  ;;  %v9186_v12 = vpop.eup %6739  ;;  %v2640_v2 = vmul.f32 1.442695, %v2560_v29 }
 0x5c8   :  { %v2414_v26 = vpop.xlane.xlu0 %2413  ;;  %v2408_v23 = vpop.xlane.xlu1 %2407  ;;  %v2932_v40 = vpack.c.bf16 %v9186_v12, %v9184_v51 }
 0x5c9   :  { %6747 = vpow2.f32 %v2634_v14  ;;  %v2564_v58 = vsub.f32 %v8950_v18, %v2414_v26  ;;  %v2562_v56 = vsub.f32 %v8932_v8, %v2408_v23 }
 0x5ca   :  { %6183 = vmatprep.mubr.msk.bf16.mxu0 %vm2351_vm5, %v2932_v40 }
 0x5cb   :  { %v2648_v0 = vmul.f32 1.442695, %v2564_v58  ;;  %v2644_v11 = vmul.f32 1.442695, %v2562_v56  ;;  %6184 = vmatmul.mubr.msk.bf16.vlgmr.msra.gmra.mrb[56].mxu0 %vm2351_vm5, %v2933_v39  ;;  %v9199_v8 = vpop.eup %6741 }
 0x5cc   :  { %v2417_v59 = vpop.xlane.xlu0 %2416  ;;  %v2411_v61 = vpop.xlane.xlu1 %2410  ;;  %6208 = vmatpush3.bf16.msra.mxu0 %v8916_v41  ;;  %11936 = vst [vmem:[#allocation138_spill] sm:$0xff] %v9199_v8 }
 0x5cd   :  { %v2565_v24 = vsub.f32 %v8958_v54, %v2417_v59  ;;  %v2563_v18 = vsub.f32 %v8938_v44, %v2411_v61  ;;  %6209 = vmatprep.subr.bf16.mxu0 %v8970_v36  ;;  %6749 = vpow2.f32 %v2648_v0 }
 0x5ce   :  { %6751 = vpow2.f32 %v2644_v11 }
 0x5cf   :  { %v2650_v14 = vmul.f32 1.442695, %v2565_v24  ;;  %v2646_v26 = vmul.f32 1.442695, %v2563_v18  ;;  %v9201_v23 = vpop.eup %6743 }
 0x5d0   :  { %11937 = vst [vmem:[#allocation139_spill] sm:$0xff] %v9201_v23  ;;  %v2405_v39 = vpop.xlane.xlu1 %2404  ;;  %6210 = vmatpush3.bf16.msra.mxu0 %v8970_v36  ;;  %v2935_v44 = vpack.c.bf16 %v9201_v23, %v9199_v8  ;;  %v9207_v54 = vpop.eup %6745 }
 0x5d1   :  { %6753 = vpow2.f32 %v2650_v14  ;;  %v2561_v41 = vsub.f32 %v8944_v60, %v2405_v39  ;;  %11938 = vst [vmem:[#allocation140_spill] sm:$0xff] %v9207_v54  ;;  %6211 = vmatprep.subr.bf16.mxu0 %v9046_v50 }
 0x5d2   :  { %6755 = vpow2.f32 %v2646_v26 }
 0x5d3   :  { %v9210_v1 = vpop.eup %6747  ;;  %v2642_v58 = vmul.f32 1.442695, %v2561_v41  ;;  %6757 = vpow2.f32 %v2640_v2 }
 0x5d4   :  { %v2420_v56 = vpop.xlane.xlu1 %2419  ;;  %v2934_v40 = vpack.c.bf16 %v9210_v1, %v9207_v54  ;;  %6212 = vmatpush3.bf16.msra.mxu0 %v9046_v50 }
 0x5d5   :  { %6759 = vpow2.f32 %v2642_v58  ;;  %v2566_v60 = vsub.f32 %v8948_v33, %v2420_v56  ;;  %6213 = vmatprep.subr.bf16.mxu0 %v8980_v42 }
 0x5d6   :  { %6187 = vmatprep.mubr.msk.bf16.mxu0 %vm2351_vm5, %v2934_v40 }
 0x5d7   :  { %6188 = vmatmul.mubr.msk.bf16.gmra.mrb[60].mxu0 %vm2351_vm5, %v2935_v44  ;;  %v2652_v36 = vmul.f32 1.442695, %v2566_v60  ;;  %v9219_v29 = vpop.eup %6749 }
 0x5d8   :  { %v2423_v0 = vpop.xlane.xlu1 %2422  ;;  %6214 = vmatpush3.bf16.msra.mxu0 %v8980_v42  ;;  %v9223_v59 = vpop.eup %6751 }
 0x5d9   :  { %v2567_v11 = vsub.f32 %v8952_v28, %v2423_v0  ;;  %6239 = vmatprep.subr.bf16.mxu0 %v8998_v62  ;;  %6761 = vpow2.f32 %v2652_v36 }
 0x5db   :  { %v9226_v50 = vpop.eup %6753  ;;  %v2654_v33 = vmul.f32 1.442695, %v2567_v11 }
 0x5dc   :  { %v9228_v61 = vpop.eup %6755  ;;  %v2938_v24 = vpack.c.bf16 %v9226_v50, %v9219_v29 }
 0x5dd   :  { %v2937_v18 = vpack.c.bf16 %v9228_v61, %v9223_v59  ;;  %6763 = vpow2.f32 %v2654_v33  ;;  %v9234_v42 = vpop.eup %6757 }
 0x5df   :  { %v9236_v28 = vpop.eup %6759 }
 0x5e0   :  { %v2936_v14 = vpack.c.bf16 %v9236_v28, %v9234_v42 }
 0x5e2   :  { %6199 = vmatprep.mubr.msk.bf16.mxu1 %vm2351_vm5, %v2936_v14 }
 0x5e3   :  { %6200 = vmatmul.mubr.msk.bf16.vlgmr.msra.gmra.mrb[32].mxu1 %vm2351_vm5, %v2937_v18  ;;  %v9245_v26 = vpop.eup %6761 }
 0x5e4   :  { %6224 = vmatpush3.bf16.msra.mxu1 %v8928_v46  ;;  %6203 = vmatprep.mubr.msk.bf16.mxu1 %vm2351_vm5, %v2938_v24 }
 0x5e5   :  { %6225 = vmatprep.subr.bf16.mxu1 %v8972_v5 }
 0x5e7   :  { %v9247_v2 = vpop.eup %6763 }
 0x5e8   :  { %6226 = vmatpush3.bf16.msra.mxu1 %v8972_v5  ;;  %v2939_v39 = vpack.c.bf16 %v9247_v2, %v9245_v26 }
 0x5e9   :  { %6227 = vmatprep.subr.bf16.mxu1 %v8986_v47 }
 0x5eb   :  { %6204 = vmatmul.mubr.msk.bf16.gmra.mrb[36].mxu1 %vm2351_vm5, %v2939_v39 }
 0x5ec   :  { %6228 = vmatpush3.bf16.msra.mxu1 %v8986_v47 }
 0x5ed   :  { %6229 = vmatprep.subr.bf16.mxu1 %v8994_v32 }
 0x5f0   :  { %6230 = vmatpush3.bf16.msra.mxu1 %v8994_v32 }
 0x5f1   :  { %6255 = vmatprep.subr.bf16.mxu1 %v9016_v48 }
 0x5f5   :  { %v9258_v46 = vpop.f32.mrb[40].mxu0 }
 0x5f6   :  { %v9260_v41 = vpop.f32.mrb[41].mxu0  ;;  %v2526_v5 = vsel %vm2351_vm5, %v9258_v46, -inf }
 0x5f7   :  { %2527 = vmax.xlane.f32.xlu1 %v2526_v5  ;;  %v9264_v44 = vpop.f32.mrb[42].mxu0  ;;  %v2520_v32 = vsel %vm2351_vm5, %v9260_v41, -inf }
 0x5f8   :  { %v9266_v58 = vpop.f32.mrb[43].mxu0  ;;  %v2529_v47 = vsel %vm2351_vm5, %v9264_v44, -inf }
 0x5f9   :  { %2530 = vmax.xlane.f32.xlu0 %v2529_v47  ;;  %v2523_v56 = vsel %vm2351_vm5, %v9266_v58, -inf }
 0x5fb   :  { %2521 = vmax.xlane.f32.xlu1 %v2520_v32 }
 0x5fd   :  { %2524 = vmax.xlane.f32.xlu0 %v2523_v56  ;;  %v9274_v40 = vpop.f32.mrb[44].mxu0 }
 0x5fe   :  { %v9276_v60 = vpop.f32.mrb[45].mxu0  ;;  %v2538_v36 = vsel %vm2351_vm5, %v9274_v40, -inf }
 0x5ff   :  { %2539 = vmax.xlane.f32.xlu1 %v2538_v36  ;;  %v9280_v0 = vpop.f32.mrb[46].mxu0  ;;  %v2532_v33 = vsel %vm2351_vm5, %v9276_v60, -inf }
 0x600   :  { %v9282_v11 = vpop.f32.mrb[47].mxu0 }
 0x603   :  { %2533 = vmax.xlane.f32.xlu1 %v2532_v33 }
 0x609   :  { %v2432_v24 = vpop.xlane.xlu0 %2431 }
 0x60a   :  { %v2570_v18 = vsub.f32 %v8974_v52, %v2432_v24  ;;  %v2426_v14 = vpop.xlane.xlu1 %2425 }
 0x60b   :  { %v2568_v39 = vsub.f32 %v8976_v45, %v2426_v14 }
 0x60c   :  { %v2660_v5 = vmul.f32 1.442695, %v2570_v18 }
 0x60d   :  { %v2656_v47 = vmul.f32 1.442695, %v2568_v39  ;;  %v2429_v32 = vpop.xlane.xlu0 %2428 }
 0x60e   :  { %v2569_v56 = vsub.f32 %v8988_v3, %v2429_v32  ;;  %v2435_v36 = vpop.xlane.xlu1 %2434  ;;  %6765 = vpow2.f32 %v2660_v5 }
 0x60f   :  { %v2571_v8 = vsub.f32 %v8982_v6, %v2435_v36  ;;  %6767 = vpow2.f32 %v2656_v47 }
 0x610   :  { %v2658_v54 = vmul.f32 1.442695, %v2569_v56 }
 0x611   :  { %v2662_v13 = vmul.f32 1.442695, %v2571_v8  ;;  %v2444_v23 = vpop.xlane.xlu0 %2443 }
 0x612   :  { %6769 = vpow2.f32 %v2658_v54  ;;  %v2574_v33 = vsub.f32 %v8996_v16, %v2444_v23  ;;  %v2438_v52 = vpop.xlane.xlu1 %2437 }
 0x613   :  { %6771 = vpow2.f32 %v2662_v13  ;;  %v2572_v45 = vsub.f32 %v9000_v22, %v2438_v52  ;;  %3585 = vrot.lane.b32.xlu0 %v8716_v4, %s7049_s28 }
 0x614   :  { %v2668_v24 = vmul.f32 1.442695, %v2574_v33  ;;  %3583 = vrot.lane.b32.xlu1 %v8706_v35, %s7049_s28  ;;  %v11940_v33 = vld [vmem:[#allocation118_spill] sm:$0xff] }
 0x615   :  { %v2664_v3 = vmul.f32 1.442695, %v2572_v45  ;;  %v2441_v6 = vpop.xlane.xlu0 %2440 }
 0x616   :  { %v2573_v18 = vsub.f32 %v9008_v37, %v2441_v6  ;;  %v2447_v8 = vpop.xlane.xlu1 %2446  ;;  %6773 = vpow2.f32 %v2668_v24 }
 0x617   :  { %v2575_v54 = vsub.f32 %v9004_v15, %v2447_v8  ;;  %3587 = vrot.lane.b32.xlu0 %v8731_v10, %s7049_s28  ;;  %6775 = vpow2.f32 %v2664_v3  ;;  %v11939_v15 = vld [vmem:[#allocation117_spill] sm:$0xff]  ;;  %v11942_v8 = vld [vmem:[#allocation116_spill] sm:$0xff] }
 0x618   :  { %v2666_v16 = vmul.f32 1.442695, %v2573_v18  ;;  %v9300_v13 = vpop.eup %6765 }
 0x619   :  { %v2670_v22 = vmul.f32 1.442695, %v2575_v54  ;;  %v9302_v23 = vpop.eup %6767 }
 0x61a   :  { %6777 = vpow2.f32 %v2666_v16  ;;  %v2456_v4 = vpop.xlane.xlu0 %2455 }
 0x61b   :  { %6779 = vpow2.f32 %v2670_v22  ;;  %v2578_v35 = vsub.f32 %v9018_v17, %v2456_v4  ;;  %v2450_v37 = vpop.xlane.xlu1 %2449  ;;  %v11941_v17 = vld [vmem:[#allocation120_spill] sm:$0xff]  ;;  %v11943_v22 = vld [vmem:[#allocation122_spill] sm:$0xff] }
 0x61c   :  { %v9305_v14 = vpop.eup %6769  ;;  %v2576_v39 = vsub.f32 %v11939_v15, %v2450_v37  ;;  %v11944_v15 = vld [vmem:[#allocation124_spill] sm:$0xff] }
 0x61d   :  { %v9308_v5 = vpop.eup %6771  ;;  %v2676_v10 = vmul.f32 1.442695, %v2578_v35  ;;  %v2940_v47 = vpack.c.bf16 %v9305_v14, %v9302_v23 }
 0x61e   :  { %v2941_v32 = vpack.c.bf16 %v9308_v5, %v9300_v13  ;;  %v2672_v56 = vmul.f32 1.442695, %v2576_v39  ;;  %v2459_v36 = vpop.xlane.xlu0 %2458 }
 0x61f   :  { %v2579_v52 = vsub.f32 %v11940_v33, %v2459_v36  ;;  %v2453_v45 = vpop.xlane.xlu1 %2452  ;;  %6215 = vmatprep.mubr.msk.bf16.mxu0 %vm2351_vm5, %v2940_v47  ;;  %6781 = vpow2.f32 %v2676_v10 }
 0x620   :  { %v2577_v24 = vsub.f32 %v11941_v17, %v2453_v45  ;;  %6216 = vmatmul.mubr.msk.bf16.vlgmr.msra.gmra.mrb[64].mxu0 %vm2351_vm5, %v2941_v32  ;;  %v9319_v6 = vpop.eup %6773  ;;  %6783 = vpow2.f32 %v2672_v56  ;;  %v11945_v56 = vld [vmem:[#allocation128_spill] sm:$0xff] }
 0x621   :  { %v2678_v3 = vmul.f32 1.442695, %v2579_v52  ;;  %6240 = vmatpush3.bf16.msra.mxu0 %v8998_v62  ;;  %v9322_v16 = vpop.eup %6775  ;;  %v11946_v52 = vld [vmem:[#allocation125_spill] sm:$0xff] }
 0x622   :  { %v2674_v18 = vmul.f32 1.442695, %v2577_v24  ;;  %6241 = vmatprep.subr.bf16.mxu0 %v11942_v8  ;;  %v2468_v54 = vpop.xlane.xlu0 %2467  ;;  %v11947_v24 = vld [vmem:[#allocation126_spill] sm:$0xff] }
 0x623   :  { %6785 = vpow2.f32 %v2678_v3  ;;  %v2582_v4 = vsub.f32 %v11943_v22, %v2468_v54  ;;  %v2462_v35 = vpop.xlane.xlu1 %2461  ;;  %v11948_v54 = vld [vmem:[#allocation123_spill] sm:$0xff] }
 0x624   :  { %v9325_v37 = vpop.eup %6777  ;;  %6787 = vpow2.f32 %v2674_v18  ;;  %v2580_v39 = vsub.f32 %v11944_v15, %v2462_v35  ;;  %v11949_v35 = vld [vmem:[#allocation129_spill] sm:$0xff] }
 0x625   :  { %v9328_v10 = vpop.eup %6779  ;;  %v2684_v62 = vmul.f32 1.442695, %v2582_v4  ;;  %6242 = vmatpush3.bf16.msra.mxu0 %v11942_v8  ;;  %v2942_v47 = vpack.c.bf16 %v9325_v37, %v9322_v16 }
 0x626   :  { %v2680_v32 = vmul.f32 1.442695, %v2580_v39  ;;  %6243 = vmatprep.subr.bf16.mxu0 %v11945_v56  ;;  %v2471_v36 = vpop.xlane.xlu0 %2470  ;;  %v2943_v33 = vpack.c.bf16 %v9328_v10, %v9319_v6 }
 0x627   :  { %v2583_v45 = vsub.f32 %v11946_v52, %v2471_v36  ;;  %v2465_v17 = vpop.xlane.xlu1 %2464  ;;  %6219 = vmatprep.mubr.msk.bf16.mxu0 %vm2351_vm5, %v2942_v47  ;;  %6789 = vpow2.f32 %v2684_v62  ;;  %v11950_v36 = vld [vmem:[#allocation130_spill] sm:$0xff] }
 0x628   :  { %v2581_v3 = vsub.f32 %v11947_v24, %v2465_v17  ;;  %6220 = vmatmul.mubr.msk.bf16.gmra.mrb[68].mxu0 %vm2351_vm5, %v2943_v33  ;;  %6791 = vpow2.f32 %v2680_v32 }
 0x629   :  { %v2686_v18 = vmul.f32 1.442695, %v2583_v45  ;;  %6244 = vmatpush3.bf16.msra.mxu0 %v11945_v56  ;;  %v9342_v4 = vpop.eup %6781 }
 0x62a   :  { %v2682_v8 = vmul.f32 1.442695, %v2581_v3  ;;  %6245 = vmatprep.subr.bf16.mxu0 %v11948_v54  ;;  %v2480_v22 = vpop.xlane.xlu0 %2479  ;;  %v9345_v47 = vpop.eup %6783 }
 0x62b   :  { %6793 = vpow2.f32 %v2686_v18  ;;  %v2586_v15 = vsub.f32 %v11949_v35, %v2480_v22  ;;  %v2474_v39 = vpop.xlane.xlu1 %2473 }
 0x62c   :  { %6795 = vpow2.f32 %v2682_v8  ;;  %v2584_v33 = vsub.f32 %v11950_v36, %v2474_v39 }
 0x62d   :  { %v9348_v62 = vpop.eup %6785  ;;  %v2692_v52 = vmul.f32 1.442695, %v2586_v15  ;;  %6246 = vmatpush3.bf16.msra.mxu0 %v11948_v54 }
 0x62e   :  { %v9351_v32 = vpop.eup %6787  ;;  %v2945_v56 = vpack.c.bf16 %v9348_v62, %v9342_v4  ;;  %v2688_v45 = vmul.f32 1.442695, %v2584_v33  ;;  %v2477_v17 = vpop.xlane.xlu0 %2476  ;;  %v11951_v33 = vld [vmem:[#allocation119_spill] sm:$0xff] }
 0x62f   :  { %v2585_v24 = vsub.f32 %v9072_v25, %v2477_v17  ;;  %v2483_v3 = vpop.xlane.xlu1 %2482  ;;  %v2944_v18 = vpack.c.bf16 %v9351_v32, %v9345_v47  ;;  %6797 = vpow2.f32 %v2692_v52 }
 0x630   :  { %v2587_v8 = vsub.f32 %v9068_v63, %v2483_v3  ;;  %6799 = vpow2.f32 %v2688_v45 }
 0x631   :  { %v2690_v22 = vmul.f32 1.442695, %v2585_v24  ;;  %6231 = vmatprep.mubr.msk.bf16.mxu1 %vm2351_vm5, %v2944_v18  ;;  %v9361_v15 = vpop.eup %6789  ;;  %v2739_v18 = vsel %vm2351_vm5, %v9118_v34, 0.0 }
 0x632   :  { %v2694_v54 = vmul.f32 1.442695, %v2587_v8  ;;  %6232 = vmatmul.mubr.msk.bf16.vlgmr.msra.gmra.mrb[40].mxu1 %vm2351_vm5, %v2945_v56  ;;  %v2492_v35 = vpop.xlane.xlu0 %2491  ;;  %v9365_v36 = vpop.eup %6791  ;;  %v2541_v56 = vsel %vm2351_vm5, %v9280_v0, -inf }
 0x633   :  { %6801 = vpow2.f32 %v2690_v22  ;;  %6256 = vmatpush3.bf16.msra.mxu1 %v9016_v48  ;;  %v2590_v25 = vsub.f32 %v9080_v38, %v2492_v35  ;;  %v2486_v39 = vpop.xlane.xlu1 %2485 }
 0x634   :  { %6803 = vpow2.f32 %v2694_v54  ;;  %v2588_v63 = vsub.f32 %v9084_v19, %v2486_v39  ;;  %6257 = vmatprep.subr.bf16.mxu1 %v11951_v33  ;;  %v11952_v54 = vld [vmem:[#allocation121_spill] sm:$0xff]  ;;  %v2745_v39 = vsel %vm2351_vm5, %v9123_v9, 0.0 }
 0x635   :  { %v9369_v52 = vpop.eup %6793  ;;  %v2700_v45 = vmul.f32 1.442695, %v2590_v25  ;;  %v2535_v25 = vsel %vm2351_vm5, %v9282_v11, -inf }
 0x636   :  { %v9373_v17 = vpop.eup %6795  ;;  %v2696_v24 = vmul.f32 1.442695, %v2588_v63  ;;  %v2489_v48 = vpop.xlane.xlu0 %2488  ;;  %2542 = vmax.xlane.f32.xlu0 %v2541_v56  ;;  %v2947_v38 = vpack.c.bf16 %v9369_v52, %v9361_v15  ;;  %v11953_v56 = vld [vmem:[#allocation127_spill] sm:$0xff] }
 0x637   :  { %6258 = vmatpush3.bf16.msra.mxu1 %v11951_v33  ;;  %v2589_v19 = vsub.f32 %v9092_v20, %v2489_v48  ;;  %v2495_v3 = vpop.xlane.xlu1 %2494  ;;  %v2946_v8 = vpack.c.bf16 %v9373_v17, %v9365_v36  ;;  %6805 = vpow2.f32 %v2700_v45  ;;  %v11954_v48 = vld [vmem:[#allocation131_spill] sm:$0xff] }
 0x638   :  { %v2591_v22 = vsub.f32 %v9088_v30, %v2495_v3  ;;  %6259 = vmatprep.subr.bf16.mxu1 %v11952_v54  ;;  %2740 = vadd.xlane.f32.xlu1 %v2739_v18  ;;  %6807 = vpow2.f32 %v2696_v24 }
 0x639   :  { %v2698_v35 = vmul.f32 1.442695, %v2589_v19  ;;  %6235 = vmatprep.mubr.msk.bf16.mxu1 %vm2351_vm5, %v2946_v8  ;;  %v9389_v34 = vpop.eup %6797 }
 0x63a   :  { %v2702_v20 = vmul.f32 1.442695, %v2591_v22  ;;  %6236 = vmatmul.mubr.msk.bf16.gmra.mrb[44].mxu1 %vm2351_vm5, %v2947_v38  ;;  %2536 = vmax.xlane.f32.xlu0 %v2535_v25  ;;  %v9394_v63 = vpop.eup %6799  ;;  %v2751_v22 = vsel %vm2351_vm5, %v9163_v53, 0.0  ;;  %v2757_v53 = vsel %vm2351_vm5, %v9148_v21, 0.0 }
 0x63b   :  { %6809 = vpow2.f32 %v2698_v35  ;;  %6260 = vmatpush3.bf16.msra.mxu1 %v11952_v54  ;;  %v2504_v30 = vpop.xlane.xlu0 %2503  ;;  %v11955_v54 = vld [vmem:[#allocation132_spill] sm:$0xff] }
 0x63c   :  { %6811 = vpow2.f32 %v2702_v20  ;;  %v2594_v33 = vsub.f32 %v9101_v55, %v2504_v30  ;;  %v2498_v45 = vpop.xlane.xlu1 %2497  ;;  %6261 = vmatprep.subr.bf16.mxu1 %v11953_v56  ;;  %2746 = vadd.xlane.f32.xlu1 %v2745_v39  ;;  %v11956_v20 = vld [vmem:[#allocation134_spill] sm:$0xff] }
 0x63d   :  { %v9398_v24 = vpop.eup %6801  ;;  %v2592_v38 = vsub.f32 %v11954_v48, %v2498_v45 }
 0x63e   :  { %v9401_v19 = vpop.eup %6803  ;;  %v2708_v3 = vmul.f32 1.442695, %v2594_v33  ;;  %v2948_v18 = vpack.c.bf16 %v9398_v24, %v9394_v63 }
 0x63f   :  { %v2949_v9 = vpack.c.bf16 %v9401_v19, %v9389_v34  ;;  %v2704_v8 = vmul.f32 1.442695, %v2592_v38  ;;  %6262 = vmatpush3.bf16.msra.mxu1 %v11953_v56  ;;  %v2507_v55 = vpop.xlane.xlu0 %2506 }
 0x640   :  { %v2595_v35 = vsub.f32 %v11955_v54, %v2507_v55  ;;  %v2501_v25 = vpop.xlane.xlu1 %2500  ;;  %6247 = vmatprep.mubr.msk.bf16.mxu0 %vm2351_vm5, %v2948_v18  ;;  %2752 = vadd.xlane.f32.xlu1 %v2751_v22  ;;  %6813 = vpow2.f32 %v2708_v3 }
 0x641   :  { %v2593_v30 = vsub.f32 %v11956_v20, %v2501_v25  ;;  %6248 = vmatmul.mubr.msk.bf16.vlgmr.msra.gmra.mrb[72].mxu0 %vm2351_vm5, %v2949_v9  ;;  %v9414_v33 = vpop.eup %6805  ;;  %6815 = vpow2.f32 %v2704_v8 }
 0x642   :  { %v2710_v39 = vmul.f32 1.442695, %v2595_v35  ;;  %v9418_v48 = vpop.eup %6807  ;;  %v2763_v35 = vsel %vm2351_vm5, %v9186_v12, 0.0  ;;  %v2787_v12 = vsel %vm2351_vm5, %v9236_v28, 0.0 }
 0x643   :  { %v2706_v45 = vmul.f32 1.442695, %v2593_v30  ;;  %v2516_v56 = vpop.xlane.xlu0 %2515 }
 0x644   :  { %6817 = vpow2.f32 %v2710_v39  ;;  %v2598_v38 = vsub.f32 %v9131_v43, %v2516_v56  ;;  %v2510_v18 = vpop.xlane.xlu1 %2509  ;;  %2758 = vadd.xlane.f32.xlu1 %v2757_v53 }
 0x645   :  { %v9421_v55 = vpop.eup %6809  ;;  %6819 = vpow2.f32 %v2706_v45  ;;  %v2596_v3 = vsub.f32 %v9135_v31, %v2510_v18  ;;  %v11957_v18 = vld [vmem:[#allocation115_spill] sm:$0xff] }
 0x646   :  { %v9424_v9 = vpop.eup %6811  ;;  %v2716_v8 = vmul.f32 1.442695, %v2598_v38  ;;  %v2950_v22 = vpack.c.bf16 %v9421_v55, %v9418_v48  ;;  %v2805_v38 = vsel %vm2351_vm5, %v9247_v2, 0.0 }
 0x647   :  { %v2712_v54 = vmul.f32 1.442695, %v2596_v3  ;;  %v2519_v21 = vpop.xlane.xlu0 %2518  ;;  %v2951_v43 = vpack.c.bf16 %v9424_v9, %v9414_v33  ;;  %v2799_v3 = vsel %vm2351_vm5, %v9226_v50, 0.0  ;;  %v2811_v50 = vsel %vm2351_vm5, %v9305_v14, 0.0 }
 0x648   :  { %v2599_v25 = vsub.f32 %v9143_v49, %v2519_v21  ;;  %v2513_v20 = vpop.xlane.xlu1 %2512  ;;  %6251 = vmatprep.mubr.msk.bf16.mxu0 %vm2351_vm5, %v2950_v22  ;;  %2764 = vadd.xlane.f32.xlu1 %v2763_v35  ;;  %6821 = vpow2.f32 %v2716_v8  ;;  %v2817_v21 = vsel %vm2351_vm5, %v9308_v5, 0.0  ;;  %v2823_v5 = vsel %vm2351_vm5, %v9325_v37, 0.0 }
 0x649   :  { %v2597_v31 = vsub.f32 %v9150_v7, %v2513_v20  ;;  %6252 = vmatmul.mubr.msk.bf16.gmra.mrb[76].mxu0 %vm2351_vm5, %v2951_v43  ;;  %6823 = vpow2.f32 %v2712_v54  ;;  %v2841_v20 = vsel %vm2351_vm5, %v9348_v62, 0.0  ;;  %v2847_v62 = vsel %vm2351_vm5, %v9373_v17, 0.0 }
 0x64a   :  { %v2718_v30 = vmul.f32 1.442695, %v2599_v25  ;;  %v9438_v45 = vpop.eup %6813  ;;  %v2829_v25 = vsel %vm2351_vm5, %v9328_v10, 0.0  ;;  %v2853_v10 = vsel %vm2351_vm5, %v9369_v52, 0.0  ;;  %v2760_v17 = vsel %vm2351_vm5, %v9184_v51, 0.0 }
 0x64b   :  { %v2714_v39 = vmul.f32 1.442695, %v2597_v31  ;;  %v9440_v49 = vpop.eup %6815  ;;  %v2835_v31 = vsel %vm2351_vm5, %v9351_v32, 0.0  ;;  %v2748_v32 = vsel %vm2351_vm5, %v9158_v27, 0.0  ;;  %v2877_v27 = vsel %vm2351_vm5, %v9424_v9, 0.0 }
 0x64c   :  { %6825 = vpow2.f32 %v2718_v30  ;;  %2788 = vadd.xlane.f32.xlu1 %v2787_v12  ;;  %v11958_v30 = vld [vmem:[#allocation135_spill] sm:$0xff]  ;;  %v2865_v12 = vsel %vm2351_vm5, %v9401_v19, 0.0  ;;  %v2790_v19 = vsel %vm2351_vm5, %v9223_v59, 0.0  ;;  %v2784_v51 = vsel %vm2351_vm5, %v9234_v42, 0.0 }
 0x64d   :  { %6827 = vpow2.f32 %v2714_v39  ;;  %v2736_v14 = vsel %vm2351_vm5, %v11958_v30, 0.0  ;;  %v11959_v39 = vld [vmem:[#allocation133_spill] sm:$0xff]  ;;  %v2793_v42 = vsel %vm2351_vm5, %v9228_v61, 0.0 }
 0x64e   :  { %v6818_v56 = vpop.eup %6817  ;;  %v2742_v37 = vsel %vm2351_vm5, %v11959_v39, 0.0 }
 0x64f   :  { %v9442_v53 = vpop.eup %6819  ;;  %v2953_v7 = vpack.c.bf16 %v6818_v56, %v9438_v45  ;;  %v2889_v9 = vsel %vm2351_vm5, %v6818_v56, 0.0 }
 0x650   :  { %3589 = vrot.lane.b32.xlu0 %v11957_v18, %s7049_s28  ;;  %2806 = vadd.xlane.f32.xlu1 %v2805_v38  ;;  %v2952_v28 = vpack.c.bf16 %v9442_v53, %v9440_v49  ;;  %v2859_v38 = vsel %vm2351_vm5, %v9398_v24, 0.0  ;;  %v2871_v18 = vsel %vm2351_vm5, %v9421_v55, 0.0 }
 0x652   :  { %6263 = vmatprep.mubr.msk.bf16.mxu1 %vm2351_vm5, %v2952_v28  ;;  %v9455_v8 = vpop.eup %6821 }
 0x653   :  { %6264 = vmatmul.mubr.msk.bf16.vlgmr.msra.gmra.mrb[48].mxu1 %vm2351_vm5, %v2953_v7  ;;  %v9457_v22 = vpop.eup %6823  ;;  %v11960_v7 = vld [vmem:[#allocation136_spill] sm:$0xff] }
 0x654   :  { %2800 = vadd.xlane.f32.xlu1 %v2799_v3  ;;  %v2754_v52 = vsel %vm2351_vm5, %v11960_v7, 0.0 }
 0x656   :  { %v9459_v2 = vpop.eup %6825 }
 0x657   :  { %v9461_v54 = vpop.eup %6827  ;;  %v2955_v35 = vpack.c.bf16 %v9459_v2, %v9455_v8  ;;  %v2901_v61 = vsel %vm2351_vm5, %v9459_v2, 0.0 }
 0x658   :  { %2818 = vadd.xlane.f32.xlu1 %v2817_v21  ;;  %v2954_v43 = vpack.c.bf16 %v9461_v54, %v9457_v22 }
 0x65a   :  { %6267 = vmatprep.mubr.msk.bf16.mxu1 %vm2351_vm5, %v2954_v43 }
 0x65b   :  { %6268 = vmatmul.mubr.msk.bf16.gmra.mrb[52].mxu1 %vm2351_vm5, %v2955_v35 }
 0x65c   :  { %2812 = vadd.xlane.f32.xlu1 %v2811_v50 }
 0x660   :  { %2830 = vadd.xlane.f32.xlu1 %v2829_v25 }
 0x664   :  { %2824 = vadd.xlane.f32.xlu1 %v2823_v5 }
 0x668   :  { %2842 = vadd.xlane.f32.xlu1 %v2841_v20 }
 0x66c   :  { %2836 = vadd.xlane.f32.xlu1 %v2835_v31  ;;  %v2883_v31 = vsel %vm2351_vm5, %v9442_v53, 0.0  ;;  %v2796_v53 = vsel %vm2351_vm5, %v9219_v29, 0.0 }
 0x66f   :  { %2737 = vadd.xlane.f32.xlu0 %v2736_v14  ;;  %v2802_v14 = vsel %vm2351_vm5, %v9245_v26, 0.0  ;;  %v2895_v26 = vsel %vm2351_vm5, %v9461_v54, 0.0 }
 0x670   :  { %2854 = vadd.xlane.f32.xlu1 %v2853_v10 }
 0x673   :  { %2743 = vadd.xlane.f32.xlu0 %v2742_v37 }
 0x674   :  { %2848 = vadd.xlane.f32.xlu1 %v2847_v62 }
 0x677   :  { %2749 = vadd.xlane.f32.xlu0 %v2748_v32 }
 0x678   :  { %2866 = vadd.xlane.f32.xlu1 %v2865_v12 }
 0x67b   :  { %2755 = vadd.xlane.f32.xlu0 %v2754_v52  ;;  %v2814_v52 = vsel %vm2351_vm5, %v9300_v13, 0.0  ;;  %v2826_v13 = vsel %vm2351_vm5, %v9319_v6, 0.0  ;;  %v2838_v6 = vsel %vm2351_vm5, %v9342_v4, 0.0  ;;  %v2844_v4 = vsel %vm2351_vm5, %v9365_v36, 0.0 }
 0x67c   :  { %2860 = vadd.xlane.f32.xlu1 %v2859_v38  ;;  %v2874_v36 = vsel %vm2351_vm5, %v9414_v33, 0.0 }
 0x67f   :  { %2761 = vadd.xlane.f32.xlu0 %v2760_v17 }
 0x680   :  { %2878 = vadd.xlane.f32.xlu1 %v2877_v27 }
 0x683   :  { %2791 = vadd.xlane.f32.xlu0 %v2790_v19  ;;  %v2808_v19 = vsel %vm2351_vm5, %v9302_v23, 0.0 }
 0x684   :  { %v2528_v28 = vpop.xlane.xlu1 %2527  ;;  %2872 = vadd.xlane.f32.xlu1 %v2871_v18 }
 0x685   :  { %v2602_v24 = vsub.f32 %v9258_v46, %v2528_v28 }
 0x686   :  { %v2531_v3 = vpop.xlane.xlu0 %2530 }
 0x687   :  { %v2724_v21 = vmul.f32 1.442695, %v2602_v24  ;;  %v2603_v35 = vsub.f32 %v9264_v44, %v2531_v3  ;;  %2785 = vadd.xlane.f32.xlu0 %v2784_v51  ;;  %v2769_v3 = vsel %vm2351_vm5, %v9178_v57, 0.0  ;;  %v2832_v57 = vsel %vm2351_vm5, %v9345_v47, 0.0 }
 0x688   :  { %v2522_v43 = vpop.xlane.xlu1 %2521  ;;  %v9510_v59 = vpop.f32.mrb[48].mxu0  ;;  %2890 = vadd.xlane.f32.xlu1 %v2889_v9  ;;  %v2862_v47 = vsel %vm2351_vm5, %v9389_v34, 0.0 }
 0x689   :  { %11961 = vst [vmem:[#allocation117_spill] sm:$0xff] %v9510_v59  ;;  %v2726_v50 = vmul.f32 1.442695, %v2603_v35  ;;  %v2600_v55 = vsub.f32 %v9260_v41, %v2522_v43  ;;  %v9513_v25 = vpop.f32.mrb[49].mxu0  ;;  %6829 = vpow2.f32 %v2724_v21  ;;  %v2820_v35 = vsel %vm2351_vm5, %v9322_v16, 0.0 }
 0x68a   :  { %11962 = vst [vmem:[#allocation118_spill] sm:$0xff] %v9513_v25  ;;  %v9515_v46 = vpop.f32.mrb[50].mxu0  ;;  %v2525_v5 = vpop.xlane.xlu0 %2524  ;;  %v2850_v16 = vsel %vm2351_vm5, %v9361_v15, 0.0  ;;  %v2856_v15 = vsel %vm2351_vm5, %v9394_v63, 0.0 }
 0x68b   :  { %11963 = vst [vmem:[#allocation120_spill] sm:$0xff] %v9515_v46  ;;  %6831 = vpow2.f32 %v2726_v50  ;;  %v2720_v44 = vmul.f32 1.442695, %v2600_v55  ;;  %v2601_v56 = vsub.f32 %v9266_v58, %v2525_v5  ;;  %v9520_v20 = vpop.f32.mrb[51].mxu0  ;;  %2794 = vadd.xlane.f32.xlu0 %v2793_v42 }
 0x68c   :  { %11964 = vst [vmem:[#allocation116_spill] sm:$0xff] %v9520_v20  ;;  %v9524_v41 = vpop.xlane.xlu1 %2539  ;;  %2884 = vadd.xlane.f32.xlu1 %v2883_v31 }
 0x68d   :  { %v2722_v30 = vmul.f32 1.442695, %v2601_v56  ;;  %6833 = vpow2.f32 %v2720_v44 }
 0x68e   :  { %v3586_v39 = vpop.permute.xlu0 %3585 }
 0x68f   :  { %6835 = vpow2.f32 %v2722_v30  ;;  %2803 = vadd.xlane.f32.xlu0 %v2802_v14  ;;  %v2606_v30 = vsub.f32 %v9274_v40, %v9524_v41  ;;  %v2886_v41 = vsel %vm2351_vm5, %v9438_v45, 0.0  ;;  %v2898_v45 = vsel %vm2351_vm5, %v9455_v8, 0.0 }
 0x690   :  { %v9530_v58 = vpop.xlane.xlu1 %2533  ;;  %2902 = vadd.xlane.f32.xlu1 %v2901_v61 }
 0x691   :  { %v2732_v63 = vmul.f32 1.442695, %v2606_v30 }
 0x692   :  { %v9532_v10 = vpop.f32.mrb[52].mxu0  ;;  %v3588_v27 = vpop.permute.xlu0 %3587 }
 0x693   :  { %11965 = vst [vmem:[#allocation122_spill] sm:$0xff] %v9532_v10  ;;  %v9536_v37 = vpop.f32.mrb[53].mxu0  ;;  %2797 = vadd.xlane.f32.xlu0 %v2796_v53  ;;  %v9540_v62 = vpop.eup %6829  ;;  %v2868_v53 = vsel %vm2351_vm5, %v9418_v48, 0.0  ;;  %6837 = vpow2.f32 %v2732_v63 }
 0x694   :  { %11966 = vst [vmem:[#allocation124_spill] sm:$0xff] %v9536_v37  ;;  %v3584_v32 = vpop.permute.xlu1 %3583  ;;  %v9542_v12 = vpop.f32.mrb[54].mxu0  ;;  %2896 = vadd.xlane.f32.xlu1 %v2895_v26 }
 0x695   :  { %11967 = vst [vmem:[#allocation128_spill] sm:$0xff] %v9542_v12  ;;  %v9544_v2 = vpop.eup %6831  ;;  %v9546_v7 = vpop.f32.mrb[55].mxu0  ;;  %6271 = vmatprep.subr.bf16.mxu0 %v3584_v32 }
 0x696   :  { %11968 = vst [vmem:[#allocation125_spill] sm:$0xff] %v9546_v7  ;;  %v2957_v29 = vpack.c.bf16 %v9544_v2, %v9540_v62  ;;  %6272 = vmatpush3.bf16.msra.mxu0 %v3584_v32  ;;  %v2913_v54 = vsel %vm2351_vm5, %v9544_v2, 0.0  ;;  %v2910_v2 = vsel %vm2351_vm5, %v9540_v62, 0.0 }
 0x697   :  { %2815 = vadd.xlane.f32.xlu0 %v2814_v52  ;;  %6273 = vmatprep.subr.bf16.mxu0 %v3586_v39  ;;  %v9554_v38 = vpop.eup %6833 }
 0x698   :  { %2914 = vadd.xlane.f32.xlu1 %v2913_v54 }
 0x699   :  { %v6836_v17 = vpop.eup %6835 }
 0x69a   :  { %6274 = vmatpush3.bf16.msra.mxu0 %v3586_v39  ;;  %v2956_v18 = vpack.c.bf16 %v6836_v17, %v9554_v38  ;;  %v2907_v28 = vsel %vm2351_vm5, %v6836_v17, 0.0  ;;  %v2604_v39 = vsub.f32 %v9276_v60, %v9530_v58  ;;  %v2880_v58 = vsel %vm2351_vm5, %v9440_v49, 0.0 }
 0x69b   :  { %2809 = vadd.xlane.f32.xlu0 %v2808_v19  ;;  %6275 = vmatprep.subr.bf16.mxu0 %v3588_v27 }
 0x69c   :  { %6279 = vmatprep.mubr.msk.bf16.mxu0 %vm2351_vm5, %v2956_v18  ;;  %2908 = vadd.xlane.f32.xlu1 %v2907_v28  ;;  %v2728_v52 = vmul.f32 1.442695, %v2604_v39  ;;  %v2892_v18 = vsel %vm2351_vm5, %v9457_v22, 0.0  ;;  %v2904_v22 = vsel %vm2351_vm5, %v9554_v38, 0.0  ;;  %v11978_v38 = vld [vmem:[#allocation137_spill] sm:$0xff]  ;;  %v11979_v39 = vld [vmem:[#allocation140_spill] sm:$0xff] }
 0x69d   :  { %v2766_v63 = vsel %vm2351_vm5, %v11978_v38, 0.0 }
 0x69e   :  { %6276 = vmatpush3.bf16.msra.mxu0 %v3588_v27  ;;  %v9563_v24 = vpop.f32.mrb[56].mxu0 }
 0x69f   :  { %2827 = vadd.xlane.f32.xlu0 %v2826_v13  ;;  %v9567_v23 = vpop.f32.mrb[57].mxu0 }
 0x6a0   :  { %11969 = vst [vmem:[#allocation126_spill] sm:$0xff] %v9567_v23  ;;  %2770 = vadd.xlane.f32.xlu1 %v2769_v3  ;;  %v9569_v51 = vpop.f32.mrb[58].mxu0 }
 0x6a1   :  { %v9571_v21 = vpop.f32.mrb[59].mxu0 }
 0x6a2   :  { %11970 = vst [vmem:[#allocation123_spill] sm:$0xff] %v9571_v21 }
 0x6a3   :  { %2821 = vadd.xlane.f32.xlu0 %v2820_v35 }
 0x6a7   :  { %2839 = vadd.xlane.f32.xlu0 %v2838_v6 }
 0x6aa   :  { %v9577_v9 = vpop.f32.mrb[60].mxu0 }
 0x6ab   :  { %11971 = vst [vmem:[#allocation129_spill] sm:$0xff] %v9577_v9  ;;  %v9581_v43 = vpop.f32.mrb[61].mxu0  ;;  %2833 = vadd.xlane.f32.xlu0 %v2832_v57 }
 0x6ac   :  { %v9583_v50 = vpop.f32.mrb[62].mxu0 }
 0x6ad   :  { %v9585_v55 = vpop.f32.mrb[63].mxu0 }
 0x6af   :  { %2851 = vadd.xlane.f32.xlu0 %v2850_v16  ;;  %v2775_v16 = vsel %vm2351_vm5, %v9210_v1, 0.0 }
 0x6b3   :  { %2845 = vadd.xlane.f32.xlu0 %v2844_v4 }
 0x6b6   :  { %v9591_v5 = vpop.f32.mrb[32].mxu1 }
 0x6b7   :  { %v9595_v42 = vpop.f32.mrb[33].mxu1  ;;  %2863 = vadd.xlane.f32.xlu0 %v2862_v47  ;;  %v11977_v47 = vld [vmem:[#allocation139_spill] sm:$0xff] }
 0x6b8   :  { %v9597_v44 = vpop.f32.mrb[34].mxu1 }
 0x6b9   :  { %v9599_v56 = vpop.f32.mrb[35].mxu1 }
 0x6bb   :  { %2857 = vadd.xlane.f32.xlu0 %v2856_v15  ;;  %v2781_v15 = vsel %vm2351_vm5, %v11977_v47, 0.0 }
 0x6be   :  { %v9603_v31 = vpop.f32.mrb[36].mxu1 }
 0x6bf   :  { %v9609_v34 = vpop.f32.mrb[37].mxu1  ;;  %2875 = vadd.xlane.f32.xlu0 %v2874_v36 }
 0x6c0   :  { %v9611_v14 = vpop.f32.mrb[38].mxu1 }
 0x6c1   :  { %v9613_v61 = vpop.f32.mrb[39].mxu1 }
 0x6c3   :  { %2869 = vadd.xlane.f32.xlu0 %v2868_v53  ;;  %v2543_v26 = vpop.xlane.xlu0 %2542 }
 0x6c4   :  { %v2607_v33 = vsub.f32 %v9280_v0, %v2543_v26  ;;  %v2772_v26 = vsel %vm2351_vm5, %v11979_v39, 0.0 }
 0x6c5   :  { %v9620_v32 = vpop.xlane.xlu1 %2740 }
 0x6c6   :  { %11972 = vst [vmem:[#allocation130_spill] sm:$0xff] %v9620_v32  ;;  %v2734_v40 = vmul.f32 1.442695, %v2607_v33 }
 0x6c7   :  { %2887 = vadd.xlane.f32.xlu0 %v2886_v41  ;;  %v2537_v54 = vpop.xlane.xlu0 %2536 }
 0x6c8   :  { %6839 = vpow2.f32 %v2734_v40  ;;  %v2605_v48 = vsub.f32 %v9282_v11, %v2537_v54  ;;  %v6838_v11 = vpop.eup %6837  ;;  %v11980_v40 = vld [vmem:[#allocation138_spill] sm:$0xff] }
 0x6c9   :  { %v9625_v17 = vpop.xlane.xlu1 %2746  ;;  %6841 = vpow2.f32 %v2728_v52  ;;  %v2922_v62 = vsel %vm2351_vm5, %v6838_v11, 0.0  ;;  %v2778_v41 = vsel %vm2351_vm5, %v11980_v40, 0.0 }
 0x6ca   :  { %11973 = vst [vmem:[#allocation119_spill] sm:$0xff] %v9625_v17  ;;  %v2730_v60 = vmul.f32 1.442695, %v2605_v48 }
 0x6cb   :  { %2881 = vadd.xlane.f32.xlu0 %v2880_v58  ;;  %v3590_v0 = vpop.permute.xlu0 %3589 }
 0x6cc   :  { %6843 = vpow2.f32 %v2730_v60  ;;  %6277 = vmatprep.subr.bf16.mxu0 %v3590_v0 }
 0x6cd   :  { %v9629_v27 = vpop.xlane.xlu1 %2752  ;;  %6278 = vmatpush3.bf16.msra.mxu0 %v3590_v0 }
 0x6ce   :  { %11974 = vst [vmem:[#allocation121_spill] sm:$0xff] %v9629_v27 }
 0x6cf   :  { %2899 = vadd.xlane.f32.xlu0 %v2898_v45 }
 0x6d0   :  { %6280 = vmatmul.mubr.msk.bf16.vlgmr.msra.gmra.mrb[80].mxu0 %vm2351_vm5, %v2957_v29 }
 0x6d1   :  { %v9637_v19 = vpop.xlane.xlu1 %2758 }
 0x6d2   :  { %11975 = vst [vmem:[#allocation127_spill] sm:$0xff] %v9637_v19  ;;  %v6840_v49 = vpop.eup %6839 }
 0x6d3   :  { %2893 = vadd.xlane.f32.xlu0 %v2892_v18  ;;  %v2925_v28 = vsel %vm2351_vm5, %v6840_v49, 0.0  ;;  %v2959_v13 = vpack.c.bf16 %v6840_v49, %v6838_v11  ;;  %v6842_v3 = vpop.eup %6841 }
 0x6d4   :  { %2926 = vadd.xlane.f32.xlu1 %v2925_v28  ;;  %v2916_v30 = vsel %vm2351_vm5, %v6842_v3, 0.0 }
 0x6d5   :  { %v9642_v8 = vpop.xlane.xlu1 %2764 }
 0x6d6   :  { %11976 = vst [vmem:[#allocation131_spill] sm:$0xff] %v9642_v8  ;;  %v6844_v35 = vpop.eup %6843 }
 0x6d7   :  { %2911 = vadd.xlane.f32.xlu0 %v2910_v2  ;;  %v2919_v29 = vsel %vm2351_vm5, %v6844_v35, 0.0  ;;  %v2958_v6 = vpack.c.bf16 %v6844_v35, %v6842_v3 }
 0x6d8   :  { %2920 = vadd.xlane.f32.xlu1 %v2919_v29 }
 0x6d9   :  { %v2789_v57 = vpop.xlane.xlu1 %2788  ;;  %6283 = vmatprep.mubr.msk.bf16.mxu0 %vm2351_vm5, %v2958_v6 }
 0x6da   :  { %6284 = vmatmul.mubr.msk.bf16.gmra.mrb[84].mxu0 %vm2351_vm5, %v2959_v13  ;;  %6845 = vrcp.f32 %v2789_v57 }
 0x6db   :  { %2905 = vadd.xlane.f32.xlu0 %v2904_v22 }
 0x6dc   :  { %2776 = vadd.xlane.f32.xlu1 %v2775_v16 }
 0x6dd   :  { %v2807_v4 = vpop.xlane.xlu1 %2806 }
 0x6df   :  { %2923 = vadd.xlane.f32.xlu0 %v2922_v62 }
 0x6e0   :  { %2782 = vadd.xlane.f32.xlu1 %v2781_v15 }
 0x6e1   :  { %v9656_v36 = vpop.xlane.xlu1 %2800 }
 0x6e3   :  { %2917 = vadd.xlane.f32.xlu0 %v2916_v30 }
 0x6e4   :  { %v6846_v57 = vpop.eup %6845 }
 0x6e5   :  { %v9659_v53 = vpop.xlane.xlu1 %2818  ;;  %v3753_v23 = vmul.f32 %v6846_v57, %v9599_v56 }
 0x6e7   :  { %2767 = vadd.xlane.f32.xlu0 %v2766_v63 }
 0x6e9   :  { %v9663_v1 = vpop.xlane.xlu1 %2812 }
 0x6eb   :  { %2773 = vadd.xlane.f32.xlu0 %v2772_v26 }
 0x6ed   :  { %v9667_v33 = vpop.xlane.xlu1 %2830 }
 0x6ef   :  { %2779 = vadd.xlane.f32.xlu0 %v2778_v41 }
 0x6f1   :  { %v9671_v52 = vpop.xlane.xlu1 %2824 }
 0x6f3   :  { %v9673_v54 = vpop.f32.mrb[64].mxu0 }
 0x6f4   :  { %v9675_v48 = vpop.f32.mrb[65].mxu0 }
 0x6f5   :  { %v9677_v60 = vpop.f32.mrb[66].mxu0  ;;  %v9679_v58 = vpop.xlane.xlu1 %2842 }
 0x6f6   :  { %v9681_v0 = vpop.f32.mrb[67].mxu0 }
 0x6f9   :  { %v9683_v45 = vpop.xlane.xlu1 %2836 }
 0x6fb   :  { %v9685_v11 = vpop.f32.mrb[68].mxu0 }
 0x6fc   :  { %v9687_v49 = vpop.f32.mrb[69].mxu0  ;;  %v9689_v18 = vpop.xlane.xlu0 %2737 }
 0x6fd   :  { %11981 = vst [vmem:[#allocation132_spill] sm:$0xff] %v9689_v18  ;;  %v9691_v28 = vpop.f32.mrb[70].mxu0  ;;  %v9693_v13 = vpop.xlane.xlu1 %2854 }
 0x6fe   :  { %v9695_v3 = vpop.f32.mrb[71].mxu0 }
 0x700   :  { %v9697_v35 = vpop.xlane.xlu0 %2743 }
 0x701   :  { %11982 = vst [vmem:[#allocation134_spill] sm:$0xff] %v9697_v35  ;;  %v9699_v2 = vpop.xlane.xlu1 %2848 }
 0x704   :  { %v9701_v29 = vpop.xlane.xlu0 %2749 }
 0x705   :  { %11983 = vst [vmem:[#allocation115_spill] sm:$0xff] %v9701_v29  ;;  %v9703_v6 = vpop.f32.mrb[40].mxu1  ;;  %v9705_v22 = vpop.xlane.xlu1 %2866 }
 0x706   :  { %v9707_v16 = vpop.f32.mrb[41].mxu1 }
 0x707   :  { %v9709_v62 = vpop.f32.mrb[42].mxu1 }
 0x708   :  { %v9711_v47 = vpop.f32.mrb[43].mxu1  ;;  %v9713_v15 = vpop.xlane.xlu0 %2755 }
 0x709   :  { %11984 = vst [vmem:[#allocation135_spill] sm:$0xff] %v9713_v15  ;;  %v9715_v30 = vpop.xlane.xlu1 %2860 }
 0x70c   :  { %v9717_v38 = vpop.xlane.xlu0 %2761 }
 0x70d   :  { %11985 = vst [vmem:[#allocation133_spill] sm:$0xff] %v9717_v38  ;;  %v9719_v63 = vpop.f32.mrb[44].mxu1  ;;  %v2879_v39 = vpop.xlane.xlu1 %2878 }
 0x70e   :  { %v9721_v26 = vpop.f32.mrb[45].mxu1  ;;  %6847 = vrcp.f32 %v2879_v39 }
 0x70f   :  { %v9723_v40 = vpop.f32.mrb[46].mxu1 }
 0x710   :  { %v9725_v41 = vpop.f32.mrb[47].mxu1  ;;  %v2792_v7 = vpop.xlane.xlu0 %2791 }
 0x711   :  { %v2873_v37 = vpop.xlane.xlu1 %2872 }
 0x712   :  { %6849 = vrcp.f32 %v2873_v37 }
 0x714   :  { %v9727_v10 = vpop.f32.mrb[72].mxu0  ;;  %v2786_v12 = vpop.xlane.xlu0 %2785 }
 0x715   :  { %v9729_v25 = vpop.f32.mrb[73].mxu0  ;;  %6851 = vrcp.f32 %v2786_v12  ;;  %v9731_v20 = vpop.xlane.xlu1 %2890 }
 0x716   :  { %v9733_v46 = vpop.f32.mrb[74].mxu0  ;;  %6853 = vrcp.f32 %v2792_v7 }
 0x717   :  { %v9735_v59 = vpop.f32.mrb[75].mxu0 }
 0x718   :  { %v2795_v29 = vpop.xlane.xlu0 %2794  ;;  %v6848_v15 = vpop.eup %6847 }
 0x719   :  { %6855 = vrcp.f32 %v2795_v29  ;;  %v9737_v27 = vpop.xlane.xlu1 %2884 }
 0x71a   :  { %6857 = vrcp.f32 %v2807_v4 }
 0x71c   :  { %v9739_v37 = vpop.f32.mrb[76].mxu0  ;;  %v2804_v39 = vpop.xlane.xlu0 %2803 }
 0x71d   :  { %v9741_v18 = vpop.f32.mrb[77].mxu0  ;;  %6859 = vrcp.f32 %v2804_v39  ;;  %v9743_v12 = vpop.xlane.xlu1 %2902 }
 0x71e   :  { %v6850_v19 = vpop.eup %6849  ;;  %v6254_v32 = vpop.f32.mrb[78].mxu0  ;;  %6861 = vrcp.f32 %v9656_v36 }
 0x71f   :  { %v6852_v7 = vpop.eup %6851  ;;  %v9746_v35 = vmul.f32 %v6848_v15, %v6254_v32  ;;  %v3482_v29 = vpop.f32.mrb[79].mxu0 }
 0x720   :  { %v9748_v17 = vmul.f32 %v6850_v19, %v3482_v29  ;;  %v2798_v4 = vpop.xlane.xlu0 %2797  ;;  %v3752_v21 = vmul.f32 %v6852_v7, %v9595_v42  ;;  %v6854_v38 = vpop.eup %6853 }
 0x721   :  { %6863 = vrcp.f32 %v2798_v4  ;;  %v9752_v39 = vpop.xlane.xlu1 %2896  ;;  %v3754_v19 = vmul.f32 %v6854_v38, %v9591_v5 }
 0x722   :  { %v6570_v8 = vpack.i.bf16 %v3753_v23, %v3752_v21  ;;  %6865 = vrcp.f32 %v9659_v53 }
 0x723   :  { %v6856_v9 = vpop.eup %6855 }
 0x724   :  { %6571 = vrot.lane.b32.xlu0 %v6570_v8, %s7050_s29  ;;  %v2816_v32 = vpop.xlane.xlu0 %2815  ;;  %v3755_v36 = vmul.f32 %v6856_v9, %v9597_v44  ;;  %v6858_v15 = vpop.eup %6857 }
 0x725   :  { %6867 = vrcp.f32 %v2816_v32  ;;  %v9758_v42 = vpop.xlane.xlu1 %2914  ;;  %v3759_v9 = vmul.f32 %v6858_v15, %v9611_v14 }
 0x726   :  { %v9760_v56 = vpop.f32.mrb[48].mxu1  ;;  %v6565_v57 = vpack.i.bf16 %v3755_v36, %v3754_v19  ;;  %6869 = vrcp.f32 %v9663_v1 }
 0x727   :  { %v6860_v7 = vpop.eup %6859  ;;  %v9762_v23 = vpop.f32.mrb[49].mxu1 }
 0x728   :  { %v9765_v21 = vpop.f32.mrb[50].mxu1  ;;  %6566 = vrot.lane.b32.xlu1 %v6565_v57, %s7050_s29  ;;  %v2810_v8 = vpop.xlane.xlu0 %2809  ;;  %v3758_v5 = vmul.f32 %v6860_v7, %v9603_v31 }
 0x729   :  { %v6862_v44 = vpop.eup %6861  ;;  %v9770_v53 = vpop.f32.mrb[51].mxu1  ;;  %6871 = vrcp.f32 %v2810_v8 }
 0x72a   :  { %v9772_v38 = vpop.xlane.xlu1 %2908  ;;  %v6575_v29 = vpack.i.bf16 %v3759_v9, %v3758_v5  ;;  %6873 = vrcp.f32 %v9667_v33  ;;  %v3757_v19 = vmul.f32 %v6862_v44, %v9613_v61 }
 0x72b   :  { %v6864_v4 = vpop.eup %6863 }
 0x72c   :  { %6576 = vrot.lane.b32.xlu0 %v6575_v29, %s7050_s29  ;;  %v2828_v1 = vpop.xlane.xlu0 %2827  ;;  %v3756_v32 = vmul.f32 %v6864_v4, %v9609_v34  ;;  %v6866_v14 = vpop.eup %6865 }
 0x72d   :  { %6875 = vrcp.f32 %v2828_v1  ;;  %v3763_v33 = vmul.f32 %v6866_v14, %v9677_v60 }
 0x72e   :  { %v2771_v31 = vpop.xlane.xlu1 %2770  ;;  %v9778_v36 = vpop.f32.mrb[52].mxu1  ;;  %v6580_v15 = vpack.i.bf16 %v3757_v19, %v3756_v32 }
 0x72f   :  { %6877 = vrcp.f32 %v2771_v31  ;;  %v6868_v57 = vpop.eup %6867  ;;  %v9780_v7 = vpop.f32.mrb[53].mxu1 }
 0x730   :  { %6879 = vrcp.f32 %v9671_v52  ;;  %v9784_v8 = vpop.f32.mrb[54].mxu1  ;;  %6581 = vrot.lane.b32.xlu1 %v6580_v15, %s7050_s29  ;;  %v2822_v34 = vpop.xlane.xlu0 %2821  ;;  %v3762_v61 = vmul.f32 %v6868_v57, %v9673_v54 }
 0x731   :  { %v9788_v5 = vpop.f32.mrb[55].mxu1  ;;  %6881 = vrcp.f32 %v2822_v34  ;;  %v6870_v9 = vpop.eup %6869 }
 0x732   :  { %v6585_v44 = vpack.i.bf16 %v3763_v33, %v3762_v61  ;;  %6883 = vrcp.f32 %v9679_v58  ;;  %v3761_v4 = vmul.f32 %v6870_v9, %v9681_v0 }
 0x733   :  { %v6872_v29 = vpop.eup %6871 }
 0x734   :  { %6586 = vrot.lane.b32.xlu0 %v6585_v44, %s7050_s29  ;;  %v2840_v52 = vpop.xlane.xlu0 %2839  ;;  %v3760_v60 = vmul.f32 %v6872_v29, %v9675_v48  ;;  %v6874_v1 = vpop.eup %6873 }
 0x735   :  { %6885 = vrcp.f32 %v2840_v52  ;;  %v9796_v31 = vmul.f32 %v6874_v1, %v9691_v28 }
 0x736   :  { %v6590_v32 = vpack.i.bf16 %v3761_v4, %v3760_v60  ;;  %6887 = vrcp.f32 %v9683_v45 }
 0x737   :  { %v6876_v19 = vpop.eup %6875 }
 0x738   :  { %6591 = vrot.lane.b32.xlu1 %v6590_v32, %s7050_s29  ;;  %v2834_v58 = vpop.xlane.xlu0 %2833  ;;  %v9800_v0 = vmul.f32 %v6876_v19, %v9685_v11 }
 0x739   :  { %v6878_v54 = vpop.eup %6877  ;;  %6889 = vrcp.f32 %v2834_v58 }
 0x73a   :  { %v9803_v14 = vmul.f32 %v6878_v54, %v9569_v51  ;;  %v6880_v48 = vpop.eup %6879  ;;  %v6650_v15 = vpack.i.bf16 %v9796_v31, %v9800_v0  ;;  %6891 = vrcp.f32 %v9693_v13 }
 0x73b   :  { %v6882_v57 = vpop.eup %6881  ;;  %v9809_v45 = vmul.f32 %v6880_v48, %v9695_v3 }
 0x73c   :  { %v2852_v28 = vpop.xlane.xlu0 %2851  ;;  %v9812_v33 = vmul.f32 %v6882_v57, %v9687_v49  ;;  %v6884_v11 = vpop.eup %6883 }
 0x73d   :  { %6893 = vrcp.f32 %v2852_v28  ;;  %v3771_v61 = vmul.f32 %v6884_v11, %v9709_v62 }
 0x73e   :  { %v6645_v51 = vpack.i.bf16 %v9809_v45, %v9812_v33  ;;  %6895 = vrcp.f32 %v9699_v2 }
 0x73f   :  { %v6886_v34 = vpop.eup %6885 }
 0x740   :  { %v2846_v9 = vpop.xlane.xlu0 %2845  ;;  %v3770_v13 = vmul.f32 %v6886_v34, %v9703_v6  ;;  %v6888_v3 = vpop.eup %6887 }
 0x741   :  { %6897 = vrcp.f32 %v2846_v9  ;;  %v3769_v49 = vmul.f32 %v6888_v3, %v9711_v47 }
 0x742   :  { %v6595_v44 = vpack.i.bf16 %v3771_v61, %v3770_v13  ;;  %6899 = vrcp.f32 %v9705_v22 }
 0x743   :  { %v6890_v29 = vpop.eup %6889 }
 0x744   :  { %6596 = vrot.lane.b32.xlu0 %v6595_v44, %s7051_s3  ;;  %v2864_v4 = vpop.xlane.xlu0 %2863  ;;  %v3768_v52 = vmul.f32 %v6890_v29, %v9707_v16  ;;  %v6892_v2 = vpop.eup %6891 }
 0x745   :  { %6901 = vrcp.f32 %v2864_v4  ;;  %v3775_v6 = vmul.f32 %v6892_v2, %v9723_v40  ;;  %v4045_v4 = vld [vmem:[%s11525_s7 + $0x18] sm:$0xff] }
 0x746   :  { %v6600_v62 = vpack.i.bf16 %v3769_v49, %v3768_v52  ;;  %6903 = vrcp.f32 %v9715_v30  ;;  %v4044_v49 = vld [vmem:[%s11525_s7 + $0x10] sm:$0xff] }
 0x747   :  { %v6894_v60 = vpop.eup %6893  ;;  %v4055_v52 = vpack.c.bf16 %v4045_v4, %v4044_v49 }
 0x748   :  { %6601 = vrot.lane.b32.xlu1 %v6600_v62, %s7051_s3  ;;  %v2858_v1 = vpop.xlane.xlu0 %2857  ;;  %v3774_v22 = vmul.f32 %v6894_v60, %v9719_v63  ;;  %v6896_v47 = vpop.eup %6895 }
 0x749   :  { %6905 = vrcp.f32 %v2858_v1  ;;  %v3773_v54 = vmul.f32 %v6896_v47, %v9725_v41 }
 0x74a   :  { %v6605_v32 = vpack.i.bf16 %v3775_v6, %v3774_v22 }
 0x74b   :  { %v6898_v19 = vpop.eup %6897 }
 0x74c   :  { %6606 = vrot.lane.b32.xlu0 %v6605_v32, %s7051_s3  ;;  %v2876_v16 = vpop.xlane.xlu0 %2875  ;;  %v3772_v58 = vmul.f32 %v6898_v19, %v9721_v26  ;;  %v6900_v30 = vpop.eup %6899 }
 0x74d   :  { %6907 = vrcp.f32 %v2876_v16  ;;  %v3779_v57 = vmul.f32 %v6900_v30, %v9733_v46 }
 0x74e   :  { %v6610_v48 = vpack.i.bf16 %v3773_v54, %v3772_v58 }
 0x74f   :  { %v6902_v40 = vpop.eup %6901 }
 0x750   :  { %6611 = vrot.lane.b32.xlu1 %v6610_v48, %s7051_s3  ;;  %v2870_v63 = vpop.xlane.xlu0 %2869  ;;  %v3778_v28 = vmul.f32 %v6902_v40, %v9727_v10  ;;  %v6904_v11 = vpop.eup %6903  ;;  %v4042_v10 = vld [vmem:[%s11525_s7] sm:$0xff] }
 0x751   :  { %6909 = vrcp.f32 %v2870_v63  ;;  %v3777_v61 = vmul.f32 %v6904_v11, %v9735_v59  ;;  %v4043_v59 = vld [vmem:[%s11525_s7 + $0x8] sm:$0xff]  ;;  %s7052_s7 = smov 24  }
 0x752   :  { %v6630_v34 = vpack.i.bf16 %v3779_v57, %v3778_v28  ;;  %6911 = vrcp.f32 %v9731_v20  ;;  %v4054_v20 = vpack.c.bf16 %v4043_v59, %v4042_v10 }
 0x753   :  { %v6906_v41 = vpop.eup %6905 }
 0x754   :  { %v2888_v26 = vpop.xlane.xlu0 %2887  ;;  %v3776_v9 = vmul.f32 %v6906_v41, %v9729_v25  ;;  %6287 = vmatprep.subr.bf16.mxu1 %v4054_v20 }
 0x755   :  { %6913 = vrcp.f32 %v2888_v26  ;;  %6288 = vmatpush3.bf16.msra.mxu1 %v4054_v20 }
 0x756   :  { %v6625_v13 = vpack.i.bf16 %v3777_v61, %v3776_v9  ;;  %6915 = vrcp.f32 %v9737_v27  ;;  %6289 = vmatprep.subr.bf16.mxu1 %v4055_v52 }
 0x757   :  { %v6908_v3 = vpop.eup %6907 }
 0x758   :  { %v2882_v46 = vpop.xlane.xlu0 %2881  ;;  %v9838_v44 = vmul.f32 %v6908_v3, %v9739_v37 }
 0x759   :  { %6917 = vrcp.f32 %v2882_v46  ;;  %6290 = vmatpush3.bf16.msra.mxu1 %v4055_v52 }
 0x75a   :  { %v6670_v25 = vpack.i.bf16 %v9746_v35, %v9838_v44  ;;  %6919 = vrcp.f32 %v9743_v12  ;;  %v11991_v35 = vld [vmem:[#allocation119_spill] sm:$0xff]  ;;  %v11992_v44 = vld [vmem:[#allocation134_spill] sm:$0xff] }
 0x75b   :  { %v6910_v29 = vpop.eup %6909 }
 0x75c   :  { %v2900_v27 = vpop.xlane.xlu0 %2899  ;;  %v9850_v37 = vmul.f32 %v6910_v29, %v9741_v18  ;;  %v6912_v2 = vpop.eup %6911 }
 0x75d   :  { %6921 = vrcp.f32 %v2900_v27  ;;  %v3787_v18 = vmul.f32 %v6912_v2, %v9765_v21 }
 0x75e   :  { %v6665_v62 = vpack.i.bf16 %v9748_v17, %v9850_v37  ;;  %6923 = vrcp.f32 %v9752_v39  ;;  %v11994_v17 = vld [vmem:[#allocation127_spill] sm:$0xff]  ;;  %v11995_v37 = vld [vmem:[#allocation132_spill] sm:$0xff] }
 0x75f   :  { %v6914_v12 = vpop.eup %6913 }
 0x760   :  { %v2894_v60 = vpop.xlane.xlu0 %2893  ;;  %v3786_v6 = vmul.f32 %v6914_v12, %v9760_v56  ;;  %v6916_v22 = vpop.eup %6915 }
 0x761   :  { %6925 = vrcp.f32 %v2894_v60  ;;  %v2927_v1 = vpop.xlane.xlu1 %2926  ;;  %v3785_v19 = vmul.f32 %v6916_v22, %v9770_v53 }
 0x762   :  { %v6615_v47 = vpack.i.bf16 %v3787_v18, %v3786_v6 }
 0x763   :  { %v6918_v32 = vpop.eup %6917 }
 0x764   :  { %6616 = vrot.lane.b32.xlu0 %v6615_v47, %s7052_s7  ;;  %v2912_v54 = vpop.xlane.xlu0 %2911  ;;  %v3784_v16 = vmul.f32 %v6918_v32, %v9762_v23  ;;  %v6920_v58 = vpop.eup %6919 }
 0x765   :  { %v2921_v39 = vpop.xlane.xlu1 %2920  ;;  %v3791_v56 = vmul.f32 %v6920_v58, %v9784_v8 }
 0x766   :  { %v6620_v21 = vpack.i.bf16 %v3785_v19, %v3784_v16 }
 0x767   :  { %v6922_v30 = vpop.eup %6921 }
 0x768   :  { %6631 = vrot.lane.b32.xlu0 %v6630_v34, %s7051_s3  ;;  %6621 = vrot.lane.b32.xlu1 %v6620_v21, %s7052_s7  ;;  %v2906_v48 = vpop.xlane.xlu0 %2905  ;;  %v3790_v40 = vmul.f32 %v6922_v30, %v9778_v36  ;;  %v6924_v57 = vpop.eup %6923  ;;  %v11989_v21 = vld [vmem:[#allocation126_spill] sm:$0xff] }
 0x769   :  { %v2777_v53 = vpop.xlane.xlu1 %2776  ;;  %v3789_v23 = vmul.f32 %v6924_v57, %v9788_v5 }
 0x76a   :  { %6927 = vrcp.f32 %v2777_v53  ;;  %v6635_v63 = vpack.i.bf16 %v3791_v56, %v3790_v40  ;;  %v11990_v56 = vld [vmem:[#allocation123_spill] sm:$0xff] }
 0x76b   :  { %v6926_v28 = vpop.eup %6925 }
 0x76c   :  { %6626 = vrot.lane.b32.xlu1 %v6625_v13, %s7051_s3  ;;  %6636 = vrot.lane.b32.xlu0 %v6635_v63, %s7052_s7  ;;  %v2924_v11 = vpop.xlane.xlu0 %2923  ;;  %v3788_v8 = vmul.f32 %v6926_v28, %v9780_v7 }
 0x76d   :  { %v2783_v34 = vpop.xlane.xlu1 %2782 }
 0x76e   :  { %6929 = vrcp.f32 %v2783_v34  ;;  %v6640_v41 = vpack.i.bf16 %v3789_v23, %v3788_v8 }
 0x770   :  { %6651 = vrot.lane.b32.xlu0 %v6650_v15, %s7050_s29  ;;  %6641 = vrot.lane.b32.xlu1 %v6640_v41, %s7052_s7  ;;  %v2918_v36 = vpop.xlane.xlu0 %2917 }
 0x774   :  { %v6928_v61 = vpop.eup %6927  ;;  %6646 = vrot.lane.b32.xlu1 %v6645_v51, %s7050_s29  ;;  %v2768_v5 = vpop.xlane.xlu0 %2767  ;;  %v11986_v51 = vld [vmem:[#allocation129_spill] sm:$0xff] }
 0x775   :  { %6931 = vrcp.f32 %v2768_v5  ;;  %v9884_v7 = vmul.f32 %v6928_v61, %v9585_v55  ;;  %v11988_v55 = vld [vmem:[#allocation133_spill] sm:$0xff] }
 0x778   :  { %v6930_v26 = vpop.eup %6929  ;;  %v2774_v9 = vpop.xlane.xlu0 %2773 }
 0x779   :  { %6933 = vrcp.f32 %v2774_v9  ;;  %v9887_v31 = vmul.f32 %v6930_v26, %v9583_v50  ;;  %v11987_v50 = vld [vmem:[#allocation131_spill] sm:$0xff] }
 0x77c   :  { %v2780_v0 = vpop.xlane.xlu0 %2779 }
 0x77d   :  { %6935 = vrcp.f32 %v2780_v0 }
 0x77e   :  { %6937 = vrcp.f32 %v9758_v42 }
 0x77f   :  { %v6932_v15 = vpop.eup %6931  ;;  %6939 = vrcp.f32 %v9772_v38 }
 0x780   :  { %v3746_v13 = vmul.f32 %v6932_v15, %v9563_v24  ;;  %6941 = vrcp.f32 %v2912_v54 }
 0x781   :  { %6943 = vrcp.f32 %v2906_v48 }
 0x782   :  { %6945 = vrcp.f32 %v11987_v50 }
 0x783   :  { %v6934_v3 = vpop.eup %6933  ;;  %6947 = vrcp.f32 %v11988_v55 }
 0x784   :  { %v9891_v45 = vmul.f32 %v6934_v3, %v9581_v43  ;;  %6949 = vrcp.f32 %v2927_v1 }
 0x785   :  { %6951 = vrcp.f32 %v2921_v39 }
 0x786   :  { %6953 = vrcp.f32 %v2924_v11 }
 0x787   :  { %v6936_v33 = vpop.eup %6935  ;;  %6955 = vrcp.f32 %v2918_v36 }
 0x788   :  { %v9894_v46 = vmul.f32 %v6936_v33, %v11986_v51  ;;  %v6938_v59 = vpop.eup %6937  ;;  %6957 = vrcp.f32 %v11991_v35 }
 0x789   :  { %v6940_v29 = vpop.eup %6939  ;;  %6959 = vrcp.f32 %v11992_v44 }
 0x78a   :  { %v6942_v27 = vpop.eup %6941 }
 0x78b   :  { %v6944_v4 = vpop.eup %6943 }
 0x78c   :  { %v6946_v60 = vpop.eup %6945 }
 0x78d   :  { %v6948_v32 = vpop.eup %6947  ;;  %v3745_v48 = vmul.f32 %v6946_v60, %v11990_v56 }
 0x78e   :  { %v3744_v30 = vmul.f32 %v6948_v32, %v11989_v21  ;;  %v6950_v57 = vpop.eup %6949 }
 0x78f   :  { %v6952_v23 = vpop.eup %6951 }
 0x790   :  { %v6954_v8 = vpop.eup %6953 }
 0x791   :  { %v6956_v41 = vpop.eup %6955 }
 0x792   :  { %v6958_v3 = vpop.eup %6957 }
 0x793   :  { %v6960_v33 = vpop.eup %6959 }
 0x796   :  { %v9900_v10 = vpop.permute.xlu0 %6571 }
 0x79a   :  { %v9902_v24 = vpop.permute.xlu1 %6566 }
 0x79e   :  { %v9904_v43 = vpop.permute.xlu0 %6576 }
 0x7a2   :  { %v9906_v38 = vpop.permute.xlu1 %6581 }
 0x7a3   :  { %v6281_v20 = vpop.f32.mrb[80].mxu0 }
 0x7a4   :  { %v3641_v42 = vpop.f32.mrb[81].mxu0  ;;  %v3794_v52 = vmul.f32 %v6942_v27, %v6281_v20  ;;  %v6569_v20 = vunpack.i.h.bf16 %v9902_v24 }
 0x7a5   :  { %v6282_v49 = vpop.f32.mrb[82].mxu0  ;;  %v3792_v6 = vmul.f32 %v6944_v4, %v3641_v42  ;;  %v11998_v42 = vld [vmem:[#allocation115_spill] sm:$0xff] }
 0x7a6   :  { %v3795_v2 = vmul.f32 %v6938_v59, %v6282_v49  ;;  %v3644_v12 = vpop.f32.mrb[83].mxu0  ;;  %v6587_v18 = vpop.permute.xlu0 %6586  ;;  %v11997_v59 = vld [vmem:[#allocation121_spill] sm:$0xff] }
 0x7a7   :  { %v3793_v22 = vmul.f32 %v6940_v29, %v3644_v12  ;;  %v6589_v47 = vunpack.i.h.bf16 %v6587_v18  ;;  %v6588_v1 = vunpack.i.l.bf16 %v6587_v18  ;;  %v6568_v29 = vunpack.i.l.bf16 %v9902_v24  ;;  %v12000_v12 = vld [vmem:[#allocation120_spill] sm:$0xff] }
 0x7a8   :  { %v6655_v19 = vpack.i.bf16 %v3795_v2, %v3794_v52  ;;  %v11999_v52 = vld [vmem:[#allocation117_spill] sm:$0xff]  ;;  %v3739_v18 = vmul.f32 %v6958_v3, %v12000_v12 }
 0x7a9   :  { %v6660_v54 = vpack.i.bf16 %v3793_v22, %v3792_v6  ;;  %v9910_v16 = vsel %vm1554_vm4, %v9803_v14, %v6589_v47  ;;  %v9913_v39 = vsel %vm1554_vm4, %v3746_v13, %v6588_v1  ;;  %v3738_v2 = vmul.f32 %v6960_v33, %v11999_v52  ;;  %v12001_v6 = vld [vmem:[#allocation116_spill] sm:$0xff] }
 0x7aa   :  { %v6592_v58 = vpop.permute.xlu1 %6591  ;;  %6656 = vrot.lane.b32.xlu0 %v6655_v19, %s7052_s7  ;;  %v6574_v47 = vunpack.i.h.bf16 %v9900_v10  ;;  %v6573_v1 = vunpack.i.l.bf16 %v9900_v10 }
 0x7ab   :  { %v6594_v40 = vunpack.i.h.bf16 %v6592_v58  ;;  %v6593_v53 = vunpack.i.l.bf16 %v6592_v58  ;;  %6661 = vrot.lane.b32.xlu1 %v6660_v54, %s7052_s7  ;;  %v3995_v54 = vsel %vm1554_vm4, %v3739_v18, %v6569_v20  ;;  %v3994_v58 = vsel %vm1554_vm4, %v3738_v2, %v6568_v29  ;;  %v12005_v18 = vld [vmem:[#allocation124_spill] sm:$0xff] }
 0x7ad   :  { %v9920_v63 = vsel %vm1554_vm4, %v3745_v48, %v6594_v40  ;;  %v9923_v14 = vsel %vm1554_vm4, %v3744_v30, %v6593_v53  ;;  %v6285_v28 = vpop.f32.mrb[84].mxu0 }
 0x7ae   :  { %v3657_v11 = vpop.f32.mrb[85].mxu0  ;;  %6671 = vrot.lane.b32.xlu0 %v6670_v25, %s7051_s3  ;;  %v3798_v36 = vmul.f32 %v6954_v8, %v6285_v28  ;;  %v11993_v25 = vld [vmem:[#allocation130_spill] sm:$0xff] }
 0x7af   :  { %v6286_v34 = vpop.f32.mrb[86].mxu0  ;;  %6666 = vrot.lane.b32.xlu1 %v6665_v62, %s7051_s3  ;;  %v3796_v26 = vmul.f32 %v6956_v41, %v3657_v11  ;;  %6961 = vrcp.f32 %v11993_v25  ;;  %v11996_v62 = vld [vmem:[#allocation135_spill] sm:$0xff] }
 0x7b0   :  { %v3799_v61 = vmul.f32 %v6950_v57, %v6286_v34  ;;  %v3660_v5 = vpop.f32.mrb[87].mxu0  ;;  %6963 = vrcp.f32 %v11994_v17  ;;  %v12002_v57 = vld [vmem:[#allocation118_spill] sm:$0xff] }
 0x7b1   :  { %v3797_v9 = vmul.f32 %v6952_v23, %v3660_v5  ;;  %6965 = vrcp.f32 %v11995_v37  ;;  %v12003_v23 = vld [vmem:[#allocation128_spill] sm:$0xff]  ;;  %v12004_v34 = vld [vmem:[#allocation122_spill] sm:$0xff] }
 0x7b2   :  { %v6680_v0 = vpack.i.bf16 %v3799_v61, %v3798_v36  ;;  %6967 = vrcp.f32 %v11996_v62  ;;  %v6579_v36 = vunpack.i.h.bf16 %v9904_v43  ;;  %v6578_v61 = vunpack.i.l.bf16 %v9904_v43 }
 0x7b3   :  { %v6675_v15 = vpack.i.bf16 %v3797_v9, %v3796_v26  ;;  %6969 = vrcp.f32 %v11997_v59 }
 0x7b4   :  { %6681 = vrot.lane.b32.xlu0 %v6680_v0, %s7052_s7  ;;  %6971 = vrcp.f32 %v11998_v42  ;;  %v6584_v42 = vunpack.i.h.bf16 %v9906_v38 }
 0x7b5   :  { %6676 = vrot.lane.b32.xlu1 %v6675_v15, %s7052_s7 }
 0x7b6   :  { %v6597_v13 = vpop.permute.xlu0 %6596 }
 0x7b7   :  { %v6599_v27 = vunpack.i.h.bf16 %v6597_v13  ;;  %v6598_v49 = vunpack.i.l.bf16 %v6597_v13 }
 0x7b9   :  { %v6962_v55 = vpop.eup %6961  ;;  %v4012_v56 = vsel %vm4008_vm6, %v3995_v54, %v6599_v27  ;;  %v4011_v48 = vsel %vm4008_vm6, %v3994_v58, %v6598_v49  ;;  %v6583_v27 = vunpack.i.l.bf16 %v9906_v38 }
 0x7ba   :  { %v6602_v51 = vpop.permute.xlu1 %6601  ;;  %v6964_v4 = vpop.eup %6963  ;;  %v3737_v22 = vmul.f32 %v6962_v55, %v12001_v6  ;;  %v12006_v6 = vld [vmem:[#allocation125_spill] sm:$0xff] }
 0x7bb   :  { %v6966_v60 = vpop.eup %6965  ;;  %v6604_v40 = vunpack.i.h.bf16 %v6602_v51  ;;  %v6603_v53 = vunpack.i.l.bf16 %v6602_v51  ;;  %v3743_v10 = vmul.f32 %v6964_v4, %v12003_v23 }
 0x7bc   :  { %v6968_v19 = vpop.eup %6967  ;;  %v3736_v28 = vmul.f32 %v6966_v60, %v12002_v57  ;;  %v3993_v0 = vsel %vm1554_vm4, %v3737_v22, %v6574_v47 }
 0x7bd   :  { %v3742_v41 = vmul.f32 %v6968_v19, %v12004_v34  ;;  %v4010_v17 = vsel %vm4008_vm6, %v3993_v0, %v6604_v40  ;;  %v6970_v13 = vpop.eup %6969  ;;  %v3999_v51 = vsel %vm1554_vm4, %v3743_v10, %v6579_v36 }
 0x7be   :  { %v6607_v50 = vpop.permute.xlu0 %6606  ;;  %v3992_v15 = vsel %vm1554_vm4, %v3736_v28, %v6573_v1  ;;  %v6972_v33 = vpop.eup %6971  ;;  %v3741_v22 = vmul.f32 %v6970_v13, %v12006_v6 }
 0x7bf   :  { %v4009_v25 = vsel %vm4008_vm6, %v3992_v15, %v6603_v53  ;;  %v6609_v37 = vunpack.i.h.bf16 %v6607_v50  ;;  %v6608_v62 = vunpack.i.l.bf16 %v6607_v50  ;;  %v3998_v55 = vsel %vm1554_vm4, %v3742_v41, %v6578_v61 }
 0x7c0   :  { %v3740_v60 = vmul.f32 %v6972_v33, %v12005_v18  ;;  %v3997_v19 = vsel %vm1554_vm4, %v3741_v22, %v6584_v42 }
 0x7c1   :  { %v4015_v50 = vsel %vm4008_vm6, %v3998_v55, %v6608_v62  ;;  %v4016_v52 = vsel %vm4008_vm6, %v3999_v51, %v6609_v37 }
 0x7c2   :  { %v6612_v32 = vpop.permute.xlu1 %6611  ;;  %v3996_v54 = vsel %vm1554_vm4, %v3740_v60, %v6583_v27 }
 0x7c3   :  { %v6614_v2 = vunpack.i.h.bf16 %v6612_v32  ;;  %v6613_v12 = vunpack.i.l.bf16 %v6612_v32 }
 0x7d6   :  { %v6617_v24 = vpop.permute.xlu0 %6616 }
 0x7d7   :  { %v6619_v21 = vunpack.i.h.bf16 %v6617_v24  ;;  %v6618_v30 = vunpack.i.l.bf16 %v6617_v24 }
 0x7d9   :  { %v4028_v11 = vsel %vm4025_vm7, %v4011_v48, %v6618_v30  ;;  %v4029_v8 = vsel %vm4025_vm7, %v4012_v56, %v6619_v21  ;;  %v4014_v21 = vsel %vm4008_vm6, %v3997_v19, %v6614_v2  ;;  %v4013_v30 = vsel %vm4008_vm6, %v3996_v54, %v6613_v12 }
 0x7da   :  { %v4047_v5 = vpack.c.bf16 %v4029_v8, %v4028_v11  ;;  %v6622_v26 = vpop.permute.xlu1 %6621  ;;  %v6632_v9 = vpop.permute.xlu0 %6631 }
 0x7db   :  { %v6624_v35 = vunpack.i.h.bf16 %v6622_v26  ;;  %v6623_v44 = vunpack.i.l.bf16 %v6622_v26  ;;  %v6634_v28 = vunpack.i.h.bf16 %v6632_v9  ;;  %v6633_v23 = vunpack.i.l.bf16 %v6632_v9 }
 0x7dd   :  { %v4026_v3 = vsel %vm4025_vm7, %v4009_v25, %v6623_v44  ;;  %v4027_v43 = vsel %vm4025_vm7, %v4010_v17, %v6624_v35  ;;  %v4019_v61 = vsel %vm4008_vm6, %v9913_v39, %v6633_v23  ;;  %v12013_v23 = vld [vmem:[#allocation81_spill] sm:$0xff] }
 0x7de   :  { %v4046_v59 = vpack.c.bf16 %v4027_v43, %v4026_v3  ;;  %v6627_v20 = vpop.permute.xlu1 %6626  ;;  %v6637_v29 = vpop.permute.xlu0 %6636 }
 0x7df   :  { %v6639_v49 = vunpack.i.h.bf16 %v6637_v29  ;;  %v6638_v4 = vunpack.i.l.bf16 %v6637_v29  ;;  %v6629_v10 = vunpack.i.h.bf16 %v6627_v20  ;;  %v6628_v11 = vunpack.i.l.bf16 %v6627_v20 }
 0x7e0   :  { %6291 = vmatprep.mubr.msk.bf16.mxu1 %vm961_vm3, %v4046_v59 }
 0x7e1   :  { %v4032_v47 = vsel %vm4025_vm7, %v4015_v50, %v6638_v4  ;;  %v4033_v1 = vsel %vm4025_vm7, %v4016_v52, %v6639_v49  ;;  %6292 = vmatmul.mubr.msk.bf16.vlgmr.msra.gmra.mrb[56].mxu1 %vm961_vm3, %v4047_v5  ;;  %v4020_v5 = vsel %vm4008_vm6, %v9910_v16, %v6634_v28  ;;  %v4018_v15 = vsel %vm4008_vm6, %v9920_v63, %v6629_v10 }
 0x7e2   :  { %v4049_v38 = vpack.c.bf16 %v4033_v1, %v4032_v47  ;;  %v6642_v24 = vpop.permute.xlu1 %6641  ;;  %v6652_v53 = vpop.permute.xlu0 %6651  ;;  %v4017_v9 = vsel %vm4008_vm6, %v9923_v14, %v6628_v11  ;;  %v4193_v1 = vld [vmem:[%s11526_s8] sm:$0x7f] }
 0x7e3   :  { %v6644_v58 = vunpack.i.h.bf16 %v6642_v24  ;;  %v6643_v32 = vunpack.i.l.bf16 %v6642_v24  ;;  %v6654_v16 = vunpack.i.h.bf16 %v6652_v53  ;;  %v6653_v13 = vunpack.i.l.bf16 %v6652_v53 }
 0x7e5   :  { %v4031_v56 = vsel %vm4025_vm7, %v4014_v21, %v6644_v58  ;;  %v4030_v48 = vsel %vm4025_vm7, %v4013_v30, %v6643_v32  ;;  %v4007_v59 = vsel %vm1554_vm4, %v9887_v31, %v6654_v16  ;;  %v4006_v20 = vsel %vm1554_vm4, %v9894_v46, %v6653_v13  ;;  %v12009_v58 = vld [vmem:[#allocation52_spill] sm:$0xff]  ;;  %v12010_v30 = vld [vmem:[#allocation79_spill] sm:$0xff] }
 0x7e6   :  { %v4048_v40 = vpack.c.bf16 %v4031_v56, %v4030_v48  ;;  %v6647_v57 = vpop.permute.xlu1 %6646 }
 0x7e7   :  { %v6649_v43 = vunpack.i.h.bf16 %v6647_v57  ;;  %v6648_v33 = vunpack.i.l.bf16 %v6647_v57 }
 0x7e8   :  { %6295 = vmatprep.mubr.msk.bf16.mxu1 %vm961_vm3, %v4048_v40 }
 0x7e9   :  { %6296 = vmatmul.mubr.msk.bf16.gmra.mrb[60].mxu1 %vm961_vm3, %v4049_v38  ;;  %v4005_v42 = vsel %vm1554_vm4, %v9884_v7, %v6649_v43  ;;  %v4004_v27 = vsel %vm1554_vm4, %v9891_v45, %v6648_v33  ;;  %v12007_v38 = vld [vmem:[#allocation29_spill] sm:$0xff] }
 0x7ea   :  { %v12008_v24 = vsub.s32 2, %v12007_v38  ;;  %v12011_v40 = vsub.s32 1, %v12007_v38  ;;  %v12012_v57 = vsub.s32 5, %v12007_v38  ;;  %v12018_v16 = vsub.s32 0, %v12007_v38 }
 0x7ec   :  { %v10024_v19 = vrot.slane %v4193_v1, %v12008_v24  ;;  %v10034_v53 = vrot.slane %v4193_v1, %v12011_v40  ;;  %v10038_v28 = vrot.slane %v4193_v1, %v12012_v57  ;;  %v10075_v13 = vrot.slane %v4193_v1, %v12018_v16 }
 0x81c   :  { %v6657_v8 = vpop.permute.xlu0 %6656 }
 0x81d   :  { %v6659_v34 = vunpack.i.h.bf16 %v6657_v8  ;;  %v6658_v41 = vunpack.i.l.bf16 %v6657_v8  ;;  %v6662_v36 = vpop.permute.xlu1 %6661 }
 0x81e   :  { %v6664_v26 = vunpack.i.h.bf16 %v6662_v36  ;;  %v6663_v0 = vunpack.i.l.bf16 %v6662_v36  ;;  %v12015_v36 = vsub.s32 3, %v12007_v38 }
 0x81f   :  { %v4036_v35 = vsel %vm4025_vm7, %v4019_v61, %v6658_v41  ;;  %v4037_v44 = vsel %vm4025_vm7, %v4020_v5, %v6659_v34  ;;  %v12014_v34 = vsub.s32 6, %v12007_v38  ;;  %v12016_v5 = vsub.s32 4, %v12007_v38 }
 0x820   :  { %v4051_v25 = vpack.c.bf16 %v4037_v44, %v4036_v35  ;;  %v4035_v17 = vsel %vm4025_vm7, %v4018_v15, %v6664_v26  ;;  %v4034_v39 = vsel %vm4025_vm7, %v4017_v9, %v6663_v0  ;;  %v6672_v62 = vpop.permute.xlu0 %6671  ;;  %v10053_v61 = vrot.slane %v4193_v1, %v12015_v36  ;;  %v12017_v0 = vld [vmem:[#allocation51_spill] sm:$0xff] }
 0x821   :  { %v4050_v37 = vpack.c.bf16 %v4035_v17, %v4034_v39  ;;  %v6667_v3 = vpop.permute.xlu1 %6666  ;;  %v6674_v63 = vunpack.i.h.bf16 %v6672_v62  ;;  %v6673_v14 = vunpack.i.l.bf16 %v6672_v62  ;;  %v10049_v41 = vrot.slane %v4193_v1, %v12014_v34  ;;  %v12023_v34 = vld [vmem:[#allocation84_spill] sm:$0xff] }
 0x822   :  { %v6669_v51 = vunpack.i.h.bf16 %v6667_v3  ;;  %v6668_v55 = vunpack.i.l.bf16 %v6667_v3  ;;  %v10057_v26 = vrot.slane %v4193_v1, %v12016_v5  ;;  %v12024_v5 = vld [vmem:[#allocation28_spill] sm:$0xff] }
 0x823   :  { %6299 = vmatprep.mubr.msk.bf16.mxu1 %vm961_vm3, %v4050_v37  ;;  %v4023_v52 = vsel %vm4008_vm6, %v4006_v20, %v6673_v14  ;;  %v4024_v2 = vsel %vm4008_vm6, %v4007_v59, %v6674_v63 }
 0x824   :  { %6300 = vmatmul.mubr.msk.bf16.gmra.mrb[64].mxu1 %vm961_vm3, %v4051_v25  ;;  %v4022_v31 = vsel %vm4008_vm6, %v4005_v42, %v6669_v51  ;;  %v4021_v46 = vsel %vm4008_vm6, %v4004_v27, %v6668_v55 }
 0x826   :  { %v6682_v29 = vpop.permute.xlu0 %6681 }
 0x827   :  { %v6684_v49 = vunpack.i.h.bf16 %v6682_v29  ;;  %v6683_v4 = vunpack.i.l.bf16 %v6682_v29  ;;  %v6677_v50 = vpop.permute.xlu1 %6676 }
 0x828   :  { %v6679_v12 = vunpack.i.h.bf16 %v6677_v50  ;;  %v6678_v18 = vunpack.i.l.bf16 %v6677_v50 }
 0x829   :  { %v4040_v60 = vsel %vm4025_vm7, %v4023_v52, %v6683_v4  ;;  %v4041_v7 = vsel %vm4025_vm7, %v4024_v2, %v6684_v49  ;;  %v12019_v49 = vld [vmem:[#allocation72_spill] sm:$0xff] }
 0x82a   :  { %v4053_v6 = vpack.c.bf16 %v4041_v7, %v4040_v60  ;;  %v4039_v45 = vsel %vm4025_vm7, %v4022_v31, %v6679_v12  ;;  %v4038_v22 = vsel %vm4025_vm7, %v4021_v46, %v6678_v18  ;;  %v12020_v31 = vld [vmem:[#allocation83_spill] sm:$0xff] }
 0x82b   :  { %v4052_v47 = vpack.c.bf16 %v4039_v45, %v4038_v22  ;;  %v12021_v45 = vld [vmem:[#allocation4_spill] sm:$0xff] }
 0x82d   :  { %6303 = vmatprep.mubr.msk.bf16.mxu1 %vm961_vm3, %v4052_v47 }
 0x82e   :  { %6304 = vmatmul.mubr.msk.bf16.gmra.mrb[68].mxu1 %vm961_vm3, %v4053_v6 }
 0x8b4   :  { %v6293_v54 = vpop.f32.mrb[56].mxu1 }
 0x8b5   :  { %v10027_v32 = vadd.f32 %v6293_v54, %v12009_v58  ;;  %v4114_v21 = vpop.f32.mrb[57].mxu1  ;;  %v12022_v54 = vld [vmem:[#allocation74_spill] sm:$0xff] }
 0x8b6   :  { %v10030_v56 = vadd.f32 %v4114_v21, %v12010_v30  ;;  %v6294_v48 = vpop.f32.mrb[58].mxu1 }
 0x8b7   :  { %v10041_v10 = vadd.f32 %v6294_v48, %v12013_v23  ;;  %v4117_v11 = vpop.f32.mrb[59].mxu1  ;;  %v10045_v8 = vmul.f32 %v10024_v19, %v10027_v32  ;;  %v4321_v25 = vrot.slane %v10027_v32, 4  ;;  %v4541_v3 = vrot.slane %v10027_v32, 1 }
 0x8b8   :  { %v10060_v15 = vadd.f32 %v4117_v11, %v12017_v0  ;;  %v11706_v9 = vrot.slane %v10030_v56, 4  ;;  %v11705_v35 = vrot.slane %v10030_v56, 7  ;;  %v11703_v39 = vrot.slane %v10030_v56, 1 }
 0x8b9   :  { %v10066_v44 = vmul.f32 %v10024_v19, %v10041_v10  ;;  %v4322_v27 = vrot.slane %v10041_v10, 4  ;;  %v4202_v7 = vmul.f32 %v10075_v13, %v10041_v10  ;;  %v4457_v6 = vrot.slane %v10027_v32, 7 }
 0x8ba   :  { %v4320_v17 = vrot.slane %v10060_v15, 4  ;;  %v4540_v37 = vrot.slane %v10060_v15, 1  ;;  %v4456_v62 = vrot.slane %v10060_v15, 7  ;;  %v4222_v43 = vmul.f32 %v10034_v53, %v10060_v15 }
 0x8bb   :  { %v4347_v1 = vsel %vm374_vm0, %v4321_v25, %v4322_v27  ;;  %v4458_v24 = vrot.slane %v10041_v10, 7  ;;  %v4542_v48 = vrot.slane %v10041_v10, 1 }
 0x8bc   :  { %v6297_v33 = vpop.f32.mrb[60].mxu1  ;;  %v4349_v63 = vsel %vm374_vm0, %v11706_v9, %v4320_v17  ;;  %v4569_v14 = vsel %vm788_vm2, %v11703_v39, %v4540_v37  ;;  %v4348_v51 = vsel %vm374_vm0, %v4320_v17, %v4321_v25  ;;  %v4485_v55 = vsel %vm639_vm1, %v11705_v35, %v4456_v62 }
 0x8bd   :  { %v4130_v59 = vpop.f32.mrb[61].mxu1  ;;  %v10095_v20 = vmul.f32 %v10057_v26, %v4349_v63  ;;  %v10098_v29 = vmul.f32 %v10049_v41, %v4569_v14  ;;  %v10101_v42 = vmul.f32 %v10053_v61, %v4349_v63  ;;  %v10108_v52 = vmul.f32 %v10057_v26, %v4348_v51 }
 0x8be   :  { %v10105_v4 = vadd.f32 %v4130_v59, %v12019_v49  ;;  %v6298_v50 = vpop.f32.mrb[62].mxu1  ;;  %v10111_v2 = vmul.f32 %v10038_v28, %v4485_v55  ;;  %v4568_v12 = vsel %vm788_vm2, %v4540_v37, %v4541_v3  ;;  %v4238_v22 = vmul.f32 %v4222_v43, %v12021_v45  ;;  %v12025_v37 = vld [vmem:[#allocation15_spill] sm:$0xff] }
 0x8bf   :  { %v4133_v18 = vpop.f32.mrb[63].mxu1  ;;  %v10119_v60 = vmul.f32 %v10049_v41, %v4568_v12  ;;  %v10130_v58 = vadd.f32 %v6297_v33, %v12022_v54  ;;  %v4358_v30 = vmul.f32 %v10053_v61, %v4347_v1  ;;  %v4483_v23 = vsel %vm639_vm1, %v4457_v6, %v4458_v24  ;;  %v12026_v55 = vld [vmem:[#allocation55_spill] sm:$0xff]  ;;  %v12029_v54 = vld [vmem:[#allocation30_spill] sm:$0xff] }
 0x8c0   :  { %v10116_v46 = vadd.f32 %v4133_v18, %v12020_v31  ;;  %v4323_v47 = vrot.slane %v10105_v4, 4  ;;  %v4254_v40 = vadd.f32 %v4238_v22, %v4202_v7  ;;  %v4543_v11 = vrot.slane %v10105_v4, 1  ;;  %v12028_v18 = vld [vmem:[#allocation8_spill] sm:$0xff] }
 0x8c1   :  { %v10146_v36 = vadd.f32 %v6298_v50, %v12023_v34  ;;  %v4494_v17 = vmul.f32 %v10038_v28, %v4483_v23  ;;  %v4374_v16 = vmul.f32 %v4358_v30, %v12025_v37  ;;  %v4221_v33 = vmul.f32 %v10034_v53, %v10030_v56  ;;  %v12027_v50 = vld [vmem:[#allocation2_spill] sm:$0xff] }
 0x8c2   :  { %v4274_v21 = vmul.f32 %v10024_v19, %v10116_v46  ;;  %v10138_v57 = vsel %vm374_vm0, %v4322_v27, %v4323_v47  ;;  %v4566_v43 = vsel %vm788_vm2, %v4542_v48, %v4543_v11  ;;  %v4273_v63 = vmul.f32 %v10024_v19, %v10105_v4  ;;  %v12030_v23 = vld [vmem:[#allocation42_spill] sm:$0xff] }
 0x8c3   :  { %v4410_v25 = vmul.f32 %v10057_v26, %v10138_v57  ;;  %v4578_v27 = vmul.f32 %v10049_v41, %v4566_v43  ;;  %v4201_v49 = vmul.f32 %v10075_v13, %v10027_v32  ;;  %v4237_v12 = vmul.f32 %v4221_v33, %v12027_v50  ;;  %v12035_v50 = vld [vmem:[#allocation31_spill] sm:$0xff] }
 0x8c4   :  { %v4290_v0 = vmul.f32 %v4274_v21, %v12024_v5  ;;  %v4289_v31 = vmul.f32 %v4273_v63, %v12028_v18  ;;  %v4357_v7 = vmul.f32 %v10053_v61, %v4348_v51  ;;  %v4409_v45 = vmul.f32 %v10057_v26, %v4347_v1  ;;  %v12033_v63 = vld [vmem:[#allocation3_spill] sm:$0xff] }
 0x8c5   :  { %v4426_v59 = vmul.f32 %v4410_v25, %v12026_v55  ;;  %v4510_v21 = vmul.f32 %v4494_v17, %v12029_v54  ;;  %v4484_v30 = vsel %vm639_vm1, %v4456_v62, %v4457_v6  ;;  %v4594_v34 = vmul.f32 %v4578_v27, %v12030_v23  ;;  %v12032_v6 = vld [vmem:[#allocation19_spill] sm:$0xff]  ;;  %v12034_v55 = vld [vmem:[#allocation16_spill] sm:$0xff] }
 0x8c6   :  { %v4306_v14 = vadd.f32 %v4290_v0, %v4254_v40  ;;  %v4567_v40 = vsel %vm788_vm2, %v4541_v3, %v4542_v48  ;;  %v4253_v5 = vadd.f32 %v4237_v12, %v4201_v49  ;;  %v12031_v0 = vld [vmem:[#allocation13_spill] sm:$0xff]  ;;  %v4493_v37 = vmul.f32 %v10038_v28, %v4484_v30 }
 0x8c7   :  { %v4373_v25 = vmul.f32 %v4357_v7, %v12031_v0  ;;  %v4577_v51 = vmul.f32 %v10049_v41, %v4567_v40  ;;  %v4204_v1 = vmul.f32 %v10075_v13, %v10116_v46  ;;  %v4224_v17 = vmul.f32 %v10034_v53, %v10041_v10  ;;  %v12036_v0 = vld [vmem:[#allocation45_spill] sm:$0xff] }
 0x8c8   :  { %v4390_v22 = vadd.f32 %v4374_v16, %v4306_v14  ;;  %v4305_v62 = vadd.f32 %v4289_v31, %v4253_v5  ;;  %v4425_v16 = vmul.f32 %v4409_v45, %v12032_v6  ;;  %v4276_v3 = vmul.f32 %v10024_v19, %v10146_v36 }
 0x8c9   :  { %v4324_v48 = vrot.slane %v10116_v46, 4  ;;  %v4509_v14 = vmul.f32 %v4493_v37, %v12033_v63  ;;  %v4325_v27 = vrot.slane %v10130_v58, 4  ;;  %v4459_v31 = vrot.slane %v10105_v4, 7 }
 0x8ca   :  { %v4442_v43 = vadd.f32 %v4426_v59, %v4390_v22  ;;  %v4240_v59 = vmul.f32 %v4224_v17, %v12034_v55  ;;  %v4389_v49 = vadd.f32 %v4373_v25, %v4305_v62  ;;  %v4292_v12 = vmul.f32 %v4276_v3, %v12035_v50  ;;  %v12038_v17 = vld [vmem:[#allocation54_spill] sm:$0xff] }
 0x8cb   :  { %v4345_v18 = vsel %vm374_vm0, %v4323_v47, %v4324_v48  ;;  %v4344_v22 = vsel %vm374_vm0, %v4324_v48, %v4325_v27  ;;  %v4460_v40 = vrot.slane %v10116_v46, 7  ;;  %v4544_v23 = vrot.slane %v10116_v46, 1 }
 0x8cc   :  { %v4526_v33 = vadd.f32 %v4510_v21, %v4442_v43  ;;  %v4256_v45 = vadd.f32 %v4240_v59, %v4204_v1  ;;  %v4360_v54 = vmul.f32 %v10053_v61, %v4345_v18  ;;  %v4441_v21 = vadd.f32 %v4425_v16, %v4389_v49  ;;  %v12037_v43 = vld [vmem:[#allocation5_spill] sm:$0xff]  ;;  %v12039_v49 = vld [vmem:[#allocation62_spill] sm:$0xff] }
 0x8cd   :  { %v4412_v30 = vmul.f32 %v10057_v26, %v4344_v22  ;;  %v4593_v1 = vmul.f32 %v4577_v51, %v12037_v43  ;;  %v4481_v6 = vsel %vm639_vm1, %v4459_v31, %v4460_v40  ;;  %v4223_v51 = vmul.f32 %v10034_v53, %v10027_v32 }
 0x8ce   :  { %v4610_v7 = vadd.f32 %v4594_v34, %v4526_v33  ;;  %v4308_v47 = vadd.f32 %v4292_v12, %v4256_v45  ;;  %v4376_v25 = vmul.f32 %v4360_v54, %v12036_v0  ;;  %v4545_v34 = vrot.slane %v10130_v58, 1  ;;  %v12040_v45 = vld [vmem:[#allocation21_spill] sm:$0xff]  ;;  %v12042_v0 = vld [vmem:[#allocation71_spill] sm:$0xff] }
 0x8cf   :  { %v4525_v37 = vadd.f32 %v4509_v14, %v4441_v21  ;;  %v4428_v62 = vmul.f32 %v4412_v30, %v12038_v17  ;;  %v4496_v3 = vmul.f32 %v10038_v28, %v4481_v6  ;;  %v4203_v33 = vmul.f32 %v10075_v13, %v10105_v4  ;;  %v12041_v21 = vld [vmem:[#allocation33_spill] sm:$0xff]  ;;  %v12043_v17 = vld [vmem:[#allocation44_spill] sm:$0xff] }
 0x8d0   :  { %v10200_v5 = vadd.f32 %v4610_v7, %v10041_v10  ;;  %v4392_v16 = vadd.f32 %v4376_v25, %v4308_v47  ;;  %v4564_v48 = vsel %vm788_vm2, %v4544_v23, %v4545_v34  ;;  %v4275_v14 = vmul.f32 %v10024_v19, %v10130_v58 }
 0x8d1   :  { %v4609_v63 = vadd.f32 %v4593_v1, %v4525_v37  ;;  %v4580_v55 = vmul.f32 %v10049_v41, %v4564_v48  ;;  %v4512_v50 = vmul.f32 %v4496_v3, %v12039_v49  ;;  %v4359_v12 = vmul.f32 %v10053_v61, %v10138_v57 }
 0x8d2   :  { %v4444_v59 = vadd.f32 %v4428_v62, %v4392_v16  ;;  %v4239_v54 = vmul.f32 %v4223_v51, %v12040_v45  ;;  %v4291_v30 = vmul.f32 %v4275_v14, %v12041_v21  ;;  %v4411_v37 = vmul.f32 %v10057_v26, %v4345_v18  ;;  %v12044_v18 = vld [vmem:[#allocation57_spill] sm:$0xff]  ;;  %v12046_v14 = vld [vmem:[#allocation60_spill] sm:$0xff] }
 0x8d3   :  { %v4625_v7 = vadd.f32 %v4609_v63, %v10027_v32  ;;  %v4596_v25 = vmul.f32 %v4580_v55, %v12042_v0  ;;  %v4482_v43 = vsel %vm639_vm1, %v4458_v24, %v4459_v31  ;;  %v4375_v62 = vmul.f32 %v4359_v12, %v12043_v17  ;;  %v12045_v55 = vld [vmem:[#allocation27_spill] sm:$0xff] }
 0x8d4   :  { %v4528_v47 = vadd.f32 %v4512_v50, %v4444_v59  ;;  %v4255_v1 = vadd.f32 %v4239_v54, %v4203_v33  ;;  %v4495_v57 = vmul.f32 %v10038_v28, %v4482_v43  ;;  %v4565_v32 = vsel %vm788_vm2, %v4543_v11, %v4544_v23  ;;  %v12048_v43 = vld [vmem:[#allocation70_spill] sm:$0xff] }
 0x8d5   :  { %v4579_v16 = vmul.f32 %v10049_v41, %v4565_v32  ;;  %v4427_v48 = vmul.f32 %v4411_v37, %v12044_v18  ;;  %v4226_v10 = vmul.f32 %v10034_v53, %v10116_v46  ;;  %v4206_v31 = vmul.f32 %v10075_v13, %v10146_v36 }
 0x8d6   :  { %v4612_v6 = vadd.f32 %v4596_v25, %v4528_v47  ;;  %v4307_v3 = vadd.f32 %v4291_v30, %v4255_v1  ;;  %v4326_v33 = vrot.slane %v10146_v36, 4  ;;  %v4461_v11 = vrot.slane %v10130_v58, 7  ;;  %v12047_v47 = vld [vmem:[#allocation18_spill] sm:$0xff] }
 0x8d7   :  { %v4242_v51 = vmul.f32 %v4226_v10, %v12045_v55  ;;  %v11704_v23 = vrot.slane %v10146_v36, 7  ;;  %v4511_v59 = vmul.f32 %v4495_v57, %v12046_v14  ;;  %v4225_v50 = vmul.f32 %v10034_v53, %v10105_v4 }
 0x8d8   :  { %v4628_v24 = vadd.f32 %v4612_v6, %v10116_v46  ;;  %v4391_v63 = vadd.f32 %v4375_v62, %v4307_v3  ;;  %v4343_v49 = vsel %vm374_vm0, %v4325_v27, %v4326_v33  ;;  %v4546_v46 = vrot.slane %v10146_v36, 1 }
 0x8d9   :  { %v10255_v45 = vadd.f32 %v4242_v51, %v4206_v31  ;;  %v4362_v54 = vmul.f32 %v10053_v61, %v4343_v49  ;;  %v4479_v21 = vsel %vm639_vm1, %v4461_v11, %v11704_v23  ;;  %v4205_v27 = vmul.f32 %v10075_v13, %v10130_v58  ;;  %v12054_v51 = vld [vmem:[#allocation26_spill] sm:$0xff]  ;;  %v12073_v23 = vld [vmem:[#allocation7_spill] sm:$0xff] }
 0x8da   :  { %v4443_v12 = vadd.f32 %v4427_v48, %v4391_v63  ;;  %v4498_v30 = vmul.f32 %v10038_v28, %v4479_v21  ;;  %v4241_v0 = vmul.f32 %v4225_v50, %v12047_v47  ;;  %v4361_v25 = vmul.f32 %v10053_v61, %v4344_v22  ;;  %v12059_v21 = vld [vmem:[#allocation17_spill] sm:$0xff] }
 0x8db   :  { %v4595_v1 = vmul.f32 %v4579_v16, %v12048_v43  ;;  %v4413_v17 = vmul.f32 %v10057_v26, %v4343_v49  ;;  %v4480_v62 = vsel %vm639_vm1, %v4460_v40, %v4461_v11  ;;  %v4563_v3 = vsel %vm788_vm2, %v4545_v34, %v4546_v46  ;;  %v10295_v34 = vld [vmem:[%s11527_s9] ss:$0 sm:$0xff]  ;;  %v12057_v49 = vld [vmem:[#allocation36_spill] sm:$0xff]  ;;  %v12060_v47 = vld [vmem:[#allocation25_spill] sm:$0xff] }
 0x8dc   :  { %v4527_v37 = vadd.f32 %v4511_v59, %v4443_v12  ;;  %v10271_v57 = vadd.f32 %v4241_v0, %v4205_v27  ;;  %v4497_v32 = vmul.f32 %v10038_v28, %v4480_v62  ;;  %v4228_v22 = vmul.f32 %v10034_v53, %v10146_v36  ;;  %v12058_v12 = vld [vmem:[#allocation43_spill] sm:$0xff]  ;;  %v12061_v0 = vld [vmem:[#allocation38_spill] sm:$0xff]  ;;  %v12066_v43 = vld [vmem:[#allocation49_spill] sm:$0xff] }
 0x8dd   :  { %v4581_v16 = vmul.f32 %v10049_v41, %v4563_v3  ;;  %v4227_v18 = vmul.f32 %v10034_v53, %v10130_v58  ;;  %v10285_v40 = vmul.f32 %v10024_v19, %v10060_v15  ;;  %v10290_v10 = vmul.f32 %v10024_v19, %v10030_v56 }
 0x8de   :  { %v4611_v6 = vadd.f32 %v4595_v1, %v4527_v37  ;;  %v10299_v31 = vadd.f32 %v10295_v34, %v10200_v5  ;;  %v10302_v63 = vadd.f32 %v10295_v34, %v4625_v7  ;;  %v10305_v55 = vadd.f32 %v10295_v34, %v4628_v24  ;;  %v12055_v5 = vld [vmem:[#allocation6_spill] sm:$0xff]  ;;  %v12056_v7 = vld [vmem:[#allocation53_spill] sm:$0xff] }
 0x8df   :  { %12049 = vst [vmem:[#allocation136_spill] sm:$0xff] %v10285_v40  ;;  %12050 = vst [vmem:[#allocation139_spill] sm:$0xff] %v10290_v10  ;;  %v10313_v11 = vmul.f32 %v10045_v8, %v12054_v51  ;;  %v10317_v14 = vmul.f32 %v10075_v13, %v10060_v15  ;;  %v10321_v59 = vmul.f32 %v10066_v44, %v12055_v5 }
 0x8e0   :  { %v4627_v48 = vadd.f32 %v4611_v6, %v10105_v4  ;;  %12051 = vst [vmem:[#allocation137_spill] sm:$0xff] %v10299_v31  ;;  %12052 = vst [vmem:[#allocation140_spill] sm:$0xff] %v10302_v63  ;;  %v10309_v4 = vmul.f32 %v10075_v13, %v10030_v56  ;;  %v10325_v24 = vmul.f32 %v10095_v20, %v12056_v7  ;;  %v12068_v6 = vld [vmem:[#allocation95_spill] sm:$0xff]  ;;  %v12070_v7 = vld [vmem:[#allocation56_spill] sm:$0xff] }
 0x8e1   :  { %12053 = vst [vmem:[#allocation138_spill] sm:$0xff] %v10305_v55  ;;  %v10329_v50 = vmul.f32 %v10098_v29, %v12057_v49  ;;  %v10333_v8 = vmul.f32 %v10101_v42, %v12058_v12  ;;  %v10337_v27 = vmul.f32 %v10108_v52, %v12059_v21  ;;  %v10341_v44 = vmul.f32 %v10111_v2, %v12060_v47  ;;  %v12071_v12 = vld [vmem:[#allocation68_spill] sm:$0xff]  ;;  %v12072_v47 = vld [vmem:[#allocation89_spill] sm:$0xff] }
 0x8e2   :  { %v10345_v20 = vmul.f32 %v10119_v60, %v12061_v0  ;;  %v10349_v29 = vsel %vm961_vm3, %v10299_v31, 0.0  ;;  %v10352_v37 = vadd.f32 %v10295_v34, %v4627_v48  ;;  %v10356_v52 = vsel %vm961_vm3, %v10302_v63, 0.0  ;;  %v12067_v60 = vld [vmem:[#allocation66_spill] sm:$0xff] }
 0x8e3   :  { %12062 = vst [vmem:[#allocation129_spill] sm:$0xff] %v10349_v29  ;;  %12064 = vst [vmem:[#allocation133_spill] sm:$0xff] %v10356_v52  ;;  %v10360_v2 = vsel %vm961_vm3, %v10305_v55, 0.0  ;;  %v4378_v1 = vmul.f32 %v4362_v54, %v12066_v43  ;;  %v10364_v62 = vmul.f32 %v4498_v30, %v12067_v60  ;;  %v12069_v48 = vld [vmem:[#allocation46_spill] sm:$0xff]  ;;  %v4429_v49 = vmul.f32 %v4413_v17, %v12070_v7  ;;  %v12074_v54 = vld [vmem:[#allocation20_spill] sm:$0xff] }
 0x8e4   :  { %12063 = vst [vmem:[#allocation131_spill] sm:$0xff] %v10352_v37  ;;  %12065 = vst [vmem:[#allocation126_spill] sm:$0xff] %v10360_v2  ;;  %v4377_v5 = vmul.f32 %v4361_v25, %v12069_v48  ;;  %v4513_v21 = vmul.f32 %v4497_v32, %v12071_v12  ;;  %v4597_v35 = vmul.f32 %v4581_v16, %v12073_v23  ;;  %v12075_v30 = vld [vmem:[#allocation58_spill] sm:$0xff]  ;;  %v10385_v25 = vsel %vm961_vm3, %v10352_v37, 0.0  ;;  %v12080_v17 = vld [vmem:[#allocation35_spill] sm:$0xff] }
 0x8e5   :  { %v4244_v43 = vmul.f32 %v4228_v22, %v12074_v54  ;;  %v10378_v60 = vmul.f32 %v4227_v18, %v12075_v30  ;;  %12077 = vst [vmem:[#allocation123_spill] sm:$0xff] %v10385_v25  ;;  %v12079_v30 = vld [vmem:[#allocation32_spill] sm:$0xff]  ;;  %v12084_v25 = vld [vmem:[#allocation69_spill] sm:$0xff] }
 0x8e6   :  { %v12081_v37 = vld [vmem:[#allocation40_spill] sm:$0xff] }
 0x8f7   :  { %v6301_v42 = vpop.f32.mrb[64].mxu1 }
 0x8f8   :  { %v10367_v3 = vadd.f32 %v6301_v42, %v12068_v6  ;;  %v4146_v51 = vpop.f32.mrb[65].mxu1  ;;  %v12076_v42 = vld [vmem:[#allocation94_spill] sm:$0xff] }
 0x8f9   :  { %v10373_v0 = vadd.f32 %v4146_v51, %v12072_v47  ;;  %v6302_v39 = vpop.f32.mrb[66].mxu1  ;;  %v12078_v51 = vld [vmem:[#allocation92_spill] sm:$0xff] }
 0x8fa   :  { %v10381_v6 = vadd.f32 %v6302_v39, %v12076_v42  ;;  %v4149_v9 = vpop.f32.mrb[67].mxu1  ;;  %v4279_v32 = vmul.f32 %v10024_v19, %v10367_v3 }
 0x8fb   :  { %v10391_v23 = vadd.f32 %v4149_v9, %v12078_v51  ;;  %v4327_v22 = vrot.slane %v10373_v0, 4  ;;  %v11715_v16 = vrot.slane %v10373_v0, 1  ;;  %v4277_v39 = vmul.f32 %v10024_v19, %v10373_v0 }
 0x8fc   :  { %v4280_v18 = vmul.f32 %v10024_v19, %v10381_v6  ;;  %v10403_v12 = vmul.f32 %v10075_v13, %v10373_v0 }
 0x8fd   :  { %v4278_v9 = vmul.f32 %v10024_v19, %v10391_v23  ;;  %v10411_v47 = vsel %vm374_vm0, %v4326_v33, %v4327_v22  ;;  %v4562_v54 = vsel %vm788_vm2, %v4546_v46, %v11715_v16  ;;  %v4293_v42 = vmul.f32 %v4277_v39, %v12079_v30  ;;  %v12082_v16 = vld [vmem:[#allocation59_spill] sm:$0xff] }
 0x8fe   :  { %v4414_v51 = vmul.f32 %v10057_v26, %v10411_v47  ;;  %v4582_v7 = vmul.f32 %v10049_v41, %v4562_v54  ;;  %v4208_v48 = vmul.f32 %v10075_v13, %v10391_v23  ;;  %v4296_v33 = vmul.f32 %v4280_v18, %v12080_v17  ;;  %v12083_v30 = vld [vmem:[#allocation75_spill] sm:$0xff]  ;;  %v12086_v18 = vld [vmem:[#allocation114_spill] sm:$0xff] }
 0x8ff   :  { %v4294_v55 = vmul.f32 %v4278_v9, %v12081_v37  ;;  %v4309_v63 = vadd.f32 %v4293_v42, %v10271_v57  ;;  %v4328_v31 = vrot.slane %v10391_v23, 4  ;;  %v11716_v46 = vrot.slane %v10391_v23, 7 }
 0x900   :  { %v4430_v39 = vmul.f32 %v4414_v51, %v12082_v16  ;;  %v4598_v10 = vmul.f32 %v4582_v7, %v12083_v30  ;;  %v4260_v40 = vadd.f32 %v4244_v43, %v4208_v48  ;;  %v4295_v54 = vmul.f32 %v4279_v32, %v12084_v25 }
 0x901   :  { %v6305_v2 = vpop.f32.mrb[68].mxu1  ;;  %v4310_v52 = vadd.f32 %v4294_v55, %v10255_v45  ;;  %v4393_v29 = vadd.f32 %v4377_v5, %v4309_v63  ;;  %v12085_v17 = vrot.slane %v10367_v3, 4  ;;  %v4341_v37 = vsel %vm374_vm0, %v4327_v22, %v4328_v31  ;;  %v12089_v22 = vld [vmem:[#allocation109_spill] sm:$0xff] }
 0x902   :  { %v10443_v16 = vadd.f32 %v6305_v2, %v12086_v18  ;;  %v4162_v7 = vpop.f32.mrb[69].mxu1  ;;  %v4312_v43 = vadd.f32 %v4296_v33, %v4260_v40  ;;  %v4364_v25 = vmul.f32 %v10053_v61, %v4341_v37  ;;  %v12088_v32 = vrot.slane %v10373_v0, 7  ;;  %v12090_v40 = vld [vmem:[#allocation113_spill] sm:$0xff]  ;;  %v12092_v33 = vld [vmem:[#allocation80_spill] sm:$0xff] }
 0x903   :  { %v10438_v57 = vsel %vm374_vm0, %v4328_v31, %v12085_v17  ;;  %v6306_v63 = vpop.f32.mrb[70].mxu1  ;;  %v4394_v55 = vadd.f32 %v4378_v1, %v4310_v52  ;;  %v4445_v5 = vadd.f32 %v4429_v49, %v4393_v29  ;;  %v4548_v2 = vrot.slane %v10391_v23, 1  ;;  %v12091_v29 = vld [vmem:[#allocation47_spill] sm:$0xff] }
 0x904   :  { %12087 = vst [vmem:[#allocation119_spill] sm:$0xff] %v10443_v16  ;;  %v4416_v45 = vmul.f32 %v10057_v26, %v10438_v57  ;;  %v4477_v31 = vsel %vm639_vm1, %v12088_v32, %v11716_v46  ;;  %v10456_v48 = vadd.f32 %v4162_v7, %v12089_v22  ;;  %v10459_v9 = vadd.f32 %v6306_v63, %v12090_v40  ;;  %v4165_v42 = vpop.f32.mrb[71].mxu1  ;;  %v12093_v32 = vld [vmem:[#allocation12_spill] sm:$0xff] }
 0x905   :  { %v4219_v52 = vmul.f32 %v10034_v53, %v10443_v16  ;;  %v4380_v1 = vmul.f32 %v4364_v25, %v12091_v29  ;;  %v4446_v49 = vadd.f32 %v4430_v39, %v4394_v55  ;;  %v4529_v51 = vadd.f32 %v4513_v21, %v4445_v5  ;;  %v12094_v25 = vld [vmem:[#allocation87_spill] sm:$0xff] }
 0x906   :  { %v4432_v30 = vmul.f32 %v4416_v45, %v12092_v33  ;;  %v4500_v17 = vmul.f32 %v10038_v28, %v4477_v31  ;;  %v4334_v18 = vrot.slane %v10459_v9, 4  ;;  %v4470_v22 = vrot.slane %v10459_v9, 7 }
 0x907   :  { %v4235_v7 = vmul.f32 %v4219_v52, %v12093_v32  ;;  %v4220_v63 = vmul.f32 %v10034_v53, %v10459_v9  ;;  %v4530_v40 = vadd.f32 %v10364_v62, %v4446_v49  ;;  %v4613_v46 = vadd.f32 %v4597_v35, %v4529_v51  ;;  %v12097_v62 = vld [vmem:[#allocation14_spill] sm:$0xff]  ;;  %v12099_v32 = vld [vmem:[#allocation112_spill] sm:$0xff] }
 0x908   :  { %v4396_v16 = vadd.f32 %v4380_v1, %v4312_v43  ;;  %v4516_v39 = vmul.f32 %v4500_v17, %v12094_v25  ;;  %v12095_v45 = vrot.slane %v10030_v56, 4  ;;  %v12096_v5 = vrot.slane %v10030_v56, 7 }
 0x909   :  { %v4251_v21 = vadd.f32 %v4235_v7, %v10309_v4  ;;  %v4236_v43 = vmul.f32 %v4220_v63, %v12097_v62  ;;  %v4614_v52 = vadd.f32 %v4598_v10, %v4530_v40  ;;  %v4629_v29 = vadd.f32 %v4613_v46, %v10130_v58  ;;  %v12100_v63 = vld [vmem:[#allocation11_spill] sm:$0xff] }
 0x90a   :  { %v10480_v55 = vsel %vm374_vm0, %v4334_v18, %v12095_v45  ;;  %v4486_v35 = vsel %vm639_vm1, %v4470_v22, %v12096_v5  ;;  %v4448_v51 = vadd.f32 %v4432_v30, %v4396_v16  ;;  %v12098_v33 = vrot.slane %v10367_v3, 1  ;;  %v12101_v30 = vld [vmem:[#allocation23_spill] sm:$0xff] }
 0x90b   :  { %v4355_v4 = vmul.f32 %v10053_v61, %v10480_v55  ;;  %v4491_v31 = vmul.f32 %v10038_v28, %v4486_v35  ;;  %v4303_v1 = vadd.f32 %v10313_v11, %v4251_v21  ;;  %v4252_v49 = vadd.f32 %v4236_v43, %v10317_v14  ;;  %v12103_v35 = vld [vmem:[#allocation90_spill] sm:$0xff] }
 0x90c   :  { %v4560_v17 = vsel %vm788_vm2, %v4548_v2, %v12098_v33  ;;  %v10500_v7 = vadd.f32 %v4165_v42, %v12099_v32  ;;  %v4630_v45 = vadd.f32 %v4614_v52, %v10146_v36  ;;  %v10505_v10 = vadd.f32 %v10295_v34, %v4629_v29  ;;  %v12107_v29 = vld [vmem:[#allocation61_spill] sm:$0xff] }
 0x90d   :  { %v4371_v25 = vmul.f32 %v4355_v4, %v12100_v63  ;;  %v4304_v58 = vadd.f32 %v10321_v59, %v4252_v49  ;;  %v4532_v11 = vadd.f32 %v4516_v39, %v4448_v51  ;;  %v4584_v14 = vmul.f32 %v10049_v41, %v4560_v17  ;;  %v12109_v32 = vld [vmem:[#allocation85_spill] sm:$0xff] }
 0x90e   :  { %v4259_v46 = vadd.f32 %v10378_v60, %v10403_v12  ;;  %v4507_v40 = vmul.f32 %v4491_v31, %v12101_v30  ;;  %v10513_v42 = vadd.f32 %v10295_v34, %v4630_v45  ;;  %v4363_v21 = vmul.f32 %v10053_v61, %v10411_v47  ;;  %v12104_v12 = vld [vmem:[#allocation76_spill] sm:$0xff] }
 0x90f   :  { %v4387_v16 = vadd.f32 %v4371_v25, %v4303_v1  ;;  %v4388_v5 = vadd.f32 %v10333_v8, %v4304_v58  ;;  %v4600_v62 = vmul.f32 %v4584_v14, %v12103_v35  ;;  %v4415_v39 = vmul.f32 %v10057_v26, %v4341_v37  ;;  %v12112_v35 = vld [vmem:[#allocation73_spill] sm:$0xff] }
 0x910   :  { %12102 = vst [vmem:[#allocation134_spill] sm:$0xff] %v10513_v42  ;;  %v4311_v59 = vadd.f32 %v4295_v54, %v4259_v46  ;;  %v10523_v60 = vsel %vm961_vm3, %v10505_v10, 0.0  ;;  %v4379_v4 = vmul.f32 %v4363_v21, %v12104_v12  ;;  %v12105_v31 = vrot.slane %v10373_v0, 7 }
 0x911   :  { %v4439_v43 = vadd.f32 %v10325_v24, %v4387_v16  ;;  %v12106_v52 = vrot.slane %v10146_v36, 7  ;;  %v4440_v47 = vadd.f32 %v10337_v27, %v4388_v5  ;;  %v4616_v54 = vadd.f32 %v4600_v62, %v4532_v11 }
 0x912   :  { %v4431_v37 = vmul.f32 %v4415_v39, %v12107_v29  ;;  %v10537_v49 = vsel %vm961_vm3, %v10513_v42, 0.0  ;;  %v4395_v51 = vadd.f32 %v4379_v4, %v4311_v59  ;;  %v12108_v33 = vrot.slane %v10373_v0, 1 }
 0x913   :  { %v4478_v8 = vsel %vm639_vm1, %v12106_v52, %v12105_v31  ;;  %v4523_v1 = vadd.f32 %v4507_v40, %v4439_v43  ;;  %v4524_v17 = vadd.f32 %v10341_v44, %v4440_v47  ;;  %v4632_v27 = vadd.f32 %v4616_v54, %v10391_v23 }
 0x914   :  { %v4499_v24 = vmul.f32 %v10038_v28, %v4478_v8  ;;  %v4561_v36 = vsel %vm788_vm2, %v12108_v33, %v4548_v2  ;;  %v4447_v58 = vadd.f32 %v4431_v37, %v4395_v51  ;;  %v4230_v11 = vmul.f32 %v10034_v53, %v10391_v23  ;;  %v12110_v2 = vld [vmem:[#allocation9_spill] sm:$0xff]  ;;  %v12115_v51 = vld [vmem:[#allocation78_spill] sm:$0xff] }
 0x915   :  { %v4583_v25 = vmul.f32 %v10049_v41, %v4561_v36  ;;  %v4607_v45 = vadd.f32 %v10329_v50, %v4523_v1  ;;  %v4282_v14 = vmul.f32 %v10024_v19, %v10500_v7  ;;  %v4608_v46 = vadd.f32 %v10345_v20, %v4524_v17  ;;  %v12111_v50 = vld [vmem:[#allocation64_spill] sm:$0xff] }
 0x916   :  { %v4515_v63 = vmul.f32 %v4499_v24, %v12109_v32  ;;  %v4210_v44 = vmul.f32 %v10075_v13, %v10381_v6  ;;  %v4330_v30 = vrot.slane %v10381_v6, 4  ;;  %v4246_v5 = vmul.f32 %v4230_v11, %v12111_v50 }
 0x917   :  { %v4599_v16 = vmul.f32 %v4583_v25, %v12110_v2  ;;  %v4623_v40 = vadd.f32 %v4607_v45, %v10030_v56  ;;  %v4298_v62 = vmul.f32 %v4282_v14, %v12112_v35  ;;  %v4624_v59 = vadd.f32 %v4608_v46, %v10060_v15  ;;  %v12117_v14 = vld [vmem:[#allocation63_spill] sm:$0xff] }
 0x918   :  { %v4531_v21 = vadd.f32 %v4515_v63, %v4447_v58  ;;  %v10562_v39 = vadd.f32 %v10295_v34, %v4632_v27  ;;  %v4331_v20 = vrot.slane %v10456_v48, 4  ;;  %v12114_v43 = vrot.slane %v10367_v3, 4 }
 0x919   :  { %v10570_v4 = vadd.f32 %v10295_v34, %v4623_v40  ;;  %v4262_v52 = vadd.f32 %v4246_v5, %v4210_v44  ;;  %v10574_v47 = vadd.f32 %v10295_v34, %v4624_v59  ;;  %v4465_v54 = vrot.slane %v10367_v3, 7  ;;  %v12118_v44 = vld [vmem:[#allocation88_spill] sm:$0xff]  ;;  %v12119_v5 = vld [vmem:[#allocation129_spill] sm:$0xff] }
 0x91a   :  { %12113 = vst [vmem:[#allocation130_spill] sm:$0xff] %v10562_v39  ;;  %v4339_v12 = vsel %vm374_vm0, %v12114_v43, %v4330_v30  ;;  %v4615_v31 = vadd.f32 %v4599_v16, %v4531_v21  ;;  %v10580_v15 = vsel %vm374_vm0, %v4330_v30, %v4331_v20  ;;  %v4466_v29 = vrot.slane %v10381_v6, 7  ;;  %v12121_v43 = vld [vmem:[#allocation37_spill] sm:$0xff] }
 0x91b   :  { %v4366_v8 = vmul.f32 %v10053_v61, %v4339_v12  ;;  %v4663_v37 = vsel %vm961_vm3, %v10570_v4, 0.0  ;;  %v4314_v1 = vadd.f32 %v4298_v62, %v4262_v52  ;;  %v4666_v36 = vsel %vm961_vm3, %v10574_v47, 0.0  ;;  %v12120_v62 = vld [vmem:[#allocation22_spill] sm:$0xff]  ;;  %v12122_v52 = vld [vmem:[#allocation133_spill] sm:$0xff] }
 0x91c   :  { %v4631_v24 = vadd.f32 %v4615_v31, %v10373_v0  ;;  %4664 = vadd.xlane.f32.xlu1 %v4663_v37  ;;  %v4418_v17 = vmul.f32 %v10057_v26, %v10580_v15  ;;  %v4475_v27 = vsel %vm639_vm1, %v4465_v54, %v4466_v29  ;;  %v4550_v32 = vrot.slane %v10381_v6, 1  ;;  %4667 = vadd.xlane.f32.xlu0 %v4666_v36  ;;  %v12125_v36 = vld [vmem:[#allocation10_spill] sm:$0xff] }
 0x91d   :  { %v4382_v33 = vmul.f32 %v4366_v8, %v12115_v51  ;;  %v4502_v45 = vmul.f32 %v10038_v28, %v4475_v27  ;;  %v4551_v58 = vrot.slane %v10456_v48, 1  ;;  %v4690_v11 = vsel %vm961_vm3, %v10562_v39, 0.0 }
 0x91e   :  { %v10598_v63 = vadd.f32 %v10295_v34, %v4631_v24  ;;  %v4434_v46 = vmul.f32 %v4418_v17, %v12117_v14  ;;  %v4229_v2 = vmul.f32 %v10034_v53, %v10373_v0  ;;  %v4281_v16 = vmul.f32 %v10024_v19, %v10456_v48 }
 0x91f   :  { %v4398_v25 = vadd.f32 %v4382_v33, %v4314_v1  ;;  %v4518_v30 = vmul.f32 %v4502_v45, %v12118_v44  ;;  %v4558_v40 = vsel %vm788_vm2, %v4550_v32, %v4551_v58  ;;  %v4209_v21 = vmul.f32 %v10075_v13, %v10367_v3  ;;  %v12126_v45 = vld [vmem:[#allocation77_spill] sm:$0xff] }
 0x920   :  { %12116 = vst [vmem:[#allocation127_spill] sm:$0xff] %v10598_v63  ;;  %v4365_v50 = vmul.f32 %v10053_v61, %v10438_v57  ;;  %4673 = vadd.xlane.f32.xlu1 %v12119_v5  ;;  %v4586_v0 = vmul.f32 %v10049_v41, %v4558_v40  ;;  %v4245_v59 = vmul.f32 %v4229_v2, %v12120_v62  ;;  %v4687_v8 = vsel %vm961_vm3, %v10598_v63, 0.0  ;;  %v12129_v40 = vld [vmem:[#allocation123_spill] sm:$0xff]  ;;  %v12131_v5 = vld [vmem:[#allocation24_spill] sm:$0xff] }
 0x921   :  { %v4450_v35 = vadd.f32 %v4434_v46, %v4398_v25  ;;  %v4297_v31 = vmul.f32 %v4281_v16, %v12121_v43  ;;  %4670 = vadd.xlane.f32.xlu0 %v12122_v52  ;;  %v4417_v37 = vmul.f32 %v10057_v26, %v4339_v12  ;;  %v12123_v24 = vrot.slane %v10391_v23, 7  ;;  %v12127_v46 = vld [vmem:[#allocation126_spill] sm:$0xff]  ;;  %v12132_v62 = vld [vmem:[#allocation119_spill] sm:$0xff] }
 0x922   :  { %v12124_v1 = vrot.slane %v10367_v3, 1  ;;  %v4602_v17 = vmul.f32 %v4586_v0, %v12125_v36  ;;  %v4261_v27 = vadd.f32 %v4245_v59, %v4209_v21  ;;  %v4381_v14 = vmul.f32 %v4365_v50, %v12126_v45  ;;  %v12128_v16 = vld [vmem:[#allocation82_spill] sm:$0xff] }
 0x923   :  { %v4476_v57 = vsel %vm639_vm1, %v12123_v24, %v4465_v54  ;;  %v4534_v33 = vadd.f32 %v4518_v30, %v4450_v35  ;;  %v4212_v23 = vmul.f32 %v10075_v13, %v10500_v7  ;;  %v4232_v54 = vmul.f32 %v10034_v53, %v10381_v6  ;;  %v12130_v21 = vld [vmem:[#allocation86_spill] sm:$0xff] }
 0x924   :  { %v4559_v51 = vsel %vm788_vm2, %v12124_v1, %v4550_v32  ;;  %v4501_v25 = vmul.f32 %v10038_v28, %v4476_v57  ;;  %4679 = vadd.xlane.f32.xlu1 %v12127_v46  ;;  %v4313_v32 = vadd.f32 %v4297_v31, %v4261_v27  ;;  %v4433_v44 = vmul.f32 %v4417_v37, %v12128_v16  ;;  %v12133_v24 = vld [vmem:[#allocation98_spill] sm:$0xff]  ;;  %v12137_v16 = vld [vmem:[#allocation103_spill] sm:$0xff] }
 0x925   :  { %v4585_v12 = vmul.f32 %v10049_v41, %v4559_v51  ;;  %v4618_v2 = vadd.f32 %v4602_v17, %v4534_v33  ;;  %v4284_v30 = vmul.f32 %v10024_v19, %v10459_v9  ;;  %4676 = vadd.xlane.f32.xlu0 %v12129_v40  ;;  %v4248_v35 = vmul.f32 %v4232_v54, %v12131_v5  ;;  %v12135_v54 = vld [vmem:[#allocation91_spill] sm:$0xff] }
 0x926   :  { %v4517_v50 = vmul.f32 %v4501_v25, %v12130_v21  ;;  %v4332_v0 = vrot.slane %v10500_v7, 4  ;;  %v4333_v59 = vrot.slane %v12132_v62, 4  ;;  %v4397_v52 = vadd.f32 %v4381_v14, %v4313_v32 }
 0x927   :  { %v4634_v43 = vadd.f32 %v4618_v2, %v10381_v6  ;;  %v4300_v31 = vmul.f32 %v4284_v30, %v12133_v24  ;;  %v4467_v37 = vrot.slane %v10456_v48, 7  ;;  %v4264_v57 = vadd.f32 %v4248_v35, %v4212_v23  ;;  %v12136_v2 = vld [vmem:[#allocation50_spill] sm:$0xff] }
 0x928   :  { %v10656_v1 = vsel %vm374_vm0, %v4332_v0, %v4333_v59  ;;  %v4337_v51 = vsel %vm374_vm0, %v4331_v20, %v4332_v0  ;;  %v4468_v33 = vrot.slane %v10500_v7, 7  ;;  %4685 = vadd.xlane.f32.xlu1 %v10537_v49  ;;  %v4449_v17 = vadd.f32 %v4433_v44, %v4397_v52 }
 0x929   :  { %v10665_v36 = vadd.f32 %v10295_v34, %v4634_v43  ;;  %v4368_v27 = vmul.f32 %v10053_v61, %v4337_v51  ;;  %v4420_v25 = vmul.f32 %v10057_v26, %v10656_v1  ;;  %4682 = vadd.xlane.f32.xlu0 %v10523_v60  ;;  %v4316_v45 = vadd.f32 %v4300_v31, %v4264_v57  ;;  %v12138_v43 = vld [vmem:[#allocation93_spill] sm:$0xff] }
 0x92a   :  { %v4473_v20 = vsel %vm639_vm1, %v4467_v37, %v4468_v33  ;;  %v4552_v14 = vrot.slane %v10500_v7, 1  ;;  %v4553_v49 = vrot.slane %v12132_v62, 1  ;;  %v4533_v23 = vadd.f32 %v4517_v50, %v4449_v17  ;;  %v12139_v17 = vld [vmem:[#allocation104_spill] sm:$0xff] }
 0x92b   :  { %12134 = vst [vmem:[#allocation132_spill] sm:$0xff] %v10665_v36  ;;  %v4601_v46 = vmul.f32 %v4585_v12, %v12135_v54  ;;  %v4384_v32 = vmul.f32 %v4368_v27, %v12136_v2  ;;  %v4436_v44 = vmul.f32 %v4420_v25, %v12137_v16  ;;  %v4504_v30 = vmul.f32 %v10038_v28, %v4473_v20  ;;  %v12140_v25 = vld [vmem:[#allocation39_spill] sm:$0xff]  ;;  %v12141_v20 = vld [vmem:[#allocation110_spill] sm:$0xff]  ;;  %v12144_v16 = vld [vmem:[#allocation65_spill] sm:$0xff] }
 0x92c   :  { %v4556_v60 = vsel %vm788_vm2, %v4552_v14, %v4553_v49  ;;  %v4211_v40 = vmul.f32 %v10075_v13, %v10456_v48  ;;  %v4231_v21 = vmul.f32 %v10034_v53, %v10367_v3  ;;  %4691 = vadd.xlane.f32.xlu1 %v4690_v11  ;;  %v4283_v35 = vmul.f32 %v10024_v19, %v12132_v62 }
 0x92d   :  { %v4617_v50 = vadd.f32 %v4601_v46, %v4533_v23  ;;  %v4400_v12 = vadd.f32 %v4384_v32, %v4316_v45  ;;  %v4588_v5 = vmul.f32 %v10049_v41, %v4556_v60  ;;  %4688 = vadd.xlane.f32.xlu0 %v4687_v8  ;;  %v4696_v0 = vsel %vm961_vm3, %v10665_v36, 0.0  ;;  %v12142_v23 = vld [vmem:[#allocation100_spill] sm:$0xff]  ;;  %v12145_v60 = vld [vmem:[#allocation41_spill] sm:$0xff] }
 0x92e   :  { %v4247_v52 = vmul.f32 %v4231_v21, %v12138_v43  ;;  %v4367_v24 = vmul.f32 %v10053_v61, %v10580_v15  ;;  %v4419_v31 = vmul.f32 %v10057_v26, %v4337_v51  ;;  %v4520_v27 = vmul.f32 %v4504_v30, %v12139_v17 }
 0x92f   :  { %v4633_v11 = vadd.f32 %v4617_v50, %v10367_v3  ;;  %v4452_v57 = vadd.f32 %v4436_v44, %v4400_v12  ;;  %v4299_v45 = vmul.f32 %v4283_v35, %v12140_v25  ;;  %v4604_v19 = vmul.f32 %v4588_v5, %v12141_v20  ;;  %v12147_v12 = vld [vmem:[#allocation97_spill] sm:$0xff]  ;;  %v12151_v25 = vld [vmem:[#allocation102_spill] sm:$0xff] }
 0x930   :  { %v4263_v8 = vadd.f32 %v4247_v52, %v4211_v40  ;;  %v4383_v54 = vmul.f32 %v4367_v24, %v12142_v23  ;;  %v4474_v46 = vsel %vm639_vm1, %v4466_v29, %v4467_v37  ;;  %4697 = vadd.xlane.f32.xlu1 %v4696_v0  ;;  %v4557_v2 = vsel %vm788_vm2, %v4551_v58, %v4552_v14  ;;  %v12146_v40 = vld [vmem:[#allocation136_spill] sm:$0xff] }
 0x931   :  { %v10708_v15 = vadd.f32 %v10295_v34, %v4633_v11  ;;  %v4536_v3 = vadd.f32 %v4520_v27, %v4452_v57  ;;  %v4503_v51 = vmul.f32 %v10038_v28, %v4474_v46  ;;  %v4435_v44 = vmul.f32 %v4419_v31, %v12144_v16  ;;  %v12149_v11 = vld [vmem:[#allocation34_spill] sm:$0xff]  ;;  %v12153_v16 = vld [vmem:[#allocation67_spill] sm:$0xff] }
 0x932   :  { %v4315_v32 = vadd.f32 %v4299_v45, %v4263_v8  ;;  %v4587_v6 = vmul.f32 %v10049_v41, %v4557_v2  ;;  %v4234_v29 = vmul.f32 %v10034_v53, %v10500_v7  ;;  %v4302_v21 = vmul.f32 %v12146_v40, %v12145_v60 }
 0x933   :  { %12143 = vst [vmem:[#allocation135_spill] sm:$0xff] %v10708_v15  ;;  %v4693_v37 = vsel %vm961_vm3, %v10708_v15, 0.0  ;;  %v4620_v30 = vadd.f32 %v4604_v19, %v4536_v3  ;;  %v4335_v58 = vsel %vm374_vm0, %v4333_v59, %v4334_v18  ;;  %v4214_v50 = vmul.f32 %v10075_v13, %v10459_v9  ;;  %v12148_v18 = vld [vmem:[#allocation48_spill] sm:$0xff] }
 0x934   :  { %4694 = vadd.xlane.f32.xlu0 %v4693_v37  ;;  %v4399_v14 = vadd.f32 %v4383_v54, %v4315_v32  ;;  %v4250_v5 = vmul.f32 %v4234_v29, %v12147_v12  ;;  %v4370_v35 = vmul.f32 %v10053_v61, %v4335_v58  ;;  %v4422_v43 = vmul.f32 %v10057_v26, %v10480_v55 }
 0x935   :  { %v4636_v0 = vadd.f32 %v4620_v30, %v10500_v7  ;;  %v4469_v52 = vrot.slane %v12132_v62, 7  ;;  %v4554_v24 = vrot.slane %v10459_v9, 1  ;;  %v4519_v59 = vmul.f32 %v4503_v51, %v12148_v18  ;;  %v12155_v30 = vld [vmem:[#allocation96_spill] sm:$0xff]  ;;  %v12162_v18 = vld [vmem:[#allocation106_spill] sm:$0xff] }
 0x936   :  { %v4451_v31 = vadd.f32 %v4435_v44, %v4399_v14  ;;  %v4603_v57 = vmul.f32 %v4587_v6, %v12149_v11  ;;  %v4266_v17 = vadd.f32 %v4250_v5, %v4214_v50  ;;  %v4386_v45 = vmul.f32 %v4370_v35, %v12151_v25  ;;  %v12154_v6 = vld [vmem:[#allocation108_spill] sm:$0xff]  ;;  %v12158_v50 = vld [vmem:[#allocation101_spill] sm:$0xff]  ;;  %v12160_v5 = vld [vmem:[#allocation107_spill] sm:$0xff] }
 0x937   :  { %v10739_v27 = vadd.f32 %v10295_v34, %v4636_v0  ;;  %v4471_v55 = vsel %vm639_vm1, %v4469_v52, %v4470_v22  ;;  %v12152_v20 = vrot.slane %v10030_v56, 1  ;;  %v4233_v51 = vmul.f32 %v10034_v53, %v10456_v48 }
 0x938   :  { %v4535_v8 = vadd.f32 %v4519_v59, %v4451_v31  ;;  %v4318_v23 = vadd.f32 %v4302_v21, %v4266_v17  ;;  %v4506_v54 = vmul.f32 %v10038_v28, %v4471_v55  ;;  %v4369_v22 = vmul.f32 %v10053_v61, %v10656_v1 }
 0x939   :  { %12150 = vst [vmem:[#allocation121_spill] sm:$0xff] %v10739_v27  ;;  %v4570_v19 = vsel %vm788_vm2, %v4554_v24, %v12152_v20  ;;  %v4702_v3 = vsel %vm961_vm3, %v10739_v27, 0.0  ;;  %v4421_v56 = vmul.f32 %v10057_v26, %v4335_v58  ;;  %v4438_v44 = vmul.f32 %v4422_v43, %v12153_v16  ;;  %v12156_v58 = vld [vmem:[#allocation99_spill] sm:$0xff]  ;;  %v12161_v43 = vld [vmem:[#allocation105_spill] sm:$0xff] }
 0x93a   :  { %v4590_v46 = vmul.f32 %v10049_v41, %v4570_v19  ;;  %4703 = vadd.xlane.f32.xlu1 %v4702_v3  ;;  %v4619_v2 = vadd.f32 %v4603_v57, %v4535_v8  ;;  %v4402_v32 = vadd.f32 %v4386_v45, %v4318_v23  ;;  %v4522_v29 = vmul.f32 %v4506_v54, %v12154_v6  ;;  %v12164_v57 = vld [vmem:[#allocation111_spill] sm:$0xff]  ;;  %v12167_v6 = vld [vmem:[#allocation140_spill] sm:$0xff] }
 0x93b   :  { %v4213_v37 = vmul.f32 %v10075_v13, %v12132_v62  ;;  %v4249_v60 = vmul.f32 %v4233_v51, %v12155_v30  ;;  %v4472_v53 = vsel %vm639_vm1, %v4468_v33, %v4469_v52  ;;  %v4555_v40 = vsel %vm788_vm2, %v4553_v49, %v4554_v24  ;;  %v12157_v13 = vld [vmem:[#allocation139_spill] sm:$0xff] }
 0x93c   :  { %v4635_v61 = vadd.f32 %v4619_v2, %v10456_v48  ;;  %v4454_v26 = vadd.f32 %v4438_v44, %v4402_v32  ;;  %v4505_v1 = vmul.f32 %v10038_v28, %v4472_v53  ;;  %v4301_v14 = vmul.f32 %v12157_v13, %v12156_v58  ;;  %v12166_v32 = vld [vmem:[#allocation137_spill] sm:$0xff]  ;;  %v12169_v13 = vld [vmem:[#allocation131_spill] sm:$0xff] }
 0x93d   :  { %v4265_v21 = vadd.f32 %v4249_v60, %v4213_v37  ;;  %v4385_v12 = vmul.f32 %v4369_v22, %v12158_v50  ;;  %v4589_v7 = vmul.f32 %v10049_v41, %v4555_v40  ;;  %v4606_v35 = vmul.f32 %v4590_v46, %v12160_v5  ;;  %v12168_v40 = vld [vmem:[#allocation138_spill] sm:$0xff] }
 0x93e   :  { %v10779_v33 = vadd.f32 %v10295_v34, %v4635_v61  ;;  %v4538_v48 = vadd.f32 %v4522_v29, %v4454_v26  ;;  %v4437_v52 = vmul.f32 %v4421_v56, %v12161_v43  ;;  %v4521_v41 = vmul.f32 %v4505_v1, %v12162_v18 }
 0x93f   :  { %v4317_v28 = vadd.f32 %v4301_v14, %v4265_v21  ;;  %v4605_v17 = vmul.f32 %v4589_v7, %v12164_v57 }
 0x940   :  { %12159 = vst [vmem:[#allocation115_spill] sm:$0xff] %v10779_v33  ;;  %v4699_v0 = vsel %vm961_vm3, %v10779_v33, 0.0  ;;  %v4622_v38 = vadd.f32 %v4606_v35, %v4538_v48 }
 0x941   :  { %4700 = vadd.xlane.f32.xlu0 %v4699_v0  ;;  %v4401_v49 = vadd.f32 %v4385_v12, %v4317_v28 }
 0x942   :  { %v4638_v24 = vadd.f32 %v4622_v38, %v10459_v9 }
 0x943   :  { %v4453_v31 = vadd.f32 %v4437_v52, %v4401_v49 }
 0x944   :  { %v10788_v59 = vadd.f32 %v10295_v34, %v4638_v24 }
 0x945   :  { %v4537_v11 = vadd.f32 %v4521_v41, %v4453_v31 }
 0x946   :  { %12163 = vst [vmem:[#allocation117_spill] sm:$0xff] %v10788_v59  ;;  %v4708_v25 = vsel %vm961_vm3, %v10788_v59, 0.0 }
 0x947   :  { %4709 = vadd.xlane.f32.xlu1 %v4708_v25  ;;  %v4621_v45 = vadd.f32 %v4605_v17, %v4537_v11 }
 0x949   :  { %v4637_v55 = vadd.f32 %v4621_v45, %v12132_v62 }
 0x94b   :  { %v10795_v20 = vadd.f32 %v10295_v34, %v4637_v55 }
 0x94d   :  { %12165 = vst [vmem:[#allocation120_spill] sm:$0xff] %v10795_v20  ;;  %v4705_v9 = vsel %vm961_vm3, %v10795_v20, 0.0 }
 0x94e   :  { %4706 = vadd.xlane.f32.xlu0 %v4705_v9 }
 0x9a9   :  { %v4665_v19 = vpop.xlane.xlu1 %4664  ;;  %v4668_v23 = vpop.xlane.xlu0 %4667 }
 0x9aa   :  { %v4711_v8 = vmul.f32 0.03125, %v4665_v19  ;;  %v4712_v54 = vmul.f32 0.03125, %v4668_v23 }
 0x9ac   :  { %v10800_v46 = vsub.f32 %v10570_v4, %v4711_v8  ;;  %v10803_v3 = vsub.f32 %v10574_v47, %v4712_v54 }
 0x9ad   :  { %v4674_v51 = vpop.xlane.xlu1 %4673 }
 0x9ae   :  { %v4714_v22 = vmul.f32 0.03125, %v4674_v51  ;;  %v4671_v62 = vpop.xlane.xlu0 %4670  ;;  %v4743_v34 = vmul.f32 %v10800_v46, %v10800_v46  ;;  %v4744_v2 = vmul.f32 %v10803_v3, %v10803_v3 }
 0x9af   :  { %v4713_v56 = vmul.f32 0.03125, %v4671_v62 }
 0x9b0   :  { %v10810_v16 = vsub.f32 %v12166_v32, %v4714_v22  ;;  %v4759_v44 = vsel %vm961_vm3, %v4743_v34, 0.0  ;;  %v4762_v30 = vsel %vm961_vm3, %v4744_v2, 0.0 }
 0x9b1   :  { %v10814_v29 = vsub.f32 %v12167_v6, %v4713_v56  ;;  %v4680_v37 = vpop.xlane.xlu1 %4679  ;;  %4760 = vadd.xlane.f32.xlu0 %v4759_v44  ;;  %4763 = vadd.xlane.f32.xlu1 %v4762_v30 }
 0x9b2   :  { %v4716_v60 = vmul.f32 0.03125, %v4680_v37  ;;  %v4677_v53 = vpop.xlane.xlu0 %4676  ;;  %v4746_v61 = vmul.f32 %v10810_v16, %v10810_v16 }
 0x9b3   :  { %v4715_v26 = vmul.f32 0.03125, %v4677_v53  ;;  %v4745_v1 = vmul.f32 %v10814_v29, %v10814_v29 }
 0x9b4   :  { %v10822_v21 = vsub.f32 %v12168_v40, %v4716_v60  ;;  %v4768_v58 = vsel %vm961_vm3, %v4746_v61, 0.0 }
 0x9b5   :  { %v10826_v14 = vsub.f32 %v12169_v13, %v4715_v26  ;;  %v4686_v50 = vpop.xlane.xlu1 %4685  ;;  %v4765_v12 = vsel %vm961_vm3, %v4745_v1, 0.0  ;;  %4769 = vadd.xlane.f32.xlu1 %v4768_v58 }
 0x9b6   :  { %v4718_v7 = vmul.f32 0.03125, %v4686_v50  ;;  %v4683_v48 = vpop.xlane.xlu0 %4682  ;;  %4766 = vadd.xlane.f32.xlu0 %v4765_v12  ;;  %v4748_v5 = vmul.f32 %v10822_v21, %v10822_v21 }
 0x9b7   :  { %v4717_v35 = vmul.f32 0.03125, %v4683_v48  ;;  %v4747_v28 = vmul.f32 %v10826_v14, %v10826_v14 }
 0x9b8   :  { %v10834_v0 = vsub.f32 %v10513_v42, %v4718_v7  ;;  %v4774_v38 = vsel %vm961_vm3, %v4748_v5, 0.0 }
 0x9b9   :  { %v10838_v49 = vsub.f32 %v10505_v10, %v4717_v35  ;;  %v4692_v43 = vpop.xlane.xlu1 %4691  ;;  %v4771_v52 = vsel %vm961_vm3, %v4747_v28, 0.0  ;;  %4775 = vadd.xlane.f32.xlu1 %v4774_v38  ;;  %v4915_v38 = vld [vmem:[%s11528_s12] sm:$0xff] }
 0x9ba   :  { %v4720_v24 = vmul.f32 0.03125, %v4692_v43  ;;  %v4689_v31 = vpop.xlane.xlu0 %4688  ;;  %4772 = vadd.xlane.f32.xlu0 %v4771_v52  ;;  %v4750_v18 = vmul.f32 %v10834_v0, %v10834_v0  ;;  %v4916_v43 = vld [vmem:[%s11528_s12 + $0x8] sm:$0xff] }
 0x9bb   :  { %v4719_v41 = vmul.f32 0.03125, %v4689_v31  ;;  %v4749_v11 = vmul.f32 %v10838_v49, %v10838_v49  ;;  %v4927_v31 = vpack.c.bf16 %v4916_v43, %v4915_v38 }
 0x9bc   :  { %v10846_v57 = vsub.f32 %v10562_v39, %v4720_v24  ;;  %v4780_v17 = vsel %vm961_vm3, %v4750_v18, 0.0 }
 0x9bd   :  { %v10850_v25 = vsub.f32 %v10598_v63, %v4719_v41  ;;  %v4698_v45 = vpop.xlane.xlu1 %4697  ;;  %v4777_v55 = vsel %vm961_vm3, %v4749_v11, 0.0  ;;  %4781 = vadd.xlane.f32.xlu1 %v4780_v17  ;;  %6307 = vmatprep.subr.bf16.mxu0 %v4927_v31  ;;  %v4917_v17 = vld [vmem:[%s11528_s12 + $0x10] sm:$0xff] }
 0x9be   :  { %v4722_v9 = vmul.f32 0.03125, %v4698_v45  ;;  %4778 = vadd.xlane.f32.xlu0 %v4777_v55  ;;  %v4752_v19 = vmul.f32 %v10846_v57, %v10846_v57  ;;  %6308 = vmatpush3.bf16.msra.mxu0 %v4927_v31  ;;  %v4918_v45 = vld [vmem:[%s11528_s12 + $0x18] sm:$0xff] }
 0x9bf   :  { %v4751_v8 = vmul.f32 %v10850_v25, %v10850_v25 }
 0x9c0   :  { %v10858_v23 = vsub.f32 %v10665_v36, %v4722_v9  ;;  %v4786_v51 = vsel %vm961_vm3, %v4752_v19, 0.0  ;;  %v4928_v9 = vpack.c.bf16 %v4918_v45, %v4917_v17  ;;  %v10917_v45 = vld [vmem:[%s11530_s11] ss:$0 sm:$0xff] }
 0x9c1   :  { %v4695_v54 = vpop.xlane.xlu0 %4694  ;;  %v4783_v62 = vsel %vm961_vm3, %v4751_v8, 0.0  ;;  %4787 = vadd.xlane.f32.xlu1 %v4786_v51 }
 0x9c2   :  { %v4721_v22 = vmul.f32 0.03125, %v4695_v54  ;;  %4784 = vadd.xlane.f32.xlu0 %v4783_v62  ;;  %v4754_v34 = vmul.f32 %v10858_v23, %v10858_v23  ;;  %6309 = vmatprep.subr.bf16.mxu0 %v4928_v9 }
 0x9c3   :  { %6310 = vmatpush3.bf16.msra.mxu0 %v4928_v9 }
 0x9c4   :  { %v10865_v56 = vsub.f32 %v10708_v15, %v4721_v22  ;;  %v4792_v2 = vsel %vm961_vm3, %v4754_v34, 0.0 }
 0x9c5   :  { %4793 = vadd.xlane.f32.xlu1 %v4792_v2 }
 0x9c6   :  { %v4753_v44 = vmul.f32 %v10865_v56, %v10865_v56 }
 0x9c7   :  { %v4704_v37 = vpop.xlane.xlu1 %4703 }
 0x9c8   :  { %v4724_v30 = vmul.f32 0.03125, %v4704_v37  ;;  %v4789_v60 = vsel %vm961_vm3, %v4753_v44, 0.0 }
 0x9c9   :  { %4790 = vadd.xlane.f32.xlu0 %v4789_v60 }
 0x9ca   :  { %v10872_v53 = vsub.f32 %v10739_v27, %v4724_v30 }
 0x9cc   :  { %v4756_v61 = vmul.f32 %v10872_v53, %v10872_v53 }
 0x9ce   :  { %v4701_v26 = vpop.xlane.xlu0 %4700  ;;  %v4798_v1 = vsel %vm961_vm3, %v4756_v61, 0.0 }
 0x9cf   :  { %v4723_v58 = vmul.f32 0.03125, %v4701_v26  ;;  %4799 = vadd.xlane.f32.xlu1 %v4798_v1 }
 0x9d1   :  { %v10878_v50 = vsub.f32 %v10779_v33, %v4723_v58 }
 0x9d3   :  { %v4755_v12 = vmul.f32 %v10878_v50, %v10878_v50 }
 0x9d4   :  { %v4710_v7 = vpop.xlane.xlu1 %4709 }
 0x9d5   :  { %v4726_v48 = vmul.f32 0.03125, %v4710_v7  ;;  %v4795_v5 = vsel %vm961_vm3, %v4755_v12, 0.0 }
 0x9d6   :  { %4796 = vadd.xlane.f32.xlu0 %v4795_v5 }
 0x9d7   :  { %v10884_v35 = vsub.f32 %v10788_v59, %v4726_v48 }
 0x9d9   :  { %v4758_v28 = vmul.f32 %v10884_v35, %v10884_v35 }
 0x9db   :  { %v4707_v52 = vpop.xlane.xlu0 %4706  ;;  %v4804_v24 = vsel %vm961_vm3, %v4758_v28, 0.0 }
 0x9dc   :  { %v4725_v18 = vmul.f32 0.03125, %v4707_v52  ;;  %4805 = vadd.xlane.f32.xlu1 %v4804_v24  ;;  %v10910_v52 = vld [vmem:[%s11529_s10] ss:$0 sm:$0xff] }
 0x9de   :  { %v10896_v41 = vsub.f32 %v10795_v20, %v4725_v18 }
 0x9e0   :  { %v4757_v11 = vmul.f32 %v10896_v41, %v10896_v41 }
 0x9e2   :  { %v4801_v55 = vsel %vm961_vm3, %v4757_v11, 0.0 }
 0x9e3   :  { %4802 = vadd.xlane.f32.xlu0 %v4801_v55 }
 0xa3e   :  { %v4761_v19 = vpop.xlane.xlu0 %4760  ;;  %v4764_v54 = vpop.xlane.xlu1 %4763 }
 0xa3f   :  { %v4807_v8 = vmul.f32 0.03125, %v4761_v19  ;;  %v4808_v51 = vmul.f32 0.03125, %v4764_v54 }
 0xa41   :  { %v4823_v22 = vadd.f32 1e-05, %v4807_v8  ;;  %v4824_v62 = vadd.f32 1e-05, %v4808_v51 }
 0xa42   :  { %v4770_v2 = vpop.xlane.xlu1 %4769 }
 0xa43   :  { %6973 = vrsqrt.f32 %v4823_v22  ;;  %v4767_v34 = vpop.xlane.xlu0 %4766  ;;  %v4810_v37 = vmul.f32 0.03125, %v4770_v2 }
 0xa44   :  { %6975 = vrsqrt.f32 %v4824_v62  ;;  %v4809_v44 = vmul.f32 0.03125, %v4767_v34 }
 0xa45   :  { %v4826_v60 = vadd.f32 1e-05, %v4810_v37 }
 0xa46   :  { %v4825_v30 = vadd.f32 1e-05, %v4809_v44  ;;  %v4776_v26 = vpop.xlane.xlu1 %4775 }
 0xa47   :  { %v4773_v61 = vpop.xlane.xlu0 %4772  ;;  %v4812_v58 = vmul.f32 0.03125, %v4776_v26 }
 0xa48   :  { %6977 = vrsqrt.f32 %v4825_v30  ;;  %v4811_v1 = vmul.f32 0.03125, %v4773_v61 }
 0xa49   :  { %6979 = vrsqrt.f32 %v4826_v60  ;;  %v4828_v7 = vadd.f32 1e-05, %v4812_v58 }
 0xa4a   :  { %v4827_v12 = vadd.f32 1e-05, %v4811_v1  ;;  %v4782_v5 = vpop.xlane.xlu1 %4781 }
 0xa4b   :  { %v4779_v48 = vpop.xlane.xlu0 %4778  ;;  %v4814_v38 = vmul.f32 0.03125, %v4782_v5 }
 0xa4c   :  { %6981 = vrsqrt.f32 %v4827_v12  ;;  %v4813_v28 = vmul.f32 0.03125, %v4779_v48 }
 0xa4d   :  { %v6974_v43 = vpop.eup %6973  ;;  %6983 = vrsqrt.f32 %v4828_v7  ;;  %v4830_v11 = vadd.f32 1e-05, %v4814_v38 }
 0xa4e   :  { %v6976_v24 = vpop.eup %6975  ;;  %v4855_v31 = vmul.f32 %v6974_v43, %v10800_v46  ;;  %v4829_v18 = vadd.f32 1e-05, %v4813_v28  ;;  %v4788_v9 = vpop.xlane.xlu1 %4787 }
 0xa4f   :  { %v4856_v17 = vmul.f32 %v6976_v24, %v10803_v3  ;;  %v4785_v55 = vpop.xlane.xlu0 %4784  ;;  %v4816_v8 = vmul.f32 0.03125, %v4788_v9 }
 0xa50   :  { %6985 = vrsqrt.f32 %v4829_v18  ;;  %v4815_v19 = vmul.f32 0.03125, %v4785_v55  ;;  %v4877_v54 = vmul.f32 %v10910_v52, %v4855_v31 }
 0xa51   :  { %6987 = vrsqrt.f32 %v4830_v11  ;;  %v4878_v51 = vmul.f32 %v10910_v52, %v4856_v17  ;;  %v4832_v62 = vadd.f32 1e-05, %v4816_v8 }
 0xa52   :  { %v6978_v46 = vpop.eup %6977  ;;  %v4831_v22 = vadd.f32 1e-05, %v4815_v19  ;;  %v4899_v3 = vadd.f32 %v10917_v45, %v4877_v54  ;;  %v4794_v44 = vpop.xlane.xlu1 %4793 }
 0xa53   :  { %v6980_v34 = vpop.eup %6979  ;;  %v4857_v2 = vmul.f32 %v6978_v46, %v10814_v29  ;;  %v4900_v37 = vadd.f32 %v10917_v45, %v4878_v51  ;;  %v4818_v60 = vmul.f32 0.03125, %v4794_v44 }
 0xa54   :  { %v4858_v30 = vmul.f32 %v6980_v34, %v10810_v16  ;;  %6989 = vrsqrt.f32 %v4831_v22 }
 0xa55   :  { %v4879_v61 = vmul.f32 %v10910_v52, %v4857_v2  ;;  %6991 = vrsqrt.f32 %v4832_v62  ;;  %v4919_v1 = vpack.c.bf16 %v4900_v37, %v4899_v3  ;;  %v4834_v48 = vadd.f32 1e-05, %v4818_v60 }
 0xa56   :  { %v4791_v26 = vpop.xlane.xlu0 %4790  ;;  %v6982_v58 = vpop.eup %6981  ;;  %v4880_v12 = vmul.f32 %v10910_v52, %v4858_v30 }
 0xa57   :  { %v4817_v7 = vmul.f32 0.03125, %v4791_v26  ;;  %v6984_v5 = vpop.eup %6983  ;;  %v4901_v29 = vadd.f32 %v10917_v45, %v4879_v61  ;;  %v4859_v28 = vmul.f32 %v6982_v58, %v10826_v14  ;;  %6311 = vmatprep.mubr.msk.bf16.mxu0 %vm961_vm3, %v4919_v1  ;;  %6993 = vrsqrt.f32 %v4834_v48 }
 0xa58   :  { %v4902_v16 = vadd.f32 %v10917_v45, %v4880_v12  ;;  %v4860_v38 = vmul.f32 %v6984_v5, %v10822_v21 }
 0xa59   :  { %v4833_v43 = vadd.f32 1e-05, %v4817_v7  ;;  %v4881_v24 = vmul.f32 %v10910_v52, %v4859_v28 }
 0xa5a   :  { %v6986_v31 = vpop.eup %6985  ;;  %v4920_v18 = vpack.c.bf16 %v4902_v16, %v4901_v29  ;;  %v4882_v11 = vmul.f32 %v10910_v52, %v4860_v38 }
 0xa5b   :  { %6995 = vrsqrt.f32 %v4833_v43  ;;  %v6988_v17 = vpop.eup %6987  ;;  %v4861_v55 = vmul.f32 %v6986_v31, %v10838_v49  ;;  %v4903_v14 = vadd.f32 %v10917_v45, %v4881_v24 }
 0xa5c   :  { %v4800_v9 = vpop.xlane.xlu1 %4799  ;;  %v4862_v19 = vmul.f32 %v6988_v17, %v10834_v0  ;;  %6312 = vmatmul.mubr.msk.bf16.vlgmr.msra.gmra.mrb[88].mxu0 %vm961_vm3, %v4920_v18  ;;  %v4904_v21 = vadd.f32 %v10917_v45, %v4882_v11 }
 0xa5d   :  { %v4820_v8 = vmul.f32 0.03125, %v4800_v9  ;;  %v4883_v54 = vmul.f32 %v10910_v52, %v4861_v55 }
 0xa5e   :  { %v6990_v51 = vpop.eup %6989  ;;  %v4921_v22 = vpack.c.bf16 %v4904_v21, %v4903_v14  ;;  %v4884_v62 = vmul.f32 %v10910_v52, %v4862_v19 }
 0xa5f   :  { %v4836_v46 = vadd.f32 1e-05, %v4820_v8  ;;  %v6992_v3 = vpop.eup %6991  ;;  %v4863_v49 = vmul.f32 %v6990_v51, %v10850_v25  ;;  %v4905_v34 = vadd.f32 %v10917_v45, %v4883_v54 }
 0xa60   :  { %v4864_v2 = vmul.f32 %v6992_v3, %v10846_v57  ;;  %6315 = vmatprep.mubr.msk.bf16.mxu0 %vm961_vm3, %v4921_v22  ;;  %v4906_v0 = vadd.f32 %v10917_v45, %v4884_v62 }
 0xa61   :  { %6997 = vrsqrt.f32 %v4836_v46  ;;  %v4885_v44 = vmul.f32 %v10910_v52, %v4863_v49  ;;  %v6994_v37 = vpop.eup %6993 }
 0xa62   :  { %v4922_v60 = vpack.c.bf16 %v4906_v0, %v4905_v34  ;;  %v4886_v61 = vmul.f32 %v10910_v52, %v4864_v2  ;;  %v4866_v26 = vmul.f32 %v6994_v37, %v10858_v23  ;;  %v5538_v2 = vld [vmem:[%s11531_s14 + $0x8] sm:$0xff] }
 0xa63   :  { %v4797_v30 = vpop.xlane.xlu0 %4796  ;;  %v4907_v25 = vadd.f32 %v10917_v45, %v4885_v44  ;;  %v5541_v44 = vld [vmem:[%s11531_s14 + $0x20] sm:$0xff]  ;;  %v5542_v37 = vld [vmem:[%s11531_s14 + $0x28] sm:$0xff] }
 0xa64   :  { %v4819_v1 = vmul.f32 0.03125, %v4797_v30  ;;  %6316 = vmatmul.mubr.msk.bf16.gmra.mrb[92].mxu0 %vm961_vm3, %v4922_v60  ;;  %v4908_v57 = vadd.f32 %v10917_v45, %v4886_v61  ;;  %v4888_v48 = vmul.f32 %v10910_v52, %v4866_v26  ;;  %v5563_v30 = vpack.c.bf16 %v5542_v37, %v5541_v44  ;;  %v5543_v60 = vld [vmem:[%s11531_s14 + $0x30] sm:$0xff]  ;;  %v5544_v61 = vld [vmem:[%s11531_s14 + $0x38] sm:$0xff] }
 0xa65   :  { %v6996_v58 = vpop.eup %6995  ;;  %v5564_v26 = vpack.c.bf16 %v5544_v61, %v5543_v60 }
 0xa66   :  { %v4865_v12 = vmul.f32 %v6996_v58, %v10865_v56  ;;  %v4835_v7 = vadd.f32 1e-05, %v4819_v1  ;;  %v4923_v5 = vpack.c.bf16 %v4908_v57, %v4907_v25  ;;  %v4910_v28 = vadd.f32 %v10917_v45, %v4888_v48  ;;  %v5545_v1 = vld [vmem:[%s11531_s14 + $0x40] sm:$0xff]  ;;  %v5546_v25 = vld [vmem:[%s11531_s14 + $0x48] sm:$0xff]  ;;  %v5547_v57 = vld [vmem:[%s11531_s14 + $0x50] sm:$0xff] }
 0xa67   :  { %v5565_v58 = vpack.c.bf16 %v5546_v25, %v5545_v1  ;;  %v5549_v48 = vld [vmem:[%s11531_s14 + $0x60] sm:$0xff] }
 0xa68   :  { %6999 = vrsqrt.f32 %v4835_v7  ;;  %v4887_v29 = vmul.f32 %v10910_v52, %v4865_v12  ;;  %6319 = vmatprep.mubr.msk.bf16.mxu0 %vm961_vm3, %v4923_v5  ;;  %v5548_v12 = vld [vmem:[%s11531_s14 + $0x58] sm:$0xff]  ;;  %v5550_v5 = vld [vmem:[%s11531_s14 + $0x68] sm:$0xff] }
 0xa69   :  { %v4806_v23 = vpop.xlane.xlu1 %4805  ;;  %v5566_v7 = vpack.c.bf16 %v5548_v12, %v5547_v57 }
 0xa6a   :  { %v4822_v16 = vmul.f32 0.03125, %v4806_v23  ;;  %v4909_v38 = vadd.f32 %v10917_v45, %v4887_v29  ;;  %v5567_v29 = vpack.c.bf16 %v5550_v5, %v5549_v48  ;;  %v5552_v23 = vld [vmem:[%s11531_s14 + $0x78] sm:$0xff] }
 0xa6b   :  { %v6998_v43 = vpop.eup %6997 }
 0xa6c   :  { %v4838_v24 = vadd.f32 1e-05, %v4822_v16  ;;  %v4924_v31 = vpack.c.bf16 %v4910_v28, %v4909_v38  ;;  %v4868_v56 = vmul.f32 %v6998_v43, %v10872_v53  ;;  %v5551_v28 = vld [vmem:[%s11531_s14 + $0x70] sm:$0xff]  ;;  %v11024_v38 = vld [vmem:[%s11532_s13] ss:$0 sm:$0xff] }
 0xa6d   :  { %v5568_v16 = vpack.c.bf16 %v5552_v23, %v5551_v28 }
 0xa6e   :  { %7001 = vrsqrt.f32 %v4838_v24  ;;  %6320 = vmatmul.mubr.msk.bf16.gmra.mrb[96].mxu0 %vm961_vm3, %v4924_v31  ;;  %v4890_v17 = vmul.f32 %v10910_v52, %v4868_v56 }
 0xa70   :  { %v4803_v18 = vpop.xlane.xlu0 %4802  ;;  %v4912_v8 = vadd.f32 %v10917_v45, %v4890_v17 }
 0xa71   :  { %v4821_v11 = vmul.f32 0.03125, %v4803_v18 }
 0xa72   :  { %v7000_v55 = vpop.eup %6999 }
 0xa73   :  { %v4867_v9 = vmul.f32 %v7000_v55, %v10878_v50  ;;  %v4837_v14 = vadd.f32 1e-05, %v4821_v11 }
 0xa75   :  { %7003 = vrsqrt.f32 %v4837_v14  ;;  %v4889_v19 = vmul.f32 %v10910_v52, %v4867_v9 }
 0xa77   :  { %v4911_v21 = vadd.f32 %v10917_v45, %v4889_v19 }
 0xa78   :  { %v7002_v54 = vpop.eup %7001 }
 0xa79   :  { %v4925_v53 = vpack.c.bf16 %v4912_v8, %v4911_v21  ;;  %v4870_v51 = vmul.f32 %v7002_v54, %v10884_v35  ;;  %v5537_v35 = vld [vmem:[%s11531_s14] sm:$0xff] }
 0xa7a   :  { %v5561_v0 = vpack.c.bf16 %v5538_v2, %v5537_v35 }
 0xa7b   :  { %6323 = vmatprep.mubr.msk.bf16.mxu0 %vm961_vm3, %v4925_v53  ;;  %v4892_v46 = vmul.f32 %v10910_v52, %v4870_v51 }
 0xa7c   :  { %6327 = vmatprep.subr.bf16.mxu1 %v5561_v0 }
 0xa7d   :  { %v4914_v3 = vadd.f32 %v10917_v45, %v4892_v46  ;;  %6328 = vmatpush3.bf16.msra.mxu1 %v5561_v0 }
 0xa7f   :  { %v7004_v22 = vpop.eup %7003 }
 0xa80   :  { %v4869_v62 = vmul.f32 %v7004_v22, %v10896_v41  ;;  %v5539_v41 = vld [vmem:[%s11531_s14 + $0x10] sm:$0xff] }
 0xa82   :  { %v4891_v50 = vmul.f32 %v10910_v52, %v4869_v62  ;;  %v5540_v52 = vld [vmem:[%s11531_s14 + $0x18] sm:$0xff] }
 0xa84   :  { %v4913_v49 = vadd.f32 %v10917_v45, %v4891_v50  ;;  %v5562_v45 = vpack.c.bf16 %v5540_v52, %v5539_v41 }
 0xa86   :  { %v4926_v34 = vpack.c.bf16 %v4914_v3, %v4913_v49  ;;  %6329 = vmatprep.subr.bf16.mxu1 %v5562_v45 }
 0xa87   :  { %6330 = vmatpush3.bf16.msra.mxu1 %v5562_v45 }
 0xa88   :  { %6324 = vmatmul.mubr.msk.bf16.gmra.mrb[100].mxu0 %vm961_vm3, %v4926_v34  ;;  %6331 = vmatprep.subr.bf16.mxu1 %v5563_v30 }
 0xa8b   :  { %6332 = vmatpush3.bf16.msra.mxu1 %v5563_v30 }
 0xa8c   :  { %6333 = vmatprep.subr.bf16.mxu1 %v5564_v26 }
 0xa8f   :  { %6334 = vmatpush3.bf16.msra.mxu1 %v5564_v26 }
 0xa90   :  { %6335 = vmatprep.subr.bf16.mxu1 %v5565_v58 }
 0xa93   :  { %6336 = vmatpush3.bf16.msra.mxu1 %v5565_v58 }
 0xa94   :  { %6337 = vmatprep.subr.bf16.mxu1 %v5566_v7 }
 0xa97   :  { %6338 = vmatpush3.bf16.msra.mxu1 %v5566_v7 }
 0xa98   :  { %6339 = vmatprep.subr.bf16.mxu1 %v5567_v29 }
 0xa9b   :  { %6340 = vmatpush3.bf16.msra.mxu1 %v5567_v29 }
 0xa9c   :  { %6341 = vmatprep.subr.bf16.mxu1 %v5568_v16 }
 0xa9f   :  { %6342 = vmatpush3.bf16.msra.mxu1 %v5568_v16 }
 0xb2f   :  { %v6313_v43 = vpop.f32.mrb[88].mxu0 }
 0xb30   :  { %v11027_v24 = vadd.f32 %v6313_v43, %v11024_v38  ;;  %v4994_v31 = vpop.f32.mrb[89].mxu0 }
 0xb31   :  { %v11030_v56 = vadd.f32 %v11024_v38, %v4994_v31  ;;  %v6314_v18 = vpop.f32.mrb[90].mxu0 }
 0xb32   :  { %v5075_v11 = vmul.f32 0.70710677, %v11027_v24  ;;  %v11034_v17 = vadd.f32 %v6314_v18, %v11024_v38  ;;  %v4997_v55 = vpop.f32.mrb[91].mxu0 }
 0xb33   :  { %v5073_v9 = vmul.f32 0.70710677, %v11030_v56  ;;  %v11038_v14 = vadd.f32 %v11024_v38, %v4997_v55 }
 0xb34   :  { %v11040_v19 = vclamps-f32 %v5075_v11, 3.832507  ;;  %v5076_v8 = vmul.f32 0.70710677, %v11034_v17 }
 0xb35   :  { %v11043_v21 = vclamps-f32 %v5073_v9, 3.832507  ;;  %v5074_v54 = vmul.f32 0.70710677, %v11038_v14 }
 0xb36   :  { %v11048_v53 = vmul.f32 %v11040_v19, %v11040_v19  ;;  %v11050_v51 = vclamps-f32 %v5076_v8, 3.832507 }
 0xb37   :  { %v11054_v46 = vmul.f32 %v11043_v21, %v11043_v21  ;;  %v11056_v22 = vclamps-f32 %v5074_v54, 3.832507  ;;  %v6317_v62 = vpop.f32.mrb[92].mxu0 }
 0xb38   :  { %v5267_v50 = vmul.f32 -1.1791603e-07, %v11048_v53  ;;  %v11061_v3 = vmul.f32 %v11050_v51, %v11050_v51  ;;  %v5010_v49 = vpop.f32.mrb[93].mxu0  ;;  %v5139_v34 = vmul.f32 0.00022905065, %v11048_v53 }
 0xb39   :  { %v5265_v35 = vmul.f32 -1.1791603e-07, %v11054_v46  ;;  %v11067_v2 = vmul.f32 %v11056_v22, %v11056_v22  ;;  %v6318_v0 = vpop.f32.mrb[94].mxu0  ;;  %v5137_v5 = vmul.f32 0.00022905065, %v11054_v46 }
 0xb3a   :  { %v5283_v41 = vadd.f32 2.3547966e-05, %v5267_v50  ;;  %v5140_v45 = vmul.f32 0.00022905065, %v11061_v3  ;;  %v5268_v44 = vmul.f32 -1.1791603e-07, %v11061_v3 }
 0xb3b   :  { %v5281_v52 = vadd.f32 2.3547966e-05, %v5265_v35  ;;  %v11072_v30 = vpop.f32.mrb[95].mxu0  ;;  %v5155_v60 = vadd.f32 0.003408291, %v5139_v34 }
 0xb3c   :  { %v5299_v37 = vmul.f32 %v5283_v41, %v11048_v53  ;;  %v5284_v26 = vadd.f32 2.3547966e-05, %v5268_v44  ;;  %v5266_v1 = vmul.f32 -1.1791603e-07, %v11067_v2  ;;  %v5156_v57 = vadd.f32 0.003408291, %v5140_v45 }
 0xb3d   :  { %v5297_v61 = vmul.f32 %v5281_v52, %v11054_v46  ;;  %v5171_v28 = vmul.f32 %v5155_v60, %v11048_v53  ;;  %v5153_v54 = vadd.f32 0.003408291, %v5137_v5  ;;  %v5138_v44 = vmul.f32 0.00022905065, %v11067_v2 }
 0xb3e   :  { %v5315_v25 = vadd.f32 0.0010179626, %v5299_v37  ;;  %v5300_v12 = vmul.f32 %v5284_v26, %v11061_v3  ;;  %v5282_v7 = vadd.f32 2.3547966e-05, %v5266_v1  ;;  %v5172_v55 = vmul.f32 %v5156_v57, %v11061_v3 }
 0xb3f   :  { %v5313_v58 = vadd.f32 0.0010179626, %v5297_v61  ;;  %v5187_v35 = vadd.f32 0.050955694, %v5171_v28  ;;  %v11097_v26 = vadd.f32 %v6317_v62, %v11024_v38  ;;  %v11103_v57 = vadd.f32 %v11024_v38, %v5010_v49 }
 0xb40   :  { %v5331_v48 = vmul.f32 %v5315_v25, %v11048_v53  ;;  %v5316_v16 = vadd.f32 0.0010179626, %v5300_v12  ;;  %v5298_v43 = vmul.f32 %v5282_v7, %v11067_v2  ;;  %v5188_v60 = vadd.f32 0.050955694, %v5172_v55 }
 0xb41   :  { %v11079_v29 = vpop.f32.mrb[96].mxu0  ;;  %v5329_v23 = vmul.f32 %v5313_v58, %v11054_v46  ;;  %v5169_v25 = vmul.f32 %v5153_v54, %v11054_v46  ;;  %v5203_v12 = vmul.f32 %v5187_v35, %v11048_v53  ;;  %v5154_v5 = vadd.f32 0.003408291, %v5138_v44 }
 0xb42   :  { %v11084_v31 = vpop.f32.mrb[97].mxu0  ;;  %v5347_v18 = vadd.f32 0.01407047, %v5331_v48  ;;  %v5332_v9 = vmul.f32 %v5316_v16, %v11061_v3  ;;  %v5314_v50 = vadd.f32 0.0010179626, %v5298_v43  ;;  %v11107_v28 = vadd.f32 %v6318_v0, %v11024_v38 }
 0xb43   :  { %v5345_v11 = vadd.f32 0.01407047, %v5329_v23  ;;  %v11089_v34 = vpop.f32.mrb[98].mxu0  ;;  %v5204_v62 = vmul.f32 %v5188_v60, %v11061_v3  ;;  %v5079_v43 = vmul.f32 0.70710677, %v11097_v26  ;;  %v5170_v0 = vmul.f32 %v5154_v5, %v11067_v2 }
 0xb44   :  { %v5363_v8 = vmul.f32 %v5347_v18, %v11048_v53  ;;  %v5348_v41 = vadd.f32 0.01407047, %v5332_v9  ;;  %v11091_v52 = vpop.f32.mrb[99].mxu0  ;;  %v5330_v58 = vmul.f32 %v5314_v50, %v11067_v2  ;;  %v5077_v55 = vmul.f32 0.70710677, %v11103_v57 }
 0xb45   :  { %v5361_v37 = vmul.f32 %v5345_v11, %v11054_v46  ;;  %v5185_v11 = vadd.f32 0.050955694, %v5169_v25  ;;  %v5219_v9 = vadd.f32 0.18520832, %v5203_v12  ;;  %v11114_v54 = vclamps-f32 %v5079_v43, 3.832507 }
 0xb46   :  { %v5379_v45 = vadd.f32 0.11098505, %v5363_v8  ;;  %v5364_v61 = vmul.f32 %v5348_v41, %v11061_v3  ;;  %v5346_v49 = vadd.f32 0.01407047, %v5330_v58  ;;  %v11117_v35 = vclamps-f32 %v5077_v55, 3.832507 }
 0xb47   :  { %v5377_v23 = vadd.f32 0.11098505, %v5361_v37  ;;  %v5080_v41 = vmul.f32 0.70710677, %v11107_v28  ;;  %v5220_v44 = vadd.f32 0.18520832, %v5204_v62  ;;  %v11124_v60 = vmul.f32 %v11114_v54, %v11114_v54 }
 0xb48   :  { %v5395_v1 = vmul.f32 %v5379_v45, %v11048_v53  ;;  %v5380_v7 = vadd.f32 0.11098505, %v5364_v61  ;;  %v5362_v61 = vmul.f32 %v5346_v49, %v11067_v2  ;;  %v5235_v58 = vmul.f32 %v5219_v9, %v11048_v53 }
 0xb49   :  { %v5393_v45 = vmul.f32 %v5377_v23, %v11054_v46  ;;  %v11131_v25 = vclamps-f32 %v5080_v41, 3.832507  ;;  %v5201_v12 = vmul.f32 %v5185_v11, %v11054_v46  ;;  %v5271_v5 = vmul.f32 -1.1791603e-07, %v11124_v60 }
 0xb4a   :  { %v5411_v48 = vadd.f32 0.49746925, %v5395_v1  ;;  %v5396_v16 = vmul.f32 %v5380_v7, %v11061_v3  ;;  %v11129_v1 = vmul.f32 %v11117_v35, %v11117_v35  ;;  %v5236_v43 = vmul.f32 %v5220_v44, %v11061_v3 }
 0xb4b   :  { %v11139_v62 = vmul.f32 %v11131_v25, %v11131_v25  ;;  %v5287_v49 = vadd.f32 2.3547966e-05, %v5271_v5  ;;  %v5251_v11 = vadd.f32 1.1283791, %v5235_v58  ;;  %v11150_v44 = vadd.f32 %v11024_v38, %v11072_v30 }
 0xb4c   :  { %v5427_v18 = vmul.f32 %v5411_v48, %v11048_v53  ;;  %v5412_v8 = vadd.f32 0.49746925, %v5396_v16  ;;  %v5186_v48 = vadd.f32 0.050955694, %v5170_v0  ;;  %v5269_v23 = vmul.f32 -1.1791603e-07, %v11129_v1 }
 0xb4d   :  { %v5409_v16 = vadd.f32 0.49746925, %v5393_v45  ;;  %v5059_v53 = vmul.f32 0.5, %v11027_v24  ;;  %v5272_v9 = vmul.f32 -1.1791603e-07, %v11139_v62  ;;  %v5303_v0 = vmul.f32 %v5287_v49, %v11124_v60 }
 0xb4e   :  { %v5443_v50 = vadd.f32 1.0, %v5427_v18  ;;  %v5428_v37 = vmul.f32 %v5412_v8, %v11061_v3  ;;  %v5378_v18 = vadd.f32 0.11098505, %v5362_v61  ;;  %v5285_v55 = vadd.f32 2.3547966e-05, %v5269_v23 }
 0xb4f   :  { %v5217_v8 = vadd.f32 0.18520832, %v5201_v12  ;;  %v5143_v45 = vmul.f32 0.00022905065, %v11124_v60  ;;  %v5288_v3 = vadd.f32 2.3547966e-05, %v5272_v9  ;;  %v5425_v24 = vmul.f32 %v5409_v16, %v11054_v46 }
 0xb50   :  { %7005 = vrcp.f32 %v5443_v50  ;;  %v5444_v7 = vadd.f32 1.0, %v5428_v37  ;;  %v5202_v50 = vmul.f32 %v5186_v48, %v11067_v2  ;;  %v5301_v41 = vmul.f32 %v5285_v55, %v11129_v1 }
 0xb51   :  { %v5252_v37 = vadd.f32 1.1283791, %v5236_v43  ;;  %v5394_v61 = vmul.f32 %v5378_v18, %v11067_v2  ;;  %v5319_v58 = vadd.f32 0.0010179626, %v5303_v0  ;;  %v11156_v48 = vmul.f32 0.5, %v11030_v56 }
 0xb52   :  { %7007 = vrcp.f32 %v5444_v7  ;;  %v5317_v12 = vadd.f32 0.0010179626, %v5301_v41  ;;  %v5459_v7 = vmul.f32 %v11040_v19, %v5251_v11  ;;  %v5141_v5 = vmul.f32 0.00022905065, %v11129_v1 }
 0xb53   :  { %v5304_v23 = vmul.f32 %v5288_v3, %v11139_v62  ;;  %v5233_v49 = vmul.f32 %v5217_v8, %v11054_v46  ;;  %v5218_v30 = vadd.f32 0.18520832, %v5202_v50  ;;  %v5335_v55 = vmul.f32 %v5319_v58, %v11124_v60 }
 0xb54   :  { %v5333_v16 = vmul.f32 %v5317_v12, %v11129_v1  ;;  %v5159_v0 = vadd.f32 0.003408291, %v5143_v45  ;;  %v5078_v56 = vmul.f32 0.70710677, %v11150_v44  ;;  %v5441_v11 = vadd.f32 1.0, %v5425_v24 }
 0xb55   :  { %v5320_v19 = vadd.f32 0.0010179626, %v5304_v23  ;;  %v5460_v41 = vmul.f32 %v11050_v51, %v5252_v37  ;;  %v5410_v27 = vadd.f32 0.49746925, %v5394_v61  ;;  %v5351_v3 = vadd.f32 0.01407047, %v5335_v55 }
 0xb56   :  { %v5060_v46 = vmul.f32 0.5, %v11034_v17  ;;  %v5157_v8 = vadd.f32 0.003408291, %v5141_v5  ;;  %v5349_v50 = vadd.f32 0.01407047, %v5333_v16  ;;  %v11175_v24 = vmul.f32 0.5, %v11038_v14 }
 0xb57   :  { %v5336_v45 = vmul.f32 %v5320_v19, %v11139_v62  ;;  %v5234_v51 = vmul.f32 %v5218_v30, %v11067_v2  ;;  %v5175_v37 = vmul.f32 %v5159_v0, %v11124_v60  ;;  %v11179_v17 = vclamps-f32 %v5078_v56, 3.832507 }
 0xb58   :  { %v5249_v5 = vadd.f32 1.1283791, %v5233_v49  ;;  %7009 = vrcp.f32 %v5441_v11  ;;  %v5426_v55 = vmul.f32 %v5410_v27, %v11067_v2  ;;  %v11188_v14 = vadd.f32 %v11079_v29, %v11024_v38 }
 0xb59   :  { %v5173_v19 = vmul.f32 %v5157_v8, %v11129_v1  ;;  %v5352_v49 = vadd.f32 0.01407047, %v5336_v45  ;;  %v5250_v56 = vadd.f32 1.1283791, %v5234_v51  ;;  %v11197_v11 = vmul.f32 %v11179_v17, %v11179_v17 }
 0xb5a   :  { %v7006_v43 = vpop.eup %7005  ;;  %v11201_v27 = vadd.f32 %v11024_v38, %v11084_v31  ;;  %v11206_v29 = vmul.f32 0.5, %v11097_v26  ;;  %v5083_v45 = vmul.f32 0.70710677, %v11188_v14  ;;  %v11250_v39 = vmul.f32 0.5, %v11150_v44 }
 0xb5b   :  { %v11163_v18 = vpop.f32.mrb[100].mxu0  ;;  %v5491_v9 = vmul.f32 %v7006_v43, %v5459_v7  ;;  %v5367_v7 = vmul.f32 %v5351_v3, %v11124_v60  ;;  %v5144_v43 = vmul.f32 0.00022905065, %v11139_v62  ;;  %v5142_v8 = vmul.f32 0.00022905065, %v11197_v11 }
 0xb5c   :  { %v7008_v59 = vpop.eup %7007  ;;  %v11168_v58 = vpop.f32.mrb[101].mxu0  ;;  %v5189_v31 = vadd.f32 0.050955694, %v5173_v19 }
 0xb5d   :  { %v5507_v12 = vadd.f32 1.0, %v5491_v9  ;;  %v5492_v33 = vmul.f32 %v7008_v59, %v5460_v41  ;;  %v11172_v23 = vpop.f32.mrb[102].mxu0  ;;  %v5383_v16 = vadd.f32 0.11098505, %v5367_v7  ;;  %v5365_v9 = vmul.f32 %v5349_v50, %v11129_v1 }
 0xb5e   :  { %v11181_v61 = vpop.f32.mrb[103].mxu0  ;;  %v5160_v41 = vadd.f32 0.003408291, %v5144_v43  ;;  %v5270_v50 = vmul.f32 -1.1791603e-07, %v11197_v11  ;;  %v5368_v7 = vmul.f32 %v5352_v49, %v11139_v62 }
 0xb5f   :  { %v5508_v59 = vadd.f32 1.0, %v5492_v33  ;;  %v11190_v30 = vmul.f32 %v5507_v12, %v5059_v53  ;;  %v5191_v33 = vadd.f32 0.050955694, %v5175_v37  ;;  %v11209_v53 = vmul.f32 0.5, %v11103_v57 }
 0xb60   :  { %v5399_v3 = vmul.f32 %v5383_v16, %v11124_v60  ;;  %v5442_v12 = vadd.f32 1.0, %v5426_v55  ;;  %v5158_v51 = vadd.f32 0.003408291, %v5142_v8  ;;  %v5286_v37 = vadd.f32 2.3547966e-05, %v5270_v50 }
 0xb61   :  { %v11192_v0 = vmul.f32 %v5508_v59, %v5060_v46  ;;  %v5381_v46 = vadd.f32 0.11098505, %v5365_v9  ;;  %v5207_v26 = vmul.f32 %v5191_v33, %v11124_v60  ;;  %v5081_v57 = vmul.f32 0.70710677, %v11201_v27 }
 0xb62   :  { %v11219_v59 = vmul.f32 0.5, %v11107_v28  ;;  %v5176_v43 = vmul.f32 %v5160_v41, %v11139_v62  ;;  %v11222_v16 = vclamps-f32 %v5083_v45, 3.832507  ;;  %v11226_v55 = vadd.f32 %v11089_v34, %v11024_v38  ;;  %v7010_v8 = vpop.eup %7009 }
 0xb63   :  { %v5415_v9 = vadd.f32 0.49746925, %v5399_v3  ;;  %v5397_v19 = vmul.f32 %v5381_v46, %v11129_v1  ;;  %v5302_v49 = vmul.f32 %v5286_v37, %v11197_v11  ;;  %v11230_v33 = vclamps-f32 %v5081_v57, 3.832507 }
 0xb64   :  { %7011 = vrcp.f32 %v5442_v12  ;;  %v5205_v28 = vmul.f32 %v5189_v31, %v11129_v1  ;;  %v5384_v50 = vadd.f32 0.11098505, %v5368_v7  ;;  %v11235_v41 = vmul.f32 %v11222_v16, %v11222_v16 }
 0xb65   :  { %v5223_v45 = vadd.f32 0.18520832, %v5207_v26  ;;  %v5174_v34 = vmul.f32 %v5158_v51, %v11197_v11  ;;  %v5318_v2 = vadd.f32 0.0010179626, %v5302_v49  ;;  %v11240_v3 = vmul.f32 %v11230_v33, %v11230_v33 }
 0xb66   :  { %v5457_v46 = vmul.f32 %v11043_v21, %v5249_v5  ;;  %v5192_v37 = vadd.f32 0.050955694, %v5176_v43  ;;  %v5275_v12 = vmul.f32 -1.1791603e-07, %v11235_v41  ;;  %v5084_v31 = vmul.f32 0.70710677, %v11226_v55 }
 0xb67   :  { %v5431_v7 = vmul.f32 %v5415_v9, %v11124_v60  ;;  %v5413_v57 = vadd.f32 0.49746925, %v5397_v19  ;;  %v5334_v20 = vmul.f32 %v5318_v2, %v11197_v11  ;;  %v5273_v26 = vmul.f32 -1.1791603e-07, %v11240_v3 }
 0xb68   :  { %v5489_v51 = vmul.f32 %v7010_v8, %v5457_v46  ;;  %v5400_v49 = vmul.f32 %v5384_v50, %v11139_v62  ;;  %v5291_v36 = vadd.f32 2.3547966e-05, %v5275_v12  ;;  %v5458_v21 = vmul.f32 %v11056_v22, %v5250_v56 }
 0xb69   :  { %v5221_v5 = vadd.f32 0.18520832, %v5205_v28  ;;  %v5190_v43 = vadd.f32 0.050955694, %v5174_v34  ;;  %v5350_v63 = vadd.f32 0.01407047, %v5334_v20  ;;  %v5239_v15 = vmul.f32 %v5223_v45, %v11124_v60 }
 0xb6a   :  { %v5307_v9 = vmul.f32 %v5291_v36, %v11235_v41  ;;  %v5289_v19 = vadd.f32 2.3547966e-05, %v5273_v26  ;;  %v11255_v2 = vclamps-f32 %v5084_v31, 3.832507  ;;  %v5447_v40 = vadd.f32 1.0, %v5431_v7 }
 0xb6b   :  { %v5429_v8 = vmul.f32 %v5413_v57, %v11129_v1  ;;  %v5208_v50 = vmul.f32 %v5192_v37, %v11139_v62  ;;  %v5366_v44 = vmul.f32 %v5350_v63, %v11197_v11  ;;  %v5505_v46 = vadd.f32 1.0, %v5489_v51 }
 0xb6c   :  { %v5416_v12 = vadd.f32 0.49746925, %v5400_v49  ;;  %v5323_v22 = vadd.f32 0.0010179626, %v5307_v9  ;;  %v5305_v56 = vmul.f32 %v5289_v19, %v11240_v3  ;;  %v5237_v20 = vmul.f32 %v5221_v5, %v11129_v1 }
 0xb6d   :  { %v5206_v60 = vmul.f32 %v5190_v43, %v11197_v11  ;;  %v5382_v36 = vadd.f32 0.11098505, %v5366_v44  ;;  %v5147_v28 = vmul.f32 0.00022905065, %v11235_v41  ;;  %v5255_v34 = vadd.f32 1.1283791, %v5239_v15 }
 0xb6e   :  { %v7012_v45 = vpop.eup %7011  ;;  %v5339_v31 = vmul.f32 %v5323_v22, %v11235_v41  ;;  %v5321_v7 = vadd.f32 0.0010179626, %v5305_v56  ;;  %v11267_v63 = vmul.f32 %v11255_v2, %v11255_v2  ;;  %7013 = vrcp.f32 %v5447_v40 }
 0xb6f   :  { %v5445_v37 = vadd.f32 1.0, %v5429_v8  ;;  %v5224_v57 = vadd.f32 0.18520832, %v5208_v50  ;;  %v5398_v26 = vmul.f32 %v5382_v36, %v11197_v11  ;;  %v5432_v1 = vmul.f32 %v5416_v12, %v11139_v62 }
 0xb70   :  { %v5355_v51 = vadd.f32 0.01407047, %v5339_v31  ;;  %v5145_v49 = vmul.f32 0.00022905065, %v11240_v3  ;;  %v5337_v5 = vmul.f32 %v5321_v7, %v11240_v3  ;;  %v11274_v15 = vmul.f32 %v5505_v46, %v11156_v48 }
 0xb71   :  { %v5222_v43 = vadd.f32 0.18520832, %v5206_v60  ;;  %v5414_v9 = vadd.f32 0.49746925, %v5398_v26  ;;  %v5163_v19 = vadd.f32 0.003408291, %v5147_v28  ;;  %v5490_v44 = vmul.f32 %v7012_v45, %v5458_v21 }
 0xb72   :  { %v5253_v22 = vadd.f32 1.1283791, %v5237_v20  ;;  %v5371_v40 = vmul.f32 %v5355_v51, %v11235_v41  ;;  %v5276_v8 = vmul.f32 -1.1791603e-07, %v11267_v63  ;;  %v5240_v50 = vmul.f32 %v5224_v57, %v11139_v62 }
 0xb73   :  { %v5430_v12 = vmul.f32 %v5414_v9, %v11197_v11  ;;  %v5353_v56 = vadd.f32 0.01407047, %v5337_v5  ;;  %v5148_v36 = vmul.f32 0.00022905065, %v11267_v63  ;;  %7015 = vrcp.f32 %v5445_v37 }
 0xb74   :  { %v5448_v31 = vadd.f32 1.0, %v5432_v1  ;;  %v5387_v48 = vadd.f32 0.11098505, %v5371_v40  ;;  %v5161_v46 = vadd.f32 0.003408291, %v5145_v49  ;;  %v5238_v60 = vmul.f32 %v5222_v43, %v11197_v11 }
 0xb75   :  { %v5446_v28 = vadd.f32 1.0, %v5430_v12  ;;  %v5179_v21 = vmul.f32 %v5163_v19, %v11235_v41  ;;  %v11285_v20 = vadd.f32 %v11024_v38, %v11091_v52  ;;  %v5506_v45 = vadd.f32 1.0, %v5490_v44 }
 0xb76   :  { %v5403_v62 = vmul.f32 %v5387_v48, %v11235_v41  ;;  %v5292_v7 = vadd.f32 2.3547966e-05, %v5276_v8  ;;  %v11290_v57 = vadd.f32 %v11163_v18, %v11024_v38  ;;  %v5463_v37 = vmul.f32 %v11114_v54, %v5255_v34 }
 0xb77   :  { %7017 = vrcp.f32 %v5446_v28  ;;  %v5369_v11 = vmul.f32 %v5353_v56, %v11240_v3  ;;  %v5164_v26 = vadd.f32 0.003408291, %v5148_v36  ;;  %v5256_v1 = vadd.f32 1.1283791, %v5240_v50 }
 0xb78   :  { %7019 = vrcp.f32 %v5448_v31  ;;  %v5177_v51 = vmul.f32 %v5161_v46, %v11240_v3  ;;  %v5308_v52 = vmul.f32 %v5292_v7, %v11267_v63  ;;  %v7014_v49 = vpop.eup %7013  ;;  %v5461_v5 = vmul.f32 %v11117_v35, %v5253_v22 }
 0xb79   :  { %v5254_v43 = vadd.f32 1.1283791, %v5238_v60  ;;  %v5195_v9 = vadd.f32 0.050955694, %v5179_v21  ;;  %v5082_v18 = vmul.f32 0.70710677, %v11285_v20  ;;  %v5522_v19 = vmul.f32 %v5506_v45, %v11175_v24 }
 0xb7a   :  { %v5419_v54 = vadd.f32 0.49746925, %v5403_v62  ;;  %v5324_v34 = vadd.f32 0.0010179626, %v5308_v52  ;;  %v5087_v44 = vmul.f32 0.70710677, %v11290_v57  ;;  %v5180_v8 = vmul.f32 %v5164_v26, %v11267_v63 }
 0xb7b   :  { %v5385_v40 = vadd.f32 0.11098505, %v5369_v11  ;;  %v11301_v50 = vclamps-f32 %v5082_v18, 3.832507  ;;  %v11305_v12 = vadd.f32 %v11024_v38, %v11168_v58  ;;  %v5464_v35 = vmul.f32 %v11131_v25, %v5256_v1 }
 0xb7c   :  { %v5193_v22 = vadd.f32 0.050955694, %v5177_v51  ;;  %v5340_v56 = vmul.f32 %v5324_v34, %v11267_v63  ;;  %v11309_v36 = vclamps-f32 %v5087_v44, 3.832507  ;;  %v5495_v24 = vmul.f32 %v7014_v49, %v5463_v37 }
 0xb7d   :  { %v5211_v31 = vmul.f32 %v5195_v9, %v11235_v41  ;;  %v11314_v48 = vmul.f32 %v11301_v50, %v11301_v50  ;;  %v5085_v46 = vmul.f32 0.70710677, %v11305_v12  ;;  %v7016_v60 = vpop.eup %7015  ;;  %v5462_v58 = vmul.f32 %v11179_v17, %v5254_v43 }
 0xb7e   :  { %v5435_v28 = vmul.f32 %v5419_v54, %v11235_v41  ;;  %v5356_v25 = vadd.f32 0.01407047, %v5340_v56  ;;  %v11321_v21 = vmul.f32 %v11309_v36, %v11309_v36  ;;  %v5401_v45 = vmul.f32 %v5385_v40, %v11240_v3 }
 0xb7f   :  { %v5196_v62 = vadd.f32 0.050955694, %v5180_v8  ;;  %v5274_v7 = vmul.f32 -1.1791603e-07, %v11314_v48  ;;  %v11325_v37 = vclamps-f32 %v5085_v46, 3.832507  ;;  %v5209_v11 = vmul.f32 %v5193_v22, %v11240_v3 }
 0xb80   :  { %v5372_v26 = vmul.f32 %v5356_v25, %v11267_v63  ;;  %v5146_v17 = vmul.f32 0.00022905065, %v11314_v48  ;;  %v5279_v1 = vmul.f32 -1.1791603e-07, %v11321_v21  ;;  %v5493_v52 = vmul.f32 %v7016_v60, %v5461_v5 }
 0xb81   :  { %v7018_v51 = vpop.eup %7017  ;;  %v5227_v49 = vadd.f32 0.18520832, %v5211_v31  ;;  %v5290_v43 = vadd.f32 2.3547966e-05, %v5274_v7  ;;  %v11333_v9 = vmul.f32 %v11325_v37, %v11325_v37  ;;  %v5451_v34 = vadd.f32 1.0, %v5435_v28 }
 0xb82   :  { %v7020_v18 = vpop.eup %7019  ;;  %v5494_v54 = vmul.f32 %v7018_v51, %v5462_v58  ;;  %v5388_v44 = vadd.f32 0.11098505, %v5372_v26  ;;  %v5295_v40 = vadd.f32 2.3547966e-05, %v5279_v1  ;;  %v5417_v8 = vadd.f32 0.49746925, %v5401_v45 }
 0xb83   :  { %v5212_v22 = vmul.f32 %v5196_v62, %v11267_v63  ;;  %v5306_v56 = vmul.f32 %v5290_v43, %v11314_v48  ;;  %v5277_v46 = vmul.f32 -1.1791603e-07, %v11333_v9  ;;  %v5511_v25 = vadd.f32 1.0, %v5495_v24 }
 0xb84   :  { %v5404_v5 = vmul.f32 %v5388_v44, %v11267_v63  ;;  %v5162_v31 = vadd.f32 0.003408291, %v5146_v17  ;;  %v5311_v60 = vmul.f32 %v5295_v40, %v11321_v21  ;;  %v5509_v7 = vadd.f32 1.0, %v5493_v52 }
 0xb85   :  { %v5496_v42 = vmul.f32 %v7020_v18, %v5464_v35  ;;  %v5322_v13 = vadd.f32 0.0010179626, %v5306_v56  ;;  %v5553_v58 = vpack.c.bf16 %v5522_v19, %v11274_v15  ;;  %v5510_v28 = vadd.f32 1.0, %v5494_v54 }
 0xb86   :  { %7021 = vrcp.f32 %v5451_v34  ;;  %v5420_v45 = vadd.f32 0.49746925, %v5404_v5  ;;  %v5327_v26 = vadd.f32 0.0010179626, %v5311_v60  ;;  %v5433_v62 = vmul.f32 %v5417_v8, %v11240_v3 }
 0xb87   :  { %v5228_v1 = vadd.f32 0.18520832, %v5212_v22  ;;  %v5338_v51 = vmul.f32 %v5322_v13, %v11314_v48  ;;  %v5293_v24 = vadd.f32 2.3547966e-05, %v5277_v46  ;;  %6343 = vmatprep.mubr.bf16.mxu1 %v5553_v58  ;;  %v5178_v43 = vmul.f32 %v5162_v31, %v11314_v48 }
 0xb88   :  { %v5436_v17 = vmul.f32 %v5420_v45, %v11267_v63  ;;  %v5343_v35 = vmul.f32 %v5327_v26, %v11321_v21  ;;  %v11348_v15 = vadd.f32 %v11172_v23, %v11024_v38  ;;  %v12170_v19 = vpack.c.bf16 %v11192_v0, %v11190_v30 }
 0xb89   :  { %v5525_v52 = vmul.f32 %v5509_v7, %v11209_v53  ;;  %v5243_v13 = vmul.f32 %v5227_v49, %v11235_v41  ;;  %v5225_v18 = vadd.f32 0.18520832, %v5209_v11  ;;  %v5354_v54 = vadd.f32 0.01407047, %v5338_v51 }
 0xb8a   :  { %6344 = vmatmul.mubr.bf16.vlgmr.msra.gmra.mrb[72].mxu1 %v12170_v19  ;;  %v5512_v34 = vadd.f32 1.0, %v5496_v42  ;;  %v5526_v44 = vmul.f32 %v5510_v28, %v11250_v39  ;;  %v5452_v40 = vadd.f32 1.0, %v5436_v17  ;;  %v5359_v8 = vadd.f32 0.01407047, %v5343_v35 }
 0xb8b   :  { %v5449_v22 = vadd.f32 1.0, %v5433_v62  ;;  %v5244_v56 = vmul.f32 %v5228_v1, %v11267_v63  ;;  %v5370_v23 = vmul.f32 %v5354_v54, %v11314_v48  ;;  %v5309_v46 = vmul.f32 %v5293_v24, %v11333_v9 }
 0xb8c   :  { %7023 = vrcp.f32 %v5452_v40  ;;  %v5194_v30 = vadd.f32 0.050955694, %v5178_v43  ;;  %v5375_v0 = vmul.f32 %v5359_v8, %v11321_v21  ;;  %v5088_v53 = vmul.f32 0.70710677, %v11348_v15 }
 0xb8d   :  { %v5067_v41 = vmul.f32 0.5, %v11188_v14  ;;  %v5259_v42 = vadd.f32 1.1283791, %v5243_v13  ;;  %v5386_v11 = vadd.f32 0.11098505, %v5370_v23  ;;  %v11364_v39 = vadd.f32 %v11024_v38, %v11181_v61 }
 0xb8e   :  { %v5527_v63 = vmul.f32 %v5511_v25, %v11206_v29  ;;  %v5528_v49 = vmul.f32 %v5512_v34, %v11219_v59  ;;  %v5151_v5 = vmul.f32 0.00022905065, %v11321_v21  ;;  %v5555_v31 = vpack.c.bf16 %v5526_v44, %v5525_v52 }
 0xb8f   :  { %v5241_v60 = vmul.f32 %v5225_v18, %v11240_v3  ;;  %7025 = vrcp.f32 %v5449_v22  ;;  %v5402_v7 = vmul.f32 %v5386_v11, %v11314_v48  ;;  %v5325_v58 = vadd.f32 0.0010179626, %v5309_v46 }
 0xb90   :  { %v7022_v14 = vpop.eup %7021  ;;  %v5260_v28 = vadd.f32 1.1283791, %v5244_v56  ;;  %v5210_v45 = vmul.f32 %v5194_v30, %v11314_v48  ;;  %v5391_v26 = vadd.f32 0.11098505, %v5375_v0  ;;  %v11372_v38 = vclamps-f32 %v5088_v53, 3.832507  ;;  %6347 = vmatprep.mubr.bf16.mxu1 %v5555_v31 }
 0xb91   :  { %v5467_v61 = vmul.f32 %v11222_v16, %v5259_v42  ;;  %v5418_v29 = vadd.f32 0.49746925, %v5402_v7  ;;  %v5341_v59 = vmul.f32 %v5325_v58, %v11333_v9  ;;  %v5086_v25 = vmul.f32 0.70710677, %v11364_v39 }
 0xb92   :  { %v5167_v3 = vadd.f32 0.003408291, %v5151_v5  ;;  %v5149_v62 = vmul.f32 0.00022905065, %v11333_v9  ;;  %v11380_v1 = vmul.f32 %v11372_v38, %v11372_v38  ;;  %v5556_v51 = vpack.c.bf16 %v5528_v49, %v5527_v63 }
 0xb93   :  { %v5499_v24 = vmul.f32 %v7022_v14, %v5467_v61  ;;  %v5434_v17 = vmul.f32 %v5418_v29, %v11314_v48  ;;  %v5357_v43 = vadd.f32 0.01407047, %v5341_v59  ;;  %v11383_v35 = vclamps-f32 %v5086_v25, 3.832507 }
 0xb94   :  { %v5468_v16 = vmul.f32 %v11255_v2, %v5260_v28  ;;  %v5226_v19 = vadd.f32 0.18520832, %v5210_v45  ;;  %v5407_v52 = vmul.f32 %v5391_v26, %v11321_v21  ;;  %v5280_v13 = vmul.f32 -1.1791603e-07, %v11380_v1  ;;  %6348 = vmatmul.mubr.bf16.gmra.mrb[76].mxu1 %v5556_v51 }
 0xb95   :  { %v5450_v18 = vadd.f32 1.0, %v5434_v17  ;;  %v5373_v54 = vmul.f32 %v5357_v43, %v11333_v9  ;;  %v5152_v34 = vmul.f32 0.00022905065, %v11380_v1  ;;  %v11392_v44 = vmul.f32 %v11383_v35, %v11383_v35 }
 0xb96   :  { %v7024_v40 = vpop.eup %7023  ;;  %v5257_v8 = vadd.f32 1.1283791, %v5241_v60  ;;  %v5183_v22 = vmul.f32 %v5167_v3, %v11321_v21  ;;  %v5165_v2 = vadd.f32 0.003408291, %v5149_v62  ;;  %v5296_v56 = vadd.f32 2.3547966e-05, %v5280_v13 }
 0xb97   :  { %v5515_v23 = vadd.f32 1.0, %v5499_v24  ;;  %v5500_v46 = vmul.f32 %v7024_v40, %v5468_v16  ;;  %7027 = vrcp.f32 %v5450_v18  ;;  %v5389_v30 = vadd.f32 0.11098505, %v5373_v54 }
 0xb98   :  { %v5242_v0 = vmul.f32 %v5226_v19, %v11314_v48  ;;  %v5423_v53 = vadd.f32 0.49746925, %v5407_v52  ;;  %v5312_v42 = vmul.f32 %v5296_v56, %v11380_v1  ;;  %v5278_v11 = vmul.f32 -1.1791603e-07, %v11392_v44 }
 0xb99   :  { %v7026_v63 = vpop.eup %7025  ;;  %v5068_v49 = vmul.f32 0.5, %v11226_v55  ;;  %v5516_v5 = vadd.f32 1.0, %v5500_v46  ;;  %v5168_v31 = vadd.f32 0.003408291, %v5152_v34  ;;  %v5150_v60 = vmul.f32 0.00022905065, %v11392_v44 }
 0xb9a   :  { %v5465_v7 = vmul.f32 %v11230_v33, %v5257_v8  ;;  %v5405_v58 = vmul.f32 %v5389_v30, %v11333_v9  ;;  %v5328_v14 = vadd.f32 0.0010179626, %v5312_v42  ;;  %v5294_v28 = vadd.f32 2.3547966e-05, %v5278_v11 }
 0xb9b   :  { %v5531_v45 = vmul.f32 %v5515_v23, %v5067_v41  ;;  %v5532_v48 = vmul.f32 %v5516_v5, %v5068_v49  ;;  %v5199_v26 = vadd.f32 0.050955694, %v5183_v22  ;;  %v5181_v61 = vmul.f32 %v5165_v2, %v11333_v9 }
 0xb9c   :  { %v5497_v29 = vmul.f32 %v7026_v63, %v5465_v7  ;;  %v5258_v59 = vadd.f32 1.1283791, %v5242_v0  ;;  %v5344_v25 = vmul.f32 %v5328_v14, %v11380_v1  ;;  %v5310_v55 = vmul.f32 %v5294_v28, %v11392_v44 }
 0xb9d   :  { %v5439_v3 = vmul.f32 %v5423_v53, %v11321_v21  ;;  %v5184_v62 = vmul.f32 %v5168_v31, %v11380_v1  ;;  %v5166_v33 = vadd.f32 0.003408291, %v5150_v60  ;;  %v5558_v51 = vpack.c.bf16 %v5532_v48, %v5531_v45 }
 0xb9e   :  { %v5421_v24 = vadd.f32 0.49746925, %v5405_v58  ;;  %v5360_v17 = vadd.f32 0.01407047, %v5344_v25  ;;  %v5326_v43 = vadd.f32 0.0010179626, %v5310_v55  ;;  %v5215_v41 = vmul.f32 %v5199_v26, %v11321_v21 }
 0xb9f   :  { %v5466_v16 = vmul.f32 %v11301_v50, %v5258_v59  ;;  %v5197_v19 = vadd.f32 0.050955694, %v5181_v61  ;;  %v5513_v54 = vadd.f32 1.0, %v5497_v29  ;;  %v5455_v34 = vadd.f32 1.0, %v5439_v3 }
 0xba0   :  { %v5376_v52 = vmul.f32 %v5360_v17, %v11380_v1  ;;  %v5342_v13 = vmul.f32 %v5326_v43, %v11392_v44  ;;  %v5200_v40 = vadd.f32 0.050955694, %v5184_v62  ;;  %v5182_v8 = vmul.f32 %v5166_v33, %v11392_v44 }
 0xba1   :  { %v7028_v18 = vpop.eup %7027  ;;  %v5437_v2 = vmul.f32 %v5421_v24, %v11333_v9  ;;  %v5065_v46 = vmul.f32 0.5, %v11201_v27  ;;  %v5066_v50 = vmul.f32 0.5, %v11285_v20  ;;  %v5231_v30 = vadd.f32 0.18520832, %v5215_v41 }
 0xba2   :  { %v5498_v22 = vmul.f32 %v7028_v18, %v5466_v16  ;;  %v5392_v56 = vadd.f32 0.11098505, %v5376_v52  ;;  %v5358_v23 = vadd.f32 0.01407047, %v5342_v13  ;;  %v5213_v53 = vmul.f32 %v5197_v19, %v11333_v9 }
 0xba3   :  { %v5529_v63 = vmul.f32 %v5513_v54, %v5065_v46  ;;  %7029 = vrcp.f32 %v5455_v34  ;;  %v5216_v49 = vmul.f32 %v5200_v40, %v11380_v1  ;;  %v5198_v5 = vadd.f32 0.050955694, %v5182_v8 }
 0xba4   :  { %v5514_v0 = vadd.f32 1.0, %v5498_v22  ;;  %v5408_v42 = vmul.f32 %v5392_v56, %v11380_v1  ;;  %v5374_v11 = vmul.f32 %v5358_v23, %v11392_v44  ;;  %v5453_v60 = vadd.f32 1.0, %v5437_v2 }
 0xba5   :  { %v5247_v28 = vmul.f32 %v5231_v30, %v11321_v21  ;;  %v5229_v45 = vadd.f32 0.18520832, %v5213_v53  ;;  %v5232_v48 = vadd.f32 0.18520832, %v5216_v49  ;;  %v5214_v26 = vmul.f32 %v5198_v5, %v11392_v44 }
 0xba6   :  { %v5530_v31 = vmul.f32 %v5514_v0, %v5066_v50  ;;  %v5424_v7 = vadd.f32 0.49746925, %v5408_v42  ;;  %v5390_v58 = vadd.f32 0.11098505, %v5374_v11  ;;  %7031 = vrcp.f32 %v5453_v60 }
 0xba7   :  { %v5263_v25 = vadd.f32 1.1283791, %v5247_v28  ;;  %v5245_v55 = vmul.f32 %v5229_v45, %v11333_v9  ;;  %v5248_v3 = vmul.f32 %v5232_v48, %v11380_v1  ;;  %v5230_v62 = vadd.f32 0.18520832, %v5214_v26  ;;  %v12173_v26 = vld [vmem:[#allocation138_spill] sm:$0xff] }
 0xba8   :  { %v5440_v27 = vmul.f32 %v5424_v7, %v11380_v1  ;;  %v5406_v20 = vmul.f32 %v5390_v58, %v11392_v44  ;;  %v5557_v14 = vpack.c.bf16 %v5530_v31, %v5529_v63  ;;  %v5071_v34 = vmul.f32 0.5, %v11290_v57  ;;  %v12171_v7 = vld [vmem:[#allocation131_spill] sm:$0xff] }
 0xba9   :  { %v5471_v24 = vmul.f32 %v11309_v36, %v5263_v25  ;;  %v5261_v17 = vadd.f32 1.1283791, %v5245_v55  ;;  %v5264_v43 = vadd.f32 1.1283791, %v5248_v3  ;;  %v5246_v41 = vmul.f32 %v5230_v62, %v11392_v44  ;;  %v12174_v25 = vld [vmem:[#allocation135_spill] sm:$0xff] }
 0xbaa   :  { %v5456_v61 = vadd.f32 1.0, %v5440_v27  ;;  %v5422_v29 = vadd.f32 0.49746925, %v5406_v20  ;;  %6351 = vmatprep.mubr.bf16.mxu1 %v5557_v14  ;;  %v5072_v40 = vmul.f32 0.5, %v11348_v15  ;;  %v5836_v15 = vld [vmem:[%s11533_s15] ss:$0 sm:$0xff] }
 0xbab   :  { %6352 = vmatmul.mubr.bf16.gmra.mrb[80].mxu1 %v5558_v51  ;;  %v5469_v19 = vmul.f32 %v11325_v37, %v5261_v17  ;;  %v5472_v52 = vmul.f32 %v11372_v38, %v5264_v43  ;;  %v5262_v13 = vadd.f32 1.1283791, %v5246_v41  ;;  %v5069_v37 = vmul.f32 0.5, %v11305_v12  ;;  %v12172_v14 = vld [vmem:[#allocation134_spill] sm:$0xff]  ;;  %v12175_v62 = vld [vmem:[#allocation127_spill] sm:$0xff]  ;;  %v12176_v17 = vld [vmem:[#allocation132_spill] sm:$0xff] }
 0xbac   :  { %7033 = vrcp.f32 %v5456_v61  ;;  %v5438_v59 = vmul.f32 %v5422_v29, %v11392_v44  ;;  %v5070_v38 = vmul.f32 0.5, %v11364_v39 }
 0xbad   :  { %v7030_v21 = vpop.eup %7029  ;;  %v5470_v8 = vmul.f32 %v11383_v35, %v5262_v13 }
 0xbae   :  { %v5454_v33 = vadd.f32 1.0, %v5438_v59  ;;  %v5503_v16 = vmul.f32 %v7030_v21, %v5471_v24 }
 0xbb0   :  { %7035 = vrcp.f32 %v5454_v33  ;;  %v7032_v51 = vpop.eup %7031  ;;  %v5519_v18 = vadd.f32 1.0, %v5503_v16 }
 0xbb1   :  { %v5501_v1 = vmul.f32 %v7032_v51, %v5469_v19  ;;  %v12177_v51 = vld [vmem:[#allocation130_spill] sm:$0xff] }
 0xbb2   :  { %v5535_v44 = vmul.f32 %v5519_v18, %v5071_v34  ;;  %v12178_v18 = vld [vmem:[#allocation120_spill] sm:$0xff]  ;;  %v12179_v34 = vld [vmem:[#allocation115_spill] sm:$0xff] }
 0xbb3   :  { %v5517_v2 = vadd.f32 1.0, %v5501_v1 }
 0xbb5   :  { %v5533_v30 = vmul.f32 %v5517_v2, %v5069_v37 }
 0xbb6   :  { %v7034_v9 = vpop.eup %7033 }
 0xbb7   :  { %v5504_v54 = vmul.f32 %v7034_v9, %v5472_v52 }
 0xbb9   :  { %v5520_v36 = vadd.f32 1.0, %v5504_v54 }
 0xbba   :  { %v7036_v22 = vpop.eup %7035 }
 0xbbb   :  { %v5536_v56 = vmul.f32 %v5520_v36, %v5072_v40  ;;  %v5502_v23 = vmul.f32 %v7036_v22, %v5470_v8  ;;  %v12180_v22 = vld [vmem:[#allocation117_spill] sm:$0xff] }
 0xbbd   :  { %v5518_v46 = vadd.f32 1.0, %v5502_v23  ;;  %v5560_v50 = vpack.c.bf16 %v5536_v56, %v5535_v44  ;;  %v12181_v23 = vld [vmem:[#allocation121_spill] sm:$0xff] }
 0xbbf   :  { %v5534_v0 = vmul.f32 %v5518_v46, %v5070_v38 }
 0xbc1   :  { %v5559_v53 = vpack.c.bf16 %v5534_v0, %v5533_v30 }
 0xbc3   :  { %6355 = vmatprep.mubr.bf16.mxu1 %v5559_v53 }
 0xbc4   :  { %6356 = vmatmul.mubr.bf16.gmra.mrb[84].mxu1 %v5560_v50 }
 0xc5d   :  { %v6345_v57 = vpop.f32.mrb[72].mxu1 }
 0xc5e   :  { %v5668_v35 = vadd.f32 %v6345_v57, %v12167_v6  ;;  %v5603_v42 = vpop.f32.mrb[73].mxu1 }
 0xc5f   :  { %v5666_v11 = vadd.f32 %v5603_v42, %v10570_v4  ;;  %v6346_v12 = vpop.f32.mrb[74].mxu1 }
 0xc60   :  { %v5691_v63 = vadd.f32 %v5836_v15, %v5668_v35  ;;  %v5669_v39 = vadd.f32 %v6346_v12, %v12166_v32  ;;  %v5606_v49 = vpop.f32.mrb[75].mxu1 }
 0xc61   :  { %v5689_v5 = vadd.f32 %v5836_v15, %v5666_v11  ;;  %v5667_v31 = vadd.f32 %v5606_v49, %v10574_v47 }
 0xc62   :  { %5707 = vst.msk [vmem:[%s11534_s16 + $0x10] sm:$0xff] %vm961_vm3, %v5691_v63  ;;  %v5692_v60 = vadd.f32 %v5836_v15, %v5669_v39 }
 0xc63   :  { %5705 = vst.msk [vmem:[%s11534_s16] sm:$0xff] %vm961_vm3, %v5689_v5  ;;  %v5690_v4 = vadd.f32 %v5836_v15, %v5667_v31 }
 0xc64   :  { %5708 = vst.msk [vmem:[%s11534_s16 + $0x18] sm:$0xff] %vm961_vm3, %v5692_v60 }
 0xc65   :  { %5706 = vst.msk [vmem:[%s11534_s16 + $0x8] sm:$0xff] %vm961_vm3, %v5690_v4 }
 0xc67   :  { %v6349_v47 = vpop.f32.mrb[76].mxu1 }
 0xc68   :  { %v5672_v32 = vadd.f32 %v6349_v47, %v10505_v10  ;;  %v5619_v6 = vpop.f32.mrb[77].mxu1 }
 0xc69   :  { %v5670_v58 = vadd.f32 %v5619_v6, %v12171_v7  ;;  %v6350_v27 = vpop.f32.mrb[78].mxu1 }
 0xc6a   :  { %v5695_v20 = vadd.f32 %v5836_v15, %v5672_v32  ;;  %v5673_v28 = vadd.f32 %v6350_v27, %v12172_v14  ;;  %v5622_v45 = vpop.f32.mrb[79].mxu1 }
 0xc6b   :  { %v5693_v48 = vadd.f32 %v5836_v15, %v5670_v58  ;;  %v5671_v61 = vadd.f32 %v5622_v45, %v12173_v26 }
 0xc6c   :  { %5711 = vst.msk [vmem:[%s11534_s16 + $0x30] sm:$0xff] %vm961_vm3, %v5695_v20  ;;  %v5696_v29 = vadd.f32 %v5836_v15, %v5673_v28 }
 0xc6d   :  { %5709 = vst.msk [vmem:[%s11534_s16 + $0x20] sm:$0xff] %vm961_vm3, %v5693_v48  ;;  %v5694_v10 = vadd.f32 %v5836_v15, %v5671_v61 }
 0xc6e   :  { %5712 = vst.msk [vmem:[%s11534_s16 + $0x38] sm:$0xff] %vm961_vm3, %v5696_v29 }
 0xc6f   :  { %5710 = vst.msk [vmem:[%s11534_s16 + $0x28] sm:$0xff] %vm961_vm3, %v5694_v10 }
 0xc7e   :  { %v6353_v59 = vpop.f32.mrb[80].mxu1 }
 0xc7f   :  { %v5676_v55 = vadd.f32 %v6353_v59, %v12174_v25  ;;  %v5635_v3 = vpop.f32.mrb[81].mxu1 }
 0xc80   :  { %v5674_v33 = vadd.f32 %v5635_v3, %v12175_v62  ;;  %v6354_v21 = vpop.f32.mrb[82].mxu1 }
 0xc81   :  { %v5699_v24 = vadd.f32 %v5836_v15, %v5676_v55  ;;  %v5677_v43 = vadd.f32 %v6354_v21, %v12176_v17  ;;  %v5638_v41 = vpop.f32.mrb[83].mxu1 }
 0xc82   :  { %v5697_v16 = vadd.f32 %v5836_v15, %v5674_v33  ;;  %v5675_v19 = vadd.f32 %v5638_v41, %v12177_v51 }
 0xc83   :  { %5715 = vst.msk [vmem:[%s11534_s16 + $0x50] sm:$0xff] %vm961_vm3, %v5699_v24  ;;  %v5700_v52 = vadd.f32 %v5836_v15, %v5677_v43 }
 0xc84   :  { %5713 = vst.msk [vmem:[%s11534_s16 + $0x40] sm:$0xff] %vm961_vm3, %v5697_v16  ;;  %v5698_v13 = vadd.f32 %v5836_v15, %v5675_v19 }
 0xc85   :  { %5716 = vst.msk [vmem:[%s11534_s16 + $0x58] sm:$0xff] %vm961_vm3, %v5700_v52 }
 0xc86   :  { %5714 = vst.msk [vmem:[%s11534_s16 + $0x48] sm:$0xff] %vm961_vm3, %v5698_v13 }
 0xc97   :  { %v6357_v9 = vpop.f32.mrb[84].mxu1 }
 0xc98   :  { %v5680_v1 = vadd.f32 %v6357_v9, %v12178_v18  ;;  %v5651_v54 = vpop.f32.mrb[85].mxu1 }
 0xc99   :  { %v5678_v40 = vadd.f32 %v5651_v54, %v12179_v34  ;;  %v6358_v36 = vpop.f32.mrb[86].mxu1 }
 0xc9a   :  { %v5703_v8 = vadd.f32 %v5836_v15, %v5680_v1  ;;  %v5681_v44 = vadd.f32 %v6358_v36, %v12180_v22  ;;  %v5654_v2 = vpop.f32.mrb[87].mxu1 }
 0xc9b   :  { %v5701_v56 = vadd.f32 %v5836_v15, %v5678_v40  ;;  %v5679_v37 = vadd.f32 %v5654_v2, %v12181_v23 }
 0xc9c   :  { %5719 = vst.msk [vmem:[%s11534_s16 + $0x70] sm:$0xff] %vm961_vm3, %v5703_v8  ;;  %v5704_v38 = vadd.f32 %v5836_v15, %v5681_v44 }
 0xc9d   :  { %5717 = vst.msk [vmem:[%s11534_s16 + $0x60] sm:$0xff] %vm961_vm3, %v5701_v56  ;;  %v5702_v46 = vadd.f32 %v5836_v15, %v5679_v37 }
 0xc9e   :  { %5720 = vst.msk [vmem:[%s11534_s16 + $0x78] sm:$0xff] %vm961_vm3, %v5704_v38 }
 0xc9f   :  { %5718 = vst.msk [vmem:[%s11534_s16 + $0x68] sm:$0xff] %vm961_vm3, %v5702_v46 }

</bundles_post_ra>
